<compile_context>
chip_gen: v7x
topology: tpu7x:2x2x1
jax: 0.10.0
libtpu: 0.0.40
codegen_flags: <defaults>
</compile_context>

<pallas_src>
import functools

import jax
import jax.numpy as jnp
from jax.experimental import pallas as pl
from jax.experimental.pallas import tpu as pltpu


def _round_up(x, m):
    return (x + m - 1) // m * m


# ----------------------------------------------------------------------------
# Pallas kernels
# ----------------------------------------------------------------------------
def _mm_fused_kernel(a_ref, b_ref, scale_ref, bias_ref, o_ref, *, relu):
    # Single K step (full-extent K block) -> no accumulator scratch needed.
    acc = jnp.dot(a_ref[...], b_ref[...], preferred_element_type=jnp.float32)
    r = acc * scale_ref[...] + bias_ref[...]
    if relu:
        r = jnp.maximum(r, 0.0)
    o_ref[...] = r


def matmul_fused(a, b, scale, bias, relu):
    """(M, K) @ (K, N) with bf16 inputs, f32 accumulation, and a fused
    per-output-column affine (+ optional ReLU) epilogue.

    K and N use full (un-padded) extents; M is tiled at <=512 rows (padded to a
    multiple of 8 only).  Epilogue math stays in f32 (safe on v5e as well)."""
    M, K = a.shape
    K2, N = b.shape
    assert K == K2
    tm = min(512, _round_up(M, 8))
    Mp = _round_up(M, tm)
    a_bf = a.astype(jnp.bfloat16)
    if Mp != M:
        a_bf = jnp.pad(a_bf, ((0, Mp - M), (0, 0)))
    b_bf = b.astype(jnp.bfloat16)
    scale2 = scale.astype(jnp.float32).reshape(1, N)
    bias2 = bias.astype(jnp.float32).reshape(1, N)

    out = pl.pallas_call(
        functools.partial(_mm_fused_kernel, relu=relu),
        out_shape=jax.ShapeDtypeStruct((Mp, N), jnp.float32),
        grid_spec=pltpu.PrefetchScalarGridSpec(
            num_scalar_prefetch=0,
            grid=(Mp // tm,),
            in_specs=[pl.BlockSpec((tm, K), lambda i: (i, 0)),
                      pl.BlockSpec((K, N), lambda i: (0, 0)),
                      pl.BlockSpec((1, N), lambda i: (0, 0)),
                      pl.BlockSpec((1, N), lambda i: (0, 0))],
            out_specs=pl.BlockSpec((tm, N), lambda i: (i, 0))),
        compiler_params=pltpu.CompilerParams(
            dimension_semantics=("parallel",)),
    )(a_bf, b_bf, scale2, bias2)
    return out[:M] if Mp != M else out


def _combine_kernel(pd_ref, ld_ref, lc_ref, c_ref, out_ref):
    # softmax over the 2 "channels" (lidar_to_conf, conf), then weighted sum.
    lc = lc_ref[...]
    c = c_ref[...]
    m = jnp.maximum(lc, c)
    e_lc = jnp.exp(lc - m)
    e_c = jnp.exp(c - m)
    inv = pl.reciprocal(e_lc + e_c, approx=True)
    out_ref[...] = (e_c * inv) * pd_ref[...] + (e_lc * inv) * ld_ref[...]


def combine_pallas(precise_depth, lidar_to_depth, lidar_to_conf, conf):
    """All inputs (N, H, W, 1) NHWC -> fused output (N, H, W, 1).

    Flattened to a lane-dense (rows, 128) layout so stores are full-width."""
    shape = precise_depth.shape
    n = precise_depth.size
    lanes = 128
    rows = _round_up(-(-n // lanes), 8)
    block_rows = rows if rows <= 1024 else 512
    rows = _round_up(rows, block_rows)
    total = rows * lanes

    def flat(t):
        return jnp.pad(t.reshape(-1).astype(jnp.float32),
                       (0, total - n)).reshape(rows, lanes)

    out = pl.pallas_call(
        _combine_kernel,
        out_shape=jax.ShapeDtypeStruct((rows, lanes), jnp.float32),
        grid_spec=pltpu.PrefetchScalarGridSpec(
            num_scalar_prefetch=0,
            grid=(rows // block_rows,),
            in_specs=[pl.BlockSpec((block_rows, lanes), lambda i: (i, 0))
                      for _ in range(4)],
            out_specs=pl.BlockSpec((block_rows, lanes), lambda i: (i, 0))),
        compiler_params=pltpu.CompilerParams(
            dimension_semantics=("parallel",)),
    )(flat(precise_depth), flat(lidar_to_depth),
      flat(lidar_to_conf), flat(conf))
    return out.reshape(-1)[:n].reshape(shape)


# ----------------------------------------------------------------------------
# Conv / ConvTranspose / pooling built on the fused Pallas matmul
# ----------------------------------------------------------------------------
def conv2d(x, w, stride=(1, 1), padding=(0, 0), dilation=(1, 1),
           scale=None, bias=None, relu=False):
    """x: (N,H,W,Cin) NHWC, w: (O,I,KH,KW) torch-OIHW.

    `scale`/`bias` are per-output-channel affine terms (conv bias + eval-mode
    BN folded by the caller); they and an optional ReLU are fused into the
    Pallas matmul epilogue."""
    N, H, W, Cin = x.shape
    O, I, KH, KW = w.shape
    sh, sw = stride
    ph, pw = padding
    dh, dw = dilation
    OH = (H + 2 * ph - dh * (KH - 1) - 1) // sh + 1
    OW = (W + 2 * pw - dw * (KW - 1) - 1) // sw + 1
    # TODO(synk): im2col still materializes KH*KW shifted copies (in bf16); a
    # direct halo-tiled conv kernel would cut that HBM traffic further.
    xp = jnp.pad(x.astype(jnp.bfloat16), ((0, 0), (ph, ph), (pw, pw), (0, 0)))
    patches = []
    for i in range(KH):
        for j in range(KW):
            patches.append(
                xp[:, i * dh: i * dh + (OH - 1) * sh + 1: sh,
                      j * dw: j * dw + (OW - 1) * sw + 1: sw, :])
    pat = jnp.stack(patches, axis=3).reshape(N * OH * OW, KH * KW * Cin)
    wm = jnp.transpose(w, (2, 3, 1, 0)).reshape(KH * KW * I, O)
    if scale is None:
        scale = jnp.ones((O,), jnp.float32)
    if bias is None:
        bias = jnp.zeros((O,), jnp.float32)
    out = matmul_fused(pat, wm, scale, bias, relu)
    return out.reshape(N, OH, OW, O)


def conv_transpose2d(x, w, stride=2, padding=1, output_padding=1,
                     scale=None, bias=None, relu=False):
    """x: NHWC, w: torch ConvTranspose2d layout (I, O, KH, KW).

    Sub-pixel decomposition: the stride*stride output phases are computed as
    small dense convolutions over the *original* input (no zero-insertion), so
    no FLOPs or bytes are spent on the zero taps."""
    N, H, W, Cin = x.shape
    I, O, KH, KW = w.shape
    s, p = stride, padding
    OH = (H - 1) * s - 2 * p + KH + output_padding
    OW = (W - 1) * s - 2 * p + KW + output_padding
    assert OH == s * H and OW == s * W, "unsupported transposed-conv geometry"
    if scale is None:
        scale = jnp.ones((O,), jnp.float32)
    if bias is None:
        bias = jnp.zeros((O,), jnp.float32)
    x_bf = x.astype(jnp.bfloat16)

    def taps(kk, phase):
        # out[s*t + phase] += x[t + off] * w[k]  for every k with off integer.
        res = []
        for k in range(kk):
            num = phase + p - k
            if num % s == 0:
                res.append((k, num // s))
        return res

    row_phases = []
    for di in range(s):
        th = taps(KH, di)
        col_phases = []
        for dj in range(s):
            tw = taps(KW, dj)
            offs_h = [o for _, o in th]
            offs_w = [o for _, o in tw]
            pt = max(0, -min(offs_h))
            pb = max(0, max(offs_h))
            plft = max(0, -min(offs_w))
            pr = max(0, max(offs_w))
            xp = jnp.pad(x_bf, ((0, 0), (pt, pb), (plft, pr), (0, 0)))
            patches, wtaps = [], []
            for kh, oh in th:
                for kw, ow in tw:
                    patches.append(xp[:, pt + oh: pt + oh + H,
                                        plft + ow: plft + ow + W, :])
                    wtaps.append(w[:, :, kh, kw])               # (I, O)
            pat = jnp.stack(patches, axis=3).reshape(N * H * W,
                                                     len(patches) * Cin)
            wm = jnp.stack(wtaps, axis=0).reshape(len(wtaps) * I, O)
            sub = matmul_fused(pat, wm, scale, bias, relu)
            col_phases.append(sub.reshape(N, H, W, O))
        row_phases.append(col_phases)
    # Interleave: out[:, s*t+di, s*u+dj, :] = phases[di][dj][:, t, u, :]
    out = jnp.stack([jnp.stack(c, axis=3) for c in row_phases], axis=2)
    return out.reshape(N, OH, OW, O)


def maxpool2(x):
    N, H, W, C = x.shape
    return x.reshape(N, H // 2, 2, W // 2, 2, C).max(axis=(2, 4))


def relu(x):
    return jnp.maximum(x, 0.0)


def _bn_affine(bn, eps, conv_bias=None):
    """Fold eval-mode BN (and an optional preceding conv bias) into an affine
    (scale, bias) applied per output channel inside the matmul epilogue."""
    gamma, beta, mean, var = bn
    inv = gamma * jax.lax.rsqrt(var + eps)
    bias = beta - mean * inv
    if conv_bias is not None:
        bias = bias + conv_bias * inv
    return inv, bias


# ----------------------------------------------------------------------------
# Deterministic parameter initialization (mirrors the PyTorch module tree)
# ----------------------------------------------------------------------------
class ParamGen:
    def __init__(self, seed=0):
        self.key = jax.random.PRNGKey(seed)

    def _next(self):
        self.key, sub = jax.random.split(self.key)
        return sub

    def conv(self, o, i, kh, kw, bias=True):
        scale = (i * kh * kw) ** -0.5
        w = jax.random.normal(self._next(), (o, i, kh, kw), jnp.float32) * scale
        b = (jax.random.normal(self._next(), (o,), jnp.float32) * 0.01
             if bias else None)
        return {'w': w, 'b': b}

    def convT(self, i, o, kh, kw, bias=True):
        scale = (i * kh * kw) ** -0.5
        w = jax.random.normal(self._next(), (i, o, kh, kw), jnp.float32) * scale
        b = (jax.random.normal(self._next(), (o,), jnp.float32) * 0.01
             if bias else None)
        return {'w': w, 'b': b}

    def bn(self, c):
        return (jnp.ones((c,), jnp.float32), jnp.zeros((c,), jnp.float32),
                jnp.zeros((c,), jnp.float32), jnp.ones((c,), jnp.float32))


def init_non_bottleneck(pg, chann):
    return {'conv3x1_1': pg.conv(chann, chann, 3, 1),
            'conv1x3_1': pg.conv(chann, chann, 1, 3),
            'bn1': pg.bn(chann),
            'conv3x1_2': pg.conv(chann, chann, 3, 1),
            'conv1x3_2': pg.conv(chann, chann, 1, 3),
            'bn2': pg.bn(chann)}


def init_downsampler(pg, nin, nout):
    return {'conv': pg.conv(nout - nin, nin, 3, 3), 'bn': pg.bn(nout)}


def init_upsampler(pg, nin, nout):
    return {'convT': pg.convT(nin, nout, 3, 3), 'bn': pg.bn(nout)}


# Static layer layout of the encoder (kept out of the params pytree so the
# whole forward can be a single jit with array-only parameters).
_NB64_DILATIONS = (1,) * 5
_NB128_DILATIONS = (2, 4, 8, 16) * 2


def init_encoder(pg, in_channels):
    chans = 32 if in_channels > 16 else 16
    layers = [init_downsampler(pg, chans, 64)]
    for _ in _NB64_DILATIONS:
        layers.append(init_non_bottleneck(pg, 64))
    layers.append(init_downsampler(pg, 64, 128))
    for _ in _NB128_DILATIONS:
        layers.append(init_non_bottleneck(pg, 128))
    # Encoder.output_conv exists but is unused when predict=False.
    return {'initial': init_downsampler(pg, in_channels, chans),
            'layers': layers}


def init_decoder(pg, num_classes):
    return {'layer1': init_upsampler(pg, 128, 64),
            'layer2': init_non_bottleneck(pg, 64),
            'layer3': init_non_bottleneck(pg, 64),
            'layer4': init_upsampler(pg, 64, 32),
            'layer5': init_non_bottleneck(pg, 32),
            'layer6': init_non_bottleneck(pg, 32),
            'output_conv': pg.convT(32, num_classes, 2, 2)}


def init_hourglass1(pg, c):
    return {'conv1': pg.conv(c, c, 3, 3, bias=False),
            'conv2': pg.conv(c, c, 3, 3, bias=False),
            'conv3': pg.conv(2 * c, 2 * c, 3, 3, bias=False),
            'conv4': pg.conv(2 * c, 2 * c, 3, 3, bias=False),
            'conv5': {'convT': pg.convT(4 * c, 2 * c, 3, 3, bias=False),
                      'bn': pg.bn(2 * c)},
            'conv6': {'convT': pg.convT(2 * c, c, 3, 3, bias=False),
                      'bn': pg.bn(c)}}


def init_hourglass2(pg, c):
    return {'conv1': {'conv': pg.conv(2 * c, c, 3, 3, bias=False),
                      'bn': pg.bn(2 * c)},
            'conv2': pg.conv(2 * c, 2 * c, 3, 3, bias=False),
            'conv3': {'conv': pg.conv(2 * c, 2 * c, 3, 3, bias=False),
                      'bn': pg.bn(2 * c)},
            'conv4': pg.conv(4 * c, 2 * c, 3, 3, bias=False),
            'conv5': {'convT': pg.convT(4 * c, 2 * c, 3, 3, bias=False),
                      'bn': pg.bn(2 * c)},
            'conv6': {'convT': pg.convT(2 * c, c, 3, 3, bias=False),
                      'bn': pg.bn(c)}}


def init_uncertainty_net(seed, in_channels):
    pg = ParamGen(seed)
    out_channels = 3  # forced in the PyTorch __init__
    params = {
        'in_channels': in_channels,
        'depthnet': {'encoder': init_encoder(pg, in_channels),
                     'decoder': init_decoder(pg, out_channels)},
        'convbnrelu': pg.conv(32, 2, 3, 3, bias=False),
        'hourglass1': init_hourglass1(pg, 32),
        'hourglass2': init_hourglass2(pg, 32),
        'fuse': {'conv1': pg.conv(32, 32, 3, 3, bias=False),
                 'conv2': pg.conv(2, 32, 3, 3, bias=True)},
    }
    return params


# ----------------------------------------------------------------------------
# Forward passes (NHWC)
# ----------------------------------------------------------------------------
BN_EPS_ERF = 1e-3   # encoder/decoder BatchNorm2d(eps=0.001)
BN_EPS_HG = 1e-5    # hourglass BatchNorm2d default eps


def non_bottleneck_fwd(p, x, dilated):
    out = conv2d(x, p['conv3x1_1']['w'], (1, 1), (1, 0),
                 bias=p['conv3x1_1']['b'], relu=True)
    s1, b1 = _bn_affine(p['bn1'], BN_EPS_ERF, p['conv1x3_1']['b'])
    out = conv2d(out, p['conv1x3_1']['w'], (1, 1), (0, 1),
                 scale=s1, bias=b1, relu=True)
    out = conv2d(out, p['conv3x1_2']['w'], (1, 1), (dilated, 0), (dilated, 1),
                 bias=p['conv3x1_2']['b'], relu=True)
    s2, b2 = _bn_affine(p['bn2'], BN_EPS_ERF, p['conv1x3_2']['b'])
    out = conv2d(out, p['conv1x3_2']['w'], (1, 1), (0, dilated), (1, dilated),
                 scale=s2, bias=b2, relu=False)
    # Dropout2d: identity in eval mode.
    return relu(out + x)


def downsampler_fwd(p, x):
    gamma, beta, mean, var = p['bn']
    inv = gamma * jax.lax.rsqrt(var + BN_EPS_ERF)
    bn_b = beta - mean * inv
    nconv = p['conv']['w'].shape[0]               # = nout - nin
    # conv branch: BN channels [0:nconv] + conv bias + ReLU fused in epilogue.
    c = conv2d(x, p['conv']['w'], (2, 2), (1, 1),
               scale=inv[:nconv],
               bias=bn_b[:nconv] + p['conv']['b'] * inv[:nconv],
               relu=True)
    # pool branch: BN channels [nconv:] + ReLU (per-channel, tiny).
    m = maxpool2(x)
    m = jnp.maximum(m * inv[nconv:] + bn_b[nconv:], 0.0)
    return jnp.concatenate([c, m], axis=-1)


def upsampler_fwd(p, x):
    s, b = _bn_affine(p['bn'], BN_EPS_ERF, p['convT']['b'])
    return conv_transpose2d(x, p['convT']['w'], 2, 1, 1,
                            scale=s, bias=b, relu=True)


def encoder_fwd(p, x):
    out = downsampler_fwd(p['initial'], x)
    layers = p['layers']
    out = downsampler_fwd(layers[0], out)
    idx = 1
    for d in _NB64_DILATIONS:
        out = non_bottleneck_fwd(layers[idx], out, d)
        idx += 1
    out = downsampler_fwd(layers[idx], out)
    idx += 1
    for d in _NB128_DILATIONS:
        out = non_bottleneck_fwd(layers[idx], out, d)
        idx += 1
    return out


def decoder_fwd(p, x):
    out = upsampler_fwd(p['layer1'], x)
    out = non_bottleneck_fwd(p['layer2'], out, 1)
    out = non_bottleneck_fwd(p['layer3'], out, 1)
    em2 = out
    out = upsampler_fwd(p['layer4'], out)
    out = non_bottleneck_fwd(p['layer5'], out, 1)
    out = non_bottleneck_fwd(p['layer6'], out, 1)
    em1 = out
    out = conv_transpose2d(out, p['output_conv']['w'], 2, 0, 0,
                           bias=p['output_conv']['b'], relu=False)
    return out, em1, em2


def net_fwd(p, x):
    enc = encoder_fwd(p['encoder'], x)
    return decoder_fwd(p['decoder'], enc)


def hourglass1_fwd(p, x, em1, em2):
    x = conv2d(x, p['conv1']['w'], (2, 2), (1, 1), relu=True)
    x = conv2d(x, p['conv2']['w'], (1, 1), (1, 1), relu=True)
    x = jnp.concatenate([x, em1], axis=-1)
    xp_ = conv2d(x, p['conv3']['w'], (2, 2), (1, 1), relu=True)
    xp_ = conv2d(xp_, p['conv4']['w'], (1, 1), (1, 1), relu=True)
    xp_ = jnp.concatenate([xp_, em2], axis=-1)
    s5, b5 = _bn_affine(p['conv5']['bn'], BN_EPS_HG)
    out = conv_transpose2d(xp_, p['conv5']['convT']['w'], 2, 1, 1,
                           scale=s5, bias=b5, relu=True)
    s6, b6 = _bn_affine(p['conv6']['bn'], BN_EPS_HG)
    out = conv_transpose2d(out, p['conv6']['convT']['w'], 2, 1, 1,
                           scale=s6, bias=b6, relu=False)
    return out, x, xp_


def hourglass2_fwd(p, x, em1, em2):
    s1, b1 = _bn_affine(p['conv1']['bn'], BN_EPS_HG)
    x = conv2d(x, p['conv1']['conv']['w'], (2, 2), (1, 1),
               scale=s1, bias=b1, relu=True)
    x = conv2d(x, p['conv2']['w'], (1, 1), (1, 1), relu=False)
    x = relu(x + em1)
    s3, b3 = _bn_affine(p['conv3']['bn'], BN_EPS_HG)
    xp_ = conv2d(x, p['conv3']['conv']['w'], (2, 2), (1, 1),
                 scale=s3, bias=b3, relu=True)
    xp_ = conv2d(xp_, p['conv4']['w'], (1, 1), (1, 1), relu=False)
    xp_ = relu(xp_ + em2)
    s5, b5 = _bn_affine(p['conv5']['bn'], BN_EPS_HG)
    out = conv_transpose2d(xp_, p['conv5']['convT']['w'], 2, 1, 1,
                           scale=s5, bias=b5, relu=True)
    s6, b6 = _bn_affine(p['conv6']['bn'], BN_EPS_HG)
    out = conv_transpose2d(out, p['conv6']['convT']['w'], 2, 1, 1,
                           scale=s6, bias=b6, relu=False)
    return out


@functools.partial(jax.jit, static_argnums=0)
def _forward_jit(in_channels, params, x_nchw):
    x = jnp.transpose(x_nchw.astype(jnp.float32), (0, 2, 3, 1))  # -> NHWC
    lidar_in = x[..., 0:1] if in_channels > 1 else x

    emb0, emb1, emb2 = net_fwd(params['depthnet'], x)
    global_features = emb0[..., 0:1]
    precise_depth = emb0[..., 1:2]
    conf = emb0[..., 2:3]

    # combine == 'concat'
    inp2 = jnp.concatenate([lidar_in, global_features], axis=-1)
    out = conv2d(inp2, params['convbnrelu']['w'], (1, 1), (1, 1), relu=True)

    out1, emb3, emb4 = hourglass1_fwd(params['hourglass1'], out, emb1, emb2)
    out1 = out1 + out
    out2 = hourglass2_fwd(params['hourglass2'], out1, emb3, emb4)
    out2 = out2 + out

    f = conv2d(out2, params['fuse']['conv1']['w'], (1, 1), (1, 1), relu=True)
    f = conv2d(f, params['fuse']['conv2']['w'], (1, 1), (1, 1),
               bias=params['fuse']['conv2']['b'], relu=False)
    lidar_out = f
    lidar_to_depth = f[..., 0:1]
    lidar_to_conf = f[..., 1:2]

    out_final = combine_pallas(precise_depth, lidar_to_depth,
                               lidar_to_conf, conf)

    to_nchw = lambda t: jnp.transpose(t, (0, 3, 1, 2))
    return (to_nchw(out_final), to_nchw(lidar_out),
            to_nchw(precise_depth), to_nchw(global_features))


def uncertainty_net_forward(params, x_nchw):
    """Input NCHW (like PyTorch); returns NCHW outputs."""
    arrays = {k: v for k, v in params.items() if k != 'in_channels'}
    return _forward_jit(params['in_channels'], arrays, x_nchw)


# ----------------------------------------------------------------------------
if __name__ == "__main__":
    in_channels = 2          # channel 0 = lidar, channel 1 = "rgb"
    B, H, W = 2, 16, 16      # small shapes; H,W divisible by 8 (3 downsamples)

    params = init_uncertainty_net(seed=0, in_channels=in_channels)

    key = jax.random.PRNGKey(0)
    x = jax.random.normal(key, (B, in_channels, H, W), jnp.float32)

    outs = uncertainty_net_forward(params, x)
    jax.block_until_ready(outs)
    out, lidar_out, precise_depth, global_features = outs

    assert out.shape == (B, 1, H, W)
    assert lidar_out.shape == (B, 2, H, W)
    assert precise_depth.shape == (B, 1, H, W)
    assert global_features.shape == (B, 1, H, W)
    print("KERNEL_OK")
</pallas_src>

<mosaic_0001>
module attributes {stable_mosaic.version = 11 : i64} {
  func.func @_mm_fused_kernel(%arg0: i32, %arg1: memref<128x18xbf16, #tpu.memory_space<vmem>>, %arg2: memref<18x14xbf16, #tpu.memory_space<vmem>>, %arg3: memref<1x14xf32, #tpu.memory_space<vmem>>, %arg4: memref<1x14xf32, #tpu.memory_space<vmem>>, %arg5: memref<128x14xf32, #tpu.memory_space<vmem>>) attributes {dimension_semantics = [#tpu.dimension_semantics<parallel>], iteration_bounds = array<i64: 1>, scalar_prefetch = 0 : i64, scratch_operands = 0 : i64, tpu.core_type = #tpu.core_type<tc>, window_params = [{transform_indices = @transform_0, window_bounds = array<i64: 128, 18>}, {pipeline_mode = #tpu.pipeline_mode<synchronous>, transform_indices = @transform_1, window_bounds = array<i64: 18, 14>}, {pipeline_mode = #tpu.pipeline_mode<synchronous>, transform_indices = @transform_2, window_bounds = array<i64: 1, 14>}, {pipeline_mode = #tpu.pipeline_mode<synchronous>, transform_indices = @transform_3, window_bounds = array<i64: 1, 14>}, {transform_indices = @transform_4, window_bounds = array<i64: 128, 14>}]} {
    %c0 = arith.constant 0 : index
    %c0_0 = arith.constant 0 : index
    %0 = vector.load %arg1[%c0, %c0_0] : memref<128x18xbf16, #tpu.memory_space<vmem>>, vector<128x18xbf16>
    %c0_1 = arith.constant 0 : index
    %c0_2 = arith.constant 0 : index
    %1 = vector.load %arg2[%c0_1, %c0_2] : memref<18x14xbf16, #tpu.memory_space<vmem>>, vector<18x14xbf16>
    %cst = arith.constant dense<0.000000e+00> : vector<128x14xf32>
    %2 = tpu.matmul %0, %1, %cst {dimension_numbers = #tpu.dot_dimension_numbers<[1], [0], [0], [1], [0, 0, 1, 1], [], []>} : vector<128x18xbf16>, vector<18x14xbf16>, vector<128x14xf32> -> vector<128x14xf32>
    %c0_3 = arith.constant 0 : index
    %c0_4 = arith.constant 0 : index
    %3 = vector.load %arg3[%c0_3, %c0_4] : memref<1x14xf32, #tpu.memory_space<vmem>>, vector<1x14xf32>
    %4 = vector.broadcast %3 : vector<1x14xf32> to vector<128x14xf32>
    %5 = arith.mulf %2, %4 : vector<128x14xf32>
    %c0_5 = arith.constant 0 : index
    %c0_6 = arith.constant 0 : index
    %6 = vector.load %arg4[%c0_5, %c0_6] : memref<1x14xf32, #tpu.memory_space<vmem>>, vector<1x14xf32>
    %7 = vector.broadcast %6 : vector<1x14xf32> to vector<128x14xf32>
    %8 = arith.addf %5, %7 : vector<128x14xf32>
    %cst_7 = arith.constant 0.000000e+00 : f32
    %9 = vector.broadcast %cst_7 : f32 to vector<128x14xf32>
    %10 = arith.maximumf %8, %9 : vector<128x14xf32>
    %c0_8 = arith.constant 0 : index
    %c0_9 = arith.constant 0 : index
    %11 = vector.load %arg5[%c0_8, %c0_9] : memref<128x14xf32, #tpu.memory_space<vmem>>, vector<128x14xf32>
    tpu.vector_store %arg5[%c0_8, %c0_9], %10 {strides = array<i32>} : memref<128x14xf32, #tpu.memory_space<vmem>>, vector<128x14xf32>,
    return
  }
  func.func @transform_0(%arg0: i32) -> (i32, i32) {
    %c0_i32 = arith.constant 0 : i32
    %c0_i32_0 = arith.constant 0 : i32
    return %arg0, %c0_i32 : i32, i32
  }
  func.func @transform_1(%arg0: i32) -> (i32, i32) {
    %c0_i32 = arith.constant 0 : i32
    %c0_i32_0 = arith.constant 0 : i32
    %c0_i32_1 = arith.constant 0 : i32
    return %c0_i32, %c0_i32_0 : i32, i32
  }
  func.func @transform_2(%arg0: i32) -> (i32, i32) {
    %c0_i32 = arith.constant 0 : i32
    %c0_i32_0 = arith.constant 0 : i32
    %c0_i32_1 = arith.constant 0 : i32
    return %c0_i32, %c0_i32_0 : i32, i32
  }
  func.func @transform_3(%arg0: i32) -> (i32, i32) {
    %c0_i32 = arith.constant 0 : i32
    %c0_i32_0 = arith.constant 0 : i32
    %c0_i32_1 = arith.constant 0 : i32
    return %c0_i32, %c0_i32_0 : i32, i32
  }
  func.func @transform_4(%arg0: i32) -> (i32, i32) {
    %c0_i32 = arith.constant 0 : i32
    %c0_i32_0 = arith.constant 0 : i32
    return %arg0, %c0_i32 : i32, i32
  }
}

module attributes {stable_mosaic.version = 11 : i64} {
  func.func @_mm_fused_kernel(%arg0: i32, %arg1: memref<32x144xbf16, #tpu.memory_space<vmem>>, %arg2: memref<144x48xbf16, #tpu.memory_space<vmem>>, %arg3: memref<1x48xf32, #tpu.memory_space<vmem>>, %arg4: memref<1x48xf32, #tpu.memory_space<vmem>>, %arg5: memref<32x48xf32, #tpu.memory_space<vmem>>) attributes {dimension_semantics = [#tpu.dimension_semantics<parallel>], iteration_bounds = array<i64: 1>, scalar_prefetch = 0 : i64, scratch_operands = 0 : i64, tpu.core_type = #tpu.core_type<tc>, window_params = [{transform_indices = @transform_0, window_bounds = array<i64: 32, 144>}, {pipeline_mode = #tpu.pipeline_mode<synchronous>, transform_indices = @transform_1, window_bounds = array<i64: 144, 48>}, {pipeline_mode = #tpu.pipeline_mode<synchronous>, transform_indices = @transform_2, window_bounds = array<i64: 1, 48>}, {pipeline_mode = #tpu.pipeline_mode<synchronous>, transform_indices = @transform_3, window_bounds = array<i64: 1, 48>}, {transform_indices = @transform_4, window_bounds = array<i64: 32, 48>}]} {
    %c0 = arith.constant 0 : index
    %c0_0 = arith.constant 0 : index
    %0 = vector.load %arg1[%c0, %c0_0] : memref<32x144xbf16, #tpu.memory_space<vmem>>, vector<32x144xbf16>
    %c0_1 = arith.constant 0 : index
    %c0_2 = arith.constant 0 : index
    %1 = vector.load %arg2[%c0_1, %c0_2] : memref<144x48xbf16, #tpu.memory_space<vmem>>, vector<144x48xbf16>
    %cst = arith.constant dense<0.000000e+00> : vector<32x48xf32>
    %2 = tpu.matmul %0, %1, %cst {dimension_numbers = #tpu.dot_dimension_numbers<[1], [0], [0], [1], [0, 0, 1, 1], [], []>} : vector<32x144xbf16>, vector<144x48xbf16>, vector<32x48xf32> -> vector<32x48xf32>
    %c0_3 = arith.constant 0 : index
    %c0_4 = arith.constant 0 : index
    %3 = vector.load %arg3[%c0_3, %c0_4] : memref<1x48xf32, #tpu.memory_space<vmem>>, vector<1x48xf32>
    %4 = vector.broadcast %3 : vector<1x48xf32> to vector<32x48xf32>
    %5 = arith.mulf %2, %4 : vector<32x48xf32>
    %c0_5 = arith.constant 0 : index
    %c0_6 = arith.constant 0 : index
    %6 = vector.load %arg4[%c0_5, %c0_6] : memref<1x48xf32, #tpu.memory_space<vmem>>, vector<1x48xf32>
    %7 = vector.broadcast %6 : vector<1x48xf32> to vector<32x48xf32>
    %8 = arith.addf %5, %7 : vector<32x48xf32>
    %cst_7 = arith.constant 0.000000e+00 : f32
    %9 = vector.broadcast %cst_7 : f32 to vector<32x48xf32>
    %10 = arith.maximumf %8, %9 : vector<32x48xf32>
    %c0_8 = arith.constant 0 : index
    %c0_9 = arith.constant 0 : index
    %11 = vector.load %arg5[%c0_8, %c0_9] : memref<32x48xf32, #tpu.memory_space<vmem>>, vector<32x48xf32>
    tpu.vector_store %arg5[%c0_8, %c0_9], %10 {strides = array<i32>} : memref<32x48xf32, #tpu.memory_space<vmem>>, vector<32x48xf32>,
    return
  }
  func.func @transform_0(%arg0: i32) -> (i32, i32) {
    %c0_i32 = arith.constant 0 : i32
    %c0_i32_0 = arith.constant 0 : i32
    return %arg0, %c0_i32 : i32, i32
  }
  func.func @transform_1(%arg0: i32) -> (i32, i32) {
    %c0_i32 = arith.constant 0 : i32
    %c0_i32_0 = arith.constant 0 : i32
    %c0_i32_1 = arith.constant 0 : i32
    return %c0_i32, %c0_i32_0 : i32, i32
  }
  func.func @transform_2(%arg0: i32) -> (i32, i32) {
    %c0_i32 = arith.constant 0 : i32
    %c0_i32_0 = arith.constant 0 : i32
    %c0_i32_1 = arith.constant 0 : i32
    return %c0_i32, %c0_i32_0 : i32, i32
  }
  func.func @transform_3(%arg0: i32) -> (i32, i32) {
    %c0_i32 = arith.constant 0 : i32
    %c0_i32_0 = arith.constant 0 : i32
    %c0_i32_1 = arith.constant 0 : i32
    return %c0_i32, %c0_i32_0 : i32, i32
  }
  func.func @transform_4(%arg0: i32) -> (i32, i32) {
    %c0_i32 = arith.constant 0 : i32
    %c0_i32_0 = arith.constant 0 : i32
    return %arg0, %c0_i32 : i32, i32
  }
}

module attributes {stable_mosaic.version = 11 : i64} {
  func.func @_mm_fused_kernel(%arg0: i32, %arg1: memref<32x192xbf16, #tpu.memory_space<vmem>>, %arg2: memref<192x64xbf16, #tpu.memory_space<vmem>>, %arg3: memref<1x64xf32, #tpu.memory_space<vmem>>, %arg4: memref<1x64xf32, #tpu.memory_space<vmem>>, %arg5: memref<32x64xf32, #tpu.memory_space<vmem>>) attributes {dimension_semantics = [#tpu.dimension_semantics<parallel>], iteration_bounds = array<i64: 1>, scalar_prefetch = 0 : i64, scratch_operands = 0 : i64, tpu.core_type = #tpu.core_type<tc>, window_params = [{transform_indices = @transform_0, window_bounds = array<i64: 32, 192>}, {pipeline_mode = #tpu.pipeline_mode<synchronous>, transform_indices = @transform_1, window_bounds = array<i64: 192, 64>}, {pipeline_mode = #tpu.pipeline_mode<synchronous>, transform_indices = @transform_2, window_bounds = array<i64: 1, 64>}, {pipeline_mode = #tpu.pipeline_mode<synchronous>, transform_indices = @transform_3, window_bounds = array<i64: 1, 64>}, {transform_indices = @transform_4, window_bounds = array<i64: 32, 64>}]} {
    %c0 = arith.constant 0 : index
    %c0_0 = arith.constant 0 : index
    %0 = vector.load %arg1[%c0, %c0_0] : memref<32x192xbf16, #tpu.memory_space<vmem>>, vector<32x192xbf16>
    %c0_1 = arith.constant 0 : index
    %c0_2 = arith.constant 0 : index
    %1 = vector.load %arg2[%c0_1, %c0_2] : memref<192x64xbf16, #tpu.memory_space<vmem>>, vector<192x64xbf16>
    %cst = arith.constant dense<0.000000e+00> : vector<32x64xf32>
    %2 = tpu.matmul %0, %1, %cst {dimension_numbers = #tpu.dot_dimension_numbers<[1], [0], [0], [1], [0, 0, 1, 1], [], []>} : vector<32x192xbf16>, vector<192x64xbf16>, vector<32x64xf32> -> vector<32x64xf32>
    %c0_3 = arith.constant 0 : index
    %c0_4 = arith.constant 0 : index
    %3 = vector.load %arg3[%c0_3, %c0_4] : memref<1x64xf32, #tpu.memory_space<vmem>>, vector<1x64xf32>
    %4 = vector.broadcast %3 : vector<1x64xf32> to vector<32x64xf32>
    %5 = arith.mulf %2, %4 : vector<32x64xf32>
    %c0_5 = arith.constant 0 : index
    %c0_6 = arith.constant 0 : index
    %6 = vector.load %arg4[%c0_5, %c0_6] : memref<1x64xf32, #tpu.memory_space<vmem>>, vector<1x64xf32>
    %7 = vector.broadcast %6 : vector<1x64xf32> to vector<32x64xf32>
    %8 = arith.addf %5, %7 : vector<32x64xf32>
    %cst_7 = arith.constant 0.000000e+00 : f32
    %9 = vector.broadcast %cst_7 : f32 to vector<32x64xf32>
    %10 = arith.maximumf %8, %9 : vector<32x64xf32>
    %c0_8 = arith.constant 0 : index
    %c0_9 = arith.constant 0 : index
    %11 = vector.load %arg5[%c0_8, %c0_9] : memref<32x64xf32, #tpu.memory_space<vmem>>, vector<32x64xf32>
    tpu.vector_store %arg5[%c0_8, %c0_9], %10 {strides = array<i32>} : memref<32x64xf32, #tpu.memory_space<vmem>>, vector<32x64xf32>,
    return
  }
  func.func @transform_0(%arg0: i32) -> (i32, i32) {
    %c0_i32 = arith.constant 0 : i32
    %c0_i32_0 = arith.constant 0 : i32
    return %arg0, %c0_i32 : i32, i32
  }
  func.func @transform_1(%arg0: i32) -> (i32, i32) {
    %c0_i32 = arith.constant 0 : i32
    %c0_i32_0 = arith.constant 0 : i32
    %c0_i32_1 = arith.constant 0 : i32
    return %c0_i32, %c0_i32_0 : i32, i32
  }
  func.func @transform_2(%arg0: i32) -> (i32, i32) {
    %c0_i32 = arith.constant 0 : i32
    %c0_i32_0 = arith.constant 0 : i32
    %c0_i32_1 = arith.constant 0 : i32
    return %c0_i32, %c0_i32_0 : i32, i32
  }
  func.func @transform_3(%arg0: i32) -> (i32, i32) {
    %c0_i32 = arith.constant 0 : i32
    %c0_i32_0 = arith.constant 0 : i32
    %c0_i32_1 = arith.constant 0 : i32
    return %c0_i32, %c0_i32_0 : i32, i32
  }
  func.func @transform_4(%arg0: i32) -> (i32, i32) {
    %c0_i32 = arith.constant 0 : i32
    %c0_i32_0 = arith.constant 0 : i32
    return %arg0, %c0_i32 : i32, i32
  }
}

module attributes {stable_mosaic.version = 11 : i64} {
  func.func @_mm_fused_kernel(%arg0: i32, %arg1: memref<32x192xbf16, #tpu.memory_space<vmem>>, %arg2: memref<192x64xbf16, #tpu.memory_space<vmem>>, %arg3: memref<1x64xf32, #tpu.memory_space<vmem>>, %arg4: memref<1x64xf32, #tpu.memory_space<vmem>>, %arg5: memref<32x64xf32, #tpu.memory_space<vmem>>) attributes {dimension_semantics = [#tpu.dimension_semantics<parallel>], iteration_bounds = array<i64: 1>, scalar_prefetch = 0 : i64, scratch_operands = 0 : i64, tpu.core_type = #tpu.core_type<tc>, window_params = [{transform_indices = @transform_0, window_bounds = array<i64: 32, 192>}, {pipeline_mode = #tpu.pipeline_mode<synchronous>, transform_indices = @transform_1, window_bounds = array<i64: 192, 64>}, {pipeline_mode = #tpu.pipeline_mode<synchronous>, transform_indices = @transform_2, window_bounds = array<i64: 1, 64>}, {pipeline_mode = #tpu.pipeline_mode<synchronous>, transform_indices = @transform_3, window_bounds = array<i64: 1, 64>}, {transform_indices = @transform_4, window_bounds = array<i64: 32, 64>}]} {
    %c0 = arith.constant 0 : index
    %c0_0 = arith.constant 0 : index
    %0 = vector.load %arg1[%c0, %c0_0] : memref<32x192xbf16, #tpu.memory_space<vmem>>, vector<32x192xbf16>
    %c0_1 = arith.constant 0 : index
    %c0_2 = arith.constant 0 : index
    %1 = vector.load %arg2[%c0_1, %c0_2] : memref<192x64xbf16, #tpu.memory_space<vmem>>, vector<192x64xbf16>
    %cst = arith.constant dense<0.000000e+00> : vector<32x64xf32>
    %2 = tpu.matmul %0, %1, %cst {dimension_numbers = #tpu.dot_dimension_numbers<[1], [0], [0], [1], [0, 0, 1, 1], [], []>} : vector<32x192xbf16>, vector<192x64xbf16>, vector<32x64xf32> -> vector<32x64xf32>
    %c0_3 = arith.constant 0 : index
    %c0_4 = arith.constant 0 : index
    %3 = vector.load %arg3[%c0_3, %c0_4] : memref<1x64xf32, #tpu.memory_space<vmem>>, vector<1x64xf32>
    %4 = vector.broadcast %3 : vector<1x64xf32> to vector<32x64xf32>
    %5 = arith.mulf %2, %4 : vector<32x64xf32>
    %c0_5 = arith.constant 0 : index
    %c0_6 = arith.constant 0 : index
    %6 = vector.load %arg4[%c0_5, %c0_6] : memref<1x64xf32, #tpu.memory_space<vmem>>, vector<1x64xf32>
    %7 = vector.broadcast %6 : vector<1x64xf32> to vector<32x64xf32>
    %8 = arith.addf %5, %7 : vector<32x64xf32>
    %c0_7 = arith.constant 0 : index
    %c0_8 = arith.constant 0 : index
    %9 = vector.load %arg5[%c0_7, %c0_8] : memref<32x64xf32, #tpu.memory_space<vmem>>, vector<32x64xf32>
    tpu.vector_store %arg5[%c0_7, %c0_8], %8 {strides = array<i32>} : memref<32x64xf32, #tpu.memory_space<vmem>>, vector<32x64xf32>,
    return
  }
  func.func @transform_0(%arg0: i32) -> (i32, i32) {
    %c0_i32 = arith.constant 0 : i32
    %c0_i32_0 = arith.constant 0 : i32
    return %arg0, %c0_i32 : i32, i32
  }
  func.func @transform_1(%arg0: i32) -> (i32, i32) {
    %c0_i32 = arith.constant 0 : i32
    %c0_i32_0 = arith.constant 0 : i32
    %c0_i32_1 = arith.constant 0 : i32
    return %c0_i32, %c0_i32_0 : i32, i32
  }
  func.func @transform_2(%arg0: i32) -> (i32, i32) {
    %c0_i32 = arith.constant 0 : i32
    %c0_i32_0 = arith.constant 0 : i32
    %c0_i32_1 = arith.constant 0 : i32
    return %c0_i32, %c0_i32_0 : i32, i32
  }
  func.func @transform_3(%arg0: i32) -> (i32, i32) {
    %c0_i32 = arith.constant 0 : i32
    %c0_i32_0 = arith.constant 0 : i32
    %c0_i32_1 = arith.constant 0 : i32
    return %c0_i32, %c0_i32_0 : i32, i32
  }
  func.func @transform_4(%arg0: i32) -> (i32, i32) {
    %c0_i32 = arith.constant 0 : i32
    %c0_i32_0 = arith.constant 0 : i32
    return %arg0, %c0_i32 : i32, i32
  }
}

module attributes {stable_mosaic.version = 11 : i64} {
  func.func @_mm_fused_kernel(%arg0: i32, %arg1: memref<8x576xbf16, #tpu.memory_space<vmem>>, %arg2: memref<576x64xbf16, #tpu.memory_space<vmem>>, %arg3: memref<1x64xf32, #tpu.memory_space<vmem>>, %arg4: memref<1x64xf32, #tpu.memory_space<vmem>>, %arg5: memref<8x64xf32, #tpu.memory_space<vmem>>) attributes {dimension_semantics = [#tpu.dimension_semantics<parallel>], iteration_bounds = array<i64: 1>, scalar_prefetch = 0 : i64, scratch_operands = 0 : i64, tpu.core_type = #tpu.core_type<tc>, window_params = [{transform_indices = @transform_0, window_bounds = array<i64: 8, 576>}, {pipeline_mode = #tpu.pipeline_mode<synchronous>, transform_indices = @transform_1, window_bounds = array<i64: 576, 64>}, {pipeline_mode = #tpu.pipeline_mode<synchronous>, transform_indices = @transform_2, window_bounds = array<i64: 1, 64>}, {pipeline_mode = #tpu.pipeline_mode<synchronous>, transform_indices = @transform_3, window_bounds = array<i64: 1, 64>}, {transform_indices = @transform_4, window_bounds = array<i64: 8, 64>}]} {
    %c0 = arith.constant 0 : index
    %c0_0 = arith.constant 0 : index
    %0 = vector.load %arg1[%c0, %c0_0] : memref<8x576xbf16, #tpu.memory_space<vmem>>, vector<8x576xbf16>
    %c0_1 = arith.constant 0 : index
    %c0_2 = arith.constant 0 : index
    %1 = vector.load %arg2[%c0_1, %c0_2] : memref<576x64xbf16, #tpu.memory_space<vmem>>, vector<576x64xbf16>
    %cst = arith.constant dense<0.000000e+00> : vector<8x64xf32>
    %2 = tpu.matmul %0, %1, %cst {dimension_numbers = #tpu.dot_dimension_numbers<[1], [0], [0], [1], [0, 0, 1, 1], [], []>} : vector<8x576xbf16>, vector<576x64xbf16>, vector<8x64xf32> -> vector<8x64xf32>
    %c0_3 = arith.constant 0 : index
    %c0_4 = arith.constant 0 : index
    %3 = vector.load %arg3[%c0_3, %c0_4] : memref<1x64xf32, #tpu.memory_space<vmem>>, vector<1x64xf32>
    %4 = vector.broadcast %3 : vector<1x64xf32> to vector<8x64xf32>
    %5 = arith.mulf %2, %4 : vector<8x64xf32>
    %c0_5 = arith.constant 0 : index
    %c0_6 = arith.constant 0 : index
    %6 = vector.load %arg4[%c0_5, %c0_6] : memref<1x64xf32, #tpu.memory_space<vmem>>, vector<1x64xf32>
    %7 = vector.broadcast %6 : vector<1x64xf32> to vector<8x64xf32>
    %8 = arith.addf %5, %7 : vector<8x64xf32>
    %cst_7 = arith.constant 0.000000e+00 : f32
    %9 = vector.broadcast %cst_7 : f32 to vector<8x64xf32>
    %10 = arith.maximumf %8, %9 : vector<8x64xf32>
    %c0_8 = arith.constant 0 : index
    %c0_9 = arith.constant 0 : index
    %11 = vector.load %arg5[%c0_8, %c0_9] : memref<8x64xf32, #tpu.memory_space<vmem>>, vector<8x64xf32>
    tpu.vector_store %arg5[%c0_8, %c0_9], %10 {strides = array<i32>} : memref<8x64xf32, #tpu.memory_space<vmem>>, vector<8x64xf32>,
    return
  }
  func.func @transform_0(%arg0: i32) -> (i32, i32) {
    %c0_i32 = arith.constant 0 : i32
    %c0_i32_0 = arith.constant 0 : i32
    return %arg0, %c0_i32 : i32, i32
  }
  func.func @transform_1(%arg0: i32) -> (i32, i32) {
    %c0_i32 = arith.constant 0 : i32
    %c0_i32_0 = arith.constant 0 : i32
    %c0_i32_1 = arith.constant 0 : i32
    return %c0_i32, %c0_i32_0 : i32, i32
  }
  func.func @transform_2(%arg0: i32) -> (i32, i32) {
    %c0_i32 = arith.constant 0 : i32
    %c0_i32_0 = arith.constant 0 : i32
    %c0_i32_1 = arith.constant 0 : i32
    return %c0_i32, %c0_i32_0 : i32, i32
  }
  func.func @transform_3(%arg0: i32) -> (i32, i32) {
    %c0_i32 = arith.constant 0 : i32
    %c0_i32_0 = arith.constant 0 : i32
    %c0_i32_1 = arith.constant 0 : i32
    return %c0_i32, %c0_i32_0 : i32, i32
  }
  func.func @transform_4(%arg0: i32) -> (i32, i32) {
    %c0_i32 = arith.constant 0 : i32
    %c0_i32_0 = arith.constant 0 : i32
    return %arg0, %c0_i32 : i32, i32
  }
}

module attributes {stable_mosaic.version = 11 : i64} {
  func.func @_mm_fused_kernel(%arg0: i32, %arg1: memref<8x384xbf16, #tpu.memory_space<vmem>>, %arg2: memref<384x128xbf16, #tpu.memory_space<vmem>>, %arg3: memref<1x128xf32, #tpu.memory_space<vmem>>, %arg4: memref<1x128xf32, #tpu.memory_space<vmem>>, %arg5: memref<8x128xf32, #tpu.memory_space<vmem>>) attributes {dimension_semantics = [#tpu.dimension_semantics<parallel>], iteration_bounds = array<i64: 1>, scalar_prefetch = 0 : i64, scratch_operands = 0 : i64, tpu.core_type = #tpu.core_type<tc>, window_params = [{transform_indices = @transform_0, window_bounds = array<i64: 8, 384>}, {pipeline_mode = #tpu.pipeline_mode<synchronous>, transform_indices = @transform_1, window_bounds = array<i64: 384, 128>}, {pipeline_mode = #tpu.pipeline_mode<synchronous>, transform_indices = @transform_2, window_bounds = array<i64: 1, 128>}, {pipeline_mode = #tpu.pipeline_mode<synchronous>, transform_indices = @transform_3, window_bounds = array<i64: 1, 128>}, {transform_indices = @transform_4, window_bounds = array<i64: 8, 128>}]} {
    %c0 = arith.constant 0 : index
    %c0_0 = arith.constant 0 : index
    %0 = vector.load %arg1[%c0, %c0_0] : memref<8x384xbf16, #tpu.memory_space<vmem>>, vector<8x384xbf16>
    %c0_1 = arith.constant 0 : index
    %c0_2 = arith.constant 0 : index
    %1 = vector.load %arg2[%c0_1, %c0_2] : memref<384x128xbf16, #tpu.memory_space<vmem>>, vector<384x128xbf16>
    %cst = arith.constant dense<0.000000e+00> : vector<8x128xf32>
    %2 = tpu.matmul %0, %1, %cst {dimension_numbers = #tpu.dot_dimension_numbers<[1], [0], [0], [1], [0, 0, 1, 1], [], []>} : vector<8x384xbf16>, vector<384x128xbf16>, vector<8x128xf32> -> vector<8x128xf32>
    %c0_3 = arith.constant 0 : index
    %c0_4 = arith.constant 0 : index
    %3 = vector.load %arg3[%c0_3, %c0_4] : memref<1x128xf32, #tpu.memory_space<vmem>>, vector<1x128xf32>
    %4 = vector.broadcast %3 : vector<1x128xf32> to vector<8x128xf32>
    %5 = arith.mulf %2, %4 : vector<8x128xf32>
    %c0_5 = arith.constant 0 : index
    %c0_6 = arith.constant 0 : index
    %6 = vector.load %arg4[%c0_5, %c0_6] : memref<1x128xf32, #tpu.memory_space<vmem>>, vector<1x128xf32>
    %7 = vector.broadcast %6 : vector<1x128xf32> to vector<8x128xf32>
    %8 = arith.addf %5, %7 : vector<8x128xf32>
    %cst_7 = arith.constant 0.000000e+00 : f32
    %9 = vector.broadcast %cst_7 : f32 to vector<8x128xf32>
    %10 = arith.maximumf %8, %9 : vector<8x128xf32>
    %c0_8 = arith.constant 0 : index
    %c0_9 = arith.constant 0 : index
    %11 = vector.load %arg5[%c0_8, %c0_9] : memref<8x128xf32, #tpu.memory_space<vmem>>, vector<8x128xf32>
    tpu.vector_store %arg5[%c0_8, %c0_9], %10 {strides = array<i32>} : memref<8x128xf32, #tpu.memory_space<vmem>>, vector<8x128xf32>,
    return
  }
  func.func @transform_0(%arg0: i32) -> (i32, i32) {
    %c0_i32 = arith.constant 0 : i32
    %c0_i32_0 = arith.constant 0 : i32
    return %arg0, %c0_i32 : i32, i32
  }
  func.func @transform_1(%arg0: i32) -> (i32, i32) {
    %c0_i32 = arith.constant 0 : i32
    %c0_i32_0 = arith.constant 0 : i32
    %c0_i32_1 = arith.constant 0 : i32
    return %c0_i32, %c0_i32_0 : i32, i32
  }
  func.func @transform_2(%arg0: i32) -> (i32, i32) {
    %c0_i32 = arith.constant 0 : i32
    %c0_i32_0 = arith.constant 0 : i32
    %c0_i32_1 = arith.constant 0 : i32
    return %c0_i32, %c0_i32_0 : i32, i32
  }
  func.func @transform_3(%arg0: i32) -> (i32, i32) {
    %c0_i32 = arith.constant 0 : i32
    %c0_i32_0 = arith.constant 0 : i32
    %c0_i32_1 = arith.constant 0 : i32
    return %c0_i32, %c0_i32_0 : i32, i32
  }
  func.func @transform_4(%arg0: i32) -> (i32, i32) {
    %c0_i32 = arith.constant 0 : i32
    %c0_i32_0 = arith.constant 0 : i32
    return %arg0, %c0_i32 : i32, i32
  }
}

module attributes {stable_mosaic.version = 11 : i64} {
  func.func @_mm_fused_kernel(%arg0: i32, %arg1: memref<8x384xbf16, #tpu.memory_space<vmem>>, %arg2: memref<384x128xbf16, #tpu.memory_space<vmem>>, %arg3: memref<1x128xf32, #tpu.memory_space<vmem>>, %arg4: memref<1x128xf32, #tpu.memory_space<vmem>>, %arg5: memref<8x128xf32, #tpu.memory_space<vmem>>) attributes {dimension_semantics = [#tpu.dimension_semantics<parallel>], iteration_bounds = array<i64: 1>, scalar_prefetch = 0 : i64, scratch_operands = 0 : i64, tpu.core_type = #tpu.core_type<tc>, window_params = [{transform_indices = @transform_0, window_bounds = array<i64: 8, 384>}, {pipeline_mode = #tpu.pipeline_mode<synchronous>, transform_indices = @transform_1, window_bounds = array<i64: 384, 128>}, {pipeline_mode = #tpu.pipeline_mode<synchronous>, transform_indices = @transform_2, window_bounds = array<i64: 1, 128>}, {pipeline_mode = #tpu.pipeline_mode<synchronous>, transform_indices = @transform_3, window_bounds = array<i64: 1, 128>}, {transform_indices = @transform_4, window_bounds = array<i64: 8, 128>}]} {
    %c0 = arith.constant 0 : index
    %c0_0 = arith.constant 0 : index
    %0 = vector.load %arg1[%c0, %c0_0] : memref<8x384xbf16, #tpu.memory_space<vmem>>, vector<8x384xbf16>
    %c0_1 = arith.constant 0 : index
    %c0_2 = arith.constant 0 : index
    %1 = vector.load %arg2[%c0_1, %c0_2] : memref<384x128xbf16, #tpu.memory_space<vmem>>, vector<384x128xbf16>
    %cst = arith.constant dense<0.000000e+00> : vector<8x128xf32>
    %2 = tpu.matmul %0, %1, %cst {dimension_numbers = #tpu.dot_dimension_numbers<[1], [0], [0], [1], [0, 0, 1, 1], [], []>} : vector<8x384xbf16>, vector<384x128xbf16>, vector<8x128xf32> -> vector<8x128xf32>
    %c0_3 = arith.constant 0 : index
    %c0_4 = arith.constant 0 : index
    %3 = vector.load %arg3[%c0_3, %c0_4] : memref<1x128xf32, #tpu.memory_space<vmem>>, vector<1x128xf32>
    %4 = vector.broadcast %3 : vector<1x128xf32> to vector<8x128xf32>
    %5 = arith.mulf %2, %4 : vector<8x128xf32>
    %c0_5 = arith.constant 0 : index
    %c0_6 = arith.constant 0 : index
    %6 = vector.load %arg4[%c0_5, %c0_6] : memref<1x128xf32, #tpu.memory_space<vmem>>, vector<1x128xf32>
    %7 = vector.broadcast %6 : vector<1x128xf32> to vector<8x128xf32>
    %8 = arith.addf %5, %7 : vector<8x128xf32>
    %c0_7 = arith.constant 0 : index
    %c0_8 = arith.constant 0 : index
    %9 = vector.load %arg5[%c0_7, %c0_8] : memref<8x128xf32, #tpu.memory_space<vmem>>, vector<8x128xf32>
    tpu.vector_store %arg5[%c0_7, %c0_8], %8 {strides = array<i32>} : memref<8x128xf32, #tpu.memory_space<vmem>>, vector<8x128xf32>,
    return
  }
  func.func @transform_0(%arg0: i32) -> (i32, i32) {
    %c0_i32 = arith.constant 0 : i32
    %c0_i32_0 = arith.constant 0 : i32
    return %arg0, %c0_i32 : i32, i32
  }
  func.func @transform_1(%arg0: i32) -> (i32, i32) {
    %c0_i32 = arith.constant 0 : i32
    %c0_i32_0 = arith.constant 0 : i32
    %c0_i32_1 = arith.constant 0 : i32
    return %c0_i32, %c0_i32_0 : i32, i32
  }
  func.func @transform_2(%arg0: i32) -> (i32, i32) {
    %c0_i32 = arith.constant 0 : i32
    %c0_i32_0 = arith.constant 0 : i32
    %c0_i32_1 = arith.constant 0 : i32
    return %c0_i32, %c0_i32_0 : i32, i32
  }
  func.func @transform_3(%arg0: i32) -> (i32, i32) {
    %c0_i32 = arith.constant 0 : i32
    %c0_i32_0 = arith.constant 0 : i32
    %c0_i32_1 = arith.constant 0 : i32
    return %c0_i32, %c0_i32_0 : i32, i32
  }
  func.func @transform_4(%arg0: i32) -> (i32, i32) {
    %c0_i32 = arith.constant 0 : i32
    %c0_i32_0 = arith.constant 0 : i32
    return %arg0, %c0_i32 : i32, i32
  }
}

module attributes {stable_mosaic.version = 11 : i64} {
  func.func @_mm_fused_kernel(%arg0: i32, %arg1: memref<8x128xbf16, #tpu.memory_space<vmem>>, %arg2: memref<128x64xbf16, #tpu.memory_space<vmem>>, %arg3: memref<1x64xf32, #tpu.memory_space<vmem>>, %arg4: memref<1x64xf32, #tpu.memory_space<vmem>>, %arg5: memref<8x64xf32, #tpu.memory_space<vmem>>) attributes {dimension_semantics = [#tpu.dimension_semantics<parallel>], iteration_bounds = array<i64: 1>, scalar_prefetch = 0 : i64, scratch_operands = 0 : i64, tpu.core_type = #tpu.core_type<tc>, window_params = [{transform_indices = @transform_0, window_bounds = array<i64: 8, 128>}, {pipeline_mode = #tpu.pipeline_mode<synchronous>, transform_indices = @transform_1, window_bounds = array<i64: 128, 64>}, {pipeline_mode = #tpu.pipeline_mode<synchronous>, transform_indices = @transform_2, window_bounds = array<i64: 1, 64>}, {pipeline_mode = #tpu.pipeline_mode<synchronous>, transform_indices = @transform_3, window_bounds = array<i64: 1, 64>}, {transform_indices = @transform_4, window_bounds = array<i64: 8, 64>}]} {
    %c0 = arith.constant 0 : index
    %c0_0 = arith.constant 0 : index
    %0 = vector.load %arg1[%c0, %c0_0] : memref<8x128xbf16, #tpu.memory_space<vmem>>, vector<8x128xbf16>
    %c0_1 = arith.constant 0 : index
    %c0_2 = arith.constant 0 : index
    %1 = vector.load %arg2[%c0_1, %c0_2] : memref<128x64xbf16, #tpu.memory_space<vmem>>, vector<128x64xbf16>
    %cst = arith.constant dense<0.000000e+00> : vector<8x64xf32>
    %2 = tpu.matmul %0, %1, %cst {dimension_numbers = #tpu.dot_dimension_numbers<[1], [0], [0], [1], [0, 0, 1, 1], [], []>} : vector<8x128xbf16>, vector<128x64xbf16>, vector<8x64xf32> -> vector<8x64xf32>
    %c0_3 = arith.constant 0 : index
    %c0_4 = arith.constant 0 : index
    %3 = vector.load %arg3[%c0_3, %c0_4] : memref<1x64xf32, #tpu.memory_space<vmem>>, vector<1x64xf32>
    %4 = vector.broadcast %3 : vector<1x64xf32> to vector<8x64xf32>
    %5 = arith.mulf %2, %4 : vector<8x64xf32>
    %c0_5 = arith.constant 0 : index
    %c0_6 = arith.constant 0 : index
    %6 = vector.load %arg4[%c0_5, %c0_6] : memref<1x64xf32, #tpu.memory_space<vmem>>, vector<1x64xf32>
    %7 = vector.broadcast %6 : vector<1x64xf32> to vector<8x64xf32>
    %8 = arith.addf %5, %7 : vector<8x64xf32>
    %cst_7 = arith.constant 0.000000e+00 : f32
    %9 = vector.broadcast %cst_7 : f32 to vector<8x64xf32>
    %10 = arith.maximumf %8, %9 : vector<8x64xf32>
    %c0_8 = arith.constant 0 : index
    %c0_9 = arith.constant 0 : index
    %11 = vector.load %arg5[%c0_8, %c0_9] : memref<8x64xf32, #tpu.memory_space<vmem>>, vector<8x64xf32>
    tpu.vector_store %arg5[%c0_8, %c0_9], %10 {strides = array<i32>} : memref<8x64xf32, #tpu.memory_space<vmem>>, vector<8x64xf32>,
    return
  }
  func.func @transform_0(%arg0: i32) -> (i32, i32) {
    %c0_i32 = arith.constant 0 : i32
    %c0_i32_0 = arith.constant 0 : i32
    return %arg0, %c0_i32 : i32, i32
  }
  func.func @transform_1(%arg0: i32) -> (i32, i32) {
    %c0_i32 = arith.constant 0 : i32
    %c0_i32_0 = arith.constant 0 : i32
    %c0_i32_1 = arith.constant 0 : i32
    return %c0_i32, %c0_i32_0 : i32, i32
  }
  func.func @transform_2(%arg0: i32) -> (i32, i32) {
    %c0_i32 = arith.constant 0 : i32
    %c0_i32_0 = arith.constant 0 : i32
    %c0_i32_1 = arith.constant 0 : i32
    return %c0_i32, %c0_i32_0 : i32, i32
  }
  func.func @transform_3(%arg0: i32) -> (i32, i32) {
    %c0_i32 = arith.constant 0 : i32
    %c0_i32_0 = arith.constant 0 : i32
    %c0_i32_1 = arith.constant 0 : i32
    return %c0_i32, %c0_i32_0 : i32, i32
  }
  func.func @transform_4(%arg0: i32) -> (i32, i32) {
    %c0_i32 = arith.constant 0 : i32
    %c0_i32_0 = arith.constant 0 : i32
    return %arg0, %c0_i32 : i32, i32
  }
}

module attributes {stable_mosaic.version = 11 : i64} {
  func.func @_mm_fused_kernel(%arg0: i32, %arg1: memref<8x256xbf16, #tpu.memory_space<vmem>>, %arg2: memref<256x64xbf16, #tpu.memory_space<vmem>>, %arg3: memref<1x64xf32, #tpu.memory_space<vmem>>, %arg4: memref<1x64xf32, #tpu.memory_space<vmem>>, %arg5: memref<8x64xf32, #tpu.memory_space<vmem>>) attributes {dimension_semantics = [#tpu.dimension_semantics<parallel>], iteration_bounds = array<i64: 1>, scalar_prefetch = 0 : i64, scratch_operands = 0 : i64, tpu.core_type = #tpu.core_type<tc>, window_params = [{transform_indices = @transform_0, window_bounds = array<i64: 8, 256>}, {pipeline_mode = #tpu.pipeline_mode<synchronous>, transform_indices = @transform_1, window_bounds = array<i64: 256, 64>}, {pipeline_mode = #tpu.pipeline_mode<synchronous>, transform_indices = @transform_2, window_bounds = array<i64: 1, 64>}, {pipeline_mode = #tpu.pipeline_mode<synchronous>, transform_indices = @transform_3, window_bounds = array<i64: 1, 64>}, {transform_indices = @transform_4, window_bounds = array<i64: 8, 64>}]} {
    %c0 = arith.constant 0 : index
    %c0_0 = arith.constant 0 : index
    %0 = vector.load %arg1[%c0, %c0_0] : memref<8x256xbf16, #tpu.memory_space<vmem>>, vector<8x256xbf16>
    %c0_1 = arith.constant 0 : index
    %c0_2 = arith.constant 0 : index
    %1 = vector.load %arg2[%c0_1, %c0_2] : memref<256x64xbf16, #tpu.memory_space<vmem>>, vector<256x64xbf16>
    %cst = arith.constant dense<0.000000e+00> : vector<8x64xf32>
    %2 = tpu.matmul %0, %1, %cst {dimension_numbers = #tpu.dot_dimension_numbers<[1], [0], [0], [1], [0, 0, 1, 1], [], []>} : vector<8x256xbf16>, vector<256x64xbf16>, vector<8x64xf32> -> vector<8x64xf32>
    %c0_3 = arith.constant 0 : index
    %c0_4 = arith.constant 0 : index
    %3 = vector.load %arg3[%c0_3, %c0_4] : memref<1x64xf32, #tpu.memory_space<vmem>>, vector<1x64xf32>
    %4 = vector.broadcast %3 : vector<1x64xf32> to vector<8x64xf32>
    %5 = arith.mulf %2, %4 : vector<8x64xf32>
    %c0_5 = arith.constant 0 : index
    %c0_6 = arith.constant 0 : index
    %6 = vector.load %arg4[%c0_5, %c0_6] : memref<1x64xf32, #tpu.memory_space<vmem>>, vector<1x64xf32>
    %7 = vector.broadcast %6 : vector<1x64xf32> to vector<8x64xf32>
    %8 = arith.addf %5, %7 : vector<8x64xf32>
    %cst_7 = arith.constant 0.000000e+00 : f32
    %9 = vector.broadcast %cst_7 : f32 to vector<8x64xf32>
    %10 = arith.maximumf %8, %9 : vector<8x64xf32>
    %c0_8 = arith.constant 0 : index
    %c0_9 = arith.constant 0 : index
    %11 = vector.load %arg5[%c0_8, %c0_9] : memref<8x64xf32, #tpu.memory_space<vmem>>, vector<8x64xf32>
    tpu.vector_store %arg5[%c0_8, %c0_9], %10 {strides = array<i32>} : memref<8x64xf32, #tpu.memory_space<vmem>>, vector<8x64xf32>,
    return
  }
  func.func @transform_0(%arg0: i32) -> (i32, i32) {
    %c0_i32 = arith.constant 0 : i32
    %c0_i32_0 = arith.constant 0 : i32
    return %arg0, %c0_i32 : i32, i32
  }
  func.func @transform_1(%arg0: i32) -> (i32, i32) {
    %c0_i32 = arith.constant 0 : i32
    %c0_i32_0 = arith.constant 0 : i32
    %c0_i32_1 = arith.constant 0 : i32
    return %c0_i32, %c0_i32_0 : i32, i32
  }
  func.func @transform_2(%arg0: i32) -> (i32, i32) {
    %c0_i32 = arith.constant 0 : i32
    %c0_i32_0 = arith.constant 0 : i32
    %c0_i32_1 = arith.constant 0 : i32
    return %c0_i32, %c0_i32_0 : i32, i32
  }
  func.func @transform_3(%arg0: i32) -> (i32, i32) {
    %c0_i32 = arith.constant 0 : i32
    %c0_i32_0 = arith.constant 0 : i32
    %c0_i32_1 = arith.constant 0 : i32
    return %c0_i32, %c0_i32_0 : i32, i32
  }
  func.func @transform_4(%arg0: i32) -> (i32, i32) {
    %c0_i32 = arith.constant 0 : i32
    %c0_i32_0 = arith.constant 0 : i32
    return %arg0, %c0_i32 : i32, i32
  }
}

module attributes {stable_mosaic.version = 11 : i64} {
  func.func @_mm_fused_kernel(%arg0: i32, %arg1: memref<8x512xbf16, #tpu.memory_space<vmem>>, %arg2: memref<512x64xbf16, #tpu.memory_space<vmem>>, %arg3: memref<1x64xf32, #tpu.memory_space<vmem>>, %arg4: memref<1x64xf32, #tpu.memory_space<vmem>>, %arg5: memref<8x64xf32, #tpu.memory_space<vmem>>) attributes {dimension_semantics = [#tpu.dimension_semantics<parallel>], iteration_bounds = array<i64: 1>, scalar_prefetch = 0 : i64, scratch_operands = 0 : i64, tpu.core_type = #tpu.core_type<tc>, window_params = [{transform_indices = @transform_0, window_bounds = array<i64: 8, 512>}, {pipeline_mode = #tpu.pipeline_mode<synchronous>, transform_indices = @transform_1, window_bounds = array<i64: 512, 64>}, {pipeline_mode = #tpu.pipeline_mode<synchronous>, transform_indices = @transform_2, window_bounds = array<i64: 1, 64>}, {pipeline_mode = #tpu.pipeline_mode<synchronous>, transform_indices = @transform_3, window_bounds = array<i64: 1, 64>}, {transform_indices = @transform_4, window_bounds = array<i64: 8, 64>}]} {
    %c0 = arith.constant 0 : index
    %c0_0 = arith.constant 0 : index
    %0 = vector.load %arg1[%c0, %c0_0] : memref<8x512xbf16, #tpu.memory_space<vmem>>, vector<8x512xbf16>
    %c0_1 = arith.constant 0 : index
    %c0_2 = arith.constant 0 : index
    %1 = vector.load %arg2[%c0_1, %c0_2] : memref<512x64xbf16, #tpu.memory_space<vmem>>, vector<512x64xbf16>
    %cst = arith.constant dense<0.000000e+00> : vector<8x64xf32>
    %2 = tpu.matmul %0, %1, %cst {dimension_numbers = #tpu.dot_dimension_numbers<[1], [0], [0], [1], [0, 0, 1, 1], [], []>} : vector<8x512xbf16>, vector<512x64xbf16>, vector<8x64xf32> -> vector<8x64xf32>
    %c0_3 = arith.constant 0 : index
    %c0_4 = arith.constant 0 : index
    %3 = vector.load %arg3[%c0_3, %c0_4] : memref<1x64xf32, #tpu.memory_space<vmem>>, vector<1x64xf32>
    %4 = vector.broadcast %3 : vector<1x64xf32> to vector<8x64xf32>
    %5 = arith.mulf %2, %4 : vector<8x64xf32>
    %c0_5 = arith.constant 0 : index
    %c0_6 = arith.constant 0 : index
    %6 = vector.load %arg4[%c0_5, %c0_6] : memref<1x64xf32, #tpu.memory_space<vmem>>, vector<1x64xf32>
    %7 = vector.broadcast %6 : vector<1x64xf32> to vector<8x64xf32>
    %8 = arith.addf %5, %7 : vector<8x64xf32>
    %cst_7 = arith.constant 0.000000e+00 : f32
    %9 = vector.broadcast %cst_7 : f32 to vector<8x64xf32>
    %10 = arith.maximumf %8, %9 : vector<8x64xf32>
    %c0_8 = arith.constant 0 : index
    %c0_9 = arith.constant 0 : index
    %11 = vector.load %arg5[%c0_8, %c0_9] : memref<8x64xf32, #tpu.memory_space<vmem>>, vector<8x64xf32>
    tpu.vector_store %arg5[%c0_8, %c0_9], %10 {strides = array<i32>} : memref<8x64xf32, #tpu.memory_space<vmem>>, vector<8x64xf32>,
    return
  }
  func.func @transform_0(%arg0: i32) -> (i32, i32) {
    %c0_i32 = arith.constant 0 : i32
    %c0_i32_0 = arith.constant 0 : i32
    return %arg0, %c0_i32 : i32, i32
  }
  func.func @transform_1(%arg0: i32) -> (i32, i32) {
    %c0_i32 = arith.constant 0 : i32
    %c0_i32_0 = arith.constant 0 : i32
    %c0_i32_1 = arith.constant 0 : i32
    return %c0_i32, %c0_i32_0 : i32, i32
  }
  func.func @transform_2(%arg0: i32) -> (i32, i32) {
    %c0_i32 = arith.constant 0 : i32
    %c0_i32_0 = arith.constant 0 : i32
    %c0_i32_1 = arith.constant 0 : i32
    return %c0_i32, %c0_i32_0 : i32, i32
  }
  func.func @transform_3(%arg0: i32) -> (i32, i32) {
    %c0_i32 = arith.constant 0 : i32
    %c0_i32_0 = arith.constant 0 : i32
    %c0_i32_1 = arith.constant 0 : i32
    return %c0_i32, %c0_i32_0 : i32, i32
  }
  func.func @transform_4(%arg0: i32) -> (i32, i32) {
    %c0_i32 = arith.constant 0 : i32
    %c0_i32_0 = arith.constant 0 : i32
    return %arg0, %c0_i32 : i32, i32
  }
}

module attributes {stable_mosaic.version = 11 : i64} {
  func.func @_mm_fused_kernel(%arg0: i32, %arg1: memref<32x64xbf16, #tpu.memory_space<vmem>>, %arg2: memref<64x32xbf16, #tpu.memory_space<vmem>>, %arg3: memref<1x32xf32, #tpu.memory_space<vmem>>, %arg4: memref<1x32xf32, #tpu.memory_space<vmem>>, %arg5: memref<32x32xf32, #tpu.memory_space<vmem>>) attributes {dimension_semantics = [#tpu.dimension_semantics<parallel>], iteration_bounds = array<i64: 1>, scalar_prefetch = 0 : i64, scratch_operands = 0 : i64, tpu.core_type = #tpu.core_type<tc>, window_params = [{transform_indices = @transform_0, window_bounds = array<i64: 32, 64>}, {pipeline_mode = #tpu.pipeline_mode<synchronous>, transform_indices = @transform_1, window_bounds = array<i64: 64, 32>}, {pipeline_mode = #tpu.pipeline_mode<synchronous>, transform_indices = @transform_2, window_bounds = array<i64: 1, 32>}, {pipeline_mode = #tpu.pipeline_mode<synchronous>, transform_indices = @transform_3, window_bounds = array<i64: 1, 32>}, {transform_indices = @transform_4, window_bounds = array<i64: 32, 32>}]} {
    %c0 = arith.constant 0 : index
    %c0_0 = arith.constant 0 : index
    %0 = vector.load %arg1[%c0, %c0_0] : memref<32x64xbf16, #tpu.memory_space<vmem>>, vector<32x64xbf16>
    %c0_1 = arith.constant 0 : index
    %c0_2 = arith.constant 0 : index
    %1 = vector.load %arg2[%c0_1, %c0_2] : memref<64x32xbf16, #tpu.memory_space<vmem>>, vector<64x32xbf16>
    %cst = arith.constant dense<0.000000e+00> : vector<32x32xf32>
    %2 = tpu.matmul %0, %1, %cst {dimension_numbers = #tpu.dot_dimension_numbers<[1], [0], [0], [1], [0, 0, 1, 1], [], []>} : vector<32x64xbf16>, vector<64x32xbf16>, vector<32x32xf32> -> vector<32x32xf32>
    %c0_3 = arith.constant 0 : index
    %c0_4 = arith.constant 0 : index
    %3 = vector.load %arg3[%c0_3, %c0_4] : memref<1x32xf32, #tpu.memory_space<vmem>>, vector<1x32xf32>
    %4 = vector.broadcast %3 : vector<1x32xf32> to vector<32x32xf32>
    %5 = arith.mulf %2, %4 : vector<32x32xf32>
    %c0_5 = arith.constant 0 : index
    %c0_6 = arith.constant 0 : index
    %6 = vector.load %arg4[%c0_5, %c0_6] : memref<1x32xf32, #tpu.memory_space<vmem>>, vector<1x32xf32>
    %7 = vector.broadcast %6 : vector<1x32xf32> to vector<32x32xf32>
    %8 = arith.addf %5, %7 : vector<32x32xf32>
    %cst_7 = arith.constant 0.000000e+00 : f32
    %9 = vector.broadcast %cst_7 : f32 to vector<32x32xf32>
    %10 = arith.maximumf %8, %9 : vector<32x32xf32>
    %c0_8 = arith.constant 0 : index
    %c0_9 = arith.constant 0 : index
    %11 = vector.load %arg5[%c0_8, %c0_9] : memref<32x32xf32, #tpu.memory_space<vmem>>, vector<32x32xf32>
    tpu.vector_store %arg5[%c0_8, %c0_9], %10 {strides = array<i32>} : memref<32x32xf32, #tpu.memory_space<vmem>>, vector<32x32xf32>,
    return
  }
  func.func @transform_0(%arg0: i32) -> (i32, i32) {
    %c0_i32 = arith.constant 0 : i32
    %c0_i32_0 = arith.constant 0 : i32
    return %arg0, %c0_i32 : i32, i32
  }
  func.func @transform_1(%arg0: i32) -> (i32, i32) {
    %c0_i32 = arith.constant 0 : i32
    %c0_i32_0 = arith.constant 0 : i32
    %c0_i32_1 = arith.constant 0 : i32
    return %c0_i32, %c0_i32_0 : i32, i32
  }
  func.func @transform_2(%arg0: i32) -> (i32, i32) {
    %c0_i32 = arith.constant 0 : i32
    %c0_i32_0 = arith.constant 0 : i32
    %c0_i32_1 = arith.constant 0 : i32
    return %c0_i32, %c0_i32_0 : i32, i32
  }
  func.func @transform_3(%arg0: i32) -> (i32, i32) {
    %c0_i32 = arith.constant 0 : i32
    %c0_i32_0 = arith.constant 0 : i32
    %c0_i32_1 = arith.constant 0 : i32
    return %c0_i32, %c0_i32_0 : i32, i32
  }
  func.func @transform_4(%arg0: i32) -> (i32, i32) {
    %c0_i32 = arith.constant 0 : i32
    %c0_i32_0 = arith.constant 0 : i32
    return %arg0, %c0_i32 : i32, i32
  }
}

module attributes {stable_mosaic.version = 11 : i64} {
  func.func @_mm_fused_kernel(%arg0: i32, %arg1: memref<32x128xbf16, #tpu.memory_space<vmem>>, %arg2: memref<128x32xbf16, #tpu.memory_space<vmem>>, %arg3: memref<1x32xf32, #tpu.memory_space<vmem>>, %arg4: memref<1x32xf32, #tpu.memory_space<vmem>>, %arg5: memref<32x32xf32, #tpu.memory_space<vmem>>) attributes {dimension_semantics = [#tpu.dimension_semantics<parallel>], iteration_bounds = array<i64: 1>, scalar_prefetch = 0 : i64, scratch_operands = 0 : i64, tpu.core_type = #tpu.core_type<tc>, window_params = [{transform_indices = @transform_0, window_bounds = array<i64: 32, 128>}, {pipeline_mode = #tpu.pipeline_mode<synchronous>, transform_indices = @transform_1, window_bounds = array<i64: 128, 32>}, {pipeline_mode = #tpu.pipeline_mode<synchronous>, transform_indices = @transform_2, window_bounds = array<i64: 1, 32>}, {pipeline_mode = #tpu.pipeline_mode<synchronous>, transform_indices = @transform_3, window_bounds = array<i64: 1, 32>}, {transform_indices = @transform_4, window_bounds = array<i64: 32, 32>}]} {
    %c0 = arith.constant 0 : index
    %c0_0 = arith.constant 0 : index
    %0 = vector.load %arg1[%c0, %c0_0] : memref<32x128xbf16, #tpu.memory_space<vmem>>, vector<32x128xbf16>
    %c0_1 = arith.constant 0 : index
    %c0_2 = arith.constant 0 : index
    %1 = vector.load %arg2[%c0_1, %c0_2] : memref<128x32xbf16, #tpu.memory_space<vmem>>, vector<128x32xbf16>
    %cst = arith.constant dense<0.000000e+00> : vector<32x32xf32>
    %2 = tpu.matmul %0, %1, %cst {dimension_numbers = #tpu.dot_dimension_numbers<[1], [0], [0], [1], [0, 0, 1, 1], [], []>} : vector<32x128xbf16>, vector<128x32xbf16>, vector<32x32xf32> -> vector<32x32xf32>
    %c0_3 = arith.constant 0 : index
    %c0_4 = arith.constant 0 : index
    %3 = vector.load %arg3[%c0_3, %c0_4] : memref<1x32xf32, #tpu.memory_space<vmem>>, vector<1x32xf32>
    %4 = vector.broadcast %3 : vector<1x32xf32> to vector<32x32xf32>
    %5 = arith.mulf %2, %4 : vector<32x32xf32>
    %c0_5 = arith.constant 0 : index
    %c0_6 = arith.constant 0 : index
    %6 = vector.load %arg4[%c0_5, %c0_6] : memref<1x32xf32, #tpu.memory_space<vmem>>, vector<1x32xf32>
    %7 = vector.broadcast %6 : vector<1x32xf32> to vector<32x32xf32>
    %8 = arith.addf %5, %7 : vector<32x32xf32>
    %cst_7 = arith.constant 0.000000e+00 : f32
    %9 = vector.broadcast %cst_7 : f32 to vector<32x32xf32>
    %10 = arith.maximumf %8, %9 : vector<32x32xf32>
    %c0_8 = arith.constant 0 : index
    %c0_9 = arith.constant 0 : index
    %11 = vector.load %arg5[%c0_8, %c0_9] : memref<32x32xf32, #tpu.memory_space<vmem>>, vector<32x32xf32>
    tpu.vector_store %arg5[%c0_8, %c0_9], %10 {strides = array<i32>} : memref<32x32xf32, #tpu.memory_space<vmem>>, vector<32x32xf32>,
    return
  }
  func.func @transform_0(%arg0: i32) -> (i32, i32) {
    %c0_i32 = arith.constant 0 : i32
    %c0_i32_0 = arith.constant 0 : i32
    return %arg0, %c0_i32 : i32, i32
  }
  func.func @transform_1(%arg0: i32) -> (i32, i32) {
    %c0_i32 = arith.constant 0 : i32
    %c0_i32_0 = arith.constant 0 : i32
    %c0_i32_1 = arith.constant 0 : i32
    return %c0_i32, %c0_i32_0 : i32, i32
  }
  func.func @transform_2(%arg0: i32) -> (i32, i32) {
    %c0_i32 = arith.constant 0 : i32
    %c0_i32_0 = arith.constant 0 : i32
    %c0_i32_1 = arith.constant 0 : i32
    return %c0_i32, %c0_i32_0 : i32, i32
  }
  func.func @transform_3(%arg0: i32) -> (i32, i32) {
    %c0_i32 = arith.constant 0 : i32
    %c0_i32_0 = arith.constant 0 : i32
    %c0_i32_1 = arith.constant 0 : i32
    return %c0_i32, %c0_i32_0 : i32, i32
  }
  func.func @transform_4(%arg0: i32) -> (i32, i32) {
    %c0_i32 = arith.constant 0 : i32
    %c0_i32_0 = arith.constant 0 : i32
    return %arg0, %c0_i32 : i32, i32
  }
}

module attributes {stable_mosaic.version = 11 : i64} {
  func.func @_mm_fused_kernel(%arg0: i32, %arg1: memref<32x256xbf16, #tpu.memory_space<vmem>>, %arg2: memref<256x32xbf16, #tpu.memory_space<vmem>>, %arg3: memref<1x32xf32, #tpu.memory_space<vmem>>, %arg4: memref<1x32xf32, #tpu.memory_space<vmem>>, %arg5: memref<32x32xf32, #tpu.memory_space<vmem>>) attributes {dimension_semantics = [#tpu.dimension_semantics<parallel>], iteration_bounds = array<i64: 1>, scalar_prefetch = 0 : i64, scratch_operands = 0 : i64, tpu.core_type = #tpu.core_type<tc>, window_params = [{transform_indices = @transform_0, window_bounds = array<i64: 32, 256>}, {pipeline_mode = #tpu.pipeline_mode<synchronous>, transform_indices = @transform_1, window_bounds = array<i64: 256, 32>}, {pipeline_mode = #tpu.pipeline_mode<synchronous>, transform_indices = @transform_2, window_bounds = array<i64: 1, 32>}, {pipeline_mode = #tpu.pipeline_mode<synchronous>, transform_indices = @transform_3, window_bounds = array<i64: 1, 32>}, {transform_indices = @transform_4, window_bounds = array<i64: 32, 32>}]} {
    %c0 = arith.constant 0 : index
    %c0_0 = arith.constant 0 : index
    %0 = vector.load %arg1[%c0, %c0_0] : memref<32x256xbf16, #tpu.memory_space<vmem>>, vector<32x256xbf16>
    %c0_1 = arith.constant 0 : index
    %c0_2 = arith.constant 0 : index
    %1 = vector.load %arg2[%c0_1, %c0_2] : memref<256x32xbf16, #tpu.memory_space<vmem>>, vector<256x32xbf16>
    %cst = arith.constant dense<0.000000e+00> : vector<32x32xf32>
    %2 = tpu.matmul %0, %1, %cst {dimension_numbers = #tpu.dot_dimension_numbers<[1], [0], [0], [1], [0, 0, 1, 1], [], []>} : vector<32x256xbf16>, vector<256x32xbf16>, vector<32x32xf32> -> vector<32x32xf32>
    %c0_3 = arith.constant 0 : index
    %c0_4 = arith.constant 0 : index
    %3 = vector.load %arg3[%c0_3, %c0_4] : memref<1x32xf32, #tpu.memory_space<vmem>>, vector<1x32xf32>
    %4 = vector.broadcast %3 : vector<1x32xf32> to vector<32x32xf32>
    %5 = arith.mulf %2, %4 : vector<32x32xf32>
    %c0_5 = arith.constant 0 : index
    %c0_6 = arith.constant 0 : index
    %6 = vector.load %arg4[%c0_5, %c0_6] : memref<1x32xf32, #tpu.memory_space<vmem>>, vector<1x32xf32>
    %7 = vector.broadcast %6 : vector<1x32xf32> to vector<32x32xf32>
    %8 = arith.addf %5, %7 : vector<32x32xf32>
    %cst_7 = arith.constant 0.000000e+00 : f32
    %9 = vector.broadcast %cst_7 : f32 to vector<32x32xf32>
    %10 = arith.maximumf %8, %9 : vector<32x32xf32>
    %c0_8 = arith.constant 0 : index
    %c0_9 = arith.constant 0 : index
    %11 = vector.load %arg5[%c0_8, %c0_9] : memref<32x32xf32, #tpu.memory_space<vmem>>, vector<32x32xf32>
    tpu.vector_store %arg5[%c0_8, %c0_9], %10 {strides = array<i32>} : memref<32x32xf32, #tpu.memory_space<vmem>>, vector<32x32xf32>,
    return
  }
  func.func @transform_0(%arg0: i32) -> (i32, i32) {
    %c0_i32 = arith.constant 0 : i32
    %c0_i32_0 = arith.constant 0 : i32
    return %arg0, %c0_i32 : i32, i32
  }
  func.func @transform_1(%arg0: i32) -> (i32, i32) {
    %c0_i32 = arith.constant 0 : i32
    %c0_i32_0 = arith.constant 0 : i32
    %c0_i32_1 = arith.constant 0 : i32
    return %c0_i32, %c0_i32_0 : i32, i32
  }
  func.func @transform_2(%arg0: i32) -> (i32, i32) {
    %c0_i32 = arith.constant 0 : i32
    %c0_i32_0 = arith.constant 0 : i32
    %c0_i32_1 = arith.constant 0 : i32
    return %c0_i32, %c0_i32_0 : i32, i32
  }
  func.func @transform_3(%arg0: i32) -> (i32, i32) {
    %c0_i32 = arith.constant 0 : i32
    %c0_i32_0 = arith.constant 0 : i32
    %c0_i32_1 = arith.constant 0 : i32
    return %c0_i32, %c0_i32_0 : i32, i32
  }
  func.func @transform_4(%arg0: i32) -> (i32, i32) {
    %c0_i32 = arith.constant 0 : i32
    %c0_i32_0 = arith.constant 0 : i32
    return %arg0, %c0_i32 : i32, i32
  }
}

module attributes {stable_mosaic.version = 11 : i64} {
  func.func @_mm_fused_kernel(%arg0: i32, %arg1: memref<128x96xbf16, #tpu.memory_space<vmem>>, %arg2: memref<96x32xbf16, #tpu.memory_space<vmem>>, %arg3: memref<1x32xf32, #tpu.memory_space<vmem>>, %arg4: memref<1x32xf32, #tpu.memory_space<vmem>>, %arg5: memref<128x32xf32, #tpu.memory_space<vmem>>) attributes {dimension_semantics = [#tpu.dimension_semantics<parallel>], iteration_bounds = array<i64: 1>, scalar_prefetch = 0 : i64, scratch_operands = 0 : i64, tpu.core_type = #tpu.core_type<tc>, window_params = [{transform_indices = @transform_0, window_bounds = array<i64: 128, 96>}, {pipeline_mode = #tpu.pipeline_mode<synchronous>, transform_indices = @transform_1, window_bounds = array<i64: 96, 32>}, {pipeline_mode = #tpu.pipeline_mode<synchronous>, transform_indices = @transform_2, window_bounds = array<i64: 1, 32>}, {pipeline_mode = #tpu.pipeline_mode<synchronous>, transform_indices = @transform_3, window_bounds = array<i64: 1, 32>}, {transform_indices = @transform_4, window_bounds = array<i64: 128, 32>}]} {
    %c0 = arith.constant 0 : index
    %c0_0 = arith.constant 0 : index
    %0 = vector.load %arg1[%c0, %c0_0] : memref<128x96xbf16, #tpu.memory_space<vmem>>, vector<128x96xbf16>
    %c0_1 = arith.constant 0 : index
    %c0_2 = arith.constant 0 : index
    %1 = vector.load %arg2[%c0_1, %c0_2] : memref<96x32xbf16, #tpu.memory_space<vmem>>, vector<96x32xbf16>
    %cst = arith.constant dense<0.000000e+00> : vector<128x32xf32>
    %2 = tpu.matmul %0, %1, %cst {dimension_numbers = #tpu.dot_dimension_numbers<[1], [0], [0], [1], [0, 0, 1, 1], [], []>} : vector<128x96xbf16>, vector<96x32xbf16>, vector<128x32xf32> -> vector<128x32xf32>
    %c0_3 = arith.constant 0 : index
    %c0_4 = arith.constant 0 : index
    %3 = vector.load %arg3[%c0_3, %c0_4] : memref<1x32xf32, #tpu.memory_space<vmem>>, vector<1x32xf32>
    %4 = vector.broadcast %3 : vector<1x32xf32> to vector<128x32xf32>
    %5 = arith.mulf %2, %4 : vector<128x32xf32>
    %c0_5 = arith.constant 0 : index
    %c0_6 = arith.constant 0 : index
    %6 = vector.load %arg4[%c0_5, %c0_6] : memref<1x32xf32, #tpu.memory_space<vmem>>, vector<1x32xf32>
    %7 = vector.broadcast %6 : vector<1x32xf32> to vector<128x32xf32>
    %8 = arith.addf %5, %7 : vector<128x32xf32>
    %cst_7 = arith.constant 0.000000e+00 : f32
    %9 = vector.broadcast %cst_7 : f32 to vector<128x32xf32>
    %10 = arith.maximumf %8, %9 : vector<128x32xf32>
    %c0_8 = arith.constant 0 : index
    %c0_9 = arith.constant 0 : index
    %11 = vector.load %arg5[%c0_8, %c0_9] : memref<128x32xf32, #tpu.memory_space<vmem>>, vector<128x32xf32>
    tpu.vector_store %arg5[%c0_8, %c0_9], %10 {strides = array<i32>} : memref<128x32xf32, #tpu.memory_space<vmem>>, vector<128x32xf32>,
    return
  }
  func.func @transform_0(%arg0: i32) -> (i32, i32) {
    %c0_i32 = arith.constant 0 : i32
    %c0_i32_0 = arith.constant 0 : i32
    return %arg0, %c0_i32 : i32, i32
  }
  func.func @transform_1(%arg0: i32) -> (i32, i32) {
    %c0_i32 = arith.constant 0 : i32
    %c0_i32_0 = arith.constant 0 : i32
    %c0_i32_1 = arith.constant 0 : i32
    return %c0_i32, %c0_i32_0 : i32, i32
  }
  func.func @transform_2(%arg0: i32) -> (i32, i32) {
    %c0_i32 = arith.constant 0 : i32
    %c0_i32_0 = arith.constant 0 : i32
    %c0_i32_1 = arith.constant 0 : i32
    return %c0_i32, %c0_i32_0 : i32, i32
  }
  func.func @transform_3(%arg0: i32) -> (i32, i32) {
    %c0_i32 = arith.constant 0 : i32
    %c0_i32_0 = arith.constant 0 : i32
    %c0_i32_1 = arith.constant 0 : i32
    return %c0_i32, %c0_i32_0 : i32, i32
  }
  func.func @transform_4(%arg0: i32) -> (i32, i32) {
    %c0_i32 = arith.constant 0 : i32
    %c0_i32_0 = arith.constant 0 : i32
    return %arg0, %c0_i32 : i32, i32
  }
}

module attributes {stable_mosaic.version = 11 : i64} {
  func.func @_mm_fused_kernel(%arg0: i32, %arg1: memref<128x96xbf16, #tpu.memory_space<vmem>>, %arg2: memref<96x32xbf16, #tpu.memory_space<vmem>>, %arg3: memref<1x32xf32, #tpu.memory_space<vmem>>, %arg4: memref<1x32xf32, #tpu.memory_space<vmem>>, %arg5: memref<128x32xf32, #tpu.memory_space<vmem>>) attributes {dimension_semantics = [#tpu.dimension_semantics<parallel>], iteration_bounds = array<i64: 1>, scalar_prefetch = 0 : i64, scratch_operands = 0 : i64, tpu.core_type = #tpu.core_type<tc>, window_params = [{transform_indices = @transform_0, window_bounds = array<i64: 128, 96>}, {pipeline_mode = #tpu.pipeline_mode<synchronous>, transform_indices = @transform_1, window_bounds = array<i64: 96, 32>}, {pipeline_mode = #tpu.pipeline_mode<synchronous>, transform_indices = @transform_2, window_bounds = array<i64: 1, 32>}, {pipeline_mode = #tpu.pipeline_mode<synchronous>, transform_indices = @transform_3, window_bounds = array<i64: 1, 32>}, {transform_indices = @transform_4, window_bounds = array<i64: 128, 32>}]} {
    %c0 = arith.constant 0 : index
    %c0_0 = arith.constant 0 : index
    %0 = vector.load %arg1[%c0, %c0_0] : memref<128x96xbf16, #tpu.memory_space<vmem>>, vector<128x96xbf16>
    %c0_1 = arith.constant 0 : index
    %c0_2 = arith.constant 0 : index
    %1 = vector.load %arg2[%c0_1, %c0_2] : memref<96x32xbf16, #tpu.memory_space<vmem>>, vector<96x32xbf16>
    %cst = arith.constant dense<0.000000e+00> : vector<128x32xf32>
    %2 = tpu.matmul %0, %1, %cst {dimension_numbers = #tpu.dot_dimension_numbers<[1], [0], [0], [1], [0, 0, 1, 1], [], []>} : vector<128x96xbf16>, vector<96x32xbf16>, vector<128x32xf32> -> vector<128x32xf32>
    %c0_3 = arith.constant 0 : index
    %c0_4 = arith.constant 0 : index
    %3 = vector.load %arg3[%c0_3, %c0_4] : memref<1x32xf32, #tpu.memory_space<vmem>>, vector<1x32xf32>
    %4 = vector.broadcast %3 : vector<1x32xf32> to vector<128x32xf32>
    %5 = arith.mulf %2, %4 : vector<128x32xf32>
    %c0_5 = arith.constant 0 : index
    %c0_6 = arith.constant 0 : index
    %6 = vector.load %arg4[%c0_5, %c0_6] : memref<1x32xf32, #tpu.memory_space<vmem>>, vector<1x32xf32>
    %7 = vector.broadcast %6 : vector<1x32xf32> to vector<128x32xf32>
    %8 = arith.addf %5, %7 : vector<128x32xf32>
    %c0_7 = arith.constant 0 : index
    %c0_8 = arith.constant 0 : index
    %9 = vector.load %arg5[%c0_7, %c0_8] : memref<128x32xf32, #tpu.memory_space<vmem>>, vector<128x32xf32>
    tpu.vector_store %arg5[%c0_7, %c0_8], %8 {strides = array<i32>} : memref<128x32xf32, #tpu.memory_space<vmem>>, vector<128x32xf32>,
    return
  }
  func.func @transform_0(%arg0: i32) -> (i32, i32) {
    %c0_i32 = arith.constant 0 : i32
    %c0_i32_0 = arith.constant 0 : i32
    return %arg0, %c0_i32 : i32, i32
  }
  func.func @transform_1(%arg0: i32) -> (i32, i32) {
    %c0_i32 = arith.constant 0 : i32
    %c0_i32_0 = arith.constant 0 : i32
    %c0_i32_1 = arith.constant 0 : i32
    return %c0_i32, %c0_i32_0 : i32, i32
  }
  func.func @transform_2(%arg0: i32) -> (i32, i32) {
    %c0_i32 = arith.constant 0 : i32
    %c0_i32_0 = arith.constant 0 : i32
    %c0_i32_1 = arith.constant 0 : i32
    return %c0_i32, %c0_i32_0 : i32, i32
  }
  func.func @transform_3(%arg0: i32) -> (i32, i32) {
    %c0_i32 = arith.constant 0 : i32
    %c0_i32_0 = arith.constant 0 : i32
    %c0_i32_1 = arith.constant 0 : i32
    return %c0_i32, %c0_i32_0 : i32, i32
  }
  func.func @transform_4(%arg0: i32) -> (i32, i32) {
    %c0_i32 = arith.constant 0 : i32
    %c0_i32_0 = arith.constant 0 : i32
    return %arg0, %c0_i32 : i32, i32
  }
}

module attributes {stable_mosaic.version = 11 : i64} {
  func.func @_mm_fused_kernel(%arg0: i32, %arg1: memref<128x32xbf16, #tpu.memory_space<vmem>>, %arg2: memref<32x3xbf16, #tpu.memory_space<vmem>>, %arg3: memref<1x3xf32, #tpu.memory_space<vmem>>, %arg4: memref<1x3xf32, #tpu.memory_space<vmem>>, %arg5: memref<128x3xf32, #tpu.memory_space<vmem>>) attributes {dimension_semantics = [#tpu.dimension_semantics<parallel>], iteration_bounds = array<i64: 1>, scalar_prefetch = 0 : i64, scratch_operands = 0 : i64, tpu.core_type = #tpu.core_type<tc>, window_params = [{transform_indices = @transform_0, window_bounds = array<i64: 128, 32>}, {pipeline_mode = #tpu.pipeline_mode<synchronous>, transform_indices = @transform_1, window_bounds = array<i64: 32, 3>}, {pipeline_mode = #tpu.pipeline_mode<synchronous>, transform_indices = @transform_2, window_bounds = array<i64: 1, 3>}, {pipeline_mode = #tpu.pipeline_mode<synchronous>, transform_indices = @transform_3, window_bounds = array<i64: 1, 3>}, {transform_indices = @transform_4, window_bounds = array<i64: 128, 3>}]} {
    %c0 = arith.constant 0 : index
    %c0_0 = arith.constant 0 : index
    %0 = vector.load %arg1[%c0, %c0_0] : memref<128x32xbf16, #tpu.memory_space<vmem>>, vector<128x32xbf16>
    %c0_1 = arith.constant 0 : index
    %c0_2 = arith.constant 0 : index
    %1 = vector.load %arg2[%c0_1, %c0_2] : memref<32x3xbf16, #tpu.memory_space<vmem>>, vector<32x3xbf16>
    %cst = arith.constant dense<0.000000e+00> : vector<128x3xf32>
    %2 = tpu.matmul %0, %1, %cst {dimension_numbers = #tpu.dot_dimension_numbers<[1], [0], [0], [1], [0, 0, 1, 1], [], []>} : vector<128x32xbf16>, vector<32x3xbf16>, vector<128x3xf32> -> vector<128x3xf32>
    %c0_3 = arith.constant 0 : index
    %c0_4 = arith.constant 0 : index
    %3 = vector.load %arg3[%c0_3, %c0_4] : memref<1x3xf32, #tpu.memory_space<vmem>>, vector<1x3xf32>
    %4 = vector.broadcast %3 : vector<1x3xf32> to vector<128x3xf32>
    %5 = arith.mulf %2, %4 : vector<128x3xf32>
    %c0_5 = arith.constant 0 : index
    %c0_6 = arith.constant 0 : index
    %6 = vector.load %arg4[%c0_5, %c0_6] : memref<1x3xf32, #tpu.memory_space<vmem>>, vector<1x3xf32>
    %7 = vector.broadcast %6 : vector<1x3xf32> to vector<128x3xf32>
    %8 = arith.addf %5, %7 : vector<128x3xf32>
    %c0_7 = arith.constant 0 : index
    %c0_8 = arith.constant 0 : index
    %9 = vector.load %arg5[%c0_7, %c0_8] : memref<128x3xf32, #tpu.memory_space<vmem>>, vector<128x3xf32>
    tpu.vector_store %arg5[%c0_7, %c0_8], %8 {strides = array<i32>} : memref<128x3xf32, #tpu.memory_space<vmem>>, vector<128x3xf32>,
    return
  }
  func.func @transform_0(%arg0: i32) -> (i32, i32) {
    %c0_i32 = arith.constant 0 : i32
    %c0_i32_0 = arith.constant 0 : i32
    return %arg0, %c0_i32 : i32, i32
  }
  func.func @transform_1(%arg0: i32) -> (i32, i32) {
    %c0_i32 = arith.constant 0 : i32
    %c0_i32_0 = arith.constant 0 : i32
    %c0_i32_1 = arith.constant 0 : i32
    return %c0_i32, %c0_i32_0 : i32, i32
  }
  func.func @transform_2(%arg0: i32) -> (i32, i32) {
    %c0_i32 = arith.constant 0 : i32
    %c0_i32_0 = arith.constant 0 : i32
    %c0_i32_1 = arith.constant 0 : i32
    return %c0_i32, %c0_i32_0 : i32, i32
  }
  func.func @transform_3(%arg0: i32) -> (i32, i32) {
    %c0_i32 = arith.constant 0 : i32
    %c0_i32_0 = arith.constant 0 : i32
    %c0_i32_1 = arith.constant 0 : i32
    return %c0_i32, %c0_i32_0 : i32, i32
  }
  func.func @transform_4(%arg0: i32) -> (i32, i32) {
    %c0_i32 = arith.constant 0 : i32
    %c0_i32_0 = arith.constant 0 : i32
    return %arg0, %c0_i32 : i32, i32
  }
}

module attributes {stable_mosaic.version = 11 : i64} {
  func.func @_mm_fused_kernel(%arg0: i32, %arg1: memref<512x18xbf16, #tpu.memory_space<vmem>>, %arg2: memref<18x32xbf16, #tpu.memory_space<vmem>>, %arg3: memref<1x32xf32, #tpu.memory_space<vmem>>, %arg4: memref<1x32xf32, #tpu.memory_space<vmem>>, %arg5: memref<512x32xf32, #tpu.memory_space<vmem>>) attributes {dimension_semantics = [#tpu.dimension_semantics<parallel>], iteration_bounds = array<i64: 1>, scalar_prefetch = 0 : i64, scratch_operands = 0 : i64, tpu.core_type = #tpu.core_type<tc>, window_params = [{transform_indices = @transform_0, window_bounds = array<i64: 512, 18>}, {pipeline_mode = #tpu.pipeline_mode<synchronous>, transform_indices = @transform_1, window_bounds = array<i64: 18, 32>}, {pipeline_mode = #tpu.pipeline_mode<synchronous>, transform_indices = @transform_2, window_bounds = array<i64: 1, 32>}, {pipeline_mode = #tpu.pipeline_mode<synchronous>, transform_indices = @transform_3, window_bounds = array<i64: 1, 32>}, {transform_indices = @transform_4, window_bounds = array<i64: 512, 32>}]} {
    %c0 = arith.constant 0 : index
    %c0_0 = arith.constant 0 : index
    %0 = vector.load %arg1[%c0, %c0_0] : memref<512x18xbf16, #tpu.memory_space<vmem>>, vector<512x18xbf16>
    %c0_1 = arith.constant 0 : index
    %c0_2 = arith.constant 0 : index
    %1 = vector.load %arg2[%c0_1, %c0_2] : memref<18x32xbf16, #tpu.memory_space<vmem>>, vector<18x32xbf16>
    %cst = arith.constant dense<0.000000e+00> : vector<512x32xf32>
    %2 = tpu.matmul %0, %1, %cst {dimension_numbers = #tpu.dot_dimension_numbers<[1], [0], [0], [1], [0, 0, 1, 1], [], []>} : vector<512x18xbf16>, vector<18x32xbf16>, vector<512x32xf32> -> vector<512x32xf32>
    %c0_3 = arith.constant 0 : index
    %c0_4 = arith.constant 0 : index
    %3 = vector.load %arg3[%c0_3, %c0_4] : memref<1x32xf32, #tpu.memory_space<vmem>>, vector<1x32xf32>
    %4 = vector.broadcast %3 : vector<1x32xf32> to vector<512x32xf32>
    %5 = arith.mulf %2, %4 : vector<512x32xf32>
    %c0_5 = arith.constant 0 : index
    %c0_6 = arith.constant 0 : index
    %6 = vector.load %arg4[%c0_5, %c0_6] : memref<1x32xf32, #tpu.memory_space<vmem>>, vector<1x32xf32>
    %7 = vector.broadcast %6 : vector<1x32xf32> to vector<512x32xf32>
    %8 = arith.addf %5, %7 : vector<512x32xf32>
    %cst_7 = arith.constant 0.000000e+00 : f32
    %9 = vector.broadcast %cst_7 : f32 to vector<512x32xf32>
    %10 = arith.maximumf %8, %9 : vector<512x32xf32>
    %c0_8 = arith.constant 0 : index
    %c0_9 = arith.constant 0 : index
    %11 = vector.load %arg5[%c0_8, %c0_9] : memref<512x32xf32, #tpu.memory_space<vmem>>, vector<512x32xf32>
    tpu.vector_store %arg5[%c0_8, %c0_9], %10 {strides = array<i32>} : memref<512x32xf32, #tpu.memory_space<vmem>>, vector<512x32xf32>,
    return
  }
  func.func @transform_0(%arg0: i32) -> (i32, i32) {
    %c0_i32 = arith.constant 0 : i32
    %c0_i32_0 = arith.constant 0 : i32
    return %arg0, %c0_i32 : i32, i32
  }
  func.func @transform_1(%arg0: i32) -> (i32, i32) {
    %c0_i32 = arith.constant 0 : i32
    %c0_i32_0 = arith.constant 0 : i32
    %c0_i32_1 = arith.constant 0 : i32
    return %c0_i32, %c0_i32_0 : i32, i32
  }
  func.func @transform_2(%arg0: i32) -> (i32, i32) {
    %c0_i32 = arith.constant 0 : i32
    %c0_i32_0 = arith.constant 0 : i32
    %c0_i32_1 = arith.constant 0 : i32
    return %c0_i32, %c0_i32_0 : i32, i32
  }
  func.func @transform_3(%arg0: i32) -> (i32, i32) {
    %c0_i32 = arith.constant 0 : i32
    %c0_i32_0 = arith.constant 0 : i32
    %c0_i32_1 = arith.constant 0 : i32
    return %c0_i32, %c0_i32_0 : i32, i32
  }
  func.func @transform_4(%arg0: i32) -> (i32, i32) {
    %c0_i32 = arith.constant 0 : i32
    %c0_i32_0 = arith.constant 0 : i32
    return %arg0, %c0_i32 : i32, i32
  }
}

module attributes {stable_mosaic.version = 11 : i64} {
  func.func @_mm_fused_kernel(%arg0: i32, %arg1: memref<128x288xbf16, #tpu.memory_space<vmem>>, %arg2: memref<288x32xbf16, #tpu.memory_space<vmem>>, %arg3: memref<1x32xf32, #tpu.memory_space<vmem>>, %arg4: memref<1x32xf32, #tpu.memory_space<vmem>>, %arg5: memref<128x32xf32, #tpu.memory_space<vmem>>) attributes {dimension_semantics = [#tpu.dimension_semantics<parallel>], iteration_bounds = array<i64: 1>, scalar_prefetch = 0 : i64, scratch_operands = 0 : i64, tpu.core_type = #tpu.core_type<tc>, window_params = [{transform_indices = @transform_0, window_bounds = array<i64: 128, 288>}, {pipeline_mode = #tpu.pipeline_mode<synchronous>, transform_indices = @transform_1, window_bounds = array<i64: 288, 32>}, {pipeline_mode = #tpu.pipeline_mode<synchronous>, transform_indices = @transform_2, window_bounds = array<i64: 1, 32>}, {pipeline_mode = #tpu.pipeline_mode<synchronous>, transform_indices = @transform_3, window_bounds = array<i64: 1, 32>}, {transform_indices = @transform_4, window_bounds = array<i64: 128, 32>}]} {
    %c0 = arith.constant 0 : index
    %c0_0 = arith.constant 0 : index
    %0 = vector.load %arg1[%c0, %c0_0] : memref<128x288xbf16, #tpu.memory_space<vmem>>, vector<128x288xbf16>
    %c0_1 = arith.constant 0 : index
    %c0_2 = arith.constant 0 : index
    %1 = vector.load %arg2[%c0_1, %c0_2] : memref<288x32xbf16, #tpu.memory_space<vmem>>, vector<288x32xbf16>
    %cst = arith.constant dense<0.000000e+00> : vector<128x32xf32>
    %2 = tpu.matmul %0, %1, %cst {dimension_numbers = #tpu.dot_dimension_numbers<[1], [0], [0], [1], [0, 0, 1, 1], [], []>} : vector<128x288xbf16>, vector<288x32xbf16>, vector<128x32xf32> -> vector<128x32xf32>
    %c0_3 = arith.constant 0 : index
    %c0_4 = arith.constant 0 : index
    %3 = vector.load %arg3[%c0_3, %c0_4] : memref<1x32xf32, #tpu.memory_space<vmem>>, vector<1x32xf32>
    %4 = vector.broadcast %3 : vector<1x32xf32> to vector<128x32xf32>
    %5 = arith.mulf %2, %4 : vector<128x32xf32>
    %c0_5 = arith.constant 0 : index
    %c0_6 = arith.constant 0 : index
    %6 = vector.load %arg4[%c0_5, %c0_6] : memref<1x32xf32, #tpu.memory_space<vmem>>, vector<1x32xf32>
    %7 = vector.broadcast %6 : vector<1x32xf32> to vector<128x32xf32>
    %8 = arith.addf %5, %7 : vector<128x32xf32>
    %cst_7 = arith.constant 0.000000e+00 : f32
    %9 = vector.broadcast %cst_7 : f32 to vector<128x32xf32>
    %10 = arith.maximumf %8, %9 : vector<128x32xf32>
    %c0_8 = arith.constant 0 : index
    %c0_9 = arith.constant 0 : index
    %11 = vector.load %arg5[%c0_8, %c0_9] : memref<128x32xf32, #tpu.memory_space<vmem>>, vector<128x32xf32>
    tpu.vector_store %arg5[%c0_8, %c0_9], %10 {strides = array<i32>} : memref<128x32xf32, #tpu.memory_space<vmem>>, vector<128x32xf32>,
    return
  }
  func.func @transform_0(%arg0: i32) -> (i32, i32) {
    %c0_i32 = arith.constant 0 : i32
    %c0_i32_0 = arith.constant 0 : i32
    return %arg0, %c0_i32 : i32, i32
  }
  func.func @transform_1(%arg0: i32) -> (i32, i32) {
    %c0_i32 = arith.constant 0 : i32
    %c0_i32_0 = arith.constant 0 : i32
    %c0_i32_1 = arith.constant 0 : i32
    return %c0_i32, %c0_i32_0 : i32, i32
  }
  func.func @transform_2(%arg0: i32) -> (i32, i32) {
    %c0_i32 = arith.constant 0 : i32
    %c0_i32_0 = arith.constant 0 : i32
    %c0_i32_1 = arith.constant 0 : i32
    return %c0_i32, %c0_i32_0 : i32, i32
  }
  func.func @transform_3(%arg0: i32) -> (i32, i32) {
    %c0_i32 = arith.constant 0 : i32
    %c0_i32_0 = arith.constant 0 : i32
    %c0_i32_1 = arith.constant 0 : i32
    return %c0_i32, %c0_i32_0 : i32, i32
  }
  func.func @transform_4(%arg0: i32) -> (i32, i32) {
    %c0_i32 = arith.constant 0 : i32
    %c0_i32_0 = arith.constant 0 : i32
    return %arg0, %c0_i32 : i32, i32
  }
}

module attributes {stable_mosaic.version = 11 : i64} {
  func.func @_mm_fused_kernel(%arg0: i32, %arg1: memref<32x576xbf16, #tpu.memory_space<vmem>>, %arg2: memref<576x64xbf16, #tpu.memory_space<vmem>>, %arg3: memref<1x64xf32, #tpu.memory_space<vmem>>, %arg4: memref<1x64xf32, #tpu.memory_space<vmem>>, %arg5: memref<32x64xf32, #tpu.memory_space<vmem>>) attributes {dimension_semantics = [#tpu.dimension_semantics<parallel>], iteration_bounds = array<i64: 1>, scalar_prefetch = 0 : i64, scratch_operands = 0 : i64, tpu.core_type = #tpu.core_type<tc>, window_params = [{transform_indices = @transform_0, window_bounds = array<i64: 32, 576>}, {pipeline_mode = #tpu.pipeline_mode<synchronous>, transform_indices = @transform_1, window_bounds = array<i64: 576, 64>}, {pipeline_mode = #tpu.pipeline_mode<synchronous>, transform_indices = @transform_2, window_bounds = array<i64: 1, 64>}, {pipeline_mode = #tpu.pipeline_mode<synchronous>, transform_indices = @transform_3, window_bounds = array<i64: 1, 64>}, {transform_indices = @transform_4, window_bounds = array<i64: 32, 64>}]} {
    %c0 = arith.constant 0 : index
    %c0_0 = arith.constant 0 : index
    %0 = vector.load %arg1[%c0, %c0_0] : memref<32x576xbf16, #tpu.memory_space<vmem>>, vector<32x576xbf16>
    %c0_1 = arith.constant 0 : index
    %c0_2 = arith.constant 0 : index
    %1 = vector.load %arg2[%c0_1, %c0_2] : memref<576x64xbf16, #tpu.memory_space<vmem>>, vector<576x64xbf16>
    %cst = arith.constant dense<0.000000e+00> : vector<32x64xf32>
    %2 = tpu.matmul %0, %1, %cst {dimension_numbers = #tpu.dot_dimension_numbers<[1], [0], [0], [1], [0, 0, 1, 1], [], []>} : vector<32x576xbf16>, vector<576x64xbf16>, vector<32x64xf32> -> vector<32x64xf32>
    %c0_3 = arith.constant 0 : index
    %c0_4 = arith.constant 0 : index
    %3 = vector.load %arg3[%c0_3, %c0_4] : memref<1x64xf32, #tpu.memory_space<vmem>>, vector<1x64xf32>
    %4 = vector.broadcast %3 : vector<1x64xf32> to vector<32x64xf32>
    %5 = arith.mulf %2, %4 : vector<32x64xf32>
    %c0_5 = arith.constant 0 : index
    %c0_6 = arith.constant 0 : index
    %6 = vector.load %arg4[%c0_5, %c0_6] : memref<1x64xf32, #tpu.memory_space<vmem>>, vector<1x64xf32>
    %7 = vector.broadcast %6 : vector<1x64xf32> to vector<32x64xf32>
    %8 = arith.addf %5, %7 : vector<32x64xf32>
    %cst_7 = arith.constant 0.000000e+00 : f32
    %9 = vector.broadcast %cst_7 : f32 to vector<32x64xf32>
    %10 = arith.maximumf %8, %9 : vector<32x64xf32>
    %c0_8 = arith.constant 0 : index
    %c0_9 = arith.constant 0 : index
    %11 = vector.load %arg5[%c0_8, %c0_9] : memref<32x64xf32, #tpu.memory_space<vmem>>, vector<32x64xf32>
    tpu.vector_store %arg5[%c0_8, %c0_9], %10 {strides = array<i32>} : memref<32x64xf32, #tpu.memory_space<vmem>>, vector<32x64xf32>,
    return
  }
  func.func @transform_0(%arg0: i32) -> (i32, i32) {
    %c0_i32 = arith.constant 0 : i32
    %c0_i32_0 = arith.constant 0 : i32
    return %arg0, %c0_i32 : i32, i32
  }
  func.func @transform_1(%arg0: i32) -> (i32, i32) {
    %c0_i32 = arith.constant 0 : i32
    %c0_i32_0 = arith.constant 0 : i32
    %c0_i32_1 = arith.constant 0 : i32
    return %c0_i32, %c0_i32_0 : i32, i32
  }
  func.func @transform_2(%arg0: i32) -> (i32, i32) {
    %c0_i32 = arith.constant 0 : i32
    %c0_i32_0 = arith.constant 0 : i32
    %c0_i32_1 = arith.constant 0 : i32
    return %c0_i32, %c0_i32_0 : i32, i32
  }
  func.func @transform_3(%arg0: i32) -> (i32, i32) {
    %c0_i32 = arith.constant 0 : i32
    %c0_i32_0 = arith.constant 0 : i32
    %c0_i32_1 = arith.constant 0 : i32
    return %c0_i32, %c0_i32_0 : i32, i32
  }
  func.func @transform_4(%arg0: i32) -> (i32, i32) {
    %c0_i32 = arith.constant 0 : i32
    %c0_i32_0 = arith.constant 0 : i32
    return %arg0, %c0_i32 : i32, i32
  }
}

module attributes {stable_mosaic.version = 11 : i64} {
  func.func @_mm_fused_kernel(%arg0: i32, %arg1: memref<32x128xbf16, #tpu.memory_space<vmem>>, %arg2: memref<128x64xbf16, #tpu.memory_space<vmem>>, %arg3: memref<1x64xf32, #tpu.memory_space<vmem>>, %arg4: memref<1x64xf32, #tpu.memory_space<vmem>>, %arg5: memref<32x64xf32, #tpu.memory_space<vmem>>) attributes {dimension_semantics = [#tpu.dimension_semantics<parallel>], iteration_bounds = array<i64: 1>, scalar_prefetch = 0 : i64, scratch_operands = 0 : i64, tpu.core_type = #tpu.core_type<tc>, window_params = [{transform_indices = @transform_0, window_bounds = array<i64: 32, 128>}, {pipeline_mode = #tpu.pipeline_mode<synchronous>, transform_indices = @transform_1, window_bounds = array<i64: 128, 64>}, {pipeline_mode = #tpu.pipeline_mode<synchronous>, transform_indices = @transform_2, window_bounds = array<i64: 1, 64>}, {pipeline_mode = #tpu.pipeline_mode<synchronous>, transform_indices = @transform_3, window_bounds = array<i64: 1, 64>}, {transform_indices = @transform_4, window_bounds = array<i64: 32, 64>}]} {
    %c0 = arith.constant 0 : index
    %c0_0 = arith.constant 0 : index
    %0 = vector.load %arg1[%c0, %c0_0] : memref<32x128xbf16, #tpu.memory_space<vmem>>, vector<32x128xbf16>
    %c0_1 = arith.constant 0 : index
    %c0_2 = arith.constant 0 : index
    %1 = vector.load %arg2[%c0_1, %c0_2] : memref<128x64xbf16, #tpu.memory_space<vmem>>, vector<128x64xbf16>
    %cst = arith.constant dense<0.000000e+00> : vector<32x64xf32>
    %2 = tpu.matmul %0, %1, %cst {dimension_numbers = #tpu.dot_dimension_numbers<[1], [0], [0], [1], [0, 0, 1, 1], [], []>} : vector<32x128xbf16>, vector<128x64xbf16>, vector<32x64xf32> -> vector<32x64xf32>
    %c0_3 = arith.constant 0 : index
    %c0_4 = arith.constant 0 : index
    %3 = vector.load %arg3[%c0_3, %c0_4] : memref<1x64xf32, #tpu.memory_space<vmem>>, vector<1x64xf32>
    %4 = vector.broadcast %3 : vector<1x64xf32> to vector<32x64xf32>
    %5 = arith.mulf %2, %4 : vector<32x64xf32>
    %c0_5 = arith.constant 0 : index
    %c0_6 = arith.constant 0 : index
    %6 = vector.load %arg4[%c0_5, %c0_6] : memref<1x64xf32, #tpu.memory_space<vmem>>, vector<1x64xf32>
    %7 = vector.broadcast %6 : vector<1x64xf32> to vector<32x64xf32>
    %8 = arith.addf %5, %7 : vector<32x64xf32>
    %cst_7 = arith.constant 0.000000e+00 : f32
    %9 = vector.broadcast %cst_7 : f32 to vector<32x64xf32>
    %10 = arith.maximumf %8, %9 : vector<32x64xf32>
    %c0_8 = arith.constant 0 : index
    %c0_9 = arith.constant 0 : index
    %11 = vector.load %arg5[%c0_8, %c0_9] : memref<32x64xf32, #tpu.memory_space<vmem>>, vector<32x64xf32>
    tpu.vector_store %arg5[%c0_8, %c0_9], %10 {strides = array<i32>} : memref<32x64xf32, #tpu.memory_space<vmem>>, vector<32x64xf32>,
    return
  }
  func.func @transform_0(%arg0: i32) -> (i32, i32) {
    %c0_i32 = arith.constant 0 : i32
    %c0_i32_0 = arith.constant 0 : i32
    return %arg0, %c0_i32 : i32, i32
  }
  func.func @transform_1(%arg0: i32) -> (i32, i32) {
    %c0_i32 = arith.constant 0 : i32
    %c0_i32_0 = arith.constant 0 : i32
    %c0_i32_1 = arith.constant 0 : i32
    return %c0_i32, %c0_i32_0 : i32, i32
  }
  func.func @transform_2(%arg0: i32) -> (i32, i32) {
    %c0_i32 = arith.constant 0 : i32
    %c0_i32_0 = arith.constant 0 : i32
    %c0_i32_1 = arith.constant 0 : i32
    return %c0_i32, %c0_i32_0 : i32, i32
  }
  func.func @transform_3(%arg0: i32) -> (i32, i32) {
    %c0_i32 = arith.constant 0 : i32
    %c0_i32_0 = arith.constant 0 : i32
    %c0_i32_1 = arith.constant 0 : i32
    return %c0_i32, %c0_i32_0 : i32, i32
  }
  func.func @transform_4(%arg0: i32) -> (i32, i32) {
    %c0_i32 = arith.constant 0 : i32
    %c0_i32_0 = arith.constant 0 : i32
    return %arg0, %c0_i32 : i32, i32
  }
}

module attributes {stable_mosaic.version = 11 : i64} {
  func.func @_mm_fused_kernel(%arg0: i32, %arg1: memref<32x256xbf16, #tpu.memory_space<vmem>>, %arg2: memref<256x64xbf16, #tpu.memory_space<vmem>>, %arg3: memref<1x64xf32, #tpu.memory_space<vmem>>, %arg4: memref<1x64xf32, #tpu.memory_space<vmem>>, %arg5: memref<32x64xf32, #tpu.memory_space<vmem>>) attributes {dimension_semantics = [#tpu.dimension_semantics<parallel>], iteration_bounds = array<i64: 1>, scalar_prefetch = 0 : i64, scratch_operands = 0 : i64, tpu.core_type = #tpu.core_type<tc>, window_params = [{transform_indices = @transform_0, window_bounds = array<i64: 32, 256>}, {pipeline_mode = #tpu.pipeline_mode<synchronous>, transform_indices = @transform_1, window_bounds = array<i64: 256, 64>}, {pipeline_mode = #tpu.pipeline_mode<synchronous>, transform_indices = @transform_2, window_bounds = array<i64: 1, 64>}, {pipeline_mode = #tpu.pipeline_mode<synchronous>, transform_indices = @transform_3, window_bounds = array<i64: 1, 64>}, {transform_indices = @transform_4, window_bounds = array<i64: 32, 64>}]} {
    %c0 = arith.constant 0 : index
    %c0_0 = arith.constant 0 : index
    %0 = vector.load %arg1[%c0, %c0_0] : memref<32x256xbf16, #tpu.memory_space<vmem>>, vector<32x256xbf16>
    %c0_1 = arith.constant 0 : index
    %c0_2 = arith.constant 0 : index
    %1 = vector.load %arg2[%c0_1, %c0_2] : memref<256x64xbf16, #tpu.memory_space<vmem>>, vector<256x64xbf16>
    %cst = arith.constant dense<0.000000e+00> : vector<32x64xf32>
    %2 = tpu.matmul %0, %1, %cst {dimension_numbers = #tpu.dot_dimension_numbers<[1], [0], [0], [1], [0, 0, 1, 1], [], []>} : vector<32x256xbf16>, vector<256x64xbf16>, vector<32x64xf32> -> vector<32x64xf32>
    %c0_3 = arith.constant 0 : index
    %c0_4 = arith.constant 0 : index
    %3 = vector.load %arg3[%c0_3, %c0_4] : memref<1x64xf32, #tpu.memory_space<vmem>>, vector<1x64xf32>
    %4 = vector.broadcast %3 : vector<1x64xf32> to vector<32x64xf32>
    %5 = arith.mulf %2, %4 : vector<32x64xf32>
    %c0_5 = arith.constant 0 : index
    %c0_6 = arith.constant 0 : index
    %6 = vector.load %arg4[%c0_5, %c0_6] : memref<1x64xf32, #tpu.memory_space<vmem>>, vector<1x64xf32>
    %7 = vector.broadcast %6 : vector<1x64xf32> to vector<32x64xf32>
    %8 = arith.addf %5, %7 : vector<32x64xf32>
    %cst_7 = arith.constant 0.000000e+00 : f32
    %9 = vector.broadcast %cst_7 : f32 to vector<32x64xf32>
    %10 = arith.maximumf %8, %9 : vector<32x64xf32>
    %c0_8 = arith.constant 0 : index
    %c0_9 = arith.constant 0 : index
    %11 = vector.load %arg5[%c0_8, %c0_9] : memref<32x64xf32, #tpu.memory_space<vmem>>, vector<32x64xf32>
    tpu.vector_store %arg5[%c0_8, %c0_9], %10 {strides = array<i32>} : memref<32x64xf32, #tpu.memory_space<vmem>>, vector<32x64xf32>,
    return
  }
  func.func @transform_0(%arg0: i32) -> (i32, i32) {
    %c0_i32 = arith.constant 0 : i32
    %c0_i32_0 = arith.constant 0 : i32
    return %arg0, %c0_i32 : i32, i32
  }
  func.func @transform_1(%arg0: i32) -> (i32, i32) {
    %c0_i32 = arith.constant 0 : i32
    %c0_i32_0 = arith.constant 0 : i32
    %c0_i32_1 = arith.constant 0 : i32
    return %c0_i32, %c0_i32_0 : i32, i32
  }
  func.func @transform_2(%arg0: i32) -> (i32, i32) {
    %c0_i32 = arith.constant 0 : i32
    %c0_i32_0 = arith.constant 0 : i32
    %c0_i32_1 = arith.constant 0 : i32
    return %c0_i32, %c0_i32_0 : i32, i32
  }
  func.func @transform_3(%arg0: i32) -> (i32, i32) {
    %c0_i32 = arith.constant 0 : i32
    %c0_i32_0 = arith.constant 0 : i32
    %c0_i32_1 = arith.constant 0 : i32
    return %c0_i32, %c0_i32_0 : i32, i32
  }
  func.func @transform_4(%arg0: i32) -> (i32, i32) {
    %c0_i32 = arith.constant 0 : i32
    %c0_i32_0 = arith.constant 0 : i32
    return %arg0, %c0_i32 : i32, i32
  }
}

module attributes {stable_mosaic.version = 11 : i64} {
  func.func @_mm_fused_kernel(%arg0: i32, %arg1: memref<32x512xbf16, #tpu.memory_space<vmem>>, %arg2: memref<512x64xbf16, #tpu.memory_space<vmem>>, %arg3: memref<1x64xf32, #tpu.memory_space<vmem>>, %arg4: memref<1x64xf32, #tpu.memory_space<vmem>>, %arg5: memref<32x64xf32, #tpu.memory_space<vmem>>) attributes {dimension_semantics = [#tpu.dimension_semantics<parallel>], iteration_bounds = array<i64: 1>, scalar_prefetch = 0 : i64, scratch_operands = 0 : i64, tpu.core_type = #tpu.core_type<tc>, window_params = [{transform_indices = @transform_0, window_bounds = array<i64: 32, 512>}, {pipeline_mode = #tpu.pipeline_mode<synchronous>, transform_indices = @transform_1, window_bounds = array<i64: 512, 64>}, {pipeline_mode = #tpu.pipeline_mode<synchronous>, transform_indices = @transform_2, window_bounds = array<i64: 1, 64>}, {pipeline_mode = #tpu.pipeline_mode<synchronous>, transform_indices = @transform_3, window_bounds = array<i64: 1, 64>}, {transform_indices = @transform_4, window_bounds = array<i64: 32, 64>}]} {
    %c0 = arith.constant 0 : index
    %c0_0 = arith.constant 0 : index
    %0 = vector.load %arg1[%c0, %c0_0] : memref<32x512xbf16, #tpu.memory_space<vmem>>, vector<32x512xbf16>
    %c0_1 = arith.constant 0 : index
    %c0_2 = arith.constant 0 : index
    %1 = vector.load %arg2[%c0_1, %c0_2] : memref<512x64xbf16, #tpu.memory_space<vmem>>, vector<512x64xbf16>
    %cst = arith.constant dense<0.000000e+00> : vector<32x64xf32>
    %2 = tpu.matmul %0, %1, %cst {dimension_numbers = #tpu.dot_dimension_numbers<[1], [0], [0], [1], [0, 0, 1, 1], [], []>} : vector<32x512xbf16>, vector<512x64xbf16>, vector<32x64xf32> -> vector<32x64xf32>
    %c0_3 = arith.constant 0 : index
    %c0_4 = arith.constant 0 : index
    %3 = vector.load %arg3[%c0_3, %c0_4] : memref<1x64xf32, #tpu.memory_space<vmem>>, vector<1x64xf32>
    %4 = vector.broadcast %3 : vector<1x64xf32> to vector<32x64xf32>
    %5 = arith.mulf %2, %4 : vector<32x64xf32>
    %c0_5 = arith.constant 0 : index
    %c0_6 = arith.constant 0 : index
    %6 = vector.load %arg4[%c0_5, %c0_6] : memref<1x64xf32, #tpu.memory_space<vmem>>, vector<1x64xf32>
    %7 = vector.broadcast %6 : vector<1x64xf32> to vector<32x64xf32>
    %8 = arith.addf %5, %7 : vector<32x64xf32>
    %cst_7 = arith.constant 0.000000e+00 : f32
    %9 = vector.broadcast %cst_7 : f32 to vector<32x64xf32>
    %10 = arith.maximumf %8, %9 : vector<32x64xf32>
    %c0_8 = arith.constant 0 : index
    %c0_9 = arith.constant 0 : index
    %11 = vector.load %arg5[%c0_8, %c0_9] : memref<32x64xf32, #tpu.memory_space<vmem>>, vector<32x64xf32>
    tpu.vector_store %arg5[%c0_8, %c0_9], %10 {strides = array<i32>} : memref<32x64xf32, #tpu.memory_space<vmem>>, vector<32x64xf32>,
    return
  }
  func.func @transform_0(%arg0: i32) -> (i32, i32) {
    %c0_i32 = arith.constant 0 : i32
    %c0_i32_0 = arith.constant 0 : i32
    return %arg0, %c0_i32 : i32, i32
  }
  func.func @transform_1(%arg0: i32) -> (i32, i32) {
    %c0_i32 = arith.constant 0 : i32
    %c0_i32_0 = arith.constant 0 : i32
    %c0_i32_1 = arith.constant 0 : i32
    return %c0_i32, %c0_i32_0 : i32, i32
  }
  func.func @transform_2(%arg0: i32) -> (i32, i32) {
    %c0_i32 = arith.constant 0 : i32
    %c0_i32_0 = arith.constant 0 : i32
    %c0_i32_1 = arith.constant 0 : i32
    return %c0_i32, %c0_i32_0 : i32, i32
  }
  func.func @transform_3(%arg0: i32) -> (i32, i32) {
    %c0_i32 = arith.constant 0 : i32
    %c0_i32_0 = arith.constant 0 : i32
    %c0_i32_1 = arith.constant 0 : i32
    return %c0_i32, %c0_i32_0 : i32, i32
  }
  func.func @transform_4(%arg0: i32) -> (i32, i32) {
    %c0_i32 = arith.constant 0 : i32
    %c0_i32_0 = arith.constant 0 : i32
    return %arg0, %c0_i32 : i32, i32
  }
}

module attributes {stable_mosaic.version = 11 : i64} {
  func.func @_mm_fused_kernel(%arg0: i32, %arg1: memref<128x128xbf16, #tpu.memory_space<vmem>>, %arg2: memref<128x32xbf16, #tpu.memory_space<vmem>>, %arg3: memref<1x32xf32, #tpu.memory_space<vmem>>, %arg4: memref<1x32xf32, #tpu.memory_space<vmem>>, %arg5: memref<128x32xf32, #tpu.memory_space<vmem>>) attributes {dimension_semantics = [#tpu.dimension_semantics<parallel>], iteration_bounds = array<i64: 1>, scalar_prefetch = 0 : i64, scratch_operands = 0 : i64, tpu.core_type = #tpu.core_type<tc>, window_params = [{transform_indices = @transform_0, window_bounds = array<i64: 128, 128>}, {pipeline_mode = #tpu.pipeline_mode<synchronous>, transform_indices = @transform_1, window_bounds = array<i64: 128, 32>}, {pipeline_mode = #tpu.pipeline_mode<synchronous>, transform_indices = @transform_2, window_bounds = array<i64: 1, 32>}, {pipeline_mode = #tpu.pipeline_mode<synchronous>, transform_indices = @transform_3, window_bounds = array<i64: 1, 32>}, {transform_indices = @transform_4, window_bounds = array<i64: 128, 32>}]} {
    %c0 = arith.constant 0 : index
    %c0_0 = arith.constant 0 : index
    %0 = vector.load %arg1[%c0, %c0_0] : memref<128x128xbf16, #tpu.memory_space<vmem>>, vector<128x128xbf16>
    %c0_1 = arith.constant 0 : index
    %c0_2 = arith.constant 0 : index
    %1 = vector.load %arg2[%c0_1, %c0_2] : memref<128x32xbf16, #tpu.memory_space<vmem>>, vector<128x32xbf16>
    %cst = arith.constant dense<0.000000e+00> : vector<128x32xf32>
    %2 = tpu.matmul %0, %1, %cst {dimension_numbers = #tpu.dot_dimension_numbers<[1], [0], [0], [1], [0, 0, 1, 1], [], []>} : vector<128x128xbf16>, vector<128x32xbf16>, vector<128x32xf32> -> vector<128x32xf32>
    %c0_3 = arith.constant 0 : index
    %c0_4 = arith.constant 0 : index
    %3 = vector.load %arg3[%c0_3, %c0_4] : memref<1x32xf32, #tpu.memory_space<vmem>>, vector<1x32xf32>
    %4 = vector.broadcast %3 : vector<1x32xf32> to vector<128x32xf32>
    %5 = arith.mulf %2, %4 : vector<128x32xf32>
    %c0_5 = arith.constant 0 : index
    %c0_6 = arith.constant 0 : index
    %6 = vector.load %arg4[%c0_5, %c0_6] : memref<1x32xf32, #tpu.memory_space<vmem>>, vector<1x32xf32>
    %7 = vector.broadcast %6 : vector<1x32xf32> to vector<128x32xf32>
    %8 = arith.addf %5, %7 : vector<128x32xf32>
    %c0_7 = arith.constant 0 : index
    %c0_8 = arith.constant 0 : index
    %9 = vector.load %arg5[%c0_7, %c0_8] : memref<128x32xf32, #tpu.memory_space<vmem>>, vector<128x32xf32>
    tpu.vector_store %arg5[%c0_7, %c0_8], %8 {strides = array<i32>} : memref<128x32xf32, #tpu.memory_space<vmem>>, vector<128x32xf32>,
    return
  }
  func.func @transform_0(%arg0: i32) -> (i32, i32) {
    %c0_i32 = arith.constant 0 : i32
    %c0_i32_0 = arith.constant 0 : i32
    return %arg0, %c0_i32 : i32, i32
  }
  func.func @transform_1(%arg0: i32) -> (i32, i32) {
    %c0_i32 = arith.constant 0 : i32
    %c0_i32_0 = arith.constant 0 : i32
    %c0_i32_1 = arith.constant 0 : i32
    return %c0_i32, %c0_i32_0 : i32, i32
  }
  func.func @transform_2(%arg0: i32) -> (i32, i32) {
    %c0_i32 = arith.constant 0 : i32
    %c0_i32_0 = arith.constant 0 : i32
    %c0_i32_1 = arith.constant 0 : i32
    return %c0_i32, %c0_i32_0 : i32, i32
  }
  func.func @transform_3(%arg0: i32) -> (i32, i32) {
    %c0_i32 = arith.constant 0 : i32
    %c0_i32_0 = arith.constant 0 : i32
    %c0_i32_1 = arith.constant 0 : i32
    return %c0_i32, %c0_i32_0 : i32, i32
  }
  func.func @transform_4(%arg0: i32) -> (i32, i32) {
    %c0_i32 = arith.constant 0 : i32
    %c0_i32_0 = arith.constant 0 : i32
    return %arg0, %c0_i32 : i32, i32
  }
}

module attributes {stable_mosaic.version = 11 : i64} {
  func.func @_mm_fused_kernel(%arg0: i32, %arg1: memref<128x64xbf16, #tpu.memory_space<vmem>>, %arg2: memref<64x32xbf16, #tpu.memory_space<vmem>>, %arg3: memref<1x32xf32, #tpu.memory_space<vmem>>, %arg4: memref<1x32xf32, #tpu.memory_space<vmem>>, %arg5: memref<128x32xf32, #tpu.memory_space<vmem>>) attributes {dimension_semantics = [#tpu.dimension_semantics<parallel>], iteration_bounds = array<i64: 1>, scalar_prefetch = 0 : i64, scratch_operands = 0 : i64, tpu.core_type = #tpu.core_type<tc>, window_params = [{transform_indices = @transform_0, window_bounds = array<i64: 128, 64>}, {pipeline_mode = #tpu.pipeline_mode<synchronous>, transform_indices = @transform_1, window_bounds = array<i64: 64, 32>}, {pipeline_mode = #tpu.pipeline_mode<synchronous>, transform_indices = @transform_2, window_bounds = array<i64: 1, 32>}, {pipeline_mode = #tpu.pipeline_mode<synchronous>, transform_indices = @transform_3, window_bounds = array<i64: 1, 32>}, {transform_indices = @transform_4, window_bounds = array<i64: 128, 32>}]} {
    %c0 = arith.constant 0 : index
    %c0_0 = arith.constant 0 : index
    %0 = vector.load %arg1[%c0, %c0_0] : memref<128x64xbf16, #tpu.memory_space<vmem>>, vector<128x64xbf16>
    %c0_1 = arith.constant 0 : index
    %c0_2 = arith.constant 0 : index
    %1 = vector.load %arg2[%c0_1, %c0_2] : memref<64x32xbf16, #tpu.memory_space<vmem>>, vector<64x32xbf16>
    %cst = arith.constant dense<0.000000e+00> : vector<128x32xf32>
    %2 = tpu.matmul %0, %1, %cst {dimension_numbers = #tpu.dot_dimension_numbers<[1], [0], [0], [1], [0, 0, 1, 1], [], []>} : vector<128x64xbf16>, vector<64x32xbf16>, vector<128x32xf32> -> vector<128x32xf32>
    %c0_3 = arith.constant 0 : index
    %c0_4 = arith.constant 0 : index
    %3 = vector.load %arg3[%c0_3, %c0_4] : memref<1x32xf32, #tpu.memory_space<vmem>>, vector<1x32xf32>
    %4 = vector.broadcast %3 : vector<1x32xf32> to vector<128x32xf32>
    %5 = arith.mulf %2, %4 : vector<128x32xf32>
    %c0_5 = arith.constant 0 : index
    %c0_6 = arith.constant 0 : index
    %6 = vector.load %arg4[%c0_5, %c0_6] : memref<1x32xf32, #tpu.memory_space<vmem>>, vector<1x32xf32>
    %7 = vector.broadcast %6 : vector<1x32xf32> to vector<128x32xf32>
    %8 = arith.addf %5, %7 : vector<128x32xf32>
    %c0_7 = arith.constant 0 : index
    %c0_8 = arith.constant 0 : index
    %9 = vector.load %arg5[%c0_7, %c0_8] : memref<128x32xf32, #tpu.memory_space<vmem>>, vector<128x32xf32>
    tpu.vector_store %arg5[%c0_7, %c0_8], %8 {strides = array<i32>} : memref<128x32xf32, #tpu.memory_space<vmem>>, vector<128x32xf32>,
    return
  }
  func.func @transform_0(%arg0: i32) -> (i32, i32) {
    %c0_i32 = arith.constant 0 : i32
    %c0_i32_0 = arith.constant 0 : i32
    return %arg0, %c0_i32 : i32, i32
  }
  func.func @transform_1(%arg0: i32) -> (i32, i32) {
    %c0_i32 = arith.constant 0 : i32
    %c0_i32_0 = arith.constant 0 : i32
    %c0_i32_1 = arith.constant 0 : i32
    return %c0_i32, %c0_i32_0 : i32, i32
  }
  func.func @transform_2(%arg0: i32) -> (i32, i32) {
    %c0_i32 = arith.constant 0 : i32
    %c0_i32_0 = arith.constant 0 : i32
    %c0_i32_1 = arith.constant 0 : i32
    return %c0_i32, %c0_i32_0 : i32, i32
  }
  func.func @transform_3(%arg0: i32) -> (i32, i32) {
    %c0_i32 = arith.constant 0 : i32
    %c0_i32_0 = arith.constant 0 : i32
    %c0_i32_1 = arith.constant 0 : i32
    return %c0_i32, %c0_i32_0 : i32, i32
  }
  func.func @transform_4(%arg0: i32) -> (i32, i32) {
    %c0_i32 = arith.constant 0 : i32
    %c0_i32_0 = arith.constant 0 : i32
    return %arg0, %c0_i32 : i32, i32
  }
}

module attributes {stable_mosaic.version = 11 : i64} {
  func.func @_mm_fused_kernel(%arg0: i32, %arg1: memref<128x256xbf16, #tpu.memory_space<vmem>>, %arg2: memref<256x32xbf16, #tpu.memory_space<vmem>>, %arg3: memref<1x32xf32, #tpu.memory_space<vmem>>, %arg4: memref<1x32xf32, #tpu.memory_space<vmem>>, %arg5: memref<128x32xf32, #tpu.memory_space<vmem>>) attributes {dimension_semantics = [#tpu.dimension_semantics<parallel>], iteration_bounds = array<i64: 1>, scalar_prefetch = 0 : i64, scratch_operands = 0 : i64, tpu.core_type = #tpu.core_type<tc>, window_params = [{transform_indices = @transform_0, window_bounds = array<i64: 128, 256>}, {pipeline_mode = #tpu.pipeline_mode<synchronous>, transform_indices = @transform_1, window_bounds = array<i64: 256, 32>}, {pipeline_mode = #tpu.pipeline_mode<synchronous>, transform_indices = @transform_2, window_bounds = array<i64: 1, 32>}, {pipeline_mode = #tpu.pipeline_mode<synchronous>, transform_indices = @transform_3, window_bounds = array<i64: 1, 32>}, {transform_indices = @transform_4, window_bounds = array<i64: 128, 32>}]} {
    %c0 = arith.constant 0 : index
    %c0_0 = arith.constant 0 : index
    %0 = vector.load %arg1[%c0, %c0_0] : memref<128x256xbf16, #tpu.memory_space<vmem>>, vector<128x256xbf16>
    %c0_1 = arith.constant 0 : index
    %c0_2 = arith.constant 0 : index
    %1 = vector.load %arg2[%c0_1, %c0_2] : memref<256x32xbf16, #tpu.memory_space<vmem>>, vector<256x32xbf16>
    %cst = arith.constant dense<0.000000e+00> : vector<128x32xf32>
    %2 = tpu.matmul %0, %1, %cst {dimension_numbers = #tpu.dot_dimension_numbers<[1], [0], [0], [1], [0, 0, 1, 1], [], []>} : vector<128x256xbf16>, vector<256x32xbf16>, vector<128x32xf32> -> vector<128x32xf32>
    %c0_3 = arith.constant 0 : index
    %c0_4 = arith.constant 0 : index
    %3 = vector.load %arg3[%c0_3, %c0_4] : memref<1x32xf32, #tpu.memory_space<vmem>>, vector<1x32xf32>
    %4 = vector.broadcast %3 : vector<1x32xf32> to vector<128x32xf32>
    %5 = arith.mulf %2, %4 : vector<128x32xf32>
    %c0_5 = arith.constant 0 : index
    %c0_6 = arith.constant 0 : index
    %6 = vector.load %arg4[%c0_5, %c0_6] : memref<1x32xf32, #tpu.memory_space<vmem>>, vector<1x32xf32>
    %7 = vector.broadcast %6 : vector<1x32xf32> to vector<128x32xf32>
    %8 = arith.addf %5, %7 : vector<128x32xf32>
    %c0_7 = arith.constant 0 : index
    %c0_8 = arith.constant 0 : index
    %9 = vector.load %arg5[%c0_7, %c0_8] : memref<128x32xf32, #tpu.memory_space<vmem>>, vector<128x32xf32>
    tpu.vector_store %arg5[%c0_7, %c0_8], %8 {strides = array<i32>} : memref<128x32xf32, #tpu.memory_space<vmem>>, vector<128x32xf32>,
    return
  }
  func.func @transform_0(%arg0: i32) -> (i32, i32) {
    %c0_i32 = arith.constant 0 : i32
    %c0_i32_0 = arith.constant 0 : i32
    return %arg0, %c0_i32 : i32, i32
  }
  func.func @transform_1(%arg0: i32) -> (i32, i32) {
    %c0_i32 = arith.constant 0 : i32
    %c0_i32_0 = arith.constant 0 : i32
    %c0_i32_1 = arith.constant 0 : i32
    return %c0_i32, %c0_i32_0 : i32, i32
  }
  func.func @transform_2(%arg0: i32) -> (i32, i32) {
    %c0_i32 = arith.constant 0 : i32
    %c0_i32_0 = arith.constant 0 : i32
    %c0_i32_1 = arith.constant 0 : i32
    return %c0_i32, %c0_i32_0 : i32, i32
  }
  func.func @transform_3(%arg0: i32) -> (i32, i32) {
    %c0_i32 = arith.constant 0 : i32
    %c0_i32_0 = arith.constant 0 : i32
    %c0_i32_1 = arith.constant 0 : i32
    return %c0_i32, %c0_i32_0 : i32, i32
  }
  func.func @transform_4(%arg0: i32) -> (i32, i32) {
    %c0_i32 = arith.constant 0 : i32
    %c0_i32_0 = arith.constant 0 : i32
    return %arg0, %c0_i32 : i32, i32
  }
}

module attributes {stable_mosaic.version = 11 : i64} {
  func.func @_mm_fused_kernel(%arg0: i32, %arg1: memref<128x288xbf16, #tpu.memory_space<vmem>>, %arg2: memref<288x64xbf16, #tpu.memory_space<vmem>>, %arg3: memref<1x64xf32, #tpu.memory_space<vmem>>, %arg4: memref<1x64xf32, #tpu.memory_space<vmem>>, %arg5: memref<128x64xf32, #tpu.memory_space<vmem>>) attributes {dimension_semantics = [#tpu.dimension_semantics<parallel>], iteration_bounds = array<i64: 1>, scalar_prefetch = 0 : i64, scratch_operands = 0 : i64, tpu.core_type = #tpu.core_type<tc>, window_params = [{transform_indices = @transform_0, window_bounds = array<i64: 128, 288>}, {pipeline_mode = #tpu.pipeline_mode<synchronous>, transform_indices = @transform_1, window_bounds = array<i64: 288, 64>}, {pipeline_mode = #tpu.pipeline_mode<synchronous>, transform_indices = @transform_2, window_bounds = array<i64: 1, 64>}, {pipeline_mode = #tpu.pipeline_mode<synchronous>, transform_indices = @transform_3, window_bounds = array<i64: 1, 64>}, {transform_indices = @transform_4, window_bounds = array<i64: 128, 64>}]} {
    %c0 = arith.constant 0 : index
    %c0_0 = arith.constant 0 : index
    %0 = vector.load %arg1[%c0, %c0_0] : memref<128x288xbf16, #tpu.memory_space<vmem>>, vector<128x288xbf16>
    %c0_1 = arith.constant 0 : index
    %c0_2 = arith.constant 0 : index
    %1 = vector.load %arg2[%c0_1, %c0_2] : memref<288x64xbf16, #tpu.memory_space<vmem>>, vector<288x64xbf16>
    %cst = arith.constant dense<0.000000e+00> : vector<128x64xf32>
    %2 = tpu.matmul %0, %1, %cst {dimension_numbers = #tpu.dot_dimension_numbers<[1], [0], [0], [1], [0, 0, 1, 1], [], []>} : vector<128x288xbf16>, vector<288x64xbf16>, vector<128x64xf32> -> vector<128x64xf32>
    %c0_3 = arith.constant 0 : index
    %c0_4 = arith.constant 0 : index
    %3 = vector.load %arg3[%c0_3, %c0_4] : memref<1x64xf32, #tpu.memory_space<vmem>>, vector<1x64xf32>
    %4 = vector.broadcast %3 : vector<1x64xf32> to vector<128x64xf32>
    %5 = arith.mulf %2, %4 : vector<128x64xf32>
    %c0_5 = arith.constant 0 : index
    %c0_6 = arith.constant 0 : index
    %6 = vector.load %arg4[%c0_5, %c0_6] : memref<1x64xf32, #tpu.memory_space<vmem>>, vector<1x64xf32>
    %7 = vector.broadcast %6 : vector<1x64xf32> to vector<128x64xf32>
    %8 = arith.addf %5, %7 : vector<128x64xf32>
    %cst_7 = arith.constant 0.000000e+00 : f32
    %9 = vector.broadcast %cst_7 : f32 to vector<128x64xf32>
    %10 = arith.maximumf %8, %9 : vector<128x64xf32>
    %c0_8 = arith.constant 0 : index
    %c0_9 = arith.constant 0 : index
    %11 = vector.load %arg5[%c0_8, %c0_9] : memref<128x64xf32, #tpu.memory_space<vmem>>, vector<128x64xf32>
    tpu.vector_store %arg5[%c0_8, %c0_9], %10 {strides = array<i32>} : memref<128x64xf32, #tpu.memory_space<vmem>>, vector<128x64xf32>,
    return
  }
  func.func @transform_0(%arg0: i32) -> (i32, i32) {
    %c0_i32 = arith.constant 0 : i32
    %c0_i32_0 = arith.constant 0 : i32
    return %arg0, %c0_i32 : i32, i32
  }
  func.func @transform_1(%arg0: i32) -> (i32, i32) {
    %c0_i32 = arith.constant 0 : i32
    %c0_i32_0 = arith.constant 0 : i32
    %c0_i32_1 = arith.constant 0 : i32
    return %c0_i32, %c0_i32_0 : i32, i32
  }
  func.func @transform_2(%arg0: i32) -> (i32, i32) {
    %c0_i32 = arith.constant 0 : i32
    %c0_i32_0 = arith.constant 0 : i32
    %c0_i32_1 = arith.constant 0 : i32
    return %c0_i32, %c0_i32_0 : i32, i32
  }
  func.func @transform_3(%arg0: i32) -> (i32, i32) {
    %c0_i32 = arith.constant 0 : i32
    %c0_i32_0 = arith.constant 0 : i32
    %c0_i32_1 = arith.constant 0 : i32
    return %c0_i32, %c0_i32_0 : i32, i32
  }
  func.func @transform_4(%arg0: i32) -> (i32, i32) {
    %c0_i32 = arith.constant 0 : i32
    %c0_i32_0 = arith.constant 0 : i32
    return %arg0, %c0_i32 : i32, i32
  }
}

module attributes {stable_mosaic.version = 11 : i64} {
  func.func @_mm_fused_kernel(%arg0: i32, %arg1: memref<128x576xbf16, #tpu.memory_space<vmem>>, %arg2: memref<576x64xbf16, #tpu.memory_space<vmem>>, %arg3: memref<1x64xf32, #tpu.memory_space<vmem>>, %arg4: memref<1x64xf32, #tpu.memory_space<vmem>>, %arg5: memref<128x64xf32, #tpu.memory_space<vmem>>) attributes {dimension_semantics = [#tpu.dimension_semantics<parallel>], iteration_bounds = array<i64: 1>, scalar_prefetch = 0 : i64, scratch_operands = 0 : i64, tpu.core_type = #tpu.core_type<tc>, window_params = [{transform_indices = @transform_0, window_bounds = array<i64: 128, 576>}, {pipeline_mode = #tpu.pipeline_mode<synchronous>, transform_indices = @transform_1, window_bounds = array<i64: 576, 64>}, {pipeline_mode = #tpu.pipeline_mode<synchronous>, transform_indices = @transform_2, window_bounds = array<i64: 1, 64>}, {pipeline_mode = #tpu.pipeline_mode<synchronous>, transform_indices = @transform_3, window_bounds = array<i64: 1, 64>}, {transform_indices = @transform_4, window_bounds = array<i64: 128, 64>}]} {
    %c0 = arith.constant 0 : index
    %c0_0 = arith.constant 0 : index
    %0 = vector.load %arg1[%c0, %c0_0] : memref<128x576xbf16, #tpu.memory_space<vmem>>, vector<128x576xbf16>
    %c0_1 = arith.constant 0 : index
    %c0_2 = arith.constant 0 : index
    %1 = vector.load %arg2[%c0_1, %c0_2] : memref<576x64xbf16, #tpu.memory_space<vmem>>, vector<576x64xbf16>
    %cst = arith.constant dense<0.000000e+00> : vector<128x64xf32>
    %2 = tpu.matmul %0, %1, %cst {dimension_numbers = #tpu.dot_dimension_numbers<[1], [0], [0], [1], [0, 0, 1, 1], [], []>} : vector<128x576xbf16>, vector<576x64xbf16>, vector<128x64xf32> -> vector<128x64xf32>
    %c0_3 = arith.constant 0 : index
    %c0_4 = arith.constant 0 : index
    %3 = vector.load %arg3[%c0_3, %c0_4] : memref<1x64xf32, #tpu.memory_space<vmem>>, vector<1x64xf32>
    %4 = vector.broadcast %3 : vector<1x64xf32> to vector<128x64xf32>
    %5 = arith.mulf %2, %4 : vector<128x64xf32>
    %c0_5 = arith.constant 0 : index
    %c0_6 = arith.constant 0 : index
    %6 = vector.load %arg4[%c0_5, %c0_6] : memref<1x64xf32, #tpu.memory_space<vmem>>, vector<1x64xf32>
    %7 = vector.broadcast %6 : vector<1x64xf32> to vector<128x64xf32>
    %8 = arith.addf %5, %7 : vector<128x64xf32>
    %c0_7 = arith.constant 0 : index
    %c0_8 = arith.constant 0 : index
    %9 = vector.load %arg5[%c0_7, %c0_8] : memref<128x64xf32, #tpu.memory_space<vmem>>, vector<128x64xf32>
    tpu.vector_store %arg5[%c0_7, %c0_8], %8 {strides = array<i32>} : memref<128x64xf32, #tpu.memory_space<vmem>>, vector<128x64xf32>,
    return
  }
  func.func @transform_0(%arg0: i32) -> (i32, i32) {
    %c0_i32 = arith.constant 0 : i32
    %c0_i32_0 = arith.constant 0 : i32
    return %arg0, %c0_i32 : i32, i32
  }
  func.func @transform_1(%arg0: i32) -> (i32, i32) {
    %c0_i32 = arith.constant 0 : i32
    %c0_i32_0 = arith.constant 0 : i32
    %c0_i32_1 = arith.constant 0 : i32
    return %c0_i32, %c0_i32_0 : i32, i32
  }
  func.func @transform_2(%arg0: i32) -> (i32, i32) {
    %c0_i32 = arith.constant 0 : i32
    %c0_i32_0 = arith.constant 0 : i32
    %c0_i32_1 = arith.constant 0 : i32
    return %c0_i32, %c0_i32_0 : i32, i32
  }
  func.func @transform_3(%arg0: i32) -> (i32, i32) {
    %c0_i32 = arith.constant 0 : i32
    %c0_i32_0 = arith.constant 0 : i32
    %c0_i32_1 = arith.constant 0 : i32
    return %c0_i32, %c0_i32_0 : i32, i32
  }
  func.func @transform_4(%arg0: i32) -> (i32, i32) {
    %c0_i32 = arith.constant 0 : i32
    %c0_i32_0 = arith.constant 0 : i32
    return %arg0, %c0_i32 : i32, i32
  }
}

module attributes {stable_mosaic.version = 11 : i64} {
  func.func @_mm_fused_kernel(%arg0: i32, %arg1: memref<32x576xbf16, #tpu.memory_space<vmem>>, %arg2: memref<576x128xbf16, #tpu.memory_space<vmem>>, %arg3: memref<1x128xf32, #tpu.memory_space<vmem>>, %arg4: memref<1x128xf32, #tpu.memory_space<vmem>>, %arg5: memref<32x128xf32, #tpu.memory_space<vmem>>) attributes {dimension_semantics = [#tpu.dimension_semantics<parallel>], iteration_bounds = array<i64: 1>, scalar_prefetch = 0 : i64, scratch_operands = 0 : i64, tpu.core_type = #tpu.core_type<tc>, window_params = [{transform_indices = @transform_0, window_bounds = array<i64: 32, 576>}, {pipeline_mode = #tpu.pipeline_mode<synchronous>, transform_indices = @transform_1, window_bounds = array<i64: 576, 128>}, {pipeline_mode = #tpu.pipeline_mode<synchronous>, transform_indices = @transform_2, window_bounds = array<i64: 1, 128>}, {pipeline_mode = #tpu.pipeline_mode<synchronous>, transform_indices = @transform_3, window_bounds = array<i64: 1, 128>}, {transform_indices = @transform_4, window_bounds = array<i64: 32, 128>}]} {
    %c0 = arith.constant 0 : index
    %c0_0 = arith.constant 0 : index
    %0 = vector.load %arg1[%c0, %c0_0] : memref<32x576xbf16, #tpu.memory_space<vmem>>, vector<32x576xbf16>
    %c0_1 = arith.constant 0 : index
    %c0_2 = arith.constant 0 : index
    %1 = vector.load %arg2[%c0_1, %c0_2] : memref<576x128xbf16, #tpu.memory_space<vmem>>, vector<576x128xbf16>
    %cst = arith.constant dense<0.000000e+00> : vector<32x128xf32>
    %2 = tpu.matmul %0, %1, %cst {dimension_numbers = #tpu.dot_dimension_numbers<[1], [0], [0], [1], [0, 0, 1, 1], [], []>} : vector<32x576xbf16>, vector<576x128xbf16>, vector<32x128xf32> -> vector<32x128xf32>
    %c0_3 = arith.constant 0 : index
    %c0_4 = arith.constant 0 : index
    %3 = vector.load %arg3[%c0_3, %c0_4] : memref<1x128xf32, #tpu.memory_space<vmem>>, vector<1x128xf32>
    %4 = vector.broadcast %3 : vector<1x128xf32> to vector<32x128xf32>
    %5 = arith.mulf %2, %4 : vector<32x128xf32>
    %c0_5 = arith.constant 0 : index
    %c0_6 = arith.constant 0 : index
    %6 = vector.load %arg4[%c0_5, %c0_6] : memref<1x128xf32, #tpu.memory_space<vmem>>, vector<1x128xf32>
    %7 = vector.broadcast %6 : vector<1x128xf32> to vector<32x128xf32>
    %8 = arith.addf %5, %7 : vector<32x128xf32>
    %c0_7 = arith.constant 0 : index
    %c0_8 = arith.constant 0 : index
    %9 = vector.load %arg5[%c0_7, %c0_8] : memref<32x128xf32, #tpu.memory_space<vmem>>, vector<32x128xf32>
    tpu.vector_store %arg5[%c0_7, %c0_8], %8 {strides = array<i32>} : memref<32x128xf32, #tpu.memory_space<vmem>>, vector<32x128xf32>,
    return
  }
  func.func @transform_0(%arg0: i32) -> (i32, i32) {
    %c0_i32 = arith.constant 0 : i32
    %c0_i32_0 = arith.constant 0 : i32
    return %arg0, %c0_i32 : i32, i32
  }
  func.func @transform_1(%arg0: i32) -> (i32, i32) {
    %c0_i32 = arith.constant 0 : i32
    %c0_i32_0 = arith.constant 0 : i32
    %c0_i32_1 = arith.constant 0 : i32
    return %c0_i32, %c0_i32_0 : i32, i32
  }
  func.func @transform_2(%arg0: i32) -> (i32, i32) {
    %c0_i32 = arith.constant 0 : i32
    %c0_i32_0 = arith.constant 0 : i32
    %c0_i32_1 = arith.constant 0 : i32
    return %c0_i32, %c0_i32_0 : i32, i32
  }
  func.func @transform_3(%arg0: i32) -> (i32, i32) {
    %c0_i32 = arith.constant 0 : i32
    %c0_i32_0 = arith.constant 0 : i32
    %c0_i32_1 = arith.constant 0 : i32
    return %c0_i32, %c0_i32_0 : i32, i32
  }
  func.func @transform_4(%arg0: i32) -> (i32, i32) {
    %c0_i32 = arith.constant 0 : i32
    %c0_i32_0 = arith.constant 0 : i32
    return %arg0, %c0_i32 : i32, i32
  }
}

module attributes {stable_mosaic.version = 11 : i64} {
  func.func @_mm_fused_kernel(%arg0: i32, %arg1: memref<512x288xbf16, #tpu.memory_space<vmem>>, %arg2: memref<288x32xbf16, #tpu.memory_space<vmem>>, %arg3: memref<1x32xf32, #tpu.memory_space<vmem>>, %arg4: memref<1x32xf32, #tpu.memory_space<vmem>>, %arg5: memref<512x32xf32, #tpu.memory_space<vmem>>) attributes {dimension_semantics = [#tpu.dimension_semantics<parallel>], iteration_bounds = array<i64: 1>, scalar_prefetch = 0 : i64, scratch_operands = 0 : i64, tpu.core_type = #tpu.core_type<tc>, window_params = [{transform_indices = @transform_0, window_bounds = array<i64: 512, 288>}, {pipeline_mode = #tpu.pipeline_mode<synchronous>, transform_indices = @transform_1, window_bounds = array<i64: 288, 32>}, {pipeline_mode = #tpu.pipeline_mode<synchronous>, transform_indices = @transform_2, window_bounds = array<i64: 1, 32>}, {pipeline_mode = #tpu.pipeline_mode<synchronous>, transform_indices = @transform_3, window_bounds = array<i64: 1, 32>}, {transform_indices = @transform_4, window_bounds = array<i64: 512, 32>}]} {
    %c0 = arith.constant 0 : index
    %c0_0 = arith.constant 0 : index
    %0 = vector.load %arg1[%c0, %c0_0] : memref<512x288xbf16, #tpu.memory_space<vmem>>, vector<512x288xbf16>
    %c0_1 = arith.constant 0 : index
    %c0_2 = arith.constant 0 : index
    %1 = vector.load %arg2[%c0_1, %c0_2] : memref<288x32xbf16, #tpu.memory_space<vmem>>, vector<288x32xbf16>
    %cst = arith.constant dense<0.000000e+00> : vector<512x32xf32>
    %2 = tpu.matmul %0, %1, %cst {dimension_numbers = #tpu.dot_dimension_numbers<[1], [0], [0], [1], [0, 0, 1, 1], [], []>} : vector<512x288xbf16>, vector<288x32xbf16>, vector<512x32xf32> -> vector<512x32xf32>
    %c0_3 = arith.constant 0 : index
    %c0_4 = arith.constant 0 : index
    %3 = vector.load %arg3[%c0_3, %c0_4] : memref<1x32xf32, #tpu.memory_space<vmem>>, vector<1x32xf32>
    %4 = vector.broadcast %3 : vector<1x32xf32> to vector<512x32xf32>
    %5 = arith.mulf %2, %4 : vector<512x32xf32>
    %c0_5 = arith.constant 0 : index
    %c0_6 = arith.constant 0 : index
    %6 = vector.load %arg4[%c0_5, %c0_6] : memref<1x32xf32, #tpu.memory_space<vmem>>, vector<1x32xf32>
    %7 = vector.broadcast %6 : vector<1x32xf32> to vector<512x32xf32>
    %8 = arith.addf %5, %7 : vector<512x32xf32>
    %cst_7 = arith.constant 0.000000e+00 : f32
    %9 = vector.broadcast %cst_7 : f32 to vector<512x32xf32>
    %10 = arith.maximumf %8, %9 : vector<512x32xf32>
    %c0_8 = arith.constant 0 : index
    %c0_9 = arith.constant 0 : index
    %11 = vector.load %arg5[%c0_8, %c0_9] : memref<512x32xf32, #tpu.memory_space<vmem>>, vector<512x32xf32>
    tpu.vector_store %arg5[%c0_8, %c0_9], %10 {strides = array<i32>} : memref<512x32xf32, #tpu.memory_space<vmem>>, vector<512x32xf32>,
    return
  }
  func.func @transform_0(%arg0: i32) -> (i32, i32) {
    %c0_i32 = arith.constant 0 : i32
    %c0_i32_0 = arith.constant 0 : i32
    return %arg0, %c0_i32 : i32, i32
  }
  func.func @transform_1(%arg0: i32) -> (i32, i32) {
    %c0_i32 = arith.constant 0 : i32
    %c0_i32_0 = arith.constant 0 : i32
    %c0_i32_1 = arith.constant 0 : i32
    return %c0_i32, %c0_i32_0 : i32, i32
  }
  func.func @transform_2(%arg0: i32) -> (i32, i32) {
    %c0_i32 = arith.constant 0 : i32
    %c0_i32_0 = arith.constant 0 : i32
    %c0_i32_1 = arith.constant 0 : i32
    return %c0_i32, %c0_i32_0 : i32, i32
  }
  func.func @transform_3(%arg0: i32) -> (i32, i32) {
    %c0_i32 = arith.constant 0 : i32
    %c0_i32_0 = arith.constant 0 : i32
    %c0_i32_1 = arith.constant 0 : i32
    return %c0_i32, %c0_i32_0 : i32, i32
  }
  func.func @transform_4(%arg0: i32) -> (i32, i32) {
    %c0_i32 = arith.constant 0 : i32
    %c0_i32_0 = arith.constant 0 : i32
    return %arg0, %c0_i32 : i32, i32
  }
}

module attributes {stable_mosaic.version = 11 : i64} {
  func.func @_mm_fused_kernel(%arg0: i32, %arg1: memref<512x288xbf16, #tpu.memory_space<vmem>>, %arg2: memref<288x2xbf16, #tpu.memory_space<vmem>>, %arg3: memref<1x2xf32, #tpu.memory_space<vmem>>, %arg4: memref<1x2xf32, #tpu.memory_space<vmem>>, %arg5: memref<512x2xf32, #tpu.memory_space<vmem>>) attributes {dimension_semantics = [#tpu.dimension_semantics<parallel>], iteration_bounds = array<i64: 1>, scalar_prefetch = 0 : i64, scratch_operands = 0 : i64, tpu.core_type = #tpu.core_type<tc>, window_params = [{transform_indices = @transform_0, window_bounds = array<i64: 512, 288>}, {pipeline_mode = #tpu.pipeline_mode<synchronous>, transform_indices = @transform_1, window_bounds = array<i64: 288, 2>}, {pipeline_mode = #tpu.pipeline_mode<synchronous>, transform_indices = @transform_2, window_bounds = array<i64: 1, 2>}, {pipeline_mode = #tpu.pipeline_mode<synchronous>, transform_indices = @transform_3, window_bounds = array<i64: 1, 2>}, {transform_indices = @transform_4, window_bounds = array<i64: 512, 2>}]} {
    %c0 = arith.constant 0 : index
    %c0_0 = arith.constant 0 : index
    %0 = vector.load %arg1[%c0, %c0_0] : memref<512x288xbf16, #tpu.memory_space<vmem>>, vector<512x288xbf16>
    %c0_1 = arith.constant 0 : index
    %c0_2 = arith.constant 0 : index
    %1 = vector.load %arg2[%c0_1, %c0_2] : memref<288x2xbf16, #tpu.memory_space<vmem>>, vector<288x2xbf16>
    %cst = arith.constant dense<0.000000e+00> : vector<512x2xf32>
    %2 = tpu.matmul %0, %1, %cst {dimension_numbers = #tpu.dot_dimension_numbers<[1], [0], [0], [1], [0, 0, 1, 1], [], []>} : vector<512x288xbf16>, vector<288x2xbf16>, vector<512x2xf32> -> vector<512x2xf32>
    %c0_3 = arith.constant 0 : index
    %c0_4 = arith.constant 0 : index
    %3 = vector.load %arg3[%c0_3, %c0_4] : memref<1x2xf32, #tpu.memory_space<vmem>>, vector<1x2xf32>
    %4 = vector.broadcast %3 : vector<1x2xf32> to vector<512x2xf32>
    %5 = arith.mulf %2, %4 : vector<512x2xf32>
    %c0_5 = arith.constant 0 : index
    %c0_6 = arith.constant 0 : index
    %6 = vector.load %arg4[%c0_5, %c0_6] : memref<1x2xf32, #tpu.memory_space<vmem>>, vector<1x2xf32>
    %7 = vector.broadcast %6 : vector<1x2xf32> to vector<512x2xf32>
    %8 = arith.addf %5, %7 : vector<512x2xf32>
    %c0_7 = arith.constant 0 : index
    %c0_8 = arith.constant 0 : index
    %9 = vector.load %arg5[%c0_7, %c0_8] : memref<512x2xf32, #tpu.memory_space<vmem>>, vector<512x2xf32>
    tpu.vector_store %arg5[%c0_7, %c0_8], %8 {strides = array<i32>} : memref<512x2xf32, #tpu.memory_space<vmem>>, vector<512x2xf32>,
    return
  }
  func.func @transform_0(%arg0: i32) -> (i32, i32) {
    %c0_i32 = arith.constant 0 : i32
    %c0_i32_0 = arith.constant 0 : i32
    return %arg0, %c0_i32 : i32, i32
  }
  func.func @transform_1(%arg0: i32) -> (i32, i32) {
    %c0_i32 = arith.constant 0 : i32
    %c0_i32_0 = arith.constant 0 : i32
    %c0_i32_1 = arith.constant 0 : i32
    return %c0_i32, %c0_i32_0 : i32, i32
  }
  func.func @transform_2(%arg0: i32) -> (i32, i32) {
    %c0_i32 = arith.constant 0 : i32
    %c0_i32_0 = arith.constant 0 : i32
    %c0_i32_1 = arith.constant 0 : i32
    return %c0_i32, %c0_i32_0 : i32, i32
  }
  func.func @transform_3(%arg0: i32) -> (i32, i32) {
    %c0_i32 = arith.constant 0 : i32
    %c0_i32_0 = arith.constant 0 : i32
    %c0_i32_1 = arith.constant 0 : i32
    return %c0_i32, %c0_i32_0 : i32, i32
  }
  func.func @transform_4(%arg0: i32) -> (i32, i32) {
    %c0_i32 = arith.constant 0 : i32
    %c0_i32_0 = arith.constant 0 : i32
    return %arg0, %c0_i32 : i32, i32
  }
}

module attributes {stable_mosaic.version = 11 : i64} {
  func.func @_combine_kernel(%arg0: i32, %arg1: memref<8x128xf32, #tpu.memory_space<vmem>>, %arg2: memref<8x128xf32, #tpu.memory_space<vmem>>, %arg3: memref<8x128xf32, #tpu.memory_space<vmem>>, %arg4: memref<8x128xf32, #tpu.memory_space<vmem>>, %arg5: memref<8x128xf32, #tpu.memory_space<vmem>>) attributes {dimension_semantics = [#tpu.dimension_semantics<parallel>], iteration_bounds = array<i64: 1>, scalar_prefetch = 0 : i64, scratch_operands = 0 : i64, tpu.core_type = #tpu.core_type<tc>, window_params = [{transform_indices = @transform_0, window_bounds = array<i64: 8, 128>}, {transform_indices = @transform_1, window_bounds = array<i64: 8, 128>}, {transform_indices = @transform_2, window_bounds = array<i64: 8, 128>}, {transform_indices = @transform_3, window_bounds = array<i64: 8, 128>}, {transform_indices = @transform_4, window_bounds = array<i64: 8, 128>}]} {
    %c0 = arith.constant 0 : index
    %c0_0 = arith.constant 0 : index
    %0 = vector.load %arg3[%c0, %c0_0] : memref<8x128xf32, #tpu.memory_space<vmem>>, vector<8x128xf32>
    %c0_1 = arith.constant 0 : index
    %c0_2 = arith.constant 0 : index
    %1 = vector.load %arg4[%c0_1, %c0_2] : memref<8x128xf32, #tpu.memory_space<vmem>>, vector<8x128xf32>
    %2 = arith.maximumf %0, %1 : vector<8x128xf32>
    %3 = arith.subf %0, %2 : vector<8x128xf32>
    %4 = math.exp %3 : vector<8x128xf32>
    %5 = arith.subf %1, %2 : vector<8x128xf32>
    %6 = math.exp %5 : vector<8x128xf32>
    %7 = arith.addf %4, %6 : vector<8x128xf32>
    %8 = tpu.reciprocal %7 {approx = true} : vector<8x128xf32> -> vector<8x128xf32>
    %9 = arith.mulf %6, %8 : vector<8x128xf32>
    %c0_3 = arith.constant 0 : index
    %c0_4 = arith.constant 0 : index
    %10 = vector.load %arg1[%c0_3, %c0_4] : memref<8x128xf32, #tpu.memory_space<vmem>>, vector<8x128xf32>
    %11 = arith.mulf %9, %10 : vector<8x128xf32>
    %12 = arith.mulf %4, %8 : vector<8x128xf32>
    %c0_5 = arith.constant 0 : index
    %c0_6 = arith.constant 0 : index
    %13 = vector.load %arg2[%c0_5, %c0_6] : memref<8x128xf32, #tpu.memory_space<vmem>>, vector<8x128xf32>
    %14 = arith.mulf %12, %13 : vector<8x128xf32>
    %15 = arith.addf %11, %14 : vector<8x128xf32>
    %c0_7 = arith.constant 0 : index
    %c0_8 = arith.constant 0 : index
    %16 = vector.load %arg5[%c0_7, %c0_8] : memref<8x128xf32, #tpu.memory_space<vmem>>, vector<8x128xf32>
    tpu.vector_store %arg5[%c0_7, %c0_8], %15 {strides = array<i32>} : memref<8x128xf32, #tpu.memory_space<vmem>>, vector<8x128xf32>,
    return
  }
  func.func @transform_0(%arg0: i32) -> (i32, i32) {
    %c0_i32 = arith.constant 0 : i32
    %c0_i32_0 = arith.constant 0 : i32
    return %arg0, %c0_i32 : i32, i32
  }
  func.func @transform_1(%arg0: i32) -> (i32, i32) {
    %c0_i32 = arith.constant 0 : i32
    %c0_i32_0 = arith.constant 0 : i32
    return %arg0, %c0_i32 : i32, i32
  }
  func.func @transform_2(%arg0: i32) -> (i32, i32) {
    %c0_i32 = arith.constant 0 : i32
    %c0_i32_0 = arith.constant 0 : i32
    return %arg0, %c0_i32 : i32, i32
  }
  func.func @transform_3(%arg0: i32) -> (i32, i32) {
    %c0_i32 = arith.constant 0 : i32
    %c0_i32_0 = arith.constant 0 : i32
    return %arg0, %c0_i32 : i32, i32
  }
  func.func @transform_4(%arg0: i32) -> (i32, i32) {
    %c0_i32 = arith.constant 0 : i32
    %c0_i32_0 = arith.constant 0 : i32
    return %arg0, %c0_i32 : i32, i32
  }
}

</mosaic_0001>

<bundles_post_ra>
// kernel: _forward_jit.111
= control target key start
LH: loop header
LB: loop body
LE: loop exit
PB: predicated region body
PF: predicated region fallthrough
CT: control target
= control target key end

     0   :  { %vm111_vm0 = vcmask 1040384   ;;  %vm86_vm1 = vcmask 146432   ;;  %vm274_vm2 = vcmask 113664   ;;  %s530_s1 = inlined_call_operand.vmem [shape: bf16[18,14], index: 1, kind: input, shape index: {}]   ;;  %s531_s0 = inlined_call_operand.vmem [shape: bf16[128,18], index: 0, kind: input, shape index: {}]   ;;  %s532_s2 = inlined_call_operand.vmem [shape: f32[1,14], index: 2, kind: input, shape index: {}]   ;;  %s533_s3 = inlined_call_operand.vmem [shape: f32[1,14], index: 3, kind: input, shape index: {}]   ;;  %s534_s4 = inlined_call_operand.vmem [shape: f32[128,14], index: 4, kind: output, shape index: {}]  }
   0x1   :  { %v351_v0 = vld [vmem:[%s530_s1] sm:$0xff]   ;;  %v352_v1 = vld [vmem:[%s530_s1 + $0x8] ss:$0 sps:$4 sm:$0x11]   ;;  %v357_v7 = vld [vmem:[%s531_s0 + $0x10] sm:$0xff]  }
   0x2   :  { %v353_v2 = vld [vmem:[%s531_s0] sm:$0xff]   ;;  %325 = vmatprep.subr.bf16.mxu0 %v351_v0  ;;  %345 = vmatprep.subr.bf16.mxu1 %v351_v0  ;;  %v113_v4 = vsel %vm111_vm0, %v352_v1, 0  ;;  %v355_v5 = vld [vmem:[%s531_s0 + $0x8] sm:$0xff]   ;;  %v358_v8 = vld [vmem:[%s531_s0 + $0x30] sm:$0xff]  }
   0x3   :  { %326 = vmatpush3.bf16.msra.mxu0 %v351_v0  ;;  %347 = vmatpush3.bf16.msra.mxu1 %v351_v0  ;;  %v354_v3 = vld [vmem:[%s531_s0 + $0x20] sm:$0xff]   ;;  %v356_v6 = vld [vmem:[%s531_s0 + $0x28] sm:$0xff]   ;;  %v359_v9 = vld [vmem:[%s531_s0 + $0x18] sm:$0xff]  }
   0x4   :  { %349 = vmatprep.subr.msk.bf16.mxu0 %vm111_vm0, %v352_v1  ;;  %350 = vmatprep.subr.msk.bf16.mxu1 %vm111_vm0, %v352_v1  ;;  %v360_v10 = vld [vmem:[%s531_s0 + $0x38] sm:$0xff]   ;;  %v427_v11 = vld [vmem:[%s532_s2] ss:$0 sm:$0xff] }
   0x5   :  { %329 = vmatprep.mubr.msk.bf16.mxu0 %vm86_vm1, %v353_v2  ;;  %337 = vmatprep.mubr.msk.bf16.mxu1 %vm86_vm1, %v354_v3  ;;  %v432_v13 = vld [vmem:[%s533_s3] ss:$0 sm:$0xff] }
   0x7   :  { %328 = vmatpush3.bf16.msra.mxu0 %v113_v4  ;;  %348 = vmatpush3.bf16.msra.mxu1 %v113_v4 }
   0xa   :  { %330 = vmatmul.mubr.msk.bf16.vlgmr.msra.gmra.mrb[0].mxu0 %vm86_vm1, %v355_v5  ;;  %338 = vmatmul.mubr.msk.bf16.vlgmr.msra.gmra.mrb[0].mxu1 %vm86_vm1, %v356_v6 }
   0xb   :  { %333 = vmatprep.mubr.msk.bf16.mxu0 %vm86_vm1, %v357_v7  ;;  %341 = vmatprep.mubr.msk.bf16.mxu1 %vm86_vm1, %v358_v8 }
  0x12   :  { %334 = vmatmul.mubr.msk.bf16.gmra.mrb[4].mxu0 %vm86_vm1, %v359_v9  ;;  %342 = vmatmul.mubr.msk.bf16.gmra.mrb[4].mxu1 %vm86_vm1, %v360_v10 }
  0xdd   :  { %v331_v12 = vpop.f32.mrb[0].mxu0  ;;  %v339_v14 = vpop.f32.mrb[0].mxu1 }
  0xde   :  { %v221_v15 = vmul.f32 %v331_v12, %v427_v11  ;;  %v229_v16 = vmul.f32 %v339_v14, %v427_v11  ;;  %v149_v17 = vpop.f32.mrb[1].mxu0  ;;  %v181_v18 = vpop.f32.mrb[1].mxu1 }
  0xdf   :  { %v219_v19 = vmul.f32 %v427_v11, %v149_v17  ;;  %v227_v20 = vmul.f32 %v427_v11, %v181_v18  ;;  %v332_v21 = vpop.f32.mrb[2].mxu0  ;;  %v340_v22 = vpop.f32.mrb[2].mxu1 }
  0xe0   :  { %v244_v23 = vadd.f32 %v432_v13, %v221_v15  ;;  %v252_v24 = vadd.f32 %v432_v13, %v229_v16  ;;  %v222_v25 = vmul.f32 %v332_v21, %v427_v11  ;;  %v230_v26 = vmul.f32 %v340_v22, %v427_v11  ;;  %v152_v27 = vpop.f32.mrb[3].mxu0  ;;  %v184_v28 = vpop.f32.mrb[3].mxu1 }
  0xe1   :  { %v242_v29 = vadd.f32 %v432_v13, %v219_v19  ;;  %v250_v30 = vadd.f32 %v432_v13, %v227_v20  ;;  %v220_v31 = vmul.f32 %v427_v11, %v152_v27  ;;  %v228_v32 = vmul.f32 %v427_v11, %v184_v28 }
  0xe2   :  { %v260_v33 = vmax.f32 %v244_v23, 0.0  ;;  %v268_v34 = vmax.f32 %v252_v24, 0.0  ;;  %v245_v35 = vadd.f32 %v432_v13, %v222_v25  ;;  %v253_v36 = vadd.f32 %v432_v13, %v230_v26 }
  0xe3   :  { %v258_v37 = vmax.f32 %v242_v29, 0.0  ;;  %v266_v38 = vmax.f32 %v250_v30, 0.0  ;;  %v243_v39 = vadd.f32 %v432_v13, %v220_v31  ;;  %v251_v40 = vadd.f32 %v432_v13, %v228_v32 }
  0xe4   :  { %277 = vst.msk [vmem:[%s534_s4 + $0x10] sm:$0xff] %vm274_vm2, %v260_v33  ;;  %285 = vst.msk [vmem:[%s534_s4 + $0x50] sm:$0xff] %vm274_vm2, %v268_v34  ;;  %v261_v41 = vmax.f32 %v245_v35, 0.0  ;;  %v269_v42 = vmax.f32 %v253_v36, 0.0 }
  0xe5   :  { %275 = vst.msk [vmem:[%s534_s4] sm:$0xff] %vm274_vm2, %v258_v37  ;;  %283 = vst.msk [vmem:[%s534_s4 + $0x40] sm:$0xff] %vm274_vm2, %v266_v38  ;;  %v259_v43 = vmax.f32 %v243_v39, 0.0  ;;  %v267_v44 = vmax.f32 %v251_v40, 0.0  ;;  %v335_v45 = vpop.f32.mrb[4].mxu0  ;;  %v343_v46 = vpop.f32.mrb[4].mxu1 }
  0xe6   :  { %278 = vst.msk [vmem:[%s534_s4 + $0x18] sm:$0xff] %vm274_vm2, %v261_v41  ;;  %286 = vst.msk [vmem:[%s534_s4 + $0x58] sm:$0xff] %vm274_vm2, %v269_v42  ;;  %v225_v47 = vmul.f32 %v335_v45, %v427_v11  ;;  %v233_v48 = vmul.f32 %v343_v46, %v427_v11  ;;  %v165_v49 = vpop.f32.mrb[5].mxu0  ;;  %v197_v50 = vpop.f32.mrb[5].mxu1 }
  0xe7   :  { %276 = vst.msk [vmem:[%s534_s4 + $0x8] sm:$0xff] %vm274_vm2, %v259_v43  ;;  %284 = vst.msk [vmem:[%s534_s4 + $0x48] sm:$0xff] %vm274_vm2, %v267_v44  ;;  %v223_v51 = vmul.f32 %v427_v11, %v165_v49  ;;  %v231_v52 = vmul.f32 %v427_v11, %v197_v50  ;;  %v336_v53 = vpop.f32.mrb[6].mxu0  ;;  %v344_v54 = vpop.f32.mrb[6].mxu1 }
  0xe8   :  { %v248_v55 = vadd.f32 %v432_v13, %v225_v47  ;;  %v256_v56 = vadd.f32 %v432_v13, %v233_v48  ;;  %v226_v57 = vmul.f32 %v336_v53, %v427_v11  ;;  %v234_v58 = vmul.f32 %v344_v54, %v427_v11  ;;  %v168_v59 = vpop.f32.mrb[7].mxu0  ;;  %v200_v60 = vpop.f32.mrb[7].mxu1 }
  0xe9   :  { %v246_v61 = vadd.f32 %v432_v13, %v223_v51  ;;  %v254_v62 = vadd.f32 %v432_v13, %v231_v52  ;;  %v224_v63 = vmul.f32 %v427_v11, %v168_v59  ;;  %v232_v0 = vmul.f32 %v427_v11, %v200_v60 }
  0xea   :  { %v264_v1 = vmax.f32 %v248_v55, 0.0  ;;  %v272_v2 = vmax.f32 %v256_v56, 0.0  ;;  %v249_v3 = vadd.f32 %v432_v13, %v226_v57  ;;  %v257_v4 = vadd.f32 %v432_v13, %v234_v58 }
  0xeb   :  { %v262_v5 = vmax.f32 %v246_v61, 0.0  ;;  %v270_v6 = vmax.f32 %v254_v62, 0.0  ;;  %v247_v7 = vadd.f32 %v432_v13, %v224_v63  ;;  %v255_v8 = vadd.f32 %v432_v13, %v232_v0 }
  0xec   :  { %281 = vst.msk [vmem:[%s534_s4 + $0x30] sm:$0xff] %vm274_vm2, %v264_v1  ;;  %289 = vst.msk [vmem:[%s534_s4 + $0x70] sm:$0xff] %vm274_vm2, %v272_v2  ;;  %v265_v9 = vmax.f32 %v249_v3, 0.0  ;;  %v273_v10 = vmax.f32 %v257_v4, 0.0 }
  0xed   :  { %279 = vst.msk [vmem:[%s534_s4 + $0x20] sm:$0xff] %vm274_vm2, %v262_v5  ;;  %287 = vst.msk [vmem:[%s534_s4 + $0x60] sm:$0xff] %vm274_vm2, %v270_v6  ;;  %v263_v11 = vmax.f32 %v247_v7, 0.0  ;;  %v271_v12 = vmax.f32 %v255_v8, 0.0 }
  0xee   :  { %282 = vst.msk [vmem:[%s534_s4 + $0x38] sm:$0xff] %vm274_vm2, %v265_v9  ;;  %290 = vst.msk [vmem:[%s534_s4 + $0x78] sm:$0xff] %vm274_vm2, %v273_v10 }
  0xef   :  { %280 = vst.msk [vmem:[%s534_s4 + $0x28] sm:$0xff] %vm274_vm2, %v263_v11  ;;  %288 = vst.msk [vmem:[%s534_s4 + $0x68] sm:$0xff] %vm274_vm2, %v271_v12 }

// kernel: _forward_jit.112
= control target key start
LH: loop header
LB: loop body
LE: loop exit
PB: predicated region body
PF: predicated region fallthrough
CT: control target
= control target key end

     0   :  { %v254_v0 = vmov 0   ;;  %vm112_vm0 = vcmask 130048   ;;  %vm194_vm1 = vcmask 392192   ;;  %s337_s1 = inlined_call_operand.vmem [shape: bf16[144,48], index: 1, kind: input, shape index: {}]   ;;  %s338_s0 = inlined_call_operand.vmem [shape: bf16[32,144], index: 0, kind: input, shape index: {}]   ;;  %s339_s2 = inlined_call_operand.vmem [shape: f32[1,48], index: 2, kind: input, shape index: {}]   ;;  %s340_s3 = inlined_call_operand.vmem [shape: f32[1,48], index: 3, kind: input, shape index: {}]   ;;  %s341_s4 = inlined_call_operand.vmem [shape: f32[32,48], index: 4, kind: output, shape index: {}]  }
   0x1   :  { %119 = vmatprep.subr.bf16.mxu0 %v254_v0  ;;  %220 = vmatprep.subr.bf16.mxu1 %v254_v0  ;;  %v239_v1 = vld [vmem:[%s337_s1] sm:$0xff]   ;;  %v240_v2 = vld [vmem:[%s337_s1 + $0x8] sm:$0xff]   ;;  %v241_v3 = vld [vmem:[%s337_s1 + $0x10] sm:$0xff]  }
   0x2   :  { %120 = vmatpush1.bf16.msra.mxu0 %v239_v1  ;;  %229 = vmatpush1.bf16.msra.mxu1 %v239_v1  ;;  %v242_v4 = vld [vmem:[%s337_s1 + $0x18] sm:$0xff]   ;;  %v250_v5 = vld [vmem:[%s338_s0 + $0x4] ss:$8 sps:$4 sm:$0xff]   ;;  %v245_v9 = vld [vmem:[%s337_s1 + $0x30] sm:$0xff]  }
   0x3   :  { %121 = vmatprep.subr.bf16.mxu0 %v254_v0  ;;  %221 = vmatprep.subr.bf16.mxu1 %v254_v0  ;;  %v253_v6 = vld [vmem:[%s338_s0 + $0x14] ss:$8 sps:$4 sm:$0xff]   ;;  %v243_v7 = vld [vmem:[%s337_s1 + $0x20] sm:$0xff]   ;;  %v244_v8 = vld [vmem:[%s337_s1 + $0x28] sm:$0xff]  }
   0x4   :  { %216 = vmatprep.mubr.msk.bf16.mxu0 %vm112_vm0, %v250_v5  ;;  %217 = vmatprep.mubr.msk.bf16.mxu1 %vm112_vm0, %v253_v6  ;;  %v246_v10 = vld [vmem:[%s337_s1 + $0x38] sm:$0xff]   ;;  %v247_v11 = vld [vmem:[%s337_s1 + $0x40] sm:$0xff]  }
   0x5   :  { %v248_v12 = vld [vmem:[%s338_s0] ss:$8 sps:$4 sm:$0xff]   ;;  %v251_v13 = vld [vmem:[%s338_s0 + $0x10] ss:$8 sps:$4 sm:$0xff]  }
   0x6   :  { %122 = vmatpush1.bf16.msra.mxu0 %v240_v2  ;;  %230 = vmatpush1.bf16.msra.mxu1 %v240_v2  ;;  %v218_v14 = vld [vmem:[%s339_s2] ss:$0 sm:$0xff] }
   0x7   :  { %123 = vmatprep.subr.bf16.mxu0 %v254_v0  ;;  %222 = vmatprep.subr.bf16.mxu1 %v254_v0  ;;  %v219_v16 = vld [vmem:[%s340_s3] ss:$0 sm:$0xff] }
   0xa   :  { %124 = vmatpush1.bf16.msra.mxu0 %v241_v3  ;;  %231 = vmatpush1.bf16.msra.mxu1 %v241_v3 }
   0xb   :  { %125 = vmatprep.subr.bf16.mxu0 %v254_v0  ;;  %223 = vmatprep.subr.bf16.mxu1 %v254_v0 }
   0xe   :  { %126 = vmatpush1.bf16.msra.mxu0 %v242_v4  ;;  %232 = vmatpush1.bf16.msra.mxu1 %v242_v4 }
   0xf   :  { %127 = vmatprep.subr.bf16.mxu0 %v254_v0  ;;  %224 = vmatprep.subr.bf16.mxu1 %v254_v0 }
  0x12   :  { %128 = vmatpush1.bf16.msra.mxu0 %v243_v7  ;;  %233 = vmatpush1.bf16.msra.mxu1 %v243_v7 }
  0x13   :  { %129 = vmatprep.subr.bf16.mxu0 %v254_v0  ;;  %225 = vmatprep.subr.bf16.mxu1 %v254_v0 }
  0x16   :  { %130 = vmatpush1.bf16.msra.mxu0 %v244_v8  ;;  %234 = vmatpush1.bf16.msra.mxu1 %v244_v8 }
  0x17   :  { %131 = vmatprep.subr.bf16.mxu0 %v254_v0  ;;  %226 = vmatprep.subr.bf16.mxu1 %v254_v0 }
  0x1a   :  { %132 = vmatpush1.bf16.msra.mxu0 %v245_v9  ;;  %235 = vmatpush1.bf16.msra.mxu1 %v245_v9 }
  0x1b   :  { %133 = vmatprep.subr.bf16.mxu0 %v254_v0  ;;  %227 = vmatprep.subr.bf16.mxu1 %v254_v0 }
  0x1e   :  { %134 = vmatpush1.bf16.msra.mxu0 %v246_v10  ;;  %236 = vmatpush1.bf16.msra.mxu1 %v246_v10 }
  0x1f   :  { %135 = vmatprep.subr.bf16.mxu0 %v254_v0  ;;  %228 = vmatprep.subr.bf16.mxu1 %v254_v0 }
  0x22   :  { %136 = vmatpush1.bf16.msra.mxu0 %v247_v11  ;;  %237 = vmatpush1.bf16.msra.mxu1 %v247_v11 }
  0x25   :  { %152 = vmatmul.mubr.bf16.vlgmr.msra.gmra.mrb[0].mxu0 %v248_v12  ;;  %160 = vmatmul.mubr.bf16.vlgmr.msra.gmra.mrb[0].mxu1 %v251_v13 }
  0xf8   :  { %v153_v15 = vpop.f32.mrb[0].mxu0  ;;  %v161_v17 = vpop.f32.mrb[0].mxu1 }
  0xf9   :  { %v175_v18 = vmul.f32 %v218_v14, %v153_v15  ;;  %v177_v19 = vmul.f32 %v218_v14, %v161_v17  ;;  %v155_v20 = vpop.f32.mrb[1].mxu0  ;;  %v163_v21 = vpop.f32.mrb[1].mxu1 }
  0xfa   :  { %v156_v22 = vpop.f32.mrb[2].mxu0  ;;  %v164_v23 = vpop.f32.mrb[2].mxu1 }
  0xfb   :  { %v186_v24 = vadd.f32 %v219_v16, %v175_v18  ;;  %v188_v25 = vadd.f32 %v219_v16, %v177_v19  ;;  %v176_v26 = vmul.f32 %v218_v14, %v156_v22  ;;  %v178_v27 = vmul.f32 %v218_v14, %v164_v23  ;;  %v158_v28 = vpop.f32.mrb[3].mxu0  ;;  %v166_v29 = vpop.f32.mrb[3].mxu1 }
  0xfd   :  { %v190_v30 = vmax.f32 %v186_v24, 0.0  ;;  %v192_v31 = vmax.f32 %v188_v25, 0.0  ;;  %v187_v32 = vadd.f32 %v219_v16, %v176_v26  ;;  %v189_v33 = vadd.f32 %v219_v16, %v178_v27 }
  0xff   :  { %195 = vst.msk [vmem:[%s341_s4] sm:$0xff] %vm194_vm1, %v190_v30  ;;  %197 = vst.msk [vmem:[%s341_s4 + $0x10] sm:$0xff] %vm194_vm1, %v192_v31  ;;  %v191_v34 = vmax.f32 %v187_v32, 0.0  ;;  %v193_v35 = vmax.f32 %v189_v33, 0.0 }
 0x101   :  { %196 = vst.msk [vmem:[%s341_s4 + $0x8] sm:$0xff] %vm194_vm1, %v191_v34  ;;  %198 = vst.msk [vmem:[%s341_s4 + $0x18] sm:$0xff] %vm194_vm1, %v193_v35 }

// kernel: _forward_jit.113
= control target key start
LH: loop header
LB: loop body
LE: loop exit
PB: predicated region body
PF: predicated region fallthrough
CT: control target
= control target key end

     0   :  { %v289_v0 = vmov 0   ;;  %vm136_vm0 = vcmask 523264   ;;  %s411_s1 = inlined_call_operand.vmem [shape: bf16[192,64], index: 1, kind: input, shape index: {}]   ;;  %s412_s0 = inlined_call_operand.vmem [shape: bf16[32,192], index: 0, kind: input, shape index: {}]   ;;  %s413_s2 = inlined_call_operand.vmem [shape: f32[1,64], index: 2, kind: input, shape index: {}]   ;;  %s414_s3 = inlined_call_operand.vmem [shape: f32[1,64], index: 3, kind: input, shape index: {}]   ;;  %s415_s4 = inlined_call_operand.vmem [shape: f32[32,64], index: 4, kind: output, shape index: {}]  }
   0x1   :  { %143 = vmatprep.subr.bf16.mxu0 %v289_v0  ;;  %246 = vmatprep.subr.bf16.mxu1 %v289_v0  ;;  %v271_v1 = vld [vmem:[%s411_s1] sm:$0xff]   ;;  %v272_v2 = vld [vmem:[%s411_s1 + $0x8] sm:$0xff]   ;;  %v273_v3 = vld [vmem:[%s411_s1 + $0x10] sm:$0xff]  }
   0x2   :  { %144 = vmatpush1.bf16.msra.mxu0 %v271_v1  ;;  %258 = vmatpush1.bf16.msra.mxu1 %v271_v1  ;;  %v274_v4 = vld [vmem:[%s411_s1 + $0x18] sm:$0xff]   ;;  %v285_v5 = vld [vmem:[%s412_s0 + $0x4] ss:$8 sps:$4 sm:$0xff]   ;;  %v277_v9 = vld [vmem:[%s411_s1 + $0x30] sm:$0xff]  }
   0x3   :  { %145 = vmatprep.subr.bf16.mxu0 %v289_v0  ;;  %247 = vmatprep.subr.bf16.mxu1 %v289_v0  ;;  %v275_v6 = vld [vmem:[%s411_s1 + $0x20] sm:$0xff]   ;;  %v288_v7 = vld [vmem:[%s412_s0 + $0x14] ss:$8 sps:$4 sm:$0xff]   ;;  %v276_v8 = vld [vmem:[%s411_s1 + $0x28] sm:$0xff]  }
   0x4   :  { %242 = vmatprep.mubr.msk.bf16.mxu0 %vm136_vm0, %v285_v5  ;;  %243 = vmatprep.mubr.msk.bf16.mxu1 %vm136_vm0, %v288_v7  ;;  %v278_v10 = vld [vmem:[%s411_s1 + $0x38] sm:$0xff]   ;;  %v279_v11 = vld [vmem:[%s411_s1 + $0x40] sm:$0xff]   ;;  %v280_v12 = vld [vmem:[%s411_s1 + $0x48] sm:$0xff]  }
   0x5   :  { %v281_v13 = vld [vmem:[%s411_s1 + $0x50] sm:$0xff]   ;;  %v282_v14 = vld [vmem:[%s411_s1 + $0x58] sm:$0xff]   ;;  %v283_v15 = vld [vmem:[%s412_s0] ss:$8 sps:$4 sm:$0xff]  }
   0x6   :  { %146 = vmatpush1.bf16.msra.mxu0 %v272_v2  ;;  %259 = vmatpush1.bf16.msra.mxu1 %v272_v2  ;;  %v286_v16 = vld [vmem:[%s412_s0 + $0x10] ss:$8 sps:$4 sm:$0xff]   ;;  %v244_v17 = vld [vmem:[%s413_s2] ss:$0 sm:$0xff] }
   0x7   :  { %147 = vmatprep.subr.bf16.mxu0 %v289_v0  ;;  %248 = vmatprep.subr.bf16.mxu1 %v289_v0  ;;  %v245_v19 = vld [vmem:[%s414_s3] ss:$0 sm:$0xff] }
   0xa   :  { %148 = vmatpush1.bf16.msra.mxu0 %v273_v3  ;;  %260 = vmatpush1.bf16.msra.mxu1 %v273_v3 }
   0xb   :  { %149 = vmatprep.subr.bf16.mxu0 %v289_v0  ;;  %249 = vmatprep.subr.bf16.mxu1 %v289_v0 }
   0xe   :  { %150 = vmatpush1.bf16.msra.mxu0 %v274_v4  ;;  %261 = vmatpush1.bf16.msra.mxu1 %v274_v4 }
   0xf   :  { %151 = vmatprep.subr.bf16.mxu0 %v289_v0  ;;  %250 = vmatprep.subr.bf16.mxu1 %v289_v0 }
  0x12   :  { %152 = vmatpush1.bf16.msra.mxu0 %v275_v6  ;;  %262 = vmatpush1.bf16.msra.mxu1 %v275_v6 }
  0x13   :  { %153 = vmatprep.subr.bf16.mxu0 %v289_v0  ;;  %251 = vmatprep.subr.bf16.mxu1 %v289_v0 }
  0x16   :  { %154 = vmatpush1.bf16.msra.mxu0 %v276_v8  ;;  %263 = vmatpush1.bf16.msra.mxu1 %v276_v8 }
  0x17   :  { %155 = vmatprep.subr.bf16.mxu0 %v289_v0  ;;  %252 = vmatprep.subr.bf16.mxu1 %v289_v0 }
  0x1a   :  { %156 = vmatpush1.bf16.msra.mxu0 %v277_v9  ;;  %264 = vmatpush1.bf16.msra.mxu1 %v277_v9 }
  0x1b   :  { %157 = vmatprep.subr.bf16.mxu0 %v289_v0  ;;  %253 = vmatprep.subr.bf16.mxu1 %v289_v0 }
  0x1e   :  { %158 = vmatpush1.bf16.msra.mxu0 %v278_v10  ;;  %265 = vmatpush1.bf16.msra.mxu1 %v278_v10 }
  0x1f   :  { %159 = vmatprep.subr.bf16.mxu0 %v289_v0  ;;  %254 = vmatprep.subr.bf16.mxu1 %v289_v0 }
  0x22   :  { %160 = vmatpush1.bf16.msra.mxu0 %v279_v11  ;;  %266 = vmatpush1.bf16.msra.mxu1 %v279_v11 }
  0x23   :  { %161 = vmatprep.subr.bf16.mxu0 %v289_v0  ;;  %255 = vmatprep.subr.bf16.mxu1 %v289_v0 }
  0x26   :  { %162 = vmatpush1.bf16.msra.mxu0 %v280_v12  ;;  %267 = vmatpush1.bf16.msra.mxu1 %v280_v12 }
  0x27   :  { %163 = vmatprep.subr.bf16.mxu0 %v289_v0  ;;  %256 = vmatprep.subr.bf16.mxu1 %v289_v0 }
  0x2a   :  { %164 = vmatpush1.bf16.msra.mxu0 %v281_v13  ;;  %268 = vmatpush1.bf16.msra.mxu1 %v281_v13 }
  0x2b   :  { %165 = vmatprep.subr.bf16.mxu0 %v289_v0  ;;  %257 = vmatprep.subr.bf16.mxu1 %v289_v0 }
  0x2e   :  { %166 = vmatpush1.bf16.msra.mxu0 %v282_v14  ;;  %269 = vmatpush1.bf16.msra.mxu1 %v282_v14 }
  0x31   :  { %176 = vmatmul.mubr.bf16.vlgmr.msra.gmra.mrb[0].mxu0 %v283_v15  ;;  %184 = vmatmul.mubr.bf16.vlgmr.msra.gmra.mrb[0].mxu1 %v286_v16 }
 0x104   :  { %v177_v18 = vpop.f32.mrb[0].mxu0  ;;  %v185_v20 = vpop.f32.mrb[0].mxu1 }
 0x105   :  { %v199_v21 = vmul.f32 %v244_v17, %v177_v18  ;;  %v201_v22 = vmul.f32 %v244_v17, %v185_v20  ;;  %v179_v23 = vpop.f32.mrb[1].mxu0  ;;  %v187_v24 = vpop.f32.mrb[1].mxu1 }
 0x106   :  { %v180_v25 = vpop.f32.mrb[2].mxu0  ;;  %v188_v26 = vpop.f32.mrb[2].mxu1 }
 0x107   :  { %v210_v27 = vadd.f32 %v245_v19, %v199_v21  ;;  %v212_v28 = vadd.f32 %v245_v19, %v201_v22  ;;  %v200_v29 = vmul.f32 %v244_v17, %v180_v25  ;;  %v202_v30 = vmul.f32 %v244_v17, %v188_v26  ;;  %v182_v31 = vpop.f32.mrb[3].mxu0  ;;  %v190_v32 = vpop.f32.mrb[3].mxu1 }
 0x109   :  { %v214_v33 = vmax.f32 %v210_v27, 0.0  ;;  %v216_v34 = vmax.f32 %v212_v28, 0.0  ;;  %v211_v35 = vadd.f32 %v245_v19, %v200_v29  ;;  %v213_v36 = vadd.f32 %v245_v19, %v202_v30 }
 0x10b   :  { %218 = vst.msk [vmem:[%s415_s4] sm:$0xff] %vm136_vm0, %v214_v33  ;;  %220 = vst.msk [vmem:[%s415_s4 + $0x10] sm:$0xff] %vm136_vm0, %v216_v34  ;;  %v215_v37 = vmax.f32 %v211_v35, 0.0  ;;  %v217_v38 = vmax.f32 %v213_v36, 0.0 }
 0x10d   :  { %219 = vst.msk [vmem:[%s415_s4 + $0x8] sm:$0xff] %vm136_vm0, %v215_v37  ;;  %221 = vst.msk [vmem:[%s415_s4 + $0x18] sm:$0xff] %vm136_vm0, %v217_v38 }

// kernel: _forward_jit.116
= control target key start
LH: loop header
LB: loop body
LE: loop exit
PB: predicated region body
PF: predicated region fallthrough
CT: control target
= control target key end

     0   :  { %v285_v0 = vmov 0   ;;  %vm136_vm0 = vcmask 523264   ;;  %s407_s1 = inlined_call_operand.vmem [shape: bf16[192,64], index: 1, kind: input, shape index: {}]   ;;  %s408_s0 = inlined_call_operand.vmem [shape: bf16[32,192], index: 0, kind: input, shape index: {}]   ;;  %s409_s2 = inlined_call_operand.vmem [shape: f32[1,64], index: 2, kind: input, shape index: {}]   ;;  %s410_s3 = inlined_call_operand.vmem [shape: f32[1,64], index: 3, kind: input, shape index: {}]   ;;  %s411_s4 = inlined_call_operand.vmem [shape: f32[32,64], index: 4, kind: output, shape index: {}]  }
   0x1   :  { %143 = vmatprep.subr.bf16.mxu0 %v285_v0  ;;  %242 = vmatprep.subr.bf16.mxu1 %v285_v0  ;;  %v267_v1 = vld [vmem:[%s407_s1] sm:$0xff]   ;;  %v268_v2 = vld [vmem:[%s407_s1 + $0x8] sm:$0xff]   ;;  %v269_v3 = vld [vmem:[%s407_s1 + $0x10] sm:$0xff]  }
   0x2   :  { %144 = vmatpush1.bf16.msra.mxu0 %v267_v1  ;;  %254 = vmatpush1.bf16.msra.mxu1 %v267_v1  ;;  %v270_v4 = vld [vmem:[%s407_s1 + $0x18] sm:$0xff]   ;;  %v281_v5 = vld [vmem:[%s408_s0 + $0x4] ss:$8 sps:$4 sm:$0xff]   ;;  %v273_v9 = vld [vmem:[%s407_s1 + $0x30] sm:$0xff]  }
   0x3   :  { %145 = vmatprep.subr.bf16.mxu0 %v285_v0  ;;  %243 = vmatprep.subr.bf16.mxu1 %v285_v0  ;;  %v271_v6 = vld [vmem:[%s407_s1 + $0x20] sm:$0xff]   ;;  %v284_v7 = vld [vmem:[%s408_s0 + $0x14] ss:$8 sps:$4 sm:$0xff]   ;;  %v272_v8 = vld [vmem:[%s407_s1 + $0x28] sm:$0xff]  }
   0x4   :  { %238 = vmatprep.mubr.msk.bf16.mxu0 %vm136_vm0, %v281_v5  ;;  %239 = vmatprep.mubr.msk.bf16.mxu1 %vm136_vm0, %v284_v7  ;;  %v274_v10 = vld [vmem:[%s407_s1 + $0x38] sm:$0xff]   ;;  %v275_v11 = vld [vmem:[%s407_s1 + $0x40] sm:$0xff]   ;;  %v276_v12 = vld [vmem:[%s407_s1 + $0x48] sm:$0xff]  }
   0x5   :  { %v277_v13 = vld [vmem:[%s407_s1 + $0x50] sm:$0xff]   ;;  %v278_v14 = vld [vmem:[%s407_s1 + $0x58] sm:$0xff]   ;;  %v279_v15 = vld [vmem:[%s408_s0] ss:$8 sps:$4 sm:$0xff]  }
   0x6   :  { %146 = vmatpush1.bf16.msra.mxu0 %v268_v2  ;;  %255 = vmatpush1.bf16.msra.mxu1 %v268_v2  ;;  %v282_v16 = vld [vmem:[%s408_s0 + $0x10] ss:$8 sps:$4 sm:$0xff]   ;;  %v240_v17 = vld [vmem:[%s409_s2] ss:$0 sm:$0xff] }
   0x7   :  { %147 = vmatprep.subr.bf16.mxu0 %v285_v0  ;;  %244 = vmatprep.subr.bf16.mxu1 %v285_v0  ;;  %v241_v19 = vld [vmem:[%s410_s3] ss:$0 sm:$0xff] }
   0xa   :  { %148 = vmatpush1.bf16.msra.mxu0 %v269_v3  ;;  %256 = vmatpush1.bf16.msra.mxu1 %v269_v3 }
   0xb   :  { %149 = vmatprep.subr.bf16.mxu0 %v285_v0  ;;  %245 = vmatprep.subr.bf16.mxu1 %v285_v0 }
   0xe   :  { %150 = vmatpush1.bf16.msra.mxu0 %v270_v4  ;;  %257 = vmatpush1.bf16.msra.mxu1 %v270_v4 }
   0xf   :  { %151 = vmatprep.subr.bf16.mxu0 %v285_v0  ;;  %246 = vmatprep.subr.bf16.mxu1 %v285_v0 }
  0x12   :  { %152 = vmatpush1.bf16.msra.mxu0 %v271_v6  ;;  %258 = vmatpush1.bf16.msra.mxu1 %v271_v6 }
  0x13   :  { %153 = vmatprep.subr.bf16.mxu0 %v285_v0  ;;  %247 = vmatprep.subr.bf16.mxu1 %v285_v0 }
  0x16   :  { %154 = vmatpush1.bf16.msra.mxu0 %v272_v8  ;;  %259 = vmatpush1.bf16.msra.mxu1 %v272_v8 }
  0x17   :  { %155 = vmatprep.subr.bf16.mxu0 %v285_v0  ;;  %248 = vmatprep.subr.bf16.mxu1 %v285_v0 }
  0x1a   :  { %156 = vmatpush1.bf16.msra.mxu0 %v273_v9  ;;  %260 = vmatpush1.bf16.msra.mxu1 %v273_v9 }
  0x1b   :  { %157 = vmatprep.subr.bf16.mxu0 %v285_v0  ;;  %249 = vmatprep.subr.bf16.mxu1 %v285_v0 }
  0x1e   :  { %158 = vmatpush1.bf16.msra.mxu0 %v274_v10  ;;  %261 = vmatpush1.bf16.msra.mxu1 %v274_v10 }
  0x1f   :  { %159 = vmatprep.subr.bf16.mxu0 %v285_v0  ;;  %250 = vmatprep.subr.bf16.mxu1 %v285_v0 }
  0x22   :  { %160 = vmatpush1.bf16.msra.mxu0 %v275_v11  ;;  %262 = vmatpush1.bf16.msra.mxu1 %v275_v11 }
  0x23   :  { %161 = vmatprep.subr.bf16.mxu0 %v285_v0  ;;  %251 = vmatprep.subr.bf16.mxu1 %v285_v0 }
  0x26   :  { %162 = vmatpush1.bf16.msra.mxu0 %v276_v12  ;;  %263 = vmatpush1.bf16.msra.mxu1 %v276_v12 }
  0x27   :  { %163 = vmatprep.subr.bf16.mxu0 %v285_v0  ;;  %252 = vmatprep.subr.bf16.mxu1 %v285_v0 }
  0x2a   :  { %164 = vmatpush1.bf16.msra.mxu0 %v277_v13  ;;  %264 = vmatpush1.bf16.msra.mxu1 %v277_v13 }
  0x2b   :  { %165 = vmatprep.subr.bf16.mxu0 %v285_v0  ;;  %253 = vmatprep.subr.bf16.mxu1 %v285_v0 }
  0x2e   :  { %166 = vmatpush1.bf16.msra.mxu0 %v278_v14  ;;  %265 = vmatpush1.bf16.msra.mxu1 %v278_v14 }
  0x31   :  { %176 = vmatmul.mubr.bf16.vlgmr.msra.gmra.mrb[0].mxu0 %v279_v15  ;;  %184 = vmatmul.mubr.bf16.vlgmr.msra.gmra.mrb[0].mxu1 %v282_v16 }
 0x104   :  { %v177_v18 = vpop.f32.mrb[0].mxu0  ;;  %v185_v20 = vpop.f32.mrb[0].mxu1 }
 0x105   :  { %v199_v21 = vmul.f32 %v240_v17, %v177_v18  ;;  %v201_v22 = vmul.f32 %v240_v17, %v185_v20  ;;  %v179_v23 = vpop.f32.mrb[1].mxu0  ;;  %v187_v24 = vpop.f32.mrb[1].mxu1 }
 0x106   :  { %v180_v25 = vpop.f32.mrb[2].mxu0  ;;  %v188_v26 = vpop.f32.mrb[2].mxu1 }
 0x107   :  { %v210_v27 = vadd.f32 %v241_v19, %v199_v21  ;;  %v212_v28 = vadd.f32 %v241_v19, %v201_v22  ;;  %v200_v29 = vmul.f32 %v240_v17, %v180_v25  ;;  %v202_v30 = vmul.f32 %v240_v17, %v188_v26  ;;  %v182_v31 = vpop.f32.mrb[3].mxu0  ;;  %v190_v32 = vpop.f32.mrb[3].mxu1 }
 0x109   :  { %214 = vst.msk [vmem:[%s411_s4] sm:$0xff] %vm136_vm0, %v210_v27  ;;  %216 = vst.msk [vmem:[%s411_s4 + $0x10] sm:$0xff] %vm136_vm0, %v212_v28  ;;  %v211_v33 = vadd.f32 %v241_v19, %v200_v29  ;;  %v213_v34 = vadd.f32 %v241_v19, %v202_v30 }
 0x10b   :  { %215 = vst.msk [vmem:[%s411_s4 + $0x8] sm:$0xff] %vm136_vm0, %v211_v33  ;;  %217 = vst.msk [vmem:[%s411_s4 + $0x18] sm:$0xff] %vm136_vm0, %v213_v34 }

// kernel: _forward_jit.133
= control target key start
LH: loop header
LB: loop body
LE: loop exit
PB: predicated region body
PF: predicated region fallthrough
CT: control target
= control target key end

     0   :  { %v620_v36 = vmov 0.0   ;;  %vm621_vm0 = vmmov 0   ;;  %vm326_vm1 = vcmask 523264   ;;  %s775_s1 = inlined_call_operand.vmem [shape: bf16[576,64], index: 1, kind: input, shape index: {}]   ;;  %s776_s0 = inlined_call_operand.vmem [shape: bf16[8,576], index: 0, kind: input, shape index: {}]   ;;  %s777_s2 = inlined_call_operand.vmem [shape: f32[1,64], index: 2, kind: input, shape index: {}]   ;;  %s778_s3 = inlined_call_operand.vmem [shape: f32[1,64], index: 3, kind: input, shape index: {}]   ;;  %s779_s4 = inlined_call_operand.vmem [shape: f32[8,64], index: 4, kind: output, shape index: {}]  }
   0x1   :  { %v579_v0 = vld [vmem:[%s775_s1 + $0x40] sm:$0xff]   ;;  %v583_v4 = vld [vmem:[%s775_s1 + $0x48] sm:$0xff]   ;;  %v587_v8 = vld [vmem:[%s775_s1 + $0x50] sm:$0xff]  }
   0x2   :  { %v580_v1 = vld [vmem:[%s775_s1 + $0xc0] sm:$0xff]   ;;  %516 = vmatprep.subr.bf16.mxu0 %v579_v0  ;;  %v584_v5 = vld [vmem:[%s775_s1 + $0xc8] sm:$0xff]   ;;  %v588_v9 = vld [vmem:[%s775_s1 + $0xd0] sm:$0xff]  }
   0x3   :  { %v581_v2 = vld [vmem:[%s775_s1] sm:$0xff]   ;;  %538 = vmatprep.subr.bf16.mxu1 %v580_v1  ;;  %v585_v6 = vld [vmem:[%s775_s1 + $0x8] sm:$0xff]   ;;  %v589_v10 = vld [vmem:[%s775_s1 + $0x10] sm:$0xff]  }
   0x4   :  { %v582_v3 = vld [vmem:[%s775_s1 + $0x80] sm:$0xff]   ;;  %517 = vmatpush3.bf16.msra.mxu0 %v581_v2  ;;  %v586_v7 = vld [vmem:[%s775_s1 + $0x88] sm:$0xff]   ;;  %v590_v11 = vld [vmem:[%s775_s1 + $0x90] sm:$0xff]  }
   0x5   :  { %539 = vmatpush3.bf16.msra.mxu1 %v582_v3  ;;  %518 = vmatprep.subr.bf16.mxu0 %v583_v4  ;;  %v591_v12 = vld [vmem:[%s775_s1 + $0x58] sm:$0xff]   ;;  %v595_v16 = vld [vmem:[%s775_s1 + $0x60] sm:$0xff]   ;;  %v599_v20 = vld [vmem:[%s775_s1 + $0x68] sm:$0xff]  }
   0x6   :  { %540 = vmatprep.subr.bf16.mxu1 %v584_v5  ;;  %v592_v13 = vld [vmem:[%s775_s1 + $0xd8] sm:$0xff]   ;;  %v596_v17 = vld [vmem:[%s775_s1 + $0xe0] sm:$0xff]   ;;  %v600_v21 = vld [vmem:[%s775_s1 + $0xe8] sm:$0xff]  }
   0x7   :  { %v593_v14 = vld [vmem:[%s775_s1 + $0x18] sm:$0xff]   ;;  %v597_v18 = vld [vmem:[%s775_s1 + $0x20] sm:$0xff]   ;;  %v601_v22 = vld [vmem:[%s775_s1 + $0x28] sm:$0xff]  }
   0x8   :  { %519 = vmatpush3.bf16.msra.mxu0 %v585_v6  ;;  %v594_v15 = vld [vmem:[%s775_s1 + $0x98] sm:$0xff]   ;;  %v598_v19 = vld [vmem:[%s775_s1 + $0xa0] sm:$0xff]   ;;  %v602_v23 = vld [vmem:[%s775_s1 + $0xa8] sm:$0xff]  }
   0x9   :  { %541 = vmatpush3.bf16.msra.mxu1 %v586_v7  ;;  %520 = vmatprep.subr.bf16.mxu0 %v587_v8  ;;  %v603_v24 = vld [vmem:[%s775_s1 + $0x70] sm:$0xff]   ;;  %v607_v28 = vld [vmem:[%s775_s1 + $0x78] sm:$0xff]   ;;  %v18_v32 = vld [vmem:[%s776_s0] sm:$0xff] }
   0xa   :  { %542 = vmatprep.subr.bf16.mxu1 %v588_v9  ;;  %v604_v25 = vld [vmem:[%s775_s1 + $0xf0] sm:$0xff]   ;;  %v608_v29 = vld [vmem:[%s775_s1 + $0xf8] sm:$0xff]   ;;  %v472_v33 = vcombine.low %v18_v32, %v18_v32  ;;  %v473_v34 = vcombine.high %v18_v32, %v18_v32  ;;  %v19_v35 = vld [vmem:[%s776_s0 + $0x8] sm:$0xff] }
   0xb   :  { %v605_v26 = vld [vmem:[%s775_s1 + $0x30] sm:$0xff]   ;;  %v609_v30 = vld [vmem:[%s775_s1 + $0x38] sm:$0xff]   ;;  %v474_v37 = vcombine.low %v19_v35, %v19_v35  ;;  %v475_v38 = vcombine.high %v19_v35, %v19_v35  ;;  %v616_v39 = vld [vmem:[%s775_s1 + $0x100] sm:$0xff]  }
   0xc   :  { %521 = vmatpush3.bf16.msra.mxu0 %v589_v10  ;;  %v606_v27 = vld [vmem:[%s775_s1 + $0xb0] sm:$0xff]   ;;  %v610_v31 = vld [vmem:[%s775_s1 + $0xb8] sm:$0xff]   ;;  %362 = vmatprep.mubr.bf16.mxu0 %v473_v34  ;;  %v617_v40 = vld [vmem:[%s775_s1 + $0x108] sm:$0xff]  }
   0xd   :  { %543 = vmatpush3.bf16.msra.mxu1 %v590_v11  ;;  %522 = vmatprep.subr.bf16.mxu0 %v591_v12  ;;  %v618_v41 = vld [vmem:[%s775_s1 + $0x110] sm:$0xff]   ;;  %v619_v42 = vld [vmem:[%s775_s1 + $0x118] sm:$0xff]   ;;  %v514_v56 = vld [vmem:[%s777_s2] ss:$0 sm:$0xff] }
   0xe   :  { %544 = vmatprep.subr.bf16.mxu1 %v592_v13  ;;  %402 = vmatprep.mubr.bf16.mxu1 %v475_v38  ;;  %v613_v43 = vld [vmem:[%s776_s0 + $0x10] ss:$0 sps:$4 sm:$0xff]   ;;  %v515_v59 = vld [vmem:[%s778_s3] ss:$0 sm:$0xff] }
  0x10   :  { %523 = vmatpush3.bf16.msra.mxu0 %v593_v14 }
  0x11   :  { %545 = vmatpush3.bf16.msra.mxu1 %v594_v15  ;;  %524 = vmatprep.subr.bf16.mxu0 %v595_v16 }
  0x12   :  { %546 = vmatprep.subr.bf16.mxu1 %v596_v17 }
  0x14   :  { %525 = vmatpush3.bf16.msra.mxu0 %v597_v18 }
  0x15   :  { %547 = vmatpush3.bf16.msra.mxu1 %v598_v19  ;;  %526 = vmatprep.subr.bf16.mxu0 %v599_v20 }
  0x16   :  { %548 = vmatprep.subr.bf16.mxu1 %v600_v21 }
  0x18   :  { %527 = vmatpush3.bf16.msra.mxu0 %v601_v22 }
  0x19   :  { %549 = vmatpush3.bf16.msra.mxu1 %v602_v23  ;;  %528 = vmatprep.subr.bf16.mxu0 %v603_v24 }
  0x1a   :  { %550 = vmatprep.subr.bf16.mxu1 %v604_v25 }
  0x1c   :  { %529 = vmatpush3.bf16.msra.mxu0 %v605_v26 }
  0x1d   :  { %551 = vmatpush3.bf16.msra.mxu1 %v606_v27  ;;  %530 = vmatprep.subr.bf16.mxu0 %v607_v28 }
  0x1e   :  { %552 = vmatprep.subr.bf16.mxu1 %v608_v29 }
  0x20   :  { %531 = vmatpush3.bf16.msra.mxu0 %v609_v30 }
  0x21   :  { %553 = vmatpush3.bf16.msra.mxu1 %v610_v31  ;;  %565 = vmatprep.subr.bf16.mxu0 %v620_v36 }
  0x23   :  { %363 = vmatmul.mubr.bf16.vlgmr.msra.gmra.mrb[0].mxu0 %v472_v33 }
  0x24   :  { %403 = vmatmul.mubr.bf16.vlgmr.msra.gmra.mrb[0].mxu1 %v474_v37  ;;  %566 = vmatpush3.bf16.msra.mxu0 %v616_v39 }
  0x25   :  { %567 = vmatprep.subr.bf16.mxu0 %v620_v36  ;;  %573 = vmatprep.mubr.msk.bf16.mxu0 %vm621_vm0, %v620_v36 }
  0x28   :  { %568 = vmatpush3.bf16.msra.mxu0 %v617_v40 }
  0x29   :  { %569 = vmatprep.subr.bf16.mxu0 %v620_v36 }
  0x2c   :  { %570 = vmatpush3.bf16.msra.mxu0 %v618_v41 }
  0x2d   :  { %571 = vmatprep.subr.bf16.mxu0 %v620_v36 }
  0x30   :  { %572 = vmatpush3.bf16.msra.mxu0 %v619_v42 }
  0x33   :  { %574 = vmatmul.mubr.msk.bf16.vlgmr.msra.gmra.mrb[4].mxu0 %vm326_vm1, %v613_v43 }
  0xf6   :  { %v532_v44 = vpop.f32.mrb[0].mxu0 }
  0xf7   :  { %v554_v45 = vpop.f32.mrb[0].mxu1  ;;  %v533_v46 = vpop.f32.mrb[1].mxu0 }
  0xf8   :  { %v534_v47 = vadd.f32 %v533_v46, %v532_v44  ;;  %v555_v48 = vpop.f32.mrb[1].mxu1  ;;  %v535_v49 = vpop.f32.mrb[2].mxu0 }
  0xf9   :  { %v556_v50 = vadd.f32 %v555_v48, %v554_v45  ;;  %v536_v51 = vpop.f32.mrb[3].mxu0  ;;  %v557_v52 = vpop.f32.mrb[2].mxu1 }
  0xfa   :  { %v558_v53 = vpop.f32.mrb[3].mxu1 }
  0xfb   :  { %v405_v54 = vadd.f32 %v556_v50, %v534_v47 }
 0x106   :  { %v444_v55 = vpop.f32.mrb[4].mxu0 }
 0x107   :  { %v445_v57 = vadd.f32 %v444_v55, %v405_v54  ;;  %v575_v58 = vpop.f32.mrb[5].mxu0 }
 0x108   :  { %v447_v60 = vpop.f32.mrb[6].mxu0 }
 0x109   :  { %v457_v61 = vmul.f32 %v514_v56, %v445_v57  ;;  %v576_v62 = vpop.f32.mrb[7].mxu0 }
 0x10b   :  { %v465_v63 = vadd.f32 %v515_v59, %v457_v61 }
 0x10d   :  { %v466_v0 = vmax.f32 %v465_v63, 0.0 }
 0x10f   :  { %467 = vst.msk [vmem:[%s779_s4] sm:$0xff] %vm326_vm1, %v466_v0 }

// kernel: _forward_jit.134
= control target key start
LH: loop header
LB: loop body
LE: loop exit
PB: predicated region body
PF: predicated region fallthrough
CT: control target
= control target key end

     0   :  { %v434_v1 = vmov 0.0   ;;  %vm435_vm0 = vmmov 0   ;;  %s548_s1 = inlined_call_operand.vmem [shape: bf16[384,128], index: 1, kind: input, shape index: {}]   ;;  %s549_s0 = inlined_call_operand.vmem [shape: bf16[8,384], index: 0, kind: input, shape index: {}]   ;;  %s550_s2 = inlined_call_operand.vmem [shape: f32[1,128], index: 2, kind: input, shape index: {}]   ;;  %s551_s3 = inlined_call_operand.vmem [shape: f32[1,128], index: 3, kind: input, shape index: {}]   ;;  %s552_s4 = inlined_call_operand.vmem [shape: f32[8,128], index: 4, kind: output, shape index: {}]  }
   0x1   :  { %v407_v0 = vld [vmem:[%s548_s1 + $0x40] sm:$0xff]   ;;  %385 = vmatprep.subr.bf16.mxu1 %v434_v1  ;;  %401 = vmatprep.mubr.msk.bf16.mxu1 %vm435_vm0, %v434_v1  ;;  %v410_v4 = vld [vmem:[%s548_s1 + $0x48] sm:$0xff]   ;;  %v413_v7 = vld [vmem:[%s548_s1 + $0x50] sm:$0xff]  }
   0x2   :  { %v408_v2 = vld [vmem:[%s548_s1] sm:$0xff]   ;;  %354 = vmatprep.subr.bf16.mxu0 %v407_v0  ;;  %v411_v5 = vld [vmem:[%s548_s1 + $0x8] sm:$0xff]   ;;  %v414_v8 = vld [vmem:[%s548_s1 + $0x10] sm:$0xff]  }
   0x3   :  { %v409_v3 = vld [vmem:[%s548_s1 + $0x80] sm:$0xff]   ;;  %355 = vmatpush3.bf16.msra.mxu0 %v408_v2  ;;  %v412_v6 = vld [vmem:[%s548_s1 + $0x88] sm:$0xff]   ;;  %v415_v9 = vld [vmem:[%s548_s1 + $0x90] sm:$0xff]  }
   0x4   :  { %386 = vmatpush3.bf16.msra.mxu1 %v409_v3  ;;  %356 = vmatprep.subr.bf16.mxu0 %v410_v4  ;;  %v416_v10 = vld [vmem:[%s548_s1 + $0x58] sm:$0xff]   ;;  %v419_v13 = vld [vmem:[%s548_s1 + $0x60] sm:$0xff]   ;;  %v422_v16 = vld [vmem:[%s548_s1 + $0x68] sm:$0xff]  }
   0x5   :  { %387 = vmatprep.subr.bf16.mxu1 %v434_v1  ;;  %v417_v11 = vld [vmem:[%s548_s1 + $0x18] sm:$0xff]   ;;  %v420_v14 = vld [vmem:[%s548_s1 + $0x20] sm:$0xff]   ;;  %v423_v17 = vld [vmem:[%s548_s1 + $0x28] sm:$0xff]  }
   0x6   :  { %v418_v12 = vld [vmem:[%s548_s1 + $0x98] sm:$0xff]   ;;  %v421_v15 = vld [vmem:[%s548_s1 + $0xa0] sm:$0xff]   ;;  %v424_v18 = vld [vmem:[%s548_s1 + $0xa8] sm:$0xff]  }
   0x7   :  { %357 = vmatpush3.bf16.msra.mxu0 %v411_v5  ;;  %v425_v19 = vld [vmem:[%s548_s1 + $0x70] sm:$0xff]   ;;  %v428_v22 = vld [vmem:[%s548_s1 + $0x78] sm:$0xff]   ;;  %v18_v23 = vld [vmem:[%s549_s0] sm:$0xff] }
   0x8   :  { %388 = vmatpush3.bf16.msra.mxu1 %v412_v6  ;;  %358 = vmatprep.subr.bf16.mxu0 %v413_v7  ;;  %v426_v20 = vld [vmem:[%s548_s1 + $0x30] sm:$0xff]   ;;  %v326_v24 = vcombine.high %v18_v23, %v18_v23  ;;  %v429_v25 = vld [vmem:[%s548_s1 + $0x38] sm:$0xff]   ;;  %v325_v27 = vcombine.low %v18_v23, %v18_v23  ;;  %v433_v28 = vld [vmem:[%s549_s0 + $0x8] ss:$0 sps:$4 sm:$0xff]  }
   0x9   :  { %389 = vmatprep.subr.bf16.mxu1 %v434_v1  ;;  %v427_v21 = vld [vmem:[%s548_s1 + $0xb0] sm:$0xff]   ;;  %v430_v26 = vld [vmem:[%s548_s1 + $0xb8] sm:$0xff]   ;;  %v352_v35 = vld [vmem:[%s550_s2] ss:$0 sm:$0xff] }
   0xa   :  { %255 = vmatprep.mubr.bf16.mxu0 %v326_v24  ;;  %v353_v40 = vld [vmem:[%s551_s3] ss:$0 sm:$0xff] }
   0xb   :  { %359 = vmatpush3.bf16.msra.mxu0 %v414_v8 }
   0xc   :  { %390 = vmatpush3.bf16.msra.mxu1 %v415_v9  ;;  %360 = vmatprep.subr.bf16.mxu0 %v416_v10 }
   0xd   :  { %391 = vmatprep.subr.bf16.mxu1 %v434_v1 }
   0xf   :  { %361 = vmatpush3.bf16.msra.mxu0 %v417_v11 }
  0x10   :  { %392 = vmatpush3.bf16.msra.mxu1 %v418_v12  ;;  %362 = vmatprep.subr.bf16.mxu0 %v419_v13 }
  0x11   :  { %393 = vmatprep.subr.bf16.mxu1 %v434_v1 }
  0x13   :  { %363 = vmatpush3.bf16.msra.mxu0 %v420_v14 }
  0x14   :  { %394 = vmatpush3.bf16.msra.mxu1 %v421_v15  ;;  %364 = vmatprep.subr.bf16.mxu0 %v422_v16 }
  0x15   :  { %395 = vmatprep.subr.bf16.mxu1 %v434_v1 }
  0x17   :  { %365 = vmatpush3.bf16.msra.mxu0 %v423_v17 }
  0x18   :  { %396 = vmatpush3.bf16.msra.mxu1 %v424_v18  ;;  %366 = vmatprep.subr.bf16.mxu0 %v425_v19 }
  0x19   :  { %397 = vmatprep.subr.bf16.mxu1 %v434_v1 }
  0x1b   :  { %367 = vmatpush3.bf16.msra.mxu0 %v426_v20 }
  0x1c   :  { %398 = vmatpush3.bf16.msra.mxu1 %v427_v21  ;;  %368 = vmatprep.subr.bf16.mxu0 %v428_v22 }
  0x1d   :  { %399 = vmatprep.subr.bf16.mxu1 %v434_v1 }
  0x1f   :  { %369 = vmatpush3.bf16.msra.mxu0 %v429_v25 }
  0x20   :  { %400 = vmatpush3.bf16.msra.mxu1 %v430_v26 }
  0x22   :  { %256 = vmatmul.mubr.bf16.vlgmr.msra.gmra.mrb[0].mxu0 %v325_v27 }
  0x23   :  { %402 = vmatmul.mubr.bf16.vlgmr.msra.gmra.mrb[0].mxu1 %v433_v28 }
  0xf5   :  { %v370_v29 = vpop.f32.mrb[0].mxu0 }
  0xf6   :  { %v297_v30 = vpop.f32.mrb[0].mxu1  ;;  %v371_v31 = vpop.f32.mrb[1].mxu0 }
  0xf7   :  { %v372_v32 = vadd.f32 %v371_v31, %v370_v29  ;;  %v403_v33 = vpop.f32.mrb[1].mxu1  ;;  %v373_v34 = vpop.f32.mrb[2].mxu0 }
  0xf8   :  { %v300_v36 = vpop.f32.mrb[2].mxu1  ;;  %v374_v37 = vpop.f32.mrb[3].mxu0 }
  0xf9   :  { %v298_v38 = vadd.f32 %v372_v32, %v297_v30  ;;  %v404_v39 = vpop.f32.mrb[3].mxu1 }
  0xfb   :  { %v310_v41 = vmul.f32 %v352_v35, %v298_v38 }
  0xfd   :  { %v318_v42 = vadd.f32 %v353_v40, %v310_v41 }
  0xff   :  { %v319_v43 = vmax.f32 %v318_v42, 0.0 }
 0x101   :  { %320 = vst [vmem:[%s552_s4] sm:$0xff] %v319_v43 }

// kernel: _forward_jit.137
= control target key start
LH: loop header
LB: loop body
LE: loop exit
PB: predicated region body
PF: predicated region fallthrough
CT: control target
= control target key end

     0   :  { %v433_v1 = vmov 0.0   ;;  %vm434_vm0 = vmmov 0   ;;  %s547_s1 = inlined_call_operand.vmem [shape: bf16[384,128], index: 1, kind: input, shape index: {}]   ;;  %s548_s0 = inlined_call_operand.vmem [shape: bf16[8,384], index: 0, kind: input, shape index: {}]   ;;  %s549_s2 = inlined_call_operand.vmem [shape: f32[1,128], index: 2, kind: input, shape index: {}]   ;;  %s550_s3 = inlined_call_operand.vmem [shape: f32[1,128], index: 3, kind: input, shape index: {}]   ;;  %s551_s4 = inlined_call_operand.vmem [shape: f32[8,128], index: 4, kind: output, shape index: {}]  }
   0x1   :  { %v406_v0 = vld [vmem:[%s547_s1 + $0x40] sm:$0xff]   ;;  %384 = vmatprep.subr.bf16.mxu1 %v433_v1  ;;  %400 = vmatprep.mubr.msk.bf16.mxu1 %vm434_vm0, %v433_v1  ;;  %v409_v4 = vld [vmem:[%s547_s1 + $0x48] sm:$0xff]   ;;  %v412_v7 = vld [vmem:[%s547_s1 + $0x50] sm:$0xff]  }
   0x2   :  { %v407_v2 = vld [vmem:[%s547_s1] sm:$0xff]   ;;  %353 = vmatprep.subr.bf16.mxu0 %v406_v0  ;;  %v410_v5 = vld [vmem:[%s547_s1 + $0x8] sm:$0xff]   ;;  %v413_v8 = vld [vmem:[%s547_s1 + $0x10] sm:$0xff]  }
   0x3   :  { %v408_v3 = vld [vmem:[%s547_s1 + $0x80] sm:$0xff]   ;;  %354 = vmatpush3.bf16.msra.mxu0 %v407_v2  ;;  %v411_v6 = vld [vmem:[%s547_s1 + $0x88] sm:$0xff]   ;;  %v414_v9 = vld [vmem:[%s547_s1 + $0x90] sm:$0xff]  }
   0x4   :  { %385 = vmatpush3.bf16.msra.mxu1 %v408_v3  ;;  %355 = vmatprep.subr.bf16.mxu0 %v409_v4  ;;  %v415_v10 = vld [vmem:[%s547_s1 + $0x58] sm:$0xff]   ;;  %v418_v13 = vld [vmem:[%s547_s1 + $0x60] sm:$0xff]   ;;  %v421_v16 = vld [vmem:[%s547_s1 + $0x68] sm:$0xff]  }
   0x5   :  { %386 = vmatprep.subr.bf16.mxu1 %v433_v1  ;;  %v416_v11 = vld [vmem:[%s547_s1 + $0x18] sm:$0xff]   ;;  %v419_v14 = vld [vmem:[%s547_s1 + $0x20] sm:$0xff]   ;;  %v422_v17 = vld [vmem:[%s547_s1 + $0x28] sm:$0xff]  }
   0x6   :  { %v417_v12 = vld [vmem:[%s547_s1 + $0x98] sm:$0xff]   ;;  %v420_v15 = vld [vmem:[%s547_s1 + $0xa0] sm:$0xff]   ;;  %v423_v18 = vld [vmem:[%s547_s1 + $0xa8] sm:$0xff]  }
   0x7   :  { %356 = vmatpush3.bf16.msra.mxu0 %v410_v5  ;;  %v424_v19 = vld [vmem:[%s547_s1 + $0x70] sm:$0xff]   ;;  %v427_v22 = vld [vmem:[%s547_s1 + $0x78] sm:$0xff]   ;;  %v18_v23 = vld [vmem:[%s548_s0] sm:$0xff] }
   0x8   :  { %387 = vmatpush3.bf16.msra.mxu1 %v411_v6  ;;  %357 = vmatprep.subr.bf16.mxu0 %v412_v7  ;;  %v425_v20 = vld [vmem:[%s547_s1 + $0x30] sm:$0xff]   ;;  %v325_v24 = vcombine.high %v18_v23, %v18_v23  ;;  %v428_v25 = vld [vmem:[%s547_s1 + $0x38] sm:$0xff]   ;;  %v324_v27 = vcombine.low %v18_v23, %v18_v23  ;;  %v432_v28 = vld [vmem:[%s548_s0 + $0x8] ss:$0 sps:$4 sm:$0xff]  }
   0x9   :  { %388 = vmatprep.subr.bf16.mxu1 %v433_v1  ;;  %v426_v21 = vld [vmem:[%s547_s1 + $0xb0] sm:$0xff]   ;;  %v429_v26 = vld [vmem:[%s547_s1 + $0xb8] sm:$0xff]   ;;  %v351_v35 = vld [vmem:[%s549_s2] ss:$0 sm:$0xff] }
   0xa   :  { %255 = vmatprep.mubr.bf16.mxu0 %v325_v24  ;;  %v352_v40 = vld [vmem:[%s550_s3] ss:$0 sm:$0xff] }
   0xb   :  { %358 = vmatpush3.bf16.msra.mxu0 %v413_v8 }
   0xc   :  { %389 = vmatpush3.bf16.msra.mxu1 %v414_v9  ;;  %359 = vmatprep.subr.bf16.mxu0 %v415_v10 }
   0xd   :  { %390 = vmatprep.subr.bf16.mxu1 %v433_v1 }
   0xf   :  { %360 = vmatpush3.bf16.msra.mxu0 %v416_v11 }
  0x10   :  { %391 = vmatpush3.bf16.msra.mxu1 %v417_v12  ;;  %361 = vmatprep.subr.bf16.mxu0 %v418_v13 }
  0x11   :  { %392 = vmatprep.subr.bf16.mxu1 %v433_v1 }
  0x13   :  { %362 = vmatpush3.bf16.msra.mxu0 %v419_v14 }
  0x14   :  { %393 = vmatpush3.bf16.msra.mxu1 %v420_v15  ;;  %363 = vmatprep.subr.bf16.mxu0 %v421_v16 }
  0x15   :  { %394 = vmatprep.subr.bf16.mxu1 %v433_v1 }
  0x17   :  { %364 = vmatpush3.bf16.msra.mxu0 %v422_v17 }
  0x18   :  { %395 = vmatpush3.bf16.msra.mxu1 %v423_v18  ;;  %365 = vmatprep.subr.bf16.mxu0 %v424_v19 }
  0x19   :  { %396 = vmatprep.subr.bf16.mxu1 %v433_v1 }
  0x1b   :  { %366 = vmatpush3.bf16.msra.mxu0 %v425_v20 }
  0x1c   :  { %397 = vmatpush3.bf16.msra.mxu1 %v426_v21  ;;  %367 = vmatprep.subr.bf16.mxu0 %v427_v22 }
  0x1d   :  { %398 = vmatprep.subr.bf16.mxu1 %v433_v1 }
  0x1f   :  { %368 = vmatpush3.bf16.msra.mxu0 %v428_v25 }
  0x20   :  { %399 = vmatpush3.bf16.msra.mxu1 %v429_v26 }
  0x22   :  { %256 = vmatmul.mubr.bf16.vlgmr.msra.gmra.mrb[0].mxu0 %v324_v27 }
  0x23   :  { %401 = vmatmul.mubr.bf16.vlgmr.msra.gmra.mrb[0].mxu1 %v432_v28 }
  0xf5   :  { %v369_v29 = vpop.f32.mrb[0].mxu0 }
  0xf6   :  { %v297_v30 = vpop.f32.mrb[0].mxu1  ;;  %v370_v31 = vpop.f32.mrb[1].mxu0 }
  0xf7   :  { %v371_v32 = vadd.f32 %v370_v31, %v369_v29  ;;  %v402_v33 = vpop.f32.mrb[1].mxu1  ;;  %v372_v34 = vpop.f32.mrb[2].mxu0 }
  0xf8   :  { %v300_v36 = vpop.f32.mrb[2].mxu1  ;;  %v373_v37 = vpop.f32.mrb[3].mxu0 }
  0xf9   :  { %v298_v38 = vadd.f32 %v371_v32, %v297_v30  ;;  %v403_v39 = vpop.f32.mrb[3].mxu1 }
  0xfb   :  { %v310_v41 = vmul.f32 %v351_v35, %v298_v38 }
  0xfd   :  { %v318_v42 = vadd.f32 %v352_v40, %v310_v41 }
  0xff   :  { %319 = vst [vmem:[%s551_s4] sm:$0xff] %v318_v42 }

// kernel: _forward_jit.166
= control target key start
LH: loop header
LB: loop body
LE: loop exit
PB: predicated region body
PF: predicated region fallthrough
CT: control target
= control target key end

     0   :  { %v195_v0 = vmov 0.0   ;;  %vm196_vm0 = vmmov 0   ;;  %vm140_vm1 = vcmask 523264   ;;  %s258_s1 = inlined_call_operand.vmem [shape: bf16[128,64], index: 1, kind: input, shape index: {}]   ;;  %s259_s0 = inlined_call_operand.vmem [shape: bf16[8,128], index: 0, kind: input, shape index: {}]   ;;  %s260_s2 = inlined_call_operand.vmem [shape: f32[1,64], index: 2, kind: input, shape index: {}]   ;;  %s261_s3 = inlined_call_operand.vmem [shape: f32[1,64], index: 3, kind: input, shape index: {}]   ;;  %s262_s4 = inlined_call_operand.vmem [shape: f32[8,64], index: 4, kind: output, shape index: {}]  }
   0x1   :  { %165 = vmatprep.subr.bf16.mxu0 %v195_v0  ;;  %v187_v1 = vld [vmem:[%s258_s1] sm:$0xff]   ;;  %181 = vmatprep.mubr.msk.bf16.mxu0 %vm196_vm0, %v195_v0  ;;  %v188_v2 = vld [vmem:[%s258_s1 + $0x8] sm:$0xff]   ;;  %v189_v3 = vld [vmem:[%s258_s1 + $0x10] sm:$0xff]  }
   0x2   :  { %166 = vmatpush3.bf16.msra.mxu0 %v187_v1  ;;  %v190_v4 = vld [vmem:[%s258_s1 + $0x18] sm:$0xff]   ;;  %v191_v5 = vld [vmem:[%s258_s1 + $0x20] sm:$0xff]   ;;  %v192_v6 = vld [vmem:[%s258_s1 + $0x28] sm:$0xff]  }
   0x3   :  { %167 = vmatprep.subr.bf16.mxu0 %v195_v0  ;;  %v193_v7 = vld [vmem:[%s258_s1 + $0x30] sm:$0xff]   ;;  %v194_v8 = vld [vmem:[%s258_s1 + $0x38] sm:$0xff]   ;;  %v18_v9 = vld [vmem:[%s259_s0] sm:$0xf] }
   0x4   :  { %v154_v10 = vld [vmem:[%s260_s2] ss:$0 sm:$0xff] }
   0x5   :  { %v155_v12 = vld [vmem:[%s261_s3] ss:$0 sm:$0xff] }
   0x6   :  { %168 = vmatpush3.bf16.msra.mxu0 %v188_v2 }
   0x7   :  { %169 = vmatprep.subr.bf16.mxu0 %v195_v0 }
   0xa   :  { %170 = vmatpush3.bf16.msra.mxu0 %v189_v3 }
   0xb   :  { %171 = vmatprep.subr.bf16.mxu0 %v195_v0 }
   0xe   :  { %172 = vmatpush3.bf16.msra.mxu0 %v190_v4 }
   0xf   :  { %173 = vmatprep.subr.bf16.mxu0 %v195_v0 }
  0x12   :  { %174 = vmatpush3.bf16.msra.mxu0 %v191_v5 }
  0x13   :  { %175 = vmatprep.subr.bf16.mxu0 %v195_v0 }
  0x16   :  { %176 = vmatpush3.bf16.msra.mxu0 %v192_v6 }
  0x17   :  { %177 = vmatprep.subr.bf16.mxu0 %v195_v0 }
  0x1a   :  { %178 = vmatpush3.bf16.msra.mxu0 %v193_v7 }
  0x1b   :  { %179 = vmatprep.subr.bf16.mxu0 %v195_v0 }
  0x1e   :  { %180 = vmatpush3.bf16.msra.mxu0 %v194_v8 }
  0x21   :  { %182 = vmatmul.mubr.bf16.vlgmr.msra.gmra.mrb[0].mxu0 %v18_v9 }
  0xf4   :  { %v117_v11 = vpop.f32.mrb[0].mxu0 }
  0xf5   :  { %v130_v13 = vmul.f32 %v154_v10, %v117_v11  ;;  %v183_v14 = vpop.f32.mrb[1].mxu0 }
  0xf6   :  { %v120_v15 = vpop.f32.mrb[2].mxu0 }
  0xf7   :  { %v138_v16 = vadd.f32 %v155_v12, %v130_v13  ;;  %v184_v17 = vpop.f32.mrb[3].mxu0 }
  0xf9   :  { %v139_v18 = vmax.f32 %v138_v16, 0.0 }
  0xfb   :  { %141 = vst.msk [vmem:[%s262_s4] sm:$0xff] %vm140_vm1, %v139_v18 }

// kernel: _forward_jit.167
= control target key start
LH: loop header
LB: loop body
LE: loop exit
PB: predicated region body
PF: predicated region fallthrough
CT: control target
= control target key end

     0   :  { %vm211_vm0 = vcmask 523264   ;;  %s362_s1 = inlined_call_operand.vmem [shape: bf16[256,64], index: 1, kind: input, shape index: {}]   ;;  %s363_s0 = inlined_call_operand.vmem [shape: bf16[8,256], index: 0, kind: input, shape index: {}]   ;;  %s364_s2 = inlined_call_operand.vmem [shape: f32[1,64], index: 2, kind: input, shape index: {}]   ;;  %s365_s3 = inlined_call_operand.vmem [shape: f32[1,64], index: 3, kind: input, shape index: {}]   ;;  %s366_s4 = inlined_call_operand.vmem [shape: f32[8,64], index: 4, kind: output, shape index: {}]  }
   0x1   :  { %v259_v0 = vld [vmem:[%s362_s1 + $0x40] sm:$0xff]   ;;  %v261_v2 = vld [vmem:[%s362_s1 + $0x48] sm:$0xff]   ;;  %v263_v4 = vld [vmem:[%s362_s1 + $0x50] sm:$0xff]  }
   0x2   :  { %v260_v1 = vld [vmem:[%s362_s1] sm:$0xff]   ;;  %237 = vmatprep.subr.bf16.mxu0 %v259_v0  ;;  %v262_v3 = vld [vmem:[%s362_s1 + $0x8] sm:$0xff]   ;;  %v264_v5 = vld [vmem:[%s362_s1 + $0x10] sm:$0xff]  }
   0x3   :  { %238 = vmatpush3.bf16.msra.mxu0 %v260_v1  ;;  %v265_v6 = vld [vmem:[%s362_s1 + $0x58] sm:$0xff]   ;;  %v267_v8 = vld [vmem:[%s362_s1 + $0x60] sm:$0xff]   ;;  %v269_v10 = vld [vmem:[%s362_s1 + $0x68] sm:$0xff]  }
   0x4   :  { %239 = vmatprep.subr.bf16.mxu0 %v261_v2  ;;  %v266_v7 = vld [vmem:[%s362_s1 + $0x18] sm:$0xff]   ;;  %v268_v9 = vld [vmem:[%s362_s1 + $0x20] sm:$0xff]   ;;  %v270_v13 = vld [vmem:[%s362_s1 + $0x28] sm:$0xff]  }
   0x5   :  { %v18_v11 = vld [vmem:[%s363_s0] sm:$0xff]  ;;  %v271_v14 = vld [vmem:[%s362_s1 + $0x70] sm:$0xff]   ;;  %v273_v16 = vld [vmem:[%s362_s1 + $0x78] sm:$0xff]  }
   0x6   :  { %v218_v12 = vcombine.high %v18_v11, %v18_v11  ;;  %v272_v15 = vld [vmem:[%s362_s1 + $0x30] sm:$0xff]   ;;  %v274_v17 = vld [vmem:[%s362_s1 + $0x38] sm:$0xff]   ;;  %v217_v18 = vcombine.low %v18_v11, %v18_v11  ;;  %v235_v21 = vld [vmem:[%s364_s2] ss:$0 sm:$0xff] }
   0x7   :  { %240 = vmatpush3.bf16.msra.mxu0 %v262_v3  ;;  %v236_v24 = vld [vmem:[%s365_s3] ss:$0 sm:$0xff] }
   0x8   :  { %241 = vmatprep.subr.bf16.mxu0 %v263_v4  ;;  %186 = vmatprep.mubr.bf16.mxu0 %v218_v12 }
   0xb   :  { %242 = vmatpush3.bf16.msra.mxu0 %v264_v5 }
   0xc   :  { %243 = vmatprep.subr.bf16.mxu0 %v265_v6 }
   0xf   :  { %244 = vmatpush3.bf16.msra.mxu0 %v266_v7 }
  0x10   :  { %245 = vmatprep.subr.bf16.mxu0 %v267_v8 }
  0x13   :  { %246 = vmatpush3.bf16.msra.mxu0 %v268_v9 }
  0x14   :  { %247 = vmatprep.subr.bf16.mxu0 %v269_v10 }
  0x17   :  { %248 = vmatpush3.bf16.msra.mxu0 %v270_v13 }
  0x18   :  { %249 = vmatprep.subr.bf16.mxu0 %v271_v14 }
  0x1b   :  { %250 = vmatpush3.bf16.msra.mxu0 %v272_v15 }
  0x1c   :  { %251 = vmatprep.subr.bf16.mxu0 %v273_v16 }
  0x1f   :  { %252 = vmatpush3.bf16.msra.mxu0 %v274_v17 }
  0x22   :  { %187 = vmatmul.mubr.bf16.vlgmr.msra.gmra.mrb[0].mxu0 %v217_v18 }
  0xf5   :  { %v253_v19 = vpop.f32.mrb[0].mxu0 }
  0xf6   :  { %v254_v20 = vpop.f32.mrb[1].mxu0 }
  0xf7   :  { %v255_v22 = vadd.f32 %v254_v20, %v253_v19  ;;  %v256_v23 = vpop.f32.mrb[2].mxu0 }
  0xf8   :  { %v257_v25 = vpop.f32.mrb[3].mxu0 }
  0xf9   :  { %v201_v26 = vmul.f32 %v255_v22, %v235_v21 }
  0xfb   :  { %v209_v27 = vadd.f32 %v236_v24, %v201_v26 }
  0xfd   :  { %v210_v28 = vmax.f32 %v209_v27, 0.0 }
  0xff   :  { %212 = vst.msk [vmem:[%s366_s4] sm:$0xff] %vm211_vm0, %v210_v28 }

// kernel: _forward_jit.169
= control target key start
LH: loop header
LB: loop body
LE: loop exit
PB: predicated region body
PF: predicated region fallthrough
CT: control target
= control target key end

     0   :  { %vm387_vm0 = vcmask 523264   ;;  %s647_s1 = inlined_call_operand.vmem [shape: bf16[512,64], index: 1, kind: input, shape index: {}]   ;;  %s648_s0 = inlined_call_operand.vmem [shape: bf16[8,512], index: 0, kind: input, shape index: {}]   ;;  %s649_s2 = inlined_call_operand.vmem [shape: f32[1,64], index: 2, kind: input, shape index: {}]   ;;  %s650_s3 = inlined_call_operand.vmem [shape: f32[1,64], index: 3, kind: input, shape index: {}]   ;;  %s651_s4 = inlined_call_operand.vmem [shape: f32[8,64], index: 4, kind: output, shape index: {}]  }
   0x1   :  { %v475_v0 = vld [vmem:[%s647_s1 + $0x40] sm:$0xff]   ;;  %v479_v4 = vld [vmem:[%s647_s1 + $0x48] sm:$0xff]   ;;  %v483_v8 = vld [vmem:[%s647_s1 + $0x50] sm:$0xff]  }
   0x2   :  { %v476_v1 = vld [vmem:[%s647_s1 + $0xc0] sm:$0xff]   ;;  %431 = vmatprep.subr.bf16.mxu0 %v475_v0  ;;  %v480_v5 = vld [vmem:[%s647_s1 + $0xc8] sm:$0xff]   ;;  %v484_v9 = vld [vmem:[%s647_s1 + $0xd0] sm:$0xff]  }
   0x3   :  { %v477_v2 = vld [vmem:[%s647_s1] sm:$0xff]   ;;  %453 = vmatprep.subr.bf16.mxu1 %v476_v1  ;;  %v481_v6 = vld [vmem:[%s647_s1 + $0x8] sm:$0xff]   ;;  %v485_v10 = vld [vmem:[%s647_s1 + $0x10] sm:$0xff]  }
   0x4   :  { %v478_v3 = vld [vmem:[%s647_s1 + $0x80] sm:$0xff]   ;;  %432 = vmatpush3.bf16.msra.mxu0 %v477_v2  ;;  %v482_v7 = vld [vmem:[%s647_s1 + $0x88] sm:$0xff]   ;;  %v486_v11 = vld [vmem:[%s647_s1 + $0x90] sm:$0xff]  }
   0x5   :  { %454 = vmatpush3.bf16.msra.mxu1 %v478_v3  ;;  %433 = vmatprep.subr.bf16.mxu0 %v479_v4  ;;  %v487_v12 = vld [vmem:[%s647_s1 + $0x58] sm:$0xff]   ;;  %v491_v16 = vld [vmem:[%s647_s1 + $0x60] sm:$0xff]   ;;  %v495_v20 = vld [vmem:[%s647_s1 + $0x68] sm:$0xff]  }
   0x6   :  { %455 = vmatprep.subr.bf16.mxu1 %v480_v5  ;;  %v488_v13 = vld [vmem:[%s647_s1 + $0xd8] sm:$0xff]   ;;  %v492_v17 = vld [vmem:[%s647_s1 + $0xe0] sm:$0xff]   ;;  %v496_v21 = vld [vmem:[%s647_s1 + $0xe8] sm:$0xff]  }
   0x7   :  { %v489_v14 = vld [vmem:[%s647_s1 + $0x18] sm:$0xff]   ;;  %v493_v18 = vld [vmem:[%s647_s1 + $0x20] sm:$0xff]   ;;  %v497_v22 = vld [vmem:[%s647_s1 + $0x28] sm:$0xff]  }
   0x8   :  { %434 = vmatpush3.bf16.msra.mxu0 %v481_v6  ;;  %v490_v15 = vld [vmem:[%s647_s1 + $0x98] sm:$0xff]   ;;  %v494_v19 = vld [vmem:[%s647_s1 + $0xa0] sm:$0xff]   ;;  %v498_v23 = vld [vmem:[%s647_s1 + $0xa8] sm:$0xff]  }
   0x9   :  { %456 = vmatpush3.bf16.msra.mxu1 %v482_v7  ;;  %435 = vmatprep.subr.bf16.mxu0 %v483_v8  ;;  %v499_v24 = vld [vmem:[%s647_s1 + $0x70] sm:$0xff]   ;;  %v503_v28 = vld [vmem:[%s647_s1 + $0x78] sm:$0xff]   ;;  %v18_v32 = vld [vmem:[%s648_s0] sm:$0xff] }
   0xa   :  { %457 = vmatprep.subr.bf16.mxu1 %v484_v9  ;;  %v500_v25 = vld [vmem:[%s647_s1 + $0xf0] sm:$0xff]   ;;  %v504_v29 = vld [vmem:[%s647_s1 + $0xf8] sm:$0xff]   ;;  %v19_v33 = vld [vmem:[%s648_s0 + $0x8] sm:$0xff]  ;;  %v393_v34 = vcombine.low %v18_v32, %v18_v32  ;;  %v394_v35 = vcombine.high %v18_v32, %v18_v32 }
   0xb   :  { %v501_v26 = vld [vmem:[%s647_s1 + $0x30] sm:$0xff]   ;;  %v505_v30 = vld [vmem:[%s647_s1 + $0x38] sm:$0xff]   ;;  %v395_v36 = vcombine.low %v19_v33, %v19_v33  ;;  %v396_v37 = vcombine.high %v19_v33, %v19_v33  ;;  %v429_v46 = vld [vmem:[%s649_s2] ss:$0 sm:$0xff] }
   0xc   :  { %436 = vmatpush3.bf16.msra.mxu0 %v485_v10  ;;  %v502_v27 = vld [vmem:[%s647_s1 + $0xb0] sm:$0xff]   ;;  %v506_v31 = vld [vmem:[%s647_s1 + $0xb8] sm:$0xff]   ;;  %322 = vmatprep.mubr.bf16.mxu0 %v394_v35  ;;  %v430_v50 = vld [vmem:[%s650_s3] ss:$0 sm:$0xff] }
   0xd   :  { %458 = vmatpush3.bf16.msra.mxu1 %v486_v11  ;;  %437 = vmatprep.subr.bf16.mxu0 %v487_v12 }
   0xe   :  { %459 = vmatprep.subr.bf16.mxu1 %v488_v13  ;;  %362 = vmatprep.mubr.bf16.mxu1 %v396_v37 }
  0x10   :  { %438 = vmatpush3.bf16.msra.mxu0 %v489_v14 }
  0x11   :  { %460 = vmatpush3.bf16.msra.mxu1 %v490_v15  ;;  %439 = vmatprep.subr.bf16.mxu0 %v491_v16 }
  0x12   :  { %461 = vmatprep.subr.bf16.mxu1 %v492_v17 }
  0x14   :  { %440 = vmatpush3.bf16.msra.mxu0 %v493_v18 }
  0x15   :  { %462 = vmatpush3.bf16.msra.mxu1 %v494_v19  ;;  %441 = vmatprep.subr.bf16.mxu0 %v495_v20 }
  0x16   :  { %463 = vmatprep.subr.bf16.mxu1 %v496_v21 }
  0x18   :  { %442 = vmatpush3.bf16.msra.mxu0 %v497_v22 }
  0x19   :  { %464 = vmatpush3.bf16.msra.mxu1 %v498_v23  ;;  %443 = vmatprep.subr.bf16.mxu0 %v499_v24 }
  0x1a   :  { %465 = vmatprep.subr.bf16.mxu1 %v500_v25 }
  0x1c   :  { %444 = vmatpush3.bf16.msra.mxu0 %v501_v26 }
  0x1d   :  { %466 = vmatpush3.bf16.msra.mxu1 %v502_v27  ;;  %445 = vmatprep.subr.bf16.mxu0 %v503_v28 }
  0x1e   :  { %467 = vmatprep.subr.bf16.mxu1 %v504_v29 }
  0x20   :  { %446 = vmatpush3.bf16.msra.mxu0 %v505_v30 }
  0x21   :  { %468 = vmatpush3.bf16.msra.mxu1 %v506_v31 }
  0x23   :  { %323 = vmatmul.mubr.bf16.vlgmr.msra.gmra.mrb[0].mxu0 %v393_v34 }
  0x24   :  { %363 = vmatmul.mubr.bf16.vlgmr.msra.gmra.mrb[0].mxu1 %v395_v36 }
  0xf6   :  { %v447_v38 = vpop.f32.mrb[0].mxu0 }
  0xf7   :  { %v469_v39 = vpop.f32.mrb[0].mxu1  ;;  %v448_v40 = vpop.f32.mrb[1].mxu0 }
  0xf8   :  { %v470_v41 = vpop.f32.mrb[1].mxu1  ;;  %v449_v42 = vadd.f32 %v448_v40, %v447_v38  ;;  %v450_v44 = vpop.f32.mrb[2].mxu0 }
  0xf9   :  { %v471_v43 = vadd.f32 %v470_v41, %v469_v39  ;;  %v472_v45 = vpop.f32.mrb[2].mxu1  ;;  %v451_v47 = vpop.f32.mrb[3].mxu0 }
  0xfa   :  { %v473_v48 = vpop.f32.mrb[3].mxu1 }
  0xfb   :  { %v365_v49 = vadd.f32 %v471_v43, %v449_v42 }
  0xfd   :  { %v377_v51 = vmul.f32 %v429_v46, %v365_v49 }
  0xff   :  { %v385_v52 = vadd.f32 %v430_v50, %v377_v51 }
 0x101   :  { %v386_v53 = vmax.f32 %v385_v52, 0.0 }
 0x103   :  { %388 = vst.msk [vmem:[%s651_s4] sm:$0xff] %vm387_vm0, %v386_v53 }

// kernel: _forward_jit.178
= control target key start
LH: loop header
LB: loop body
LE: loop exit
PB: predicated region body
PF: predicated region fallthrough
CT: control target
= control target key end

     0   :  { %vm64_vm0 = vcmask 523264   ;;  %vm146_vm1 = vcmask 261120   ;;  %s250_s1 = inlined_call_operand.vmem [shape: bf16[64,32], index: 1, kind: input, shape index: {}]   ;;  %s251_s0 = inlined_call_operand.vmem [shape: bf16[32,64], index: 0, kind: input, shape index: {}]   ;;  %s252_s2 = inlined_call_operand.vmem [shape: f32[1,32], index: 2, kind: input, shape index: {}]   ;;  %s253_s3 = inlined_call_operand.vmem [shape: f32[1,32], index: 3, kind: input, shape index: {}]   ;;  %s254_s4 = inlined_call_operand.vmem [shape: f32[32,32], index: 4, kind: output, shape index: {}]  }
   0x1   :  { %v183_v0 = vld [vmem:[%s250_s1] sm:$0xff]   ;;  %v184_v1 = vld [vmem:[%s250_s1 + $0x8] sm:$0xff]   ;;  %v185_v2 = vld [vmem:[%s250_s1 + $0x10] sm:$0xff]  }
   0x2   :  { %171 = vmatprep.subr.bf16.mxu0 %v183_v0  ;;  %v187_v3 = vld [vmem:[%s251_s0] sm:$0xff]   ;;  %v186_v4 = vld [vmem:[%s250_s1 + $0x18] sm:$0xff]   ;;  %v188_v5 = vld [vmem:[%s251_s0 + $0x8] sm:$0xff]  }
   0x3   :  { %172 = vmatpush3.bf16.msra.mxu0 %v183_v0  ;;  %179 = vmatprep.mubr.msk.bf16.mxu0 %vm64_vm0, %v187_v3  ;;  %v163_v6 = vld [vmem:[%s252_s2] ss:$0 sm:$0xff] }
   0x4   :  { %173 = vmatprep.subr.bf16.mxu0 %v184_v1  ;;  %v164_v8 = vld [vmem:[%s253_s3] ss:$0 sm:$0xff] }
   0x7   :  { %174 = vmatpush3.bf16.msra.mxu0 %v184_v1 }
   0x8   :  { %175 = vmatprep.subr.bf16.mxu0 %v185_v2 }
   0xb   :  { %176 = vmatpush3.bf16.msra.mxu0 %v185_v2 }
   0xc   :  { %177 = vmatprep.subr.bf16.mxu0 %v186_v4 }
   0xf   :  { %178 = vmatpush3.bf16.msra.mxu0 %v186_v4 }
  0x12   :  { %180 = vmatmul.mubr.msk.bf16.vlgmr.msra.gmra.mrb[0].mxu0 %vm64_vm0, %v188_v5 }
  0xe5   :  { %v181_v7 = vpop.f32.mrb[0].mxu0 }
  0xe6   :  { %v129_v9 = vmul.f32 %v181_v7, %v163_v6  ;;  %v105_v10 = vpop.f32.mrb[1].mxu0 }
  0xe7   :  { %v127_v11 = vmul.f32 %v163_v6, %v105_v10  ;;  %v182_v12 = vpop.f32.mrb[2].mxu0 }
  0xe8   :  { %v140_v13 = vadd.f32 %v164_v8, %v129_v9  ;;  %v130_v14 = vmul.f32 %v182_v12, %v163_v6  ;;  %v108_v15 = vpop.f32.mrb[3].mxu0 }
  0xe9   :  { %v138_v16 = vadd.f32 %v164_v8, %v127_v11  ;;  %v128_v17 = vmul.f32 %v163_v6, %v108_v15 }
  0xea   :  { %v144_v18 = vmax.f32 %v140_v13, 0.0  ;;  %v141_v19 = vadd.f32 %v164_v8, %v130_v14 }
  0xeb   :  { %v142_v20 = vmax.f32 %v138_v16, 0.0  ;;  %v139_v21 = vadd.f32 %v164_v8, %v128_v17 }
  0xec   :  { %149 = vst.msk [vmem:[%s254_s4 + $0x10] sm:$0xff] %vm146_vm1, %v144_v18  ;;  %v145_v22 = vmax.f32 %v141_v19, 0.0 }
  0xed   :  { %147 = vst.msk [vmem:[%s254_s4] sm:$0xff] %vm146_vm1, %v142_v20  ;;  %v143_v23 = vmax.f32 %v139_v21, 0.0 }
  0xee   :  { %150 = vst.msk [vmem:[%s254_s4 + $0x18] sm:$0xff] %vm146_vm1, %v145_v22 }
  0xef   :  { %148 = vst.msk [vmem:[%s254_s4 + $0x8] sm:$0xff] %vm146_vm1, %v143_v23 }

// kernel: _forward_jit.179
= control target key start
LH: loop header
LB: loop body
LE: loop exit
PB: predicated region body
PF: predicated region fallthrough
CT: control target
= control target key end

     0   :  { %vm173_vm0 = vcmask 261120   ;;  %s307_s1 = inlined_call_operand.vmem [shape: bf16[128,32], index: 1, kind: input, shape index: {}]   ;;  %s308_s0 = inlined_call_operand.vmem [shape: bf16[32,128], index: 0, kind: input, shape index: {}]   ;;  %s309_s2 = inlined_call_operand.vmem [shape: f32[1,32], index: 2, kind: input, shape index: {}]   ;;  %s310_s3 = inlined_call_operand.vmem [shape: f32[1,32], index: 3, kind: input, shape index: {}]   ;;  %s311_s4 = inlined_call_operand.vmem [shape: f32[32,32], index: 4, kind: output, shape index: {}]  }
   0x1   :  { %v224_v0 = vld [vmem:[%s307_s1] sm:$0xff]   ;;  %v225_v1 = vld [vmem:[%s307_s1 + $0x8] sm:$0xff]   ;;  %v226_v2 = vld [vmem:[%s307_s1 + $0x10] sm:$0xff]  }
   0x2   :  { %204 = vmatprep.subr.bf16.mxu0 %v224_v0  ;;  %v227_v3 = vld [vmem:[%s307_s1 + $0x18] sm:$0xff]   ;;  %v232_v4 = vld [vmem:[%s308_s0] sm:$0xff]   ;;  %v229_v6 = vld [vmem:[%s307_s1 + $0x28] sm:$0xff]  }
   0x3   :  { %205 = vmatpush3.bf16.msra.mxu0 %v224_v0  ;;  %220 = vmatprep.mubr.bf16.mxu0 %v232_v4  ;;  %v228_v5 = vld [vmem:[%s307_s1 + $0x20] sm:$0xff]   ;;  %v230_v7 = vld [vmem:[%s307_s1 + $0x30] sm:$0xff]   ;;  %v231_v8 = vld [vmem:[%s307_s1 + $0x38] sm:$0xff]  }
   0x4   :  { %206 = vmatprep.subr.bf16.mxu0 %v225_v1  ;;  %v233_v9 = vld [vmem:[%s308_s0 + $0x8] sm:$0xff]   ;;  %v192_v10 = vld [vmem:[%s309_s2] ss:$0 sm:$0xff] }
   0x5   :  { %v193_v12 = vld [vmem:[%s310_s3] ss:$0 sm:$0xff] }
   0x7   :  { %207 = vmatpush3.bf16.msra.mxu0 %v225_v1 }
   0x8   :  { %208 = vmatprep.subr.bf16.mxu0 %v226_v2 }
   0xb   :  { %209 = vmatpush3.bf16.msra.mxu0 %v226_v2 }
   0xc   :  { %210 = vmatprep.subr.bf16.mxu0 %v227_v3 }
   0xf   :  { %211 = vmatpush3.bf16.msra.mxu0 %v227_v3 }
  0x10   :  { %212 = vmatprep.subr.bf16.mxu0 %v228_v5 }
  0x13   :  { %213 = vmatpush3.bf16.msra.mxu0 %v228_v5 }
  0x14   :  { %214 = vmatprep.subr.bf16.mxu0 %v229_v6 }
  0x17   :  { %215 = vmatpush3.bf16.msra.mxu0 %v229_v6 }
  0x18   :  { %216 = vmatprep.subr.bf16.mxu0 %v230_v7 }
  0x1b   :  { %217 = vmatpush3.bf16.msra.mxu0 %v230_v7 }
  0x1c   :  { %218 = vmatprep.subr.bf16.mxu0 %v231_v8 }
  0x1f   :  { %219 = vmatpush3.bf16.msra.mxu0 %v231_v8 }
  0x22   :  { %221 = vmatmul.mubr.bf16.vlgmr.msra.gmra.mrb[0].mxu0 %v233_v9 }
  0xf5   :  { %v222_v11 = vpop.f32.mrb[0].mxu0 }
  0xf6   :  { %v156_v13 = vmul.f32 %v222_v11, %v192_v10  ;;  %v132_v14 = vpop.f32.mrb[1].mxu0 }
  0xf7   :  { %v154_v15 = vmul.f32 %v192_v10, %v132_v14  ;;  %v223_v16 = vpop.f32.mrb[2].mxu0 }
  0xf8   :  { %v167_v17 = vadd.f32 %v193_v12, %v156_v13  ;;  %v157_v18 = vmul.f32 %v223_v16, %v192_v10  ;;  %v135_v19 = vpop.f32.mrb[3].mxu0 }
  0xf9   :  { %v165_v20 = vadd.f32 %v193_v12, %v154_v15  ;;  %v155_v21 = vmul.f32 %v192_v10, %v135_v19 }
  0xfa   :  { %v171_v22 = vmax.f32 %v167_v17, 0.0  ;;  %v168_v23 = vadd.f32 %v193_v12, %v157_v18 }
  0xfb   :  { %v169_v24 = vmax.f32 %v165_v20, 0.0  ;;  %v166_v25 = vadd.f32 %v193_v12, %v155_v21 }
  0xfc   :  { %176 = vst.msk [vmem:[%s311_s4 + $0x10] sm:$0xff] %vm173_vm0, %v171_v22  ;;  %v172_v26 = vmax.f32 %v168_v23, 0.0 }
  0xfd   :  { %174 = vst.msk [vmem:[%s311_s4] sm:$0xff] %vm173_vm0, %v169_v24  ;;  %v170_v27 = vmax.f32 %v166_v25, 0.0 }
  0xfe   :  { %177 = vst.msk [vmem:[%s311_s4 + $0x18] sm:$0xff] %vm173_vm0, %v172_v26 }
  0xff   :  { %175 = vst.msk [vmem:[%s311_s4 + $0x8] sm:$0xff] %vm173_vm0, %v170_v27 }

// kernel: _forward_jit.181
= control target key start
LH: loop header
LB: loop body
LE: loop exit
PB: predicated region body
PF: predicated region fallthrough
CT: control target
= control target key end

     0   :  { %vm245_vm0 = vcmask 261120   ;;  %s445_s1 = inlined_call_operand.vmem [shape: bf16[256,32], index: 1, kind: input, shape index: {}]   ;;  %s446_s0 = inlined_call_operand.vmem [shape: bf16[32,256], index: 0, kind: input, shape index: {}]   ;;  %s447_s2 = inlined_call_operand.vmem [shape: f32[1,32], index: 2, kind: input, shape index: {}]   ;;  %s448_s3 = inlined_call_operand.vmem [shape: f32[1,32], index: 3, kind: input, shape index: {}]   ;;  %s449_s4 = inlined_call_operand.vmem [shape: f32[32,32], index: 4, kind: output, shape index: {}]  }
   0x1   :  { %v320_v0 = vld [vmem:[%s445_s1 + $0x40] sm:$0xff]   ;;  %v322_v2 = vld [vmem:[%s445_s1 + $0x48] sm:$0xff]   ;;  %v324_v4 = vld [vmem:[%s445_s1 + $0x50] sm:$0xff]  }
   0x2   :  { %v321_v1 = vld [vmem:[%s445_s1] sm:$0xff]   ;;  %276 = vmatprep.subr.bf16.mxu0 %v320_v0  ;;  %304 = vmatprep.subr.bf16.mxu1 %v320_v0  ;;  %v323_v3 = vld [vmem:[%s445_s1 + $0x8] sm:$0xff]   ;;  %v325_v5 = vld [vmem:[%s445_s1 + $0x10] sm:$0xff]  }
   0x3   :  { %277 = vmatpush3.bf16.msra.mxu0 %v321_v1  ;;  %312 = vmatpush3.bf16.msra.mxu1 %v321_v1  ;;  %v326_v6 = vld [vmem:[%s445_s1 + $0x58] sm:$0xff]   ;;  %v328_v8 = vld [vmem:[%s445_s1 + $0x60] sm:$0xff]   ;;  %v330_v10 = vld [vmem:[%s445_s1 + $0x68] sm:$0xff]  }
   0x4   :  { %278 = vmatprep.subr.bf16.mxu0 %v322_v2  ;;  %305 = vmatprep.subr.bf16.mxu1 %v322_v2  ;;  %v327_v7 = vld [vmem:[%s445_s1 + $0x18] sm:$0xff]   ;;  %v329_v9 = vld [vmem:[%s445_s1 + $0x20] sm:$0xff]   ;;  %v331_v13 = vld [vmem:[%s445_s1 + $0x28] sm:$0xff]  }
   0x5   :  { %v338_v11 = vld [vmem:[%s446_s0 + $0x4] ss:$8 sps:$4 sm:$0xff]   ;;  %v341_v12 = vld [vmem:[%s446_s0 + $0x14] ss:$8 sps:$4 sm:$0xff]   ;;  %v336_v18 = vld [vmem:[%s446_s0] ss:$8 sps:$4 sm:$0xff]  }
   0x6   :  { %v332_v14 = vld [vmem:[%s445_s1 + $0x70] sm:$0xff]   ;;  %202 = vmatprep.mubr.bf16.mxu0 %v338_v11  ;;  %210 = vmatprep.mubr.bf16.mxu1 %v341_v12  ;;  %v334_v16 = vld [vmem:[%s445_s1 + $0x78] sm:$0xff]   ;;  %v274_v23 = vld [vmem:[%s447_s2] ss:$0 sm:$0xff] }
   0x7   :  { %279 = vmatpush3.bf16.msra.mxu0 %v323_v3  ;;  %313 = vmatpush3.bf16.msra.mxu1 %v323_v3  ;;  %v333_v15 = vld [vmem:[%s445_s1 + $0x30] sm:$0xff]   ;;  %v335_v17 = vld [vmem:[%s445_s1 + $0x38] sm:$0xff]   ;;  %v275_v29 = vld [vmem:[%s448_s3] ss:$0 sm:$0xff] }
   0x8   :  { %280 = vmatprep.subr.bf16.mxu0 %v324_v4  ;;  %306 = vmatprep.subr.bf16.mxu1 %v324_v4  ;;  %v339_v19 = vld [vmem:[%s446_s0 + $0x10] ss:$8 sps:$4 sm:$0xff]  }
   0xb   :  { %281 = vmatpush3.bf16.msra.mxu0 %v325_v5  ;;  %314 = vmatpush3.bf16.msra.mxu1 %v325_v5 }
   0xc   :  { %282 = vmatprep.subr.bf16.mxu0 %v326_v6  ;;  %307 = vmatprep.subr.bf16.mxu1 %v326_v6 }
   0xf   :  { %283 = vmatpush3.bf16.msra.mxu0 %v327_v7  ;;  %315 = vmatpush3.bf16.msra.mxu1 %v327_v7 }
  0x10   :  { %284 = vmatprep.subr.bf16.mxu0 %v328_v8  ;;  %308 = vmatprep.subr.bf16.mxu1 %v328_v8 }
  0x13   :  { %285 = vmatpush3.bf16.msra.mxu0 %v329_v9  ;;  %316 = vmatpush3.bf16.msra.mxu1 %v329_v9 }
  0x14   :  { %286 = vmatprep.subr.bf16.mxu0 %v330_v10  ;;  %309 = vmatprep.subr.bf16.mxu1 %v330_v10 }
  0x17   :  { %287 = vmatpush3.bf16.msra.mxu0 %v331_v13  ;;  %317 = vmatpush3.bf16.msra.mxu1 %v331_v13 }
  0x18   :  { %288 = vmatprep.subr.bf16.mxu0 %v332_v14  ;;  %310 = vmatprep.subr.bf16.mxu1 %v332_v14 }
  0x1b   :  { %289 = vmatpush3.bf16.msra.mxu0 %v333_v15  ;;  %318 = vmatpush3.bf16.msra.mxu1 %v333_v15 }
  0x1c   :  { %290 = vmatprep.subr.bf16.mxu0 %v334_v16  ;;  %311 = vmatprep.subr.bf16.mxu1 %v334_v16 }
  0x1f   :  { %291 = vmatpush3.bf16.msra.mxu0 %v335_v17  ;;  %319 = vmatpush3.bf16.msra.mxu1 %v335_v17 }
  0x22   :  { %203 = vmatmul.mubr.bf16.vlgmr.msra.gmra.mrb[0].mxu0 %v336_v18  ;;  %211 = vmatmul.mubr.bf16.vlgmr.msra.gmra.mrb[0].mxu1 %v339_v19 }
  0xf5   :  { %v292_v20 = vpop.f32.mrb[0].mxu0  ;;  %v298_v21 = vpop.f32.mrb[0].mxu1 }
  0xf6   :  { %v293_v22 = vpop.f32.mrb[1].mxu0  ;;  %v299_v24 = vpop.f32.mrb[1].mxu1 }
  0xf7   :  { %v294_v25 = vadd.f32 %v293_v22, %v292_v20  ;;  %v300_v26 = vadd.f32 %v299_v24, %v298_v21  ;;  %v295_v27 = vpop.f32.mrb[2].mxu0  ;;  %v301_v28 = vpop.f32.mrb[2].mxu1 }
  0xf8   :  { %v296_v30 = vpop.f32.mrb[3].mxu0  ;;  %v302_v31 = vpop.f32.mrb[3].mxu1 }
  0xf9   :  { %v226_v32 = vmul.f32 %v294_v25, %v274_v23  ;;  %v228_v33 = vmul.f32 %v300_v26, %v274_v23  ;;  %v297_v34 = vadd.f32 %v296_v30, %v295_v27  ;;  %v303_v35 = vadd.f32 %v302_v31, %v301_v28 }
  0xfb   :  { %v237_v36 = vadd.f32 %v275_v29, %v226_v32  ;;  %v239_v37 = vadd.f32 %v275_v29, %v228_v33  ;;  %v227_v38 = vmul.f32 %v297_v34, %v274_v23  ;;  %v229_v39 = vmul.f32 %v303_v35, %v274_v23 }
  0xfd   :  { %v241_v40 = vmax.f32 %v237_v36, 0.0  ;;  %v243_v41 = vmax.f32 %v239_v37, 0.0  ;;  %v238_v42 = vadd.f32 %v275_v29, %v227_v38  ;;  %v240_v43 = vadd.f32 %v275_v29, %v229_v39 }
  0xff   :  { %246 = vst.msk [vmem:[%s449_s4] sm:$0xff] %vm245_vm0, %v241_v40  ;;  %248 = vst.msk [vmem:[%s449_s4 + $0x10] sm:$0xff] %vm245_vm0, %v243_v41  ;;  %v242_v44 = vmax.f32 %v238_v42, 0.0  ;;  %v244_v45 = vmax.f32 %v240_v43, 0.0 }
 0x101   :  { %247 = vst.msk [vmem:[%s449_s4 + $0x8] sm:$0xff] %vm245_vm0, %v242_v44  ;;  %249 = vst.msk [vmem:[%s449_s4 + $0x18] sm:$0xff] %vm245_vm0, %v244_v45 }

// kernel: _forward_jit.182
= control target key start
LH: loop header
LB: loop body
LE: loop exit
PB: predicated region body
PF: predicated region fallthrough
CT: control target
= control target key end

     0   :  { %vm122_vm0 = vcmask 785408   ;;  %vm306_vm1 = vcmask 261120   ;;  %s600_s1 = inlined_call_operand.vmem [shape: bf16[96,32], index: 1, kind: input, shape index: {}]   ;;  %s601_s0 = inlined_call_operand.vmem [shape: bf16[128,96], index: 0, kind: input, shape index: {}]   ;;  %s602_s2 = inlined_call_operand.vmem [shape: f32[1,32], index: 2, kind: input, shape index: {}]   ;;  %s603_s3 = inlined_call_operand.vmem [shape: f32[1,32], index: 3, kind: input, shape index: {}]   ;;  %s604_s4 = inlined_call_operand.vmem [shape: f32[128,32], index: 4, kind: output, shape index: {}]  }
   0x1   :  { %v405_v0 = vld [vmem:[%s600_s1] sm:$0xff]   ;;  %v406_v1 = vld [vmem:[%s600_s1 + $0x8] sm:$0xff]   ;;  %v407_v2 = vld [vmem:[%s600_s1 + $0x10] sm:$0xff]  }
   0x2   :  { %365 = vmatprep.subr.bf16.mxu0 %v405_v0  ;;  %393 = vmatprep.subr.bf16.mxu1 %v405_v0  ;;  %v411_v3 = vld [vmem:[%s601_s0] sm:$0xff]   ;;  %v408_v5 = vld [vmem:[%s600_s1 + $0x18] sm:$0xff]   ;;  %v410_v7 = vld [vmem:[%s600_s1 + $0x28] sm:$0xff]  }
   0x3   :  { %366 = vmatpush3.bf16.msra.mxu0 %v405_v0  ;;  %399 = vmatpush3.bf16.msra.mxu1 %v405_v0  ;;  %v412_v4 = vld [vmem:[%s601_s0 + $0x20] sm:$0xff]   ;;  %v413_v8 = vld [vmem:[%s601_s0 + $0x8] sm:$0xff]   ;;  %v415_v10 = vld [vmem:[%s601_s0 + $0x10] sm:$0xff]  }
   0x4   :  { %367 = vmatprep.subr.bf16.mxu0 %v406_v1  ;;  %394 = vmatprep.subr.bf16.mxu1 %v406_v1  ;;  %v409_v6 = vld [vmem:[%s600_s1 + $0x20] sm:$0xff]   ;;  %v414_v9 = vld [vmem:[%s601_s0 + $0x28] sm:$0xff]   ;;  %v416_v11 = vld [vmem:[%s601_s0 + $0x30] sm:$0xff]  }
   0x5   :  { %377 = vmatprep.mubr.msk.bf16.mxu0 %vm122_vm0, %v411_v3  ;;  %385 = vmatprep.mubr.msk.bf16.mxu1 %vm122_vm0, %v412_v4  ;;  %v417_v12 = vld [vmem:[%s601_s0 + $0x18] sm:$0xff]   ;;  %v497_v14 = vld [vmem:[%s602_s2] ss:$0 sm:$0xff] }
   0x6   :  { %v418_v13 = vld [vmem:[%s601_s0 + $0x38] sm:$0xff]   ;;  %v502_v16 = vld [vmem:[%s603_s3] ss:$0 sm:$0xff] }
   0x7   :  { %368 = vmatpush3.bf16.msra.mxu0 %v406_v1  ;;  %400 = vmatpush3.bf16.msra.mxu1 %v406_v1 }
   0x8   :  { %369 = vmatprep.subr.bf16.mxu0 %v407_v2  ;;  %395 = vmatprep.subr.bf16.mxu1 %v407_v2 }
   0xb   :  { %370 = vmatpush3.bf16.msra.mxu0 %v407_v2  ;;  %401 = vmatpush3.bf16.msra.mxu1 %v407_v2 }
   0xc   :  { %371 = vmatprep.subr.bf16.mxu0 %v408_v5  ;;  %396 = vmatprep.subr.bf16.mxu1 %v408_v5 }
   0xf   :  { %372 = vmatpush3.bf16.msra.mxu0 %v408_v5  ;;  %402 = vmatpush3.bf16.msra.mxu1 %v408_v5 }
  0x10   :  { %373 = vmatprep.subr.bf16.mxu0 %v409_v6  ;;  %397 = vmatprep.subr.bf16.mxu1 %v409_v6 }
  0x13   :  { %374 = vmatpush3.bf16.msra.mxu0 %v409_v6  ;;  %403 = vmatpush3.bf16.msra.mxu1 %v409_v6 }
  0x14   :  { %375 = vmatprep.subr.bf16.mxu0 %v410_v7  ;;  %398 = vmatprep.subr.bf16.mxu1 %v410_v7 }
  0x17   :  { %376 = vmatpush3.bf16.msra.mxu0 %v410_v7  ;;  %404 = vmatpush3.bf16.msra.mxu1 %v410_v7 }
  0x1a   :  { %378 = vmatmul.mubr.msk.bf16.vlgmr.msra.gmra.mrb[0].mxu0 %vm122_vm0, %v413_v8  ;;  %386 = vmatmul.mubr.msk.bf16.vlgmr.msra.gmra.mrb[0].mxu1 %vm122_vm0, %v414_v9 }
  0x1b   :  { %381 = vmatprep.mubr.msk.bf16.mxu0 %vm122_vm0, %v415_v10  ;;  %389 = vmatprep.mubr.msk.bf16.mxu1 %vm122_vm0, %v416_v11 }
  0x22   :  { %382 = vmatmul.mubr.msk.bf16.gmra.mrb[4].mxu0 %vm122_vm0, %v417_v12  ;;  %390 = vmatmul.mubr.msk.bf16.gmra.mrb[4].mxu1 %vm122_vm0, %v418_v13 }
  0xed   :  { %v379_v15 = vpop.f32.mrb[0].mxu0  ;;  %v387_v17 = vpop.f32.mrb[0].mxu1 }
  0xee   :  { %v253_v18 = vmul.f32 %v379_v15, %v497_v14  ;;  %v261_v19 = vmul.f32 %v387_v17, %v497_v14  ;;  %v181_v20 = vpop.f32.mrb[1].mxu0  ;;  %v213_v21 = vpop.f32.mrb[1].mxu1 }
  0xef   :  { %v251_v22 = vmul.f32 %v497_v14, %v181_v20  ;;  %v259_v23 = vmul.f32 %v497_v14, %v213_v21  ;;  %v380_v24 = vpop.f32.mrb[2].mxu0  ;;  %v388_v25 = vpop.f32.mrb[2].mxu1 }
  0xf0   :  { %v276_v26 = vadd.f32 %v502_v16, %v253_v18  ;;  %v284_v27 = vadd.f32 %v502_v16, %v261_v19  ;;  %v254_v28 = vmul.f32 %v380_v24, %v497_v14  ;;  %v262_v29 = vmul.f32 %v388_v25, %v497_v14  ;;  %v184_v30 = vpop.f32.mrb[3].mxu0  ;;  %v216_v31 = vpop.f32.mrb[3].mxu1 }
  0xf1   :  { %v274_v32 = vadd.f32 %v502_v16, %v251_v22  ;;  %v282_v33 = vadd.f32 %v502_v16, %v259_v23  ;;  %v252_v34 = vmul.f32 %v497_v14, %v184_v30  ;;  %v260_v35 = vmul.f32 %v497_v14, %v216_v31 }
  0xf2   :  { %v292_v36 = vmax.f32 %v276_v26, 0.0  ;;  %v300_v37 = vmax.f32 %v284_v27, 0.0  ;;  %v277_v38 = vadd.f32 %v502_v16, %v254_v28  ;;  %v285_v39 = vadd.f32 %v502_v16, %v262_v29 }
  0xf3   :  { %v290_v40 = vmax.f32 %v274_v32, 0.0  ;;  %v298_v41 = vmax.f32 %v282_v33, 0.0  ;;  %v275_v42 = vadd.f32 %v502_v16, %v252_v34  ;;  %v283_v43 = vadd.f32 %v502_v16, %v260_v35 }
  0xf4   :  { %309 = vst.msk [vmem:[%s604_s4 + $0x10] sm:$0xff] %vm306_vm1, %v292_v36  ;;  %317 = vst.msk [vmem:[%s604_s4 + $0x50] sm:$0xff] %vm306_vm1, %v300_v37  ;;  %v293_v44 = vmax.f32 %v277_v38, 0.0  ;;  %v301_v45 = vmax.f32 %v285_v39, 0.0 }
  0xf5   :  { %307 = vst.msk [vmem:[%s604_s4] sm:$0xff] %vm306_vm1, %v290_v40  ;;  %315 = vst.msk [vmem:[%s604_s4 + $0x40] sm:$0xff] %vm306_vm1, %v298_v41  ;;  %v291_v46 = vmax.f32 %v275_v42, 0.0  ;;  %v299_v47 = vmax.f32 %v283_v43, 0.0  ;;  %v383_v48 = vpop.f32.mrb[4].mxu0  ;;  %v391_v49 = vpop.f32.mrb[4].mxu1 }
  0xf6   :  { %310 = vst.msk [vmem:[%s604_s4 + $0x18] sm:$0xff] %vm306_vm1, %v293_v44  ;;  %318 = vst.msk [vmem:[%s604_s4 + $0x58] sm:$0xff] %vm306_vm1, %v301_v45  ;;  %v257_v50 = vmul.f32 %v383_v48, %v497_v14  ;;  %v265_v51 = vmul.f32 %v391_v49, %v497_v14  ;;  %v197_v52 = vpop.f32.mrb[5].mxu0  ;;  %v229_v53 = vpop.f32.mrb[5].mxu1 }
  0xf7   :  { %308 = vst.msk [vmem:[%s604_s4 + $0x8] sm:$0xff] %vm306_vm1, %v291_v46  ;;  %316 = vst.msk [vmem:[%s604_s4 + $0x48] sm:$0xff] %vm306_vm1, %v299_v47  ;;  %v255_v54 = vmul.f32 %v497_v14, %v197_v52  ;;  %v263_v55 = vmul.f32 %v497_v14, %v229_v53  ;;  %v384_v56 = vpop.f32.mrb[6].mxu0  ;;  %v392_v57 = vpop.f32.mrb[6].mxu1 }
  0xf8   :  { %v280_v58 = vadd.f32 %v502_v16, %v257_v50  ;;  %v288_v59 = vadd.f32 %v502_v16, %v265_v51  ;;  %v258_v60 = vmul.f32 %v384_v56, %v497_v14  ;;  %v266_v61 = vmul.f32 %v392_v57, %v497_v14  ;;  %v200_v62 = vpop.f32.mrb[7].mxu0  ;;  %v232_v63 = vpop.f32.mrb[7].mxu1 }
  0xf9   :  { %v278_v0 = vadd.f32 %v502_v16, %v255_v54  ;;  %v286_v1 = vadd.f32 %v502_v16, %v263_v55  ;;  %v256_v2 = vmul.f32 %v497_v14, %v200_v62  ;;  %v264_v3 = vmul.f32 %v497_v14, %v232_v63 }
  0xfa   :  { %v296_v4 = vmax.f32 %v280_v58, 0.0  ;;  %v304_v5 = vmax.f32 %v288_v59, 0.0  ;;  %v281_v6 = vadd.f32 %v502_v16, %v258_v60  ;;  %v289_v7 = vadd.f32 %v502_v16, %v266_v61 }
  0xfb   :  { %v294_v8 = vmax.f32 %v278_v0, 0.0  ;;  %v302_v9 = vmax.f32 %v286_v1, 0.0  ;;  %v279_v10 = vadd.f32 %v502_v16, %v256_v2  ;;  %v287_v11 = vadd.f32 %v502_v16, %v264_v3 }
  0xfc   :  { %313 = vst.msk [vmem:[%s604_s4 + $0x30] sm:$0xff] %vm306_vm1, %v296_v4  ;;  %321 = vst.msk [vmem:[%s604_s4 + $0x70] sm:$0xff] %vm306_vm1, %v304_v5  ;;  %v297_v12 = vmax.f32 %v281_v6, 0.0  ;;  %v305_v13 = vmax.f32 %v289_v7, 0.0 }
  0xfd   :  { %311 = vst.msk [vmem:[%s604_s4 + $0x20] sm:$0xff] %vm306_vm1, %v294_v8  ;;  %319 = vst.msk [vmem:[%s604_s4 + $0x60] sm:$0xff] %vm306_vm1, %v302_v9  ;;  %v295_v14 = vmax.f32 %v279_v10, 0.0  ;;  %v303_v15 = vmax.f32 %v287_v11, 0.0 }
  0xfe   :  { %314 = vst.msk [vmem:[%s604_s4 + $0x38] sm:$0xff] %vm306_vm1, %v297_v12  ;;  %322 = vst.msk [vmem:[%s604_s4 + $0x78] sm:$0xff] %vm306_vm1, %v305_v13 }
  0xff   :  { %312 = vst.msk [vmem:[%s604_s4 + $0x28] sm:$0xff] %vm306_vm1, %v295_v14  ;;  %320 = vst.msk [vmem:[%s604_s4 + $0x68] sm:$0xff] %vm306_vm1, %v303_v15 }

// kernel: _forward_jit.185
= control target key start
LH: loop header
LB: loop body
LE: loop exit
PB: predicated region body
PF: predicated region fallthrough
CT: control target
= control target key end

     0   :  { %vm122_vm0 = vcmask 785408   ;;  %vm290_vm1 = vcmask 261120   ;;  %s548_s1 = inlined_call_operand.vmem [shape: bf16[96,32], index: 1, kind: input, shape index: {}]   ;;  %s549_s0 = inlined_call_operand.vmem [shape: bf16[128,96], index: 0, kind: input, shape index: {}]   ;;  %s550_s2 = inlined_call_operand.vmem [shape: f32[1,32], index: 2, kind: input, shape index: {}]   ;;  %s551_s3 = inlined_call_operand.vmem [shape: f32[1,32], index: 3, kind: input, shape index: {}]   ;;  %s552_s4 = inlined_call_operand.vmem [shape: f32[128,32], index: 4, kind: output, shape index: {}]  }
   0x1   :  { %v389_v0 = vld [vmem:[%s548_s1] sm:$0xff]   ;;  %v390_v1 = vld [vmem:[%s548_s1 + $0x8] sm:$0xff]   ;;  %v391_v2 = vld [vmem:[%s548_s1 + $0x10] sm:$0xff]  }
   0x2   :  { %349 = vmatprep.subr.bf16.mxu0 %v389_v0  ;;  %377 = vmatprep.subr.bf16.mxu1 %v389_v0  ;;  %v395_v3 = vld [vmem:[%s549_s0] sm:$0xff]   ;;  %v392_v5 = vld [vmem:[%s548_s1 + $0x18] sm:$0xff]   ;;  %v394_v7 = vld [vmem:[%s548_s1 + $0x28] sm:$0xff]  }
   0x3   :  { %350 = vmatpush3.bf16.msra.mxu0 %v389_v0  ;;  %383 = vmatpush3.bf16.msra.mxu1 %v389_v0  ;;  %v396_v4 = vld [vmem:[%s549_s0 + $0x20] sm:$0xff]   ;;  %v397_v8 = vld [vmem:[%s549_s0 + $0x8] sm:$0xff]   ;;  %v399_v10 = vld [vmem:[%s549_s0 + $0x10] sm:$0xff]  }
   0x4   :  { %351 = vmatprep.subr.bf16.mxu0 %v390_v1  ;;  %378 = vmatprep.subr.bf16.mxu1 %v390_v1  ;;  %v393_v6 = vld [vmem:[%s548_s1 + $0x20] sm:$0xff]   ;;  %v398_v9 = vld [vmem:[%s549_s0 + $0x28] sm:$0xff]   ;;  %v400_v11 = vld [vmem:[%s549_s0 + $0x30] sm:$0xff]  }
   0x5   :  { %361 = vmatprep.mubr.msk.bf16.mxu0 %vm122_vm0, %v395_v3  ;;  %369 = vmatprep.mubr.msk.bf16.mxu1 %vm122_vm0, %v396_v4  ;;  %v401_v12 = vld [vmem:[%s549_s0 + $0x18] sm:$0xff]   ;;  %v333_v14 = vld [vmem:[%s550_s2] ss:$0 sm:$0xff] }
   0x6   :  { %v402_v13 = vld [vmem:[%s549_s0 + $0x38] sm:$0xff]   ;;  %v334_v16 = vld [vmem:[%s551_s3] ss:$0 sm:$0xff] }
   0x7   :  { %352 = vmatpush3.bf16.msra.mxu0 %v390_v1  ;;  %384 = vmatpush3.bf16.msra.mxu1 %v390_v1 }
   0x8   :  { %353 = vmatprep.subr.bf16.mxu0 %v391_v2  ;;  %379 = vmatprep.subr.bf16.mxu1 %v391_v2 }
   0xb   :  { %354 = vmatpush3.bf16.msra.mxu0 %v391_v2  ;;  %385 = vmatpush3.bf16.msra.mxu1 %v391_v2 }
   0xc   :  { %355 = vmatprep.subr.bf16.mxu0 %v392_v5  ;;  %380 = vmatprep.subr.bf16.mxu1 %v392_v5 }
   0xf   :  { %356 = vmatpush3.bf16.msra.mxu0 %v392_v5  ;;  %386 = vmatpush3.bf16.msra.mxu1 %v392_v5 }
  0x10   :  { %357 = vmatprep.subr.bf16.mxu0 %v393_v6  ;;  %381 = vmatprep.subr.bf16.mxu1 %v393_v6 }
  0x13   :  { %358 = vmatpush3.bf16.msra.mxu0 %v393_v6  ;;  %387 = vmatpush3.bf16.msra.mxu1 %v393_v6 }
  0x14   :  { %359 = vmatprep.subr.bf16.mxu0 %v394_v7  ;;  %382 = vmatprep.subr.bf16.mxu1 %v394_v7 }
  0x17   :  { %360 = vmatpush3.bf16.msra.mxu0 %v394_v7  ;;  %388 = vmatpush3.bf16.msra.mxu1 %v394_v7 }
  0x1a   :  { %362 = vmatmul.mubr.msk.bf16.vlgmr.msra.gmra.mrb[0].mxu0 %vm122_vm0, %v397_v8  ;;  %370 = vmatmul.mubr.msk.bf16.vlgmr.msra.gmra.mrb[0].mxu1 %vm122_vm0, %v398_v9 }
  0x1b   :  { %365 = vmatprep.mubr.msk.bf16.mxu0 %vm122_vm0, %v399_v10  ;;  %373 = vmatprep.mubr.msk.bf16.mxu1 %vm122_vm0, %v400_v11 }
  0x22   :  { %366 = vmatmul.mubr.msk.bf16.gmra.mrb[4].mxu0 %vm122_vm0, %v401_v12  ;;  %374 = vmatmul.mubr.msk.bf16.gmra.mrb[4].mxu1 %vm122_vm0, %v402_v13 }
  0xed   :  { %v363_v15 = vpop.f32.mrb[0].mxu0  ;;  %v371_v17 = vpop.f32.mrb[0].mxu1 }
  0xee   :  { %v253_v18 = vmul.f32 %v363_v15, %v333_v14  ;;  %v261_v19 = vmul.f32 %v371_v17, %v333_v14  ;;  %v181_v20 = vpop.f32.mrb[1].mxu0  ;;  %v213_v21 = vpop.f32.mrb[1].mxu1 }
  0xef   :  { %v251_v22 = vmul.f32 %v333_v14, %v181_v20  ;;  %v259_v23 = vmul.f32 %v333_v14, %v213_v21  ;;  %v364_v24 = vpop.f32.mrb[2].mxu0  ;;  %v372_v25 = vpop.f32.mrb[2].mxu1 }
  0xf0   :  { %v276_v26 = vadd.f32 %v334_v16, %v253_v18  ;;  %v284_v27 = vadd.f32 %v334_v16, %v261_v19  ;;  %v254_v28 = vmul.f32 %v364_v24, %v333_v14  ;;  %v262_v29 = vmul.f32 %v372_v25, %v333_v14  ;;  %v184_v30 = vpop.f32.mrb[3].mxu0  ;;  %v216_v31 = vpop.f32.mrb[3].mxu1 }
  0xf1   :  { %v274_v32 = vadd.f32 %v334_v16, %v251_v22  ;;  %v282_v33 = vadd.f32 %v334_v16, %v259_v23  ;;  %v252_v34 = vmul.f32 %v333_v14, %v184_v30  ;;  %v260_v35 = vmul.f32 %v333_v14, %v216_v31 }
  0xf2   :  { %293 = vst.msk [vmem:[%s552_s4 + $0x10] sm:$0xff] %vm290_vm1, %v276_v26  ;;  %301 = vst.msk [vmem:[%s552_s4 + $0x50] sm:$0xff] %vm290_vm1, %v284_v27  ;;  %v277_v36 = vadd.f32 %v334_v16, %v254_v28  ;;  %v285_v37 = vadd.f32 %v334_v16, %v262_v29 }
  0xf3   :  { %291 = vst.msk [vmem:[%s552_s4] sm:$0xff] %vm290_vm1, %v274_v32  ;;  %299 = vst.msk [vmem:[%s552_s4 + $0x40] sm:$0xff] %vm290_vm1, %v282_v33  ;;  %v275_v38 = vadd.f32 %v334_v16, %v252_v34  ;;  %v283_v39 = vadd.f32 %v334_v16, %v260_v35 }
  0xf4   :  { %294 = vst.msk [vmem:[%s552_s4 + $0x18] sm:$0xff] %vm290_vm1, %v277_v36  ;;  %302 = vst.msk [vmem:[%s552_s4 + $0x58] sm:$0xff] %vm290_vm1, %v285_v37 }
  0xf5   :  { %292 = vst.msk [vmem:[%s552_s4 + $0x8] sm:$0xff] %vm290_vm1, %v275_v38  ;;  %300 = vst.msk [vmem:[%s552_s4 + $0x48] sm:$0xff] %vm290_vm1, %v283_v39  ;;  %v367_v40 = vpop.f32.mrb[4].mxu0  ;;  %v375_v41 = vpop.f32.mrb[4].mxu1 }
  0xf6   :  { %v257_v42 = vmul.f32 %v367_v40, %v333_v14  ;;  %v265_v43 = vmul.f32 %v375_v41, %v333_v14  ;;  %v197_v44 = vpop.f32.mrb[5].mxu0  ;;  %v229_v45 = vpop.f32.mrb[5].mxu1 }
  0xf7   :  { %v255_v46 = vmul.f32 %v333_v14, %v197_v44  ;;  %v263_v47 = vmul.f32 %v333_v14, %v229_v45  ;;  %v368_v48 = vpop.f32.mrb[6].mxu0  ;;  %v376_v49 = vpop.f32.mrb[6].mxu1 }
  0xf8   :  { %v280_v50 = vadd.f32 %v334_v16, %v257_v42  ;;  %v288_v51 = vadd.f32 %v334_v16, %v265_v43  ;;  %v258_v52 = vmul.f32 %v368_v48, %v333_v14  ;;  %v266_v53 = vmul.f32 %v376_v49, %v333_v14  ;;  %v200_v54 = vpop.f32.mrb[7].mxu0  ;;  %v232_v55 = vpop.f32.mrb[7].mxu1 }
  0xf9   :  { %v278_v56 = vadd.f32 %v334_v16, %v255_v46  ;;  %v286_v57 = vadd.f32 %v334_v16, %v263_v47  ;;  %v256_v58 = vmul.f32 %v333_v14, %v200_v54  ;;  %v264_v59 = vmul.f32 %v333_v14, %v232_v55 }
  0xfa   :  { %297 = vst.msk [vmem:[%s552_s4 + $0x30] sm:$0xff] %vm290_vm1, %v280_v50  ;;  %305 = vst.msk [vmem:[%s552_s4 + $0x70] sm:$0xff] %vm290_vm1, %v288_v51  ;;  %v281_v60 = vadd.f32 %v334_v16, %v258_v52  ;;  %v289_v61 = vadd.f32 %v334_v16, %v266_v53 }
  0xfb   :  { %295 = vst.msk [vmem:[%s552_s4 + $0x20] sm:$0xff] %vm290_vm1, %v278_v56  ;;  %303 = vst.msk [vmem:[%s552_s4 + $0x60] sm:$0xff] %vm290_vm1, %v286_v57  ;;  %v279_v62 = vadd.f32 %v334_v16, %v256_v58  ;;  %v287_v63 = vadd.f32 %v334_v16, %v264_v59 }
  0xfc   :  { %298 = vst.msk [vmem:[%s552_s4 + $0x38] sm:$0xff] %vm290_vm1, %v281_v60  ;;  %306 = vst.msk [vmem:[%s552_s4 + $0x78] sm:$0xff] %vm290_vm1, %v289_v61 }
  0xfd   :  { %296 = vst.msk [vmem:[%s552_s4 + $0x28] sm:$0xff] %vm290_vm1, %v279_v62  ;;  %304 = vst.msk [vmem:[%s552_s4 + $0x68] sm:$0xff] %vm290_vm1, %v287_v63 }

// kernel: _forward_jit.190
= control target key start
LH: loop header
LB: loop body
LE: loop exit
PB: predicated region body
PF: predicated region fallthrough
CT: control target
= control target key end

     0   :  { %vm90_vm0 = vcmask 261120   ;;  %vm258_vm1 = vcmask 23552   ;;  %s476_s1 = inlined_call_operand.vmem [shape: bf16[32,3], index: 1, kind: input, shape index: {}]   ;;  %s477_s0 = inlined_call_operand.vmem [shape: bf16[128,32], index: 0, kind: input, shape index: {}]   ;;  %s478_s2 = inlined_call_operand.vmem [shape: f32[1,3], index: 2, kind: input, shape index: {}]   ;;  %s479_s3 = inlined_call_operand.vmem [shape: f32[1,3], index: 3, kind: input, shape index: {}]   ;;  %s480_s4 = inlined_call_operand.vmem [shape: f32[128,3], index: 4, kind: output, shape index: {}]  }
   0x1   :  { %v333_v0 = vld [vmem:[%s476_s1] sm:$0xff]   ;;  %v334_v1 = vld [vmem:[%s476_s1 + $0x8] sm:$0xff]   ;;  %v339_v6 = vld [vmem:[%s477_s0 + $0x10] sm:$0xff]  }
   0x2   :  { %309 = vmatprep.subr.bf16.mxu0 %v333_v0  ;;  %329 = vmatprep.subr.bf16.mxu1 %v333_v0  ;;  %v335_v2 = vld [vmem:[%s477_s0] sm:$0xff]   ;;  %v337_v4 = vld [vmem:[%s477_s0 + $0x8] sm:$0xff]   ;;  %v340_v7 = vld [vmem:[%s477_s0 + $0x30] sm:$0xff]  }
   0x3   :  { %310 = vmatpush3.bf16.msra.mxu0 %v333_v0  ;;  %331 = vmatpush3.bf16.msra.mxu1 %v333_v0  ;;  %v336_v3 = vld [vmem:[%s477_s0 + $0x20] sm:$0xff]   ;;  %v338_v5 = vld [vmem:[%s477_s0 + $0x28] sm:$0xff]   ;;  %v341_v8 = vld [vmem:[%s477_s0 + $0x18] sm:$0xff]  }
   0x4   :  { %311 = vmatprep.subr.bf16.mxu0 %v334_v1  ;;  %330 = vmatprep.subr.bf16.mxu1 %v334_v1  ;;  %v342_v9 = vld [vmem:[%s477_s0 + $0x38] sm:$0xff]   ;;  %v297_v10 = vld [vmem:[%s478_s2] ss:$0 sm:$0xff] }
   0x5   :  { %313 = vmatprep.mubr.msk.bf16.mxu0 %vm90_vm0, %v335_v2  ;;  %321 = vmatprep.mubr.msk.bf16.mxu1 %vm90_vm0, %v336_v3  ;;  %v298_v12 = vld [vmem:[%s479_s3] ss:$0 sm:$0xff] }
   0x7   :  { %312 = vmatpush3.bf16.msra.mxu0 %v334_v1  ;;  %332 = vmatpush3.bf16.msra.mxu1 %v334_v1 }
   0xa   :  { %314 = vmatmul.mubr.msk.bf16.vlgmr.msra.gmra.mrb[0].mxu0 %vm90_vm0, %v337_v4  ;;  %322 = vmatmul.mubr.msk.bf16.vlgmr.msra.gmra.mrb[0].mxu1 %vm90_vm0, %v338_v5 }
   0xb   :  { %317 = vmatprep.mubr.msk.bf16.mxu0 %vm90_vm0, %v339_v6  ;;  %325 = vmatprep.mubr.msk.bf16.mxu1 %vm90_vm0, %v340_v7 }
  0x12   :  { %318 = vmatmul.mubr.msk.bf16.gmra.mrb[4].mxu0 %vm90_vm0, %v341_v8  ;;  %326 = vmatmul.mubr.msk.bf16.gmra.mrb[4].mxu1 %vm90_vm0, %v342_v9 }
  0xdd   :  { %v315_v11 = vpop.f32.mrb[0].mxu0  ;;  %v323_v13 = vpop.f32.mrb[0].mxu1 }
  0xde   :  { %v221_v14 = vmul.f32 %v315_v11, %v297_v10  ;;  %v229_v15 = vmul.f32 %v323_v13, %v297_v10  ;;  %v149_v16 = vpop.f32.mrb[1].mxu0  ;;  %v181_v17 = vpop.f32.mrb[1].mxu1 }
  0xdf   :  { %v219_v18 = vmul.f32 %v297_v10, %v149_v16  ;;  %v227_v19 = vmul.f32 %v297_v10, %v181_v17  ;;  %v316_v20 = vpop.f32.mrb[2].mxu0  ;;  %v324_v21 = vpop.f32.mrb[2].mxu1 }
  0xe0   :  { %v244_v22 = vadd.f32 %v298_v12, %v221_v14  ;;  %v252_v23 = vadd.f32 %v298_v12, %v229_v15  ;;  %v222_v24 = vmul.f32 %v316_v20, %v297_v10  ;;  %v230_v25 = vmul.f32 %v324_v21, %v297_v10  ;;  %v152_v26 = vpop.f32.mrb[3].mxu0  ;;  %v184_v27 = vpop.f32.mrb[3].mxu1 }
  0xe1   :  { %v242_v28 = vadd.f32 %v298_v12, %v219_v18  ;;  %v250_v29 = vadd.f32 %v298_v12, %v227_v19  ;;  %v220_v30 = vmul.f32 %v297_v10, %v152_v26  ;;  %v228_v31 = vmul.f32 %v297_v10, %v184_v27 }
  0xe2   :  { %261 = vst.msk [vmem:[%s480_s4 + $0x10] sm:$0xff] %vm258_vm1, %v244_v22  ;;  %269 = vst.msk [vmem:[%s480_s4 + $0x50] sm:$0xff] %vm258_vm1, %v252_v23  ;;  %v245_v32 = vadd.f32 %v298_v12, %v222_v24  ;;  %v253_v33 = vadd.f32 %v298_v12, %v230_v25 }
  0xe3   :  { %259 = vst.msk [vmem:[%s480_s4] sm:$0xff] %vm258_vm1, %v242_v28  ;;  %267 = vst.msk [vmem:[%s480_s4 + $0x40] sm:$0xff] %vm258_vm1, %v250_v29  ;;  %v243_v34 = vadd.f32 %v298_v12, %v220_v30  ;;  %v251_v35 = vadd.f32 %v298_v12, %v228_v31 }
  0xe4   :  { %262 = vst.msk [vmem:[%s480_s4 + $0x18] sm:$0xff] %vm258_vm1, %v245_v32  ;;  %270 = vst.msk [vmem:[%s480_s4 + $0x58] sm:$0xff] %vm258_vm1, %v253_v33 }
  0xe5   :  { %260 = vst.msk [vmem:[%s480_s4 + $0x8] sm:$0xff] %vm258_vm1, %v243_v34  ;;  %268 = vst.msk [vmem:[%s480_s4 + $0x48] sm:$0xff] %vm258_vm1, %v251_v35  ;;  %v319_v36 = vpop.f32.mrb[4].mxu0  ;;  %v327_v37 = vpop.f32.mrb[4].mxu1 }
  0xe6   :  { %v225_v38 = vmul.f32 %v319_v36, %v297_v10  ;;  %v233_v39 = vmul.f32 %v327_v37, %v297_v10  ;;  %v165_v40 = vpop.f32.mrb[5].mxu0  ;;  %v197_v41 = vpop.f32.mrb[5].mxu1 }
  0xe7   :  { %v223_v42 = vmul.f32 %v297_v10, %v165_v40  ;;  %v231_v43 = vmul.f32 %v297_v10, %v197_v41  ;;  %v320_v44 = vpop.f32.mrb[6].mxu0  ;;  %v328_v45 = vpop.f32.mrb[6].mxu1 }
  0xe8   :  { %v248_v46 = vadd.f32 %v298_v12, %v225_v38  ;;  %v256_v47 = vadd.f32 %v298_v12, %v233_v39  ;;  %v226_v48 = vmul.f32 %v320_v44, %v297_v10  ;;  %v234_v49 = vmul.f32 %v328_v45, %v297_v10  ;;  %v168_v50 = vpop.f32.mrb[7].mxu0  ;;  %v200_v51 = vpop.f32.mrb[7].mxu1 }
  0xe9   :  { %v246_v52 = vadd.f32 %v298_v12, %v223_v42  ;;  %v254_v53 = vadd.f32 %v298_v12, %v231_v43  ;;  %v224_v54 = vmul.f32 %v297_v10, %v168_v50  ;;  %v232_v55 = vmul.f32 %v297_v10, %v200_v51 }
  0xea   :  { %265 = vst.msk [vmem:[%s480_s4 + $0x30] sm:$0xff] %vm258_vm1, %v248_v46  ;;  %273 = vst.msk [vmem:[%s480_s4 + $0x70] sm:$0xff] %vm258_vm1, %v256_v47  ;;  %v249_v56 = vadd.f32 %v298_v12, %v226_v48  ;;  %v257_v57 = vadd.f32 %v298_v12, %v234_v49 }
  0xeb   :  { %263 = vst.msk [vmem:[%s480_s4 + $0x20] sm:$0xff] %vm258_vm1, %v246_v52  ;;  %271 = vst.msk [vmem:[%s480_s4 + $0x60] sm:$0xff] %vm258_vm1, %v254_v53  ;;  %v247_v58 = vadd.f32 %v298_v12, %v224_v54  ;;  %v255_v59 = vadd.f32 %v298_v12, %v232_v55 }
  0xec   :  { %266 = vst.msk [vmem:[%s480_s4 + $0x38] sm:$0xff] %vm258_vm1, %v249_v56  ;;  %274 = vst.msk [vmem:[%s480_s4 + $0x78] sm:$0xff] %vm258_vm1, %v257_v57 }
  0xed   :  { %264 = vst.msk [vmem:[%s480_s4 + $0x28] sm:$0xff] %vm258_vm1, %v247_v58  ;;  %272 = vst.msk [vmem:[%s480_s4 + $0x68] sm:$0xff] %vm258_vm1, %v255_v59 }

// kernel: _forward_jit.194
= control target key start
LH: loop header
LB: loop body
LE: loop exit
PB: predicated region body
PF: predicated region fallthrough
CT: control target
= control target key end

     0   :  { %vm351_vm0 = vcmask 1040384   ;;  %vm254_vm1 = vcmask 146432   ;;  %vm850_vm2 = vcmask 261120   ;;  %s1682_s1 = inlined_call_operand.vmem [shape: bf16[18,32], index: 1, kind: input, shape index: {}]   ;;  %s1683_s0 = inlined_call_operand.vmem [shape: bf16[512,18], index: 0, kind: input, shape index: {}]   ;;  %s1684_s2 = inlined_call_operand.vmem [shape: f32[1,32], index: 2, kind: input, shape index: {}]   ;;  %s1685_s3 = inlined_call_operand.vmem [shape: f32[1,32], index: 3, kind: input, shape index: {}]   ;;  %s1686_s4 = inlined_call_operand.vmem [shape: f32[512,32], index: 4, kind: output, shape index: {}]  }
   0x1   :  { %v1095_v0 = vld [vmem:[%s1682_s1] sm:$0xff]   ;;  %v1096_v1 = vld [vmem:[%s1682_s1 + $0x8] ss:$0 sps:$4 sm:$0x11]   ;;  %v1101_v7 = vld [vmem:[%s1683_s0 + $0x10] sm:$0xff]  }
   0x2   :  { %v1097_v2 = vld [vmem:[%s1683_s0] sm:$0xff]   ;;  %1021 = vmatprep.subr.bf16.mxu0 %v1095_v0  ;;  %1089 = vmatprep.subr.bf16.mxu1 %v1095_v0  ;;  %v353_v4 = vsel %vm351_vm0, %v1096_v1, 0  ;;  %v1099_v5 = vld [vmem:[%s1683_s0 + $0x8] sm:$0xff]   ;;  %v1102_v8 = vld [vmem:[%s1683_s0 + $0x90] sm:$0xff]  }
   0x3   :  { %1022 = vmatpush3.bf16.msra.mxu0 %v1095_v0  ;;  %1091 = vmatpush3.bf16.msra.mxu1 %v1095_v0  ;;  %v1098_v3 = vld [vmem:[%s1683_s0 + $0x80] sm:$0xff]   ;;  %v1100_v6 = vld [vmem:[%s1683_s0 + $0x88] sm:$0xff]   ;;  %v1103_v9 = vld [vmem:[%s1683_s0 + $0x18] sm:$0xff]  }
   0x4   :  { %1093 = vmatprep.subr.msk.bf16.mxu0 %vm351_vm0, %v1096_v1  ;;  %1094 = vmatprep.subr.msk.bf16.mxu1 %vm351_vm0, %v1096_v1  ;;  %v1104_v10 = vld [vmem:[%s1683_s0 + $0x98] sm:$0xff]   ;;  %v1105_v11 = vld [vmem:[%s1683_s0 + $0x20] sm:$0xff]   ;;  %v1107_v13 = vld [vmem:[%s1683_s0 + $0x28] sm:$0xff]  }
   0x5   :  { %1025 = vmatprep.mubr.msk.bf16.mxu0 %vm254_vm1, %v1097_v2  ;;  %1057 = vmatprep.mubr.msk.bf16.mxu1 %vm254_vm1, %v1098_v3  ;;  %v1106_v12 = vld [vmem:[%s1683_s0 + $0xa0] sm:$0xff]   ;;  %v1108_v14 = vld [vmem:[%s1683_s0 + $0xa8] sm:$0xff]   ;;  %v1109_v15 = vld [vmem:[%s1683_s0 + $0x30] sm:$0xff]  }
   0x6   :  { %v1110_v16 = vld [vmem:[%s1683_s0 + $0xb0] sm:$0xff]   ;;  %v1111_v17 = vld [vmem:[%s1683_s0 + $0x38] sm:$0xff]   ;;  %v1113_v19 = vld [vmem:[%s1683_s0 + $0x40] sm:$0xff]  }
   0x7   :  { %1024 = vmatpush3.bf16.msra.mxu0 %v353_v4  ;;  %1092 = vmatpush3.bf16.msra.mxu1 %v353_v4  ;;  %v1112_v18 = vld [vmem:[%s1683_s0 + $0xb8] sm:$0xff]   ;;  %v1114_v20 = vld [vmem:[%s1683_s0 + $0xc0] sm:$0xff]   ;;  %v1115_v21 = vld [vmem:[%s1683_s0 + $0x48] sm:$0xff]  }
   0x8   :  { %v1116_v22 = vld [vmem:[%s1683_s0 + $0xc8] sm:$0xff]   ;;  %v1117_v23 = vld [vmem:[%s1683_s0 + $0x50] sm:$0xff]   ;;  %v1119_v25 = vld [vmem:[%s1683_s0 + $0x58] sm:$0xff]  }
   0x9   :  { %v1118_v24 = vld [vmem:[%s1683_s0 + $0xd0] sm:$0xff]   ;;  %v1120_v26 = vld [vmem:[%s1683_s0 + $0xd8] sm:$0xff]   ;;  %v1121_v27 = vld [vmem:[%s1683_s0 + $0x60] sm:$0xff]  }
   0xa   :  { %1026 = vmatmul.mubr.msk.bf16.vlgmr.msra.gmra.mrb[0].mxu0 %vm254_vm1, %v1099_v5  ;;  %1058 = vmatmul.mubr.msk.bf16.vlgmr.msra.gmra.mrb[0].mxu1 %vm254_vm1, %v1100_v6  ;;  %v1122_v28 = vld [vmem:[%s1683_s0 + $0xe0] sm:$0xff]   ;;  %v1123_v29 = vld [vmem:[%s1683_s0 + $0x68] sm:$0xff]   ;;  %v1125_v31 = vld [vmem:[%s1683_s0 + $0x70] sm:$0xff]  }
   0xb   :  { %1029 = vmatprep.mubr.msk.bf16.mxu0 %vm254_vm1, %v1101_v7  ;;  %1061 = vmatprep.mubr.msk.bf16.mxu1 %vm254_vm1, %v1102_v8  ;;  %v1124_v30 = vld [vmem:[%s1683_s0 + $0xe8] sm:$0xff]   ;;  %v1126_v32 = vld [vmem:[%s1683_s0 + $0xf0] sm:$0xff]   ;;  %v1127_v33 = vld [vmem:[%s1683_s0 + $0x78] sm:$0xff]  }
   0xc   :  { %v1128_v34 = vld [vmem:[%s1683_s0 + $0xf8] sm:$0xff]   ;;  %v1291_v35 = vld [vmem:[%s1684_s2] ss:$0 sm:$0xff] }
   0xd   :  { %v1296_v37 = vld [vmem:[%s1685_s3] ss:$0 sm:$0xff] }
  0x12   :  { %1030 = vmatmul.mubr.msk.bf16.gmra.mrb[4].mxu0 %vm254_vm1, %v1103_v9  ;;  %1062 = vmatmul.mubr.msk.bf16.gmra.mrb[4].mxu1 %vm254_vm1, %v1104_v10 }
  0x13   :  { %1033 = vmatprep.mubr.msk.bf16.mxu0 %vm254_vm1, %v1105_v11  ;;  %1065 = vmatprep.mubr.msk.bf16.mxu1 %vm254_vm1, %v1106_v12 }
  0x1a   :  { %1034 = vmatmul.mubr.msk.bf16.gmra.mrb[8].mxu0 %vm254_vm1, %v1107_v13  ;;  %1066 = vmatmul.mubr.msk.bf16.gmra.mrb[8].mxu1 %vm254_vm1, %v1108_v14 }
  0x1b   :  { %1037 = vmatprep.mubr.msk.bf16.mxu0 %vm254_vm1, %v1109_v15  ;;  %1069 = vmatprep.mubr.msk.bf16.mxu1 %vm254_vm1, %v1110_v16 }
  0x22   :  { %1038 = vmatmul.mubr.msk.bf16.gmra.mrb[12].mxu0 %vm254_vm1, %v1111_v17  ;;  %1070 = vmatmul.mubr.msk.bf16.gmra.mrb[12].mxu1 %vm254_vm1, %v1112_v18 }
  0x23   :  { %1041 = vmatprep.mubr.msk.bf16.mxu0 %vm254_vm1, %v1113_v19  ;;  %1073 = vmatprep.mubr.msk.bf16.mxu1 %vm254_vm1, %v1114_v20 }
  0x2a   :  { %1042 = vmatmul.mubr.msk.bf16.gmra.mrb[16].mxu0 %vm254_vm1, %v1115_v21  ;;  %1074 = vmatmul.mubr.msk.bf16.gmra.mrb[16].mxu1 %vm254_vm1, %v1116_v22 }
  0x2b   :  { %1045 = vmatprep.mubr.msk.bf16.mxu0 %vm254_vm1, %v1117_v23  ;;  %1077 = vmatprep.mubr.msk.bf16.mxu1 %vm254_vm1, %v1118_v24 }
  0x32   :  { %1046 = vmatmul.mubr.msk.bf16.gmra.mrb[20].mxu0 %vm254_vm1, %v1119_v25  ;;  %1078 = vmatmul.mubr.msk.bf16.gmra.mrb[20].mxu1 %vm254_vm1, %v1120_v26 }
  0x33   :  { %1049 = vmatprep.mubr.msk.bf16.mxu0 %vm254_vm1, %v1121_v27  ;;  %1081 = vmatprep.mubr.msk.bf16.mxu1 %vm254_vm1, %v1122_v28 }
  0x3a   :  { %1050 = vmatmul.mubr.msk.bf16.gmra.mrb[24].mxu0 %vm254_vm1, %v1123_v29  ;;  %1082 = vmatmul.mubr.msk.bf16.gmra.mrb[24].mxu1 %vm254_vm1, %v1124_v30 }
  0x3b   :  { %1053 = vmatprep.mubr.msk.bf16.mxu0 %vm254_vm1, %v1125_v31  ;;  %1085 = vmatprep.mubr.msk.bf16.mxu1 %vm254_vm1, %v1126_v32 }
  0x42   :  { %1054 = vmatmul.mubr.msk.bf16.gmra.mrb[28].mxu0 %vm254_vm1, %v1127_v33  ;;  %1086 = vmatmul.mubr.msk.bf16.gmra.mrb[28].mxu1 %vm254_vm1, %v1128_v34 }
  0xdd   :  { %v1027_v36 = vpop.f32.mrb[0].mxu0  ;;  %v1059_v38 = vpop.f32.mrb[0].mxu1 }
  0xde   :  { %v653_v39 = vmul.f32 %v1027_v36, %v1291_v35  ;;  %v685_v40 = vmul.f32 %v1059_v38, %v1291_v35  ;;  %v389_v41 = vpop.f32.mrb[1].mxu0  ;;  %v517_v42 = vpop.f32.mrb[1].mxu1 }
  0xdf   :  { %v651_v43 = vmul.f32 %v1291_v35, %v389_v41  ;;  %v683_v44 = vmul.f32 %v1291_v35, %v517_v42  ;;  %v1028_v45 = vpop.f32.mrb[2].mxu0  ;;  %v1060_v46 = vpop.f32.mrb[2].mxu1 }
  0xe0   :  { %v724_v47 = vadd.f32 %v1296_v37, %v653_v39  ;;  %v756_v48 = vadd.f32 %v1296_v37, %v685_v40  ;;  %v654_v49 = vmul.f32 %v1028_v45, %v1291_v35  ;;  %v686_v50 = vmul.f32 %v1060_v46, %v1291_v35  ;;  %v392_v51 = vpop.f32.mrb[3].mxu0  ;;  %v520_v52 = vpop.f32.mrb[3].mxu1 }
  0xe1   :  { %v722_v53 = vadd.f32 %v1296_v37, %v651_v43  ;;  %v754_v54 = vadd.f32 %v1296_v37, %v683_v44  ;;  %v652_v55 = vmul.f32 %v1291_v35, %v392_v51  ;;  %v684_v56 = vmul.f32 %v1291_v35, %v520_v52 }
  0xe2   :  { %v788_v57 = vmax.f32 %v724_v47, 0.0  ;;  %v820_v58 = vmax.f32 %v756_v48, 0.0  ;;  %v725_v59 = vadd.f32 %v1296_v37, %v654_v49  ;;  %v757_v60 = vadd.f32 %v1296_v37, %v686_v50 }
  0xe3   :  { %v786_v61 = vmax.f32 %v722_v53, 0.0  ;;  %v818_v62 = vmax.f32 %v754_v54, 0.0  ;;  %v723_v63 = vadd.f32 %v1296_v37, %v652_v55  ;;  %v755_v0 = vadd.f32 %v1296_v37, %v684_v56 }
  0xe4   :  { %853 = vst.msk [vmem:[%s1686_s4 + $0x10] sm:$0xff] %vm850_vm2, %v788_v57  ;;  %885 = vst.msk [vmem:[%s1686_s4 + $0x110] sm:$0xff] %vm850_vm2, %v820_v58  ;;  %v789_v1 = vmax.f32 %v725_v59, 0.0  ;;  %v821_v2 = vmax.f32 %v757_v60, 0.0 }
  0xe5   :  { %851 = vst.msk [vmem:[%s1686_s4] sm:$0xff] %vm850_vm2, %v786_v61  ;;  %883 = vst.msk [vmem:[%s1686_s4 + $0x100] sm:$0xff] %vm850_vm2, %v818_v62  ;;  %v787_v3 = vmax.f32 %v723_v63, 0.0  ;;  %v819_v4 = vmax.f32 %v755_v0, 0.0  ;;  %v1031_v5 = vpop.f32.mrb[4].mxu0  ;;  %v1063_v6 = vpop.f32.mrb[4].mxu1 }
  0xe6   :  { %854 = vst.msk [vmem:[%s1686_s4 + $0x18] sm:$0xff] %vm850_vm2, %v789_v1  ;;  %886 = vst.msk [vmem:[%s1686_s4 + $0x118] sm:$0xff] %vm850_vm2, %v821_v2  ;;  %v657_v7 = vmul.f32 %v1031_v5, %v1291_v35  ;;  %v689_v8 = vmul.f32 %v1063_v6, %v1291_v35  ;;  %v405_v9 = vpop.f32.mrb[5].mxu0  ;;  %v533_v10 = vpop.f32.mrb[5].mxu1 }
  0xe7   :  { %852 = vst.msk [vmem:[%s1686_s4 + $0x8] sm:$0xff] %vm850_vm2, %v787_v3  ;;  %884 = vst.msk [vmem:[%s1686_s4 + $0x108] sm:$0xff] %vm850_vm2, %v819_v4  ;;  %v655_v11 = vmul.f32 %v1291_v35, %v405_v9  ;;  %v687_v12 = vmul.f32 %v1291_v35, %v533_v10  ;;  %v1032_v13 = vpop.f32.mrb[6].mxu0  ;;  %v1064_v14 = vpop.f32.mrb[6].mxu1 }
  0xe8   :  { %v728_v15 = vadd.f32 %v1296_v37, %v657_v7  ;;  %v760_v16 = vadd.f32 %v1296_v37, %v689_v8  ;;  %v658_v17 = vmul.f32 %v1032_v13, %v1291_v35  ;;  %v690_v18 = vmul.f32 %v1064_v14, %v1291_v35  ;;  %v408_v19 = vpop.f32.mrb[7].mxu0  ;;  %v536_v20 = vpop.f32.mrb[7].mxu1 }
  0xe9   :  { %v726_v21 = vadd.f32 %v1296_v37, %v655_v11  ;;  %v758_v22 = vadd.f32 %v1296_v37, %v687_v12  ;;  %v656_v23 = vmul.f32 %v1291_v35, %v408_v19  ;;  %v688_v24 = vmul.f32 %v1291_v35, %v536_v20 }
  0xea   :  { %v792_v25 = vmax.f32 %v728_v15, 0.0  ;;  %v824_v26 = vmax.f32 %v760_v16, 0.0  ;;  %v729_v27 = vadd.f32 %v1296_v37, %v658_v17  ;;  %v761_v28 = vadd.f32 %v1296_v37, %v690_v18 }
  0xeb   :  { %v790_v29 = vmax.f32 %v726_v21, 0.0  ;;  %v822_v30 = vmax.f32 %v758_v22, 0.0  ;;  %v727_v31 = vadd.f32 %v1296_v37, %v656_v23  ;;  %v759_v32 = vadd.f32 %v1296_v37, %v688_v24 }
  0xec   :  { %857 = vst.msk [vmem:[%s1686_s4 + $0x30] sm:$0xff] %vm850_vm2, %v792_v25  ;;  %889 = vst.msk [vmem:[%s1686_s4 + $0x130] sm:$0xff] %vm850_vm2, %v824_v26  ;;  %v793_v33 = vmax.f32 %v729_v27, 0.0  ;;  %v825_v34 = vmax.f32 %v761_v28, 0.0 }
  0xed   :  { %855 = vst.msk [vmem:[%s1686_s4 + $0x20] sm:$0xff] %vm850_vm2, %v790_v29  ;;  %887 = vst.msk [vmem:[%s1686_s4 + $0x120] sm:$0xff] %vm850_vm2, %v822_v30  ;;  %v791_v36 = vmax.f32 %v727_v31, 0.0  ;;  %v823_v38 = vmax.f32 %v759_v32, 0.0  ;;  %v1035_v39 = vpop.f32.mrb[8].mxu0  ;;  %v1067_v40 = vpop.f32.mrb[8].mxu1 }
  0xee   :  { %858 = vst.msk [vmem:[%s1686_s4 + $0x38] sm:$0xff] %vm850_vm2, %v793_v33  ;;  %890 = vst.msk [vmem:[%s1686_s4 + $0x138] sm:$0xff] %vm850_vm2, %v825_v34  ;;  %v661_v41 = vmul.f32 %v1035_v39, %v1291_v35  ;;  %v693_v42 = vmul.f32 %v1067_v40, %v1291_v35  ;;  %v421_v43 = vpop.f32.mrb[9].mxu0  ;;  %v549_v44 = vpop.f32.mrb[9].mxu1 }
  0xef   :  { %856 = vst.msk [vmem:[%s1686_s4 + $0x28] sm:$0xff] %vm850_vm2, %v791_v36  ;;  %888 = vst.msk [vmem:[%s1686_s4 + $0x128] sm:$0xff] %vm850_vm2, %v823_v38  ;;  %v659_v45 = vmul.f32 %v1291_v35, %v421_v43  ;;  %v691_v46 = vmul.f32 %v1291_v35, %v549_v44  ;;  %v1036_v47 = vpop.f32.mrb[10].mxu0  ;;  %v1068_v48 = vpop.f32.mrb[10].mxu1 }
  0xf0   :  { %v732_v49 = vadd.f32 %v1296_v37, %v661_v41  ;;  %v764_v50 = vadd.f32 %v1296_v37, %v693_v42  ;;  %v662_v51 = vmul.f32 %v1036_v47, %v1291_v35  ;;  %v694_v52 = vmul.f32 %v1068_v48, %v1291_v35  ;;  %v424_v53 = vpop.f32.mrb[11].mxu0  ;;  %v552_v54 = vpop.f32.mrb[11].mxu1 }
  0xf1   :  { %v730_v55 = vadd.f32 %v1296_v37, %v659_v45  ;;  %v762_v56 = vadd.f32 %v1296_v37, %v691_v46  ;;  %v660_v57 = vmul.f32 %v1291_v35, %v424_v53  ;;  %v692_v58 = vmul.f32 %v1291_v35, %v552_v54 }
  0xf2   :  { %v796_v59 = vmax.f32 %v732_v49, 0.0  ;;  %v828_v60 = vmax.f32 %v764_v50, 0.0  ;;  %v733_v61 = vadd.f32 %v1296_v37, %v662_v51  ;;  %v765_v62 = vadd.f32 %v1296_v37, %v694_v52 }
  0xf3   :  { %v794_v63 = vmax.f32 %v730_v55, 0.0  ;;  %v826_v0 = vmax.f32 %v762_v56, 0.0  ;;  %v731_v1 = vadd.f32 %v1296_v37, %v660_v57  ;;  %v763_v2 = vadd.f32 %v1296_v37, %v692_v58 }
  0xf4   :  { %861 = vst.msk [vmem:[%s1686_s4 + $0x50] sm:$0xff] %vm850_vm2, %v796_v59  ;;  %893 = vst.msk [vmem:[%s1686_s4 + $0x150] sm:$0xff] %vm850_vm2, %v828_v60  ;;  %v797_v3 = vmax.f32 %v733_v61, 0.0  ;;  %v829_v4 = vmax.f32 %v765_v62, 0.0 }
  0xf5   :  { %859 = vst.msk [vmem:[%s1686_s4 + $0x40] sm:$0xff] %vm850_vm2, %v794_v63  ;;  %891 = vst.msk [vmem:[%s1686_s4 + $0x140] sm:$0xff] %vm850_vm2, %v826_v0  ;;  %v795_v5 = vmax.f32 %v731_v1, 0.0  ;;  %v827_v6 = vmax.f32 %v763_v2, 0.0  ;;  %v1039_v7 = vpop.f32.mrb[12].mxu0  ;;  %v1071_v8 = vpop.f32.mrb[12].mxu1 }
  0xf6   :  { %862 = vst.msk [vmem:[%s1686_s4 + $0x58] sm:$0xff] %vm850_vm2, %v797_v3  ;;  %894 = vst.msk [vmem:[%s1686_s4 + $0x158] sm:$0xff] %vm850_vm2, %v829_v4  ;;  %v665_v9 = vmul.f32 %v1039_v7, %v1291_v35  ;;  %v697_v10 = vmul.f32 %v1071_v8, %v1291_v35  ;;  %v437_v11 = vpop.f32.mrb[13].mxu0  ;;  %v565_v12 = vpop.f32.mrb[13].mxu1 }
  0xf7   :  { %860 = vst.msk [vmem:[%s1686_s4 + $0x48] sm:$0xff] %vm850_vm2, %v795_v5  ;;  %892 = vst.msk [vmem:[%s1686_s4 + $0x148] sm:$0xff] %vm850_vm2, %v827_v6  ;;  %v663_v13 = vmul.f32 %v1291_v35, %v437_v11  ;;  %v695_v14 = vmul.f32 %v1291_v35, %v565_v12  ;;  %v1040_v15 = vpop.f32.mrb[14].mxu0  ;;  %v1072_v16 = vpop.f32.mrb[14].mxu1 }
  0xf8   :  { %v736_v17 = vadd.f32 %v1296_v37, %v665_v9  ;;  %v768_v18 = vadd.f32 %v1296_v37, %v697_v10  ;;  %v666_v19 = vmul.f32 %v1040_v15, %v1291_v35  ;;  %v698_v20 = vmul.f32 %v1072_v16, %v1291_v35  ;;  %v440_v21 = vpop.f32.mrb[15].mxu0  ;;  %v568_v22 = vpop.f32.mrb[15].mxu1 }
  0xf9   :  { %v734_v23 = vadd.f32 %v1296_v37, %v663_v13  ;;  %v766_v24 = vadd.f32 %v1296_v37, %v695_v14  ;;  %v664_v25 = vmul.f32 %v1291_v35, %v440_v21  ;;  %v696_v26 = vmul.f32 %v1291_v35, %v568_v22 }
  0xfa   :  { %v800_v27 = vmax.f32 %v736_v17, 0.0  ;;  %v832_v28 = vmax.f32 %v768_v18, 0.0  ;;  %v737_v29 = vadd.f32 %v1296_v37, %v666_v19  ;;  %v769_v30 = vadd.f32 %v1296_v37, %v698_v20 }
  0xfb   :  { %v798_v31 = vmax.f32 %v734_v23, 0.0  ;;  %v830_v32 = vmax.f32 %v766_v24, 0.0  ;;  %v735_v33 = vadd.f32 %v1296_v37, %v664_v25  ;;  %v767_v34 = vadd.f32 %v1296_v37, %v696_v26 }
  0xfc   :  { %865 = vst.msk [vmem:[%s1686_s4 + $0x70] sm:$0xff] %vm850_vm2, %v800_v27  ;;  %897 = vst.msk [vmem:[%s1686_s4 + $0x170] sm:$0xff] %vm850_vm2, %v832_v28  ;;  %v801_v36 = vmax.f32 %v737_v29, 0.0  ;;  %v833_v38 = vmax.f32 %v769_v30, 0.0 }
  0xfd   :  { %863 = vst.msk [vmem:[%s1686_s4 + $0x60] sm:$0xff] %vm850_vm2, %v798_v31  ;;  %895 = vst.msk [vmem:[%s1686_s4 + $0x160] sm:$0xff] %vm850_vm2, %v830_v32  ;;  %v799_v39 = vmax.f32 %v735_v33, 0.0  ;;  %v831_v40 = vmax.f32 %v767_v34, 0.0  ;;  %v1043_v41 = vpop.f32.mrb[16].mxu0  ;;  %v1075_v42 = vpop.f32.mrb[16].mxu1 }
  0xfe   :  { %866 = vst.msk [vmem:[%s1686_s4 + $0x78] sm:$0xff] %vm850_vm2, %v801_v36  ;;  %898 = vst.msk [vmem:[%s1686_s4 + $0x178] sm:$0xff] %vm850_vm2, %v833_v38  ;;  %v669_v43 = vmul.f32 %v1043_v41, %v1291_v35  ;;  %v701_v44 = vmul.f32 %v1075_v42, %v1291_v35  ;;  %v453_v45 = vpop.f32.mrb[17].mxu0  ;;  %v581_v46 = vpop.f32.mrb[17].mxu1 }
  0xff   :  { %864 = vst.msk [vmem:[%s1686_s4 + $0x68] sm:$0xff] %vm850_vm2, %v799_v39  ;;  %896 = vst.msk [vmem:[%s1686_s4 + $0x168] sm:$0xff] %vm850_vm2, %v831_v40  ;;  %v667_v47 = vmul.f32 %v1291_v35, %v453_v45  ;;  %v699_v48 = vmul.f32 %v1291_v35, %v581_v46  ;;  %v1044_v49 = vpop.f32.mrb[18].mxu0  ;;  %v1076_v50 = vpop.f32.mrb[18].mxu1 }
 0x100   :  { %v740_v51 = vadd.f32 %v1296_v37, %v669_v43  ;;  %v772_v52 = vadd.f32 %v1296_v37, %v701_v44  ;;  %v670_v53 = vmul.f32 %v1044_v49, %v1291_v35  ;;  %v702_v54 = vmul.f32 %v1076_v50, %v1291_v35  ;;  %v456_v55 = vpop.f32.mrb[19].mxu0  ;;  %v584_v56 = vpop.f32.mrb[19].mxu1 }
 0x101   :  { %v738_v57 = vadd.f32 %v1296_v37, %v667_v47  ;;  %v770_v58 = vadd.f32 %v1296_v37, %v699_v48  ;;  %v668_v59 = vmul.f32 %v1291_v35, %v456_v55  ;;  %v700_v60 = vmul.f32 %v1291_v35, %v584_v56 }
 0x102   :  { %v804_v61 = vmax.f32 %v740_v51, 0.0  ;;  %v836_v62 = vmax.f32 %v772_v52, 0.0  ;;  %v741_v63 = vadd.f32 %v1296_v37, %v670_v53  ;;  %v773_v0 = vadd.f32 %v1296_v37, %v702_v54 }
 0x103   :  { %v802_v1 = vmax.f32 %v738_v57, 0.0  ;;  %v834_v2 = vmax.f32 %v770_v58, 0.0  ;;  %v739_v3 = vadd.f32 %v1296_v37, %v668_v59  ;;  %v771_v4 = vadd.f32 %v1296_v37, %v700_v60 }
 0x104   :  { %869 = vst.msk [vmem:[%s1686_s4 + $0x90] sm:$0xff] %vm850_vm2, %v804_v61  ;;  %901 = vst.msk [vmem:[%s1686_s4 + $0x190] sm:$0xff] %vm850_vm2, %v836_v62  ;;  %v805_v5 = vmax.f32 %v741_v63, 0.0  ;;  %v837_v6 = vmax.f32 %v773_v0, 0.0 }
 0x105   :  { %867 = vst.msk [vmem:[%s1686_s4 + $0x80] sm:$0xff] %vm850_vm2, %v802_v1  ;;  %899 = vst.msk [vmem:[%s1686_s4 + $0x180] sm:$0xff] %vm850_vm2, %v834_v2  ;;  %v803_v7 = vmax.f32 %v739_v3, 0.0  ;;  %v835_v8 = vmax.f32 %v771_v4, 0.0  ;;  %v1047_v9 = vpop.f32.mrb[20].mxu0  ;;  %v1079_v10 = vpop.f32.mrb[20].mxu1 }
 0x106   :  { %870 = vst.msk [vmem:[%s1686_s4 + $0x98] sm:$0xff] %vm850_vm2, %v805_v5  ;;  %902 = vst.msk [vmem:[%s1686_s4 + $0x198] sm:$0xff] %vm850_vm2, %v837_v6  ;;  %v673_v11 = vmul.f32 %v1047_v9, %v1291_v35  ;;  %v705_v12 = vmul.f32 %v1079_v10, %v1291_v35  ;;  %v469_v13 = vpop.f32.mrb[21].mxu0  ;;  %v597_v14 = vpop.f32.mrb[21].mxu1 }
 0x107   :  { %868 = vst.msk [vmem:[%s1686_s4 + $0x88] sm:$0xff] %vm850_vm2, %v803_v7  ;;  %900 = vst.msk [vmem:[%s1686_s4 + $0x188] sm:$0xff] %vm850_vm2, %v835_v8  ;;  %v671_v15 = vmul.f32 %v1291_v35, %v469_v13  ;;  %v703_v16 = vmul.f32 %v1291_v35, %v597_v14  ;;  %v1048_v17 = vpop.f32.mrb[22].mxu0  ;;  %v1080_v18 = vpop.f32.mrb[22].mxu1 }
 0x108   :  { %v744_v19 = vadd.f32 %v1296_v37, %v673_v11  ;;  %v776_v20 = vadd.f32 %v1296_v37, %v705_v12  ;;  %v674_v21 = vmul.f32 %v1048_v17, %v1291_v35  ;;  %v706_v22 = vmul.f32 %v1080_v18, %v1291_v35  ;;  %v472_v23 = vpop.f32.mrb[23].mxu0  ;;  %v600_v24 = vpop.f32.mrb[23].mxu1 }
 0x109   :  { %v742_v25 = vadd.f32 %v1296_v37, %v671_v15  ;;  %v774_v26 = vadd.f32 %v1296_v37, %v703_v16  ;;  %v672_v27 = vmul.f32 %v1291_v35, %v472_v23  ;;  %v704_v28 = vmul.f32 %v1291_v35, %v600_v24 }
 0x10a   :  { %v808_v29 = vmax.f32 %v744_v19, 0.0  ;;  %v840_v30 = vmax.f32 %v776_v20, 0.0  ;;  %v745_v31 = vadd.f32 %v1296_v37, %v674_v21  ;;  %v777_v32 = vadd.f32 %v1296_v37, %v706_v22 }
 0x10b   :  { %v806_v33 = vmax.f32 %v742_v25, 0.0  ;;  %v838_v34 = vmax.f32 %v774_v26, 0.0  ;;  %v743_v36 = vadd.f32 %v1296_v37, %v672_v27  ;;  %v775_v38 = vadd.f32 %v1296_v37, %v704_v28 }
 0x10c   :  { %873 = vst.msk [vmem:[%s1686_s4 + $0xb0] sm:$0xff] %vm850_vm2, %v808_v29  ;;  %905 = vst.msk [vmem:[%s1686_s4 + $0x1b0] sm:$0xff] %vm850_vm2, %v840_v30  ;;  %v809_v39 = vmax.f32 %v745_v31, 0.0  ;;  %v841_v40 = vmax.f32 %v777_v32, 0.0 }
 0x10d   :  { %871 = vst.msk [vmem:[%s1686_s4 + $0xa0] sm:$0xff] %vm850_vm2, %v806_v33  ;;  %903 = vst.msk [vmem:[%s1686_s4 + $0x1a0] sm:$0xff] %vm850_vm2, %v838_v34  ;;  %v807_v41 = vmax.f32 %v743_v36, 0.0  ;;  %v839_v42 = vmax.f32 %v775_v38, 0.0  ;;  %v1051_v43 = vpop.f32.mrb[24].mxu0  ;;  %v1083_v44 = vpop.f32.mrb[24].mxu1 }
 0x10e   :  { %874 = vst.msk [vmem:[%s1686_s4 + $0xb8] sm:$0xff] %vm850_vm2, %v809_v39  ;;  %906 = vst.msk [vmem:[%s1686_s4 + $0x1b8] sm:$0xff] %vm850_vm2, %v841_v40  ;;  %v677_v45 = vmul.f32 %v1051_v43, %v1291_v35  ;;  %v709_v46 = vmul.f32 %v1083_v44, %v1291_v35  ;;  %v485_v47 = vpop.f32.mrb[25].mxu0  ;;  %v613_v48 = vpop.f32.mrb[25].mxu1 }
 0x10f   :  { %872 = vst.msk [vmem:[%s1686_s4 + $0xa8] sm:$0xff] %vm850_vm2, %v807_v41  ;;  %904 = vst.msk [vmem:[%s1686_s4 + $0x1a8] sm:$0xff] %vm850_vm2, %v839_v42  ;;  %v675_v49 = vmul.f32 %v1291_v35, %v485_v47  ;;  %v707_v50 = vmul.f32 %v1291_v35, %v613_v48  ;;  %v1052_v51 = vpop.f32.mrb[26].mxu0  ;;  %v1084_v52 = vpop.f32.mrb[26].mxu1 }
 0x110   :  { %v748_v53 = vadd.f32 %v1296_v37, %v677_v45  ;;  %v780_v54 = vadd.f32 %v1296_v37, %v709_v46  ;;  %v678_v55 = vmul.f32 %v1052_v51, %v1291_v35  ;;  %v710_v56 = vmul.f32 %v1084_v52, %v1291_v35  ;;  %v488_v57 = vpop.f32.mrb[27].mxu0  ;;  %v616_v58 = vpop.f32.mrb[27].mxu1 }
 0x111   :  { %v746_v59 = vadd.f32 %v1296_v37, %v675_v49  ;;  %v778_v60 = vadd.f32 %v1296_v37, %v707_v50  ;;  %v676_v61 = vmul.f32 %v1291_v35, %v488_v57  ;;  %v708_v62 = vmul.f32 %v1291_v35, %v616_v58 }
 0x112   :  { %v812_v63 = vmax.f32 %v748_v53, 0.0  ;;  %v844_v0 = vmax.f32 %v780_v54, 0.0  ;;  %v749_v1 = vadd.f32 %v1296_v37, %v678_v55  ;;  %v781_v2 = vadd.f32 %v1296_v37, %v710_v56 }
 0x113   :  { %v810_v3 = vmax.f32 %v746_v59, 0.0  ;;  %v842_v4 = vmax.f32 %v778_v60, 0.0  ;;  %v747_v5 = vadd.f32 %v1296_v37, %v676_v61  ;;  %v779_v6 = vadd.f32 %v1296_v37, %v708_v62 }
 0x114   :  { %877 = vst.msk [vmem:[%s1686_s4 + $0xd0] sm:$0xff] %vm850_vm2, %v812_v63  ;;  %909 = vst.msk [vmem:[%s1686_s4 + $0x1d0] sm:$0xff] %vm850_vm2, %v844_v0  ;;  %v813_v7 = vmax.f32 %v749_v1, 0.0  ;;  %v845_v8 = vmax.f32 %v781_v2, 0.0 }
 0x115   :  { %875 = vst.msk [vmem:[%s1686_s4 + $0xc0] sm:$0xff] %vm850_vm2, %v810_v3  ;;  %907 = vst.msk [vmem:[%s1686_s4 + $0x1c0] sm:$0xff] %vm850_vm2, %v842_v4  ;;  %v811_v9 = vmax.f32 %v747_v5, 0.0  ;;  %v843_v10 = vmax.f32 %v779_v6, 0.0  ;;  %v1055_v11 = vpop.f32.mrb[28].mxu0  ;;  %v1087_v12 = vpop.f32.mrb[28].mxu1 }
 0x116   :  { %878 = vst.msk [vmem:[%s1686_s4 + $0xd8] sm:$0xff] %vm850_vm2, %v813_v7  ;;  %910 = vst.msk [vmem:[%s1686_s4 + $0x1d8] sm:$0xff] %vm850_vm2, %v845_v8  ;;  %v681_v13 = vmul.f32 %v1055_v11, %v1291_v35  ;;  %v713_v14 = vmul.f32 %v1087_v12, %v1291_v35  ;;  %v501_v15 = vpop.f32.mrb[29].mxu0  ;;  %v629_v16 = vpop.f32.mrb[29].mxu1 }
 0x117   :  { %876 = vst.msk [vmem:[%s1686_s4 + $0xc8] sm:$0xff] %vm850_vm2, %v811_v9  ;;  %908 = vst.msk [vmem:[%s1686_s4 + $0x1c8] sm:$0xff] %vm850_vm2, %v843_v10  ;;  %v679_v17 = vmul.f32 %v1291_v35, %v501_v15  ;;  %v711_v18 = vmul.f32 %v1291_v35, %v629_v16  ;;  %v1056_v19 = vpop.f32.mrb[30].mxu0  ;;  %v1088_v20 = vpop.f32.mrb[30].mxu1 }
 0x118   :  { %v752_v21 = vadd.f32 %v1296_v37, %v681_v13  ;;  %v784_v22 = vadd.f32 %v1296_v37, %v713_v14  ;;  %v682_v23 = vmul.f32 %v1056_v19, %v1291_v35  ;;  %v714_v24 = vmul.f32 %v1088_v20, %v1291_v35  ;;  %v504_v25 = vpop.f32.mrb[31].mxu0  ;;  %v632_v26 = vpop.f32.mrb[31].mxu1 }
 0x119   :  { %v750_v27 = vadd.f32 %v1296_v37, %v679_v17  ;;  %v782_v28 = vadd.f32 %v1296_v37, %v711_v18  ;;  %v680_v29 = vmul.f32 %v1291_v35, %v504_v25  ;;  %v712_v30 = vmul.f32 %v1291_v35, %v632_v26 }
 0x11a   :  { %v816_v31 = vmax.f32 %v752_v21, 0.0  ;;  %v848_v32 = vmax.f32 %v784_v22, 0.0  ;;  %v753_v33 = vadd.f32 %v1296_v37, %v682_v23  ;;  %v785_v34 = vadd.f32 %v1296_v37, %v714_v24 }
 0x11b   :  { %v814_v36 = vmax.f32 %v750_v27, 0.0  ;;  %v846_v38 = vmax.f32 %v782_v28, 0.0  ;;  %v751_v39 = vadd.f32 %v1296_v37, %v680_v29  ;;  %v783_v40 = vadd.f32 %v1296_v37, %v712_v30 }
 0x11c   :  { %881 = vst.msk [vmem:[%s1686_s4 + $0xf0] sm:$0xff] %vm850_vm2, %v816_v31  ;;  %913 = vst.msk [vmem:[%s1686_s4 + $0x1f0] sm:$0xff] %vm850_vm2, %v848_v32  ;;  %v817_v35 = vmax.f32 %v753_v33, 0.0  ;;  %v849_v41 = vmax.f32 %v785_v34, 0.0 }
 0x11d   :  { %879 = vst.msk [vmem:[%s1686_s4 + $0xe0] sm:$0xff] %vm850_vm2, %v814_v36  ;;  %911 = vst.msk [vmem:[%s1686_s4 + $0x1e0] sm:$0xff] %vm850_vm2, %v846_v38  ;;  %v815_v37 = vmax.f32 %v751_v39, 0.0  ;;  %v847_v42 = vmax.f32 %v783_v40, 0.0 }
 0x11e   :  { %882 = vst.msk [vmem:[%s1686_s4 + $0xf8] sm:$0xff] %vm850_vm2, %v817_v35  ;;  %914 = vst.msk [vmem:[%s1686_s4 + $0x1f8] sm:$0xff] %vm850_vm2, %v849_v41 }
 0x11f   :  { %880 = vst.msk [vmem:[%s1686_s4 + $0xe8] sm:$0xff] %vm850_vm2, %v815_v37  ;;  %912 = vst.msk [vmem:[%s1686_s4 + $0x1e8] sm:$0xff] %vm850_vm2, %v847_v42 }

// kernel: _forward_jit.195
= control target key start
LH: loop header
LB: loop body
LE: loop exit
PB: predicated region body
PF: predicated region fallthrough
CT: control target
= control target key end

     0   :  { %vm314_vm0 = vcmask 261120   ;;  %s1104_s1 = inlined_call_operand.vmem [shape: bf16[288,32], index: 1, kind: input, shape index: {}]   ;;  %s1105_s0 = inlined_call_operand.vmem [shape: bf16[128,288], index: 0, kind: input, shape index: {}]   ;;  %s1106_s2 = inlined_call_operand.vmem [shape: f32[1,32], index: 2, kind: input, shape index: {}]   ;;  %s1107_s3 = inlined_call_operand.vmem [shape: f32[1,32], index: 3, kind: input, shape index: {}]   ;;  %s1108_s4 = inlined_call_operand.vmem [shape: f32[128,32], index: 4, kind: output, shape index: {}]  }
   0x1   :  { %v777_v0 = vld [vmem:[%s1104_s1 + $0x40] sm:$0xff]   ;;  %v779_v2 = vld [vmem:[%s1104_s1 + $0x48] sm:$0xff]   ;;  %v781_v4 = vld [vmem:[%s1104_s1 + $0x50] sm:$0xff]  }
   0x2   :  { %v778_v1 = vld [vmem:[%s1104_s1] sm:$0xff]   ;;  %667 = vmatprep.subr.bf16.mxu0 %v777_v0  ;;  %761 = vmatprep.subr.bf16.mxu1 %v777_v0  ;;  %v780_v3 = vld [vmem:[%s1104_s1 + $0x8] sm:$0xff]   ;;  %v782_v5 = vld [vmem:[%s1104_s1 + $0x10] sm:$0xff]  }
   0x3   :  { %668 = vmatpush3.bf16.msra.mxu0 %v778_v1  ;;  %769 = vmatpush3.bf16.msra.mxu1 %v778_v1  ;;  %v783_v6 = vld [vmem:[%s1104_s1 + $0x58] sm:$0xff]   ;;  %v785_v8 = vld [vmem:[%s1104_s1 + $0x60] sm:$0xff]   ;;  %v787_v10 = vld [vmem:[%s1104_s1 + $0x68] sm:$0xff]  }
   0x4   :  { %669 = vmatprep.subr.bf16.mxu0 %v779_v2  ;;  %762 = vmatprep.subr.bf16.mxu1 %v779_v2  ;;  %v784_v7 = vld [vmem:[%s1104_s1 + $0x18] sm:$0xff]   ;;  %v786_v9 = vld [vmem:[%s1104_s1 + $0x20] sm:$0xff]   ;;  %v788_v13 = vld [vmem:[%s1104_s1 + $0x28] sm:$0xff]  }
   0x5   :  { %v795_v11 = vld [vmem:[%s1105_s0 + $0x4] ss:$12 sps:$4 sm:$0xff]   ;;  %v798_v12 = vld [vmem:[%s1105_s0 + $0x94] ss:$12 sps:$4 sm:$0xff]   ;;  %v791_v16 = vld [vmem:[%s1104_s1 + $0x78] sm:$0xff]  }
   0x6   :  { %v789_v14 = vld [vmem:[%s1104_s1 + $0x70] sm:$0xff]   ;;  %371 = vmatprep.mubr.bf16.mxu0 %v795_v11  ;;  %419 = vmatprep.mubr.bf16.mxu1 %v798_v12  ;;  %v792_v17 = vld [vmem:[%s1104_s1 + $0x38] sm:$0xff]   ;;  %v793_v18 = vld [vmem:[%s1105_s0] ss:$12 sps:$4 sm:$0xff]  }
   0x7   :  { %670 = vmatpush3.bf16.msra.mxu0 %v780_v3  ;;  %770 = vmatpush3.bf16.msra.mxu1 %v780_v3  ;;  %v790_v15 = vld [vmem:[%s1104_s1 + $0x30] sm:$0xff]   ;;  %v799_v19 = vld [vmem:[%s1104_s1 + $0x80] sm:$0xff]   ;;  %v800_v21 = vld [vmem:[%s1105_s0 + $0x1c] ss:$12 sps:$4 sm:$0xff]  }
   0x8   :  { %671 = vmatprep.subr.bf16.mxu0 %v781_v4  ;;  %763 = vmatprep.subr.bf16.mxu1 %v781_v4  ;;  %v796_v20 = vld [vmem:[%s1105_s0 + $0x90] ss:$12 sps:$4 sm:$0xff]   ;;  %v802_v22 = vld [vmem:[%s1105_s0 + $0xac] ss:$12 sps:$4 sm:$0xff]   ;;  %v805_v25 = vld [vmem:[%s1105_s0 + $0xa8] ss:$12 sps:$4 sm:$0xff]  }
   0x9   :  { %v806_v23 = vld [vmem:[%s1104_s1 + $0x88] sm:$0xff]   ;;  %v804_v24 = vld [vmem:[%s1105_s0 + $0x18] ss:$12 sps:$4 sm:$0xff]   ;;  %v807_v26 = vld [vmem:[%s1105_s0 + $0x34] ss:$12 sps:$4 sm:$0xff]  }
   0xa   :  { %v809_v27 = vld [vmem:[%s1105_s0 + $0x8] ss:$12 sps:$4 sm:$0xff]   ;;  %v810_v28 = vld [vmem:[%s1105_s0 + $0x30] ss:$12 sps:$4 sm:$0xff]   ;;  %v811_v29 = vld [vmem:[%s1105_s0 + $0x20] ss:$12 sps:$4 sm:$0xff]  }
   0xb   :  { %672 = vmatpush3.bf16.msra.mxu0 %v782_v5  ;;  %771 = vmatpush3.bf16.msra.mxu1 %v782_v5  ;;  %v812_v30 = vld [vmem:[%s1105_s0 + $0x4c] ss:$12 sps:$4 sm:$0xff]   ;;  %v815_v32 = vld [vmem:[%s1105_s0 + $0x48] ss:$12 sps:$4 sm:$0xff]   ;;  %v816_v33 = vld [vmem:[%s1105_s0 + $0x50] ss:$12 sps:$4 sm:$0xff]  }
   0xc   :  { %673 = vmatprep.subr.bf16.mxu0 %v783_v6  ;;  %764 = vmatprep.subr.bf16.mxu1 %v783_v6  ;;  %v814_v31 = vld [vmem:[%s1105_s0 + $0x38] ss:$12 sps:$4 sm:$0xff]   ;;  %v819_v35 = vld [vmem:[%s1105_s0 + $0x68] ss:$12 sps:$4 sm:$0xff]   ;;  %v820_v36 = vld [vmem:[%s1105_s0 + $0x60] ss:$12 sps:$4 sm:$0xff]  }
   0xd   :  { %v817_v34 = vld [vmem:[%s1105_s0 + $0x64] ss:$12 sps:$4 sm:$0xff]   ;;  %v821_v37 = vld [vmem:[%s1105_s0 + $0x80] ss:$12 sps:$4 sm:$0xff]   ;;  %v822_v38 = vld [vmem:[%s1105_s0 + $0x7c] ss:$12 sps:$4 sm:$0xff]  }
   0xe   :  { %v824_v39 = vld [vmem:[%s1105_s0 + $0x98] ss:$12 sps:$4 sm:$0xff]   ;;  %v826_v41 = vld [vmem:[%s1105_s0 + $0xb0] ss:$12 sps:$4 sm:$0xff]   ;;  %v997_v4 = vld [vmem:[%s1106_s2] ss:$0 sm:$0xff] }
   0xf   :  { %674 = vmatpush3.bf16.msra.mxu0 %v784_v7  ;;  %772 = vmatpush3.bf16.msra.mxu1 %v784_v7  ;;  %v825_v40 = vld [vmem:[%s1105_s0 + $0x78] ss:$12 sps:$4 sm:$0xff]  }
  0x10   :  { %675 = vmatprep.subr.bf16.mxu0 %v785_v8  ;;  %765 = vmatprep.subr.bf16.mxu1 %v785_v8  ;;  %v1002_v8 = vld [vmem:[%s1107_s3] ss:$0 sm:$0xff] }
  0x13   :  { %676 = vmatpush3.bf16.msra.mxu0 %v786_v9  ;;  %773 = vmatpush3.bf16.msra.mxu1 %v786_v9 }
  0x14   :  { %677 = vmatprep.subr.bf16.mxu0 %v787_v10  ;;  %766 = vmatprep.subr.bf16.mxu1 %v787_v10 }
  0x17   :  { %678 = vmatpush3.bf16.msra.mxu0 %v788_v13  ;;  %774 = vmatpush3.bf16.msra.mxu1 %v788_v13 }
  0x18   :  { %679 = vmatprep.subr.bf16.mxu0 %v789_v14  ;;  %767 = vmatprep.subr.bf16.mxu1 %v789_v14 }
  0x1b   :  { %680 = vmatpush3.bf16.msra.mxu0 %v790_v15  ;;  %775 = vmatpush3.bf16.msra.mxu1 %v790_v15 }
  0x1c   :  { %681 = vmatprep.subr.bf16.mxu0 %v791_v16  ;;  %768 = vmatprep.subr.bf16.mxu1 %v791_v16 }
  0x1f   :  { %682 = vmatpush3.bf16.msra.mxu0 %v792_v17  ;;  %776 = vmatpush3.bf16.msra.mxu1 %v792_v17 }
  0x20   :  { %741 = vmatprep.subr.bf16.mxu1 %v799_v19 }
  0x22   :  { %372 = vmatmul.mubr.bf16.vlgmr.msra.gmra.mrb[0].mxu0 %v793_v18  ;;  %420 = vmatmul.mubr.bf16.vlgmr.msra.gmra.mrb[0].mxu1 %v796_v20 }
  0x23   :  { %742 = vmatpush3.bf16.msra.mxu1 %v799_v19  ;;  %379 = vmatprep.mubr.bf16.mxu0 %v800_v21 }
  0x24   :  { %427 = vmatprep.mubr.bf16.mxu1 %v802_v22  ;;  %743 = vmatprep.subr.bf16.mxu1 %v806_v23 }
  0x27   :  { %744 = vmatpush3.bf16.msra.mxu1 %v806_v23 }
  0x2a   :  { %380 = vmatmul.mubr.bf16.gmra.mrb[4].mxu0 %v804_v24  ;;  %428 = vmatmul.mubr.bf16.gmra.mrb[4].mxu1 %v805_v25 }
  0x2b   :  { %387 = vmatprep.mubr.bf16.mxu0 %v807_v26  ;;  %745 = vmatprep.mubr.msk.bf16.mxu1 %vm314_vm0, %v809_v27 }
  0x32   :  { %388 = vmatmul.mubr.bf16.gmra.mrb[8].mxu0 %v810_v28  ;;  %746 = vmatmul.mubr.msk.bf16.vlgmr.msra.gmra.mrb[8].mxu1 %vm314_vm0, %v811_v29 }
  0x33   :  { %395 = vmatprep.mubr.bf16.mxu0 %v812_v30  ;;  %749 = vmatprep.mubr.msk.bf16.mxu1 %vm314_vm0, %v814_v31 }
  0x3a   :  { %396 = vmatmul.mubr.bf16.gmra.mrb[12].mxu0 %v815_v32  ;;  %750 = vmatmul.mubr.msk.bf16.gmra.mrb[12].mxu1 %vm314_vm0, %v816_v33 }
  0x3b   :  { %403 = vmatprep.mubr.bf16.mxu0 %v817_v34  ;;  %753 = vmatprep.mubr.msk.bf16.mxu1 %vm314_vm0, %v819_v35 }
  0x42   :  { %404 = vmatmul.mubr.bf16.gmra.mrb[16].mxu0 %v820_v36  ;;  %754 = vmatmul.mubr.msk.bf16.gmra.mrb[16].mxu1 %vm314_vm0, %v821_v37 }
  0x43   :  { %411 = vmatprep.mubr.bf16.mxu0 %v822_v38  ;;  %757 = vmatprep.mubr.msk.bf16.mxu1 %vm314_vm0, %v824_v39 }
  0x4a   :  { %412 = vmatmul.mubr.bf16.gmra.mrb[20].mxu0 %v825_v40  ;;  %758 = vmatmul.mubr.msk.bf16.gmra.mrb[20].mxu1 %vm314_vm0, %v826_v41 }
  0xf5   :  { %v683_v42 = vpop.f32.mrb[0].mxu0  ;;  %v719_v43 = vpop.f32.mrb[0].mxu1 }
  0xf6   :  { %v684_v44 = vpop.f32.mrb[1].mxu0  ;;  %v720_v45 = vpop.f32.mrb[1].mxu1 }
  0xf7   :  { %v685_v46 = vadd.f32 %v684_v44, %v683_v42  ;;  %v986_v47 = vadd.f32 %v720_v45, %v719_v43  ;;  %v686_v48 = vpop.f32.mrb[2].mxu0  ;;  %v722_v49 = vpop.f32.mrb[2].mxu1 }
  0xf8   :  { %v687_v50 = vpop.f32.mrb[3].mxu0  ;;  %v723_v51 = vpop.f32.mrb[3].mxu1 }
  0xf9   :  { %v688_v52 = vadd.f32 %v687_v50, %v686_v48  ;;  %v988_v53 = vadd.f32 %v723_v51, %v722_v49 }
  0xfd   :  { %v689_v54 = vpop.f32.mrb[4].mxu0  ;;  %v725_v55 = vpop.f32.mrb[4].mxu1 }
  0xfe   :  { %v690_v56 = vpop.f32.mrb[5].mxu0  ;;  %v726_v57 = vpop.f32.mrb[5].mxu1 }
  0xff   :  { %v691_v58 = vadd.f32 %v690_v56, %v689_v54  ;;  %v990_v59 = vadd.f32 %v726_v57, %v725_v55  ;;  %v692_v60 = vpop.f32.mrb[6].mxu0  ;;  %v728_v61 = vpop.f32.mrb[6].mxu1 }
 0x100   :  { %v693_v62 = vpop.f32.mrb[7].mxu0  ;;  %v729_v63 = vpop.f32.mrb[7].mxu1 }
 0x101   :  { %v694_v0 = vadd.f32 %v693_v62, %v692_v60  ;;  %v992_v1 = vadd.f32 %v729_v63, %v728_v61 }
 0x105   :  { %v695_v2 = vpop.f32.mrb[8].mxu0  ;;  %v747_v3 = vpop.f32.mrb[8].mxu1 }
 0x106   :  { %v479_v5 = vadd.f32 %v747_v3, %v691_v58  ;;  %v696_v6 = vpop.f32.mrb[9].mxu0  ;;  %v470_v7 = vpop.f32.mrb[9].mxu1 }
 0x107   :  { %v697_v9 = vadd.f32 %v696_v6, %v695_v2  ;;  %v471_v10 = vadd.f32 %v685_v46, %v470_v7  ;;  %v698_v11 = vpop.f32.mrb[10].mxu0  ;;  %v748_v12 = vpop.f32.mrb[10].mxu1 }
 0x108   :  { %v542_v13 = vmul.f32 %v997_v4, %v479_v5  ;;  %v482_v14 = vadd.f32 %v748_v12, %v694_v0  ;;  %v699_v15 = vpop.f32.mrb[11].mxu0  ;;  %v473_v16 = vpop.f32.mrb[11].mxu1 }
 0x109   :  { %v540_v17 = vmul.f32 %v997_v4, %v471_v10  ;;  %v700_v18 = vadd.f32 %v699_v15, %v698_v11  ;;  %v474_v19 = vadd.f32 %v688_v52, %v473_v16 }
 0x10a   :  { %v565_v20 = vadd.f32 %v1002_v8, %v542_v13  ;;  %v543_v21 = vmul.f32 %v997_v4, %v482_v14 }
 0x10b   :  { %v563_v22 = vadd.f32 %v1002_v8, %v540_v17  ;;  %v541_v23 = vmul.f32 %v997_v4, %v474_v19 }
 0x10c   :  { %v581_v24 = vmax.f32 %v565_v20, 0.0  ;;  %v566_v25 = vadd.f32 %v1002_v8, %v543_v21 }
 0x10d   :  { %v579_v26 = vmax.f32 %v563_v22, 0.0  ;;  %v564_v27 = vadd.f32 %v1002_v8, %v541_v23  ;;  %v701_v28 = vpop.f32.mrb[12].mxu0  ;;  %v751_v29 = vpop.f32.mrb[12].mxu1 }
 0x10e   :  { %597 = vst.msk [vmem:[%s1108_s4 + $0x10] sm:$0xff] %vm314_vm0, %v581_v24  ;;  %v582_v30 = vmax.f32 %v566_v25, 0.0  ;;  %v702_v31 = vpop.f32.mrb[13].mxu0  ;;  %v486_v32 = vpop.f32.mrb[13].mxu1 }
 0x10f   :  { %595 = vst.msk [vmem:[%s1108_s4] sm:$0xff] %vm314_vm0, %v579_v26  ;;  %v580_v33 = vmax.f32 %v564_v27, 0.0  ;;  %v703_v34 = vadd.f32 %v702_v31, %v701_v28  ;;  %v487_v35 = vadd.f32 %v697_v9, %v486_v32  ;;  %v704_v36 = vpop.f32.mrb[14].mxu0  ;;  %v752_v37 = vpop.f32.mrb[14].mxu1 }
 0x110   :  { %598 = vst.msk [vmem:[%s1108_s4 + $0x18] sm:$0xff] %vm314_vm0, %v582_v30  ;;  %v705_v38 = vpop.f32.mrb[15].mxu0  ;;  %v489_v39 = vpop.f32.mrb[15].mxu1 }
 0x111   :  { %596 = vst.msk [vmem:[%s1108_s4 + $0x8] sm:$0xff] %vm314_vm0, %v580_v33  ;;  %v495_v40 = vadd.f32 %v751_v29, %v703_v34  ;;  %v544_v41 = vmul.f32 %v997_v4, %v487_v35  ;;  %v706_v42 = vadd.f32 %v705_v38, %v704_v36  ;;  %v490_v43 = vadd.f32 %v700_v18, %v489_v39 }
 0x113   :  { %v546_v44 = vmul.f32 %v997_v4, %v495_v40  ;;  %v567_v45 = vadd.f32 %v1002_v8, %v544_v41  ;;  %v498_v46 = vadd.f32 %v752_v37, %v706_v42  ;;  %v545_v48 = vmul.f32 %v997_v4, %v490_v43 }
 0x115   :  { %v569_v49 = vadd.f32 %v1002_v8, %v546_v44  ;;  %v583_v50 = vmax.f32 %v567_v45, 0.0  ;;  %v547_v51 = vmul.f32 %v997_v4, %v498_v46  ;;  %v568_v52 = vadd.f32 %v1002_v8, %v545_v48  ;;  %v707_v54 = vpop.f32.mrb[16].mxu0  ;;  %v755_v55 = vpop.f32.mrb[16].mxu1 }
 0x116   :  { %v708_v56 = vpop.f32.mrb[17].mxu0  ;;  %v502_v57 = vpop.f32.mrb[17].mxu1 }
 0x117   :  { %v585_v58 = vmax.f32 %v569_v49, 0.0  ;;  %599 = vst.msk [vmem:[%s1108_s4 + $0x20] sm:$0xff] %vm314_vm0, %v583_v50  ;;  %v570_v60 = vadd.f32 %v1002_v8, %v547_v51  ;;  %v584_v61 = vmax.f32 %v568_v52, 0.0  ;;  %v709_v62 = vadd.f32 %v708_v56, %v707_v54  ;;  %v710_v63 = vpop.f32.mrb[18].mxu0  ;;  %v756_v0 = vpop.f32.mrb[18].mxu1 }
 0x118   :  { %v711_v2 = vpop.f32.mrb[19].mxu0  ;;  %v505_v3 = vpop.f32.mrb[19].mxu1 }
 0x119   :  { %601 = vst.msk [vmem:[%s1108_s4 + $0x30] sm:$0xff] %vm314_vm0, %v585_v58  ;;  %v586_v5 = vmax.f32 %v570_v60, 0.0  ;;  %600 = vst.msk [vmem:[%s1108_s4 + $0x28] sm:$0xff] %vm314_vm0, %v584_v61  ;;  %v503_v6 = vadd.f32 %v709_v62, %v502_v57  ;;  %v712_v7 = vadd.f32 %v711_v2, %v710_v63 }
 0x11b   :  { %602 = vst.msk [vmem:[%s1108_s4 + $0x38] sm:$0xff] %vm314_vm0, %v586_v5  ;;  %v548_v9 = vmul.f32 %v997_v4, %v503_v6  ;;  %v506_v10 = vadd.f32 %v712_v7, %v505_v3 }
 0x11d   :  { %v571_v11 = vadd.f32 %v1002_v8, %v548_v9  ;;  %v549_v12 = vmul.f32 %v997_v4, %v506_v10  ;;  %v713_v13 = vpop.f32.mrb[20].mxu0  ;;  %v759_v14 = vpop.f32.mrb[20].mxu1 }
 0x11e   :  { %v527_v15 = vadd.f32 %v759_v14, %v990_v59  ;;  %v714_v16 = vpop.f32.mrb[21].mxu0  ;;  %v518_v17 = vpop.f32.mrb[21].mxu1 }
 0x11f   :  { %v587_v18 = vmax.f32 %v571_v11, 0.0  ;;  %v572_v19 = vadd.f32 %v1002_v8, %v549_v12  ;;  %v715_v20 = vadd.f32 %v714_v16, %v713_v13  ;;  %v519_v21 = vadd.f32 %v986_v47, %v518_v17  ;;  %v716_v22 = vpop.f32.mrb[22].mxu0  ;;  %v760_v23 = vpop.f32.mrb[22].mxu1 }
 0x120   :  { %v554_v24 = vmul.f32 %v997_v4, %v527_v15  ;;  %v530_v25 = vadd.f32 %v760_v23, %v992_v1  ;;  %v717_v26 = vpop.f32.mrb[23].mxu0  ;;  %v521_v27 = vpop.f32.mrb[23].mxu1 }
 0x121   :  { %603 = vst.msk [vmem:[%s1108_s4 + $0x40] sm:$0xff] %vm314_vm0, %v587_v18  ;;  %v588_v59 = vmax.f32 %v572_v19, 0.0  ;;  %v511_v28 = vadd.f32 %v755_v55, %v715_v20  ;;  %v552_v29 = vmul.f32 %v997_v4, %v519_v21  ;;  %v718_v30 = vadd.f32 %v717_v26, %v716_v22 }
 0x122   :  { %v577_v47 = vadd.f32 %v1002_v8, %v554_v24  ;;  %v555_v31 = vmul.f32 %v997_v4, %v530_v25  ;;  %v522_v32 = vadd.f32 %v988_v53, %v521_v27 }
 0x123   :  { %604 = vst.msk [vmem:[%s1108_s4 + $0x48] sm:$0xff] %vm314_vm0, %v588_v59  ;;  %v550_v1 = vmul.f32 %v997_v4, %v511_v28  ;;  %v575_v33 = vadd.f32 %v1002_v8, %v552_v29  ;;  %v514_v34 = vadd.f32 %v756_v0, %v718_v30 }
 0x124   :  { %v593_v35 = vmax.f32 %v577_v47, 0.0  ;;  %v578_v36 = vadd.f32 %v1002_v8, %v555_v31  ;;  %v553_v37 = vmul.f32 %v997_v4, %v522_v32 }
 0x125   :  { %v573_v38 = vadd.f32 %v1002_v8, %v550_v1  ;;  %v591_v39 = vmax.f32 %v575_v33, 0.0  ;;  %v551_v53 = vmul.f32 %v997_v4, %v514_v34 }
 0x126   :  { %609 = vst.msk [vmem:[%s1108_s4 + $0x70] sm:$0xff] %vm314_vm0, %v593_v35  ;;  %v594_v40 = vmax.f32 %v578_v36, 0.0  ;;  %v576_v41 = vadd.f32 %v1002_v8, %v553_v37 }
 0x127   :  { %v589_v42 = vmax.f32 %v573_v38, 0.0  ;;  %607 = vst.msk [vmem:[%s1108_s4 + $0x60] sm:$0xff] %vm314_vm0, %v591_v39  ;;  %v574_v43 = vadd.f32 %v1002_v8, %v551_v53 }
 0x128   :  { %610 = vst.msk [vmem:[%s1108_s4 + $0x78] sm:$0xff] %vm314_vm0, %v594_v40  ;;  %v592_v4 = vmax.f32 %v576_v41, 0.0 }
 0x129   :  { %605 = vst.msk [vmem:[%s1108_s4 + $0x50] sm:$0xff] %vm314_vm0, %v589_v42  ;;  %v590_v44 = vmax.f32 %v574_v43, 0.0 }
 0x12a   :  { %608 = vst.msk [vmem:[%s1108_s4 + $0x68] sm:$0xff] %vm314_vm0, %v592_v4 }
 0x12b   :  { %606 = vst.msk [vmem:[%s1108_s4 + $0x58] sm:$0xff] %vm314_vm0, %v590_v44 }

// kernel: _forward_jit.199
= control target key start
LH: loop header
LB: loop body
LE: loop exit
PB: predicated region body
PF: predicated region fallthrough
CT: control target
= control target key end

     0   :  { %vm173_vm0 = vcmask 523264   ;;  %s307_s1 = inlined_call_operand.vmem [shape: bf16[128,64], index: 1, kind: input, shape index: {}]   ;;  %s308_s0 = inlined_call_operand.vmem [shape: bf16[32,128], index: 0, kind: input, shape index: {}]   ;;  %s309_s2 = inlined_call_operand.vmem [shape: f32[1,64], index: 2, kind: input, shape index: {}]   ;;  %s310_s3 = inlined_call_operand.vmem [shape: f32[1,64], index: 3, kind: input, shape index: {}]   ;;  %s311_s4 = inlined_call_operand.vmem [shape: f32[32,64], index: 4, kind: output, shape index: {}]  }
   0x1   :  { %v224_v0 = vld [vmem:[%s307_s1] sm:$0xff]   ;;  %v225_v1 = vld [vmem:[%s307_s1 + $0x8] sm:$0xff]   ;;  %v226_v2 = vld [vmem:[%s307_s1 + $0x10] sm:$0xff]  }
   0x2   :  { %204 = vmatprep.subr.bf16.mxu0 %v224_v0  ;;  %v227_v3 = vld [vmem:[%s307_s1 + $0x18] sm:$0xff]   ;;  %v232_v4 = vld [vmem:[%s308_s0] sm:$0xff]   ;;  %v229_v6 = vld [vmem:[%s307_s1 + $0x28] sm:$0xff]  }
   0x3   :  { %205 = vmatpush3.bf16.msra.mxu0 %v224_v0  ;;  %220 = vmatprep.mubr.bf16.mxu0 %v232_v4  ;;  %v228_v5 = vld [vmem:[%s307_s1 + $0x20] sm:$0xff]   ;;  %v230_v7 = vld [vmem:[%s307_s1 + $0x30] sm:$0xff]   ;;  %v231_v8 = vld [vmem:[%s307_s1 + $0x38] sm:$0xff]  }
   0x4   :  { %206 = vmatprep.subr.bf16.mxu0 %v225_v1  ;;  %v233_v9 = vld [vmem:[%s308_s0 + $0x8] sm:$0xff]   ;;  %v192_v10 = vld [vmem:[%s309_s2] ss:$0 sm:$0xff] }
   0x5   :  { %v193_v12 = vld [vmem:[%s310_s3] ss:$0 sm:$0xff] }
   0x7   :  { %207 = vmatpush3.bf16.msra.mxu0 %v225_v1 }
   0x8   :  { %208 = vmatprep.subr.bf16.mxu0 %v226_v2 }
   0xb   :  { %209 = vmatpush3.bf16.msra.mxu0 %v226_v2 }
   0xc   :  { %210 = vmatprep.subr.bf16.mxu0 %v227_v3 }
   0xf   :  { %211 = vmatpush3.bf16.msra.mxu0 %v227_v3 }
  0x10   :  { %212 = vmatprep.subr.bf16.mxu0 %v228_v5 }
  0x13   :  { %213 = vmatpush3.bf16.msra.mxu0 %v228_v5 }
  0x14   :  { %214 = vmatprep.subr.bf16.mxu0 %v229_v6 }
  0x17   :  { %215 = vmatpush3.bf16.msra.mxu0 %v229_v6 }
  0x18   :  { %216 = vmatprep.subr.bf16.mxu0 %v230_v7 }
  0x1b   :  { %217 = vmatpush3.bf16.msra.mxu0 %v230_v7 }
  0x1c   :  { %218 = vmatprep.subr.bf16.mxu0 %v231_v8 }
  0x1f   :  { %219 = vmatpush3.bf16.msra.mxu0 %v231_v8 }
  0x22   :  { %221 = vmatmul.mubr.bf16.vlgmr.msra.gmra.mrb[0].mxu0 %v233_v9 }
  0xf5   :  { %v222_v11 = vpop.f32.mrb[0].mxu0 }
  0xf6   :  { %v156_v13 = vmul.f32 %v222_v11, %v192_v10  ;;  %v132_v14 = vpop.f32.mrb[1].mxu0 }
  0xf7   :  { %v154_v15 = vmul.f32 %v192_v10, %v132_v14  ;;  %v223_v16 = vpop.f32.mrb[2].mxu0 }
  0xf8   :  { %v167_v17 = vadd.f32 %v193_v12, %v156_v13  ;;  %v157_v18 = vmul.f32 %v223_v16, %v192_v10  ;;  %v135_v19 = vpop.f32.mrb[3].mxu0 }
  0xf9   :  { %v165_v20 = vadd.f32 %v193_v12, %v154_v15  ;;  %v155_v21 = vmul.f32 %v192_v10, %v135_v19 }
  0xfa   :  { %v171_v22 = vmax.f32 %v167_v17, 0.0  ;;  %v168_v23 = vadd.f32 %v193_v12, %v157_v18 }
  0xfb   :  { %v169_v24 = vmax.f32 %v165_v20, 0.0  ;;  %v166_v25 = vadd.f32 %v193_v12, %v155_v21 }
  0xfc   :  { %176 = vst.msk [vmem:[%s311_s4 + $0x10] sm:$0xff] %vm173_vm0, %v171_v22  ;;  %v172_v26 = vmax.f32 %v168_v23, 0.0 }
  0xfd   :  { %174 = vst.msk [vmem:[%s311_s4] sm:$0xff] %vm173_vm0, %v169_v24  ;;  %v170_v27 = vmax.f32 %v166_v25, 0.0 }
  0xfe   :  { %177 = vst.msk [vmem:[%s311_s4 + $0x18] sm:$0xff] %vm173_vm0, %v172_v26 }
  0xff   :  { %175 = vst.msk [vmem:[%s311_s4 + $0x8] sm:$0xff] %vm173_vm0, %v170_v27 }

// kernel: _forward_jit.197
= control target key start
LH: loop header
LB: loop body
LE: loop exit
PB: predicated region body
PF: predicated region fallthrough
CT: control target
= control target key end

     0   :  { %vm368_vm0 = vcmask 523264   ;;  %s917_s1 = inlined_call_operand.vmem [shape: bf16[576,64], index: 1, kind: input, shape index: {}]   ;;  %s918_s0 = inlined_call_operand.vmem [shape: bf16[32,576], index: 0, kind: input, shape index: {}]   ;;  %s919_s2 = inlined_call_operand.vmem [shape: f32[1,64], index: 2, kind: input, shape index: {}]   ;;  %s920_s3 = inlined_call_operand.vmem [shape: f32[1,64], index: 3, kind: input, shape index: {}]   ;;  %s921_s4 = inlined_call_operand.vmem [shape: f32[32,64], index: 4, kind: output, shape index: {}]  }
   0x1   :  { %v680_v0 = vld [vmem:[%s917_s1 + $0x40] sm:$0xff]   ;;  %v684_v4 = vld [vmem:[%s917_s1 + $0x48] sm:$0xff]   ;;  %v688_v8 = vld [vmem:[%s917_s1 + $0x50] sm:$0xff]  }
   0x2   :  { %v681_v1 = vld [vmem:[%s917_s1 + $0xc0] sm:$0xff]   ;;  %606 = vmatprep.subr.bf16.mxu0 %v680_v0  ;;  %v685_v5 = vld [vmem:[%s917_s1 + $0xc8] sm:$0xff]   ;;  %v689_v9 = vld [vmem:[%s917_s1 + $0xd0] sm:$0xff]  }
   0x3   :  { %v682_v2 = vld [vmem:[%s917_s1] sm:$0xff]   ;;  %634 = vmatprep.subr.bf16.mxu1 %v681_v1  ;;  %v686_v6 = vld [vmem:[%s917_s1 + $0x8] sm:$0xff]   ;;  %v690_v10 = vld [vmem:[%s917_s1 + $0x10] sm:$0xff]  }
   0x4   :  { %v683_v3 = vld [vmem:[%s917_s1 + $0x80] sm:$0xff]   ;;  %607 = vmatpush3.bf16.msra.mxu0 %v682_v2  ;;  %v687_v7 = vld [vmem:[%s917_s1 + $0x88] sm:$0xff]   ;;  %v691_v11 = vld [vmem:[%s917_s1 + $0x90] sm:$0xff]  }
   0x5   :  { %635 = vmatpush3.bf16.msra.mxu1 %v683_v3  ;;  %608 = vmatprep.subr.bf16.mxu0 %v684_v4  ;;  %v692_v12 = vld [vmem:[%s917_s1 + $0x58] sm:$0xff]   ;;  %v696_v16 = vld [vmem:[%s917_s1 + $0x60] sm:$0xff]   ;;  %v700_v20 = vld [vmem:[%s917_s1 + $0x68] sm:$0xff]  }
   0x6   :  { %636 = vmatprep.subr.bf16.mxu1 %v685_v5  ;;  %v693_v13 = vld [vmem:[%s917_s1 + $0xd8] sm:$0xff]   ;;  %v697_v17 = vld [vmem:[%s917_s1 + $0xe0] sm:$0xff]   ;;  %v701_v21 = vld [vmem:[%s917_s1 + $0xe8] sm:$0xff]  }
   0x7   :  { %v694_v14 = vld [vmem:[%s917_s1 + $0x18] sm:$0xff]   ;;  %v698_v18 = vld [vmem:[%s917_s1 + $0x20] sm:$0xff]   ;;  %v702_v22 = vld [vmem:[%s917_s1 + $0x28] sm:$0xff]  }
   0x8   :  { %609 = vmatpush3.bf16.msra.mxu0 %v686_v6  ;;  %v695_v15 = vld [vmem:[%s917_s1 + $0x98] sm:$0xff]   ;;  %v699_v19 = vld [vmem:[%s917_s1 + $0xa0] sm:$0xff]   ;;  %v703_v23 = vld [vmem:[%s917_s1 + $0xa8] sm:$0xff]  }
   0x9   :  { %637 = vmatpush3.bf16.msra.mxu1 %v687_v7  ;;  %610 = vmatprep.subr.bf16.mxu0 %v688_v8  ;;  %v704_v24 = vld [vmem:[%s917_s1 + $0x70] sm:$0xff]   ;;  %v708_v28 = vld [vmem:[%s917_s1 + $0x78] sm:$0xff]   ;;  %v717_v35 = vld [vmem:[%s918_s0 + $0xc] ss:$20 sps:$4 sm:$0xff]  }
   0xa   :  { %638 = vmatprep.subr.bf16.mxu1 %v689_v9  ;;  %v705_v25 = vld [vmem:[%s917_s1 + $0xf0] sm:$0xff]   ;;  %v709_v29 = vld [vmem:[%s917_s1 + $0xf8] sm:$0xff]   ;;  %v718_v36 = vld [vmem:[%s917_s1 + $0x100] sm:$0xff]   ;;  %456 = vmatprep.mubr.bf16.mxu1 %v717_v35 }
   0xb   :  { %v706_v26 = vld [vmem:[%s917_s1 + $0x30] sm:$0xff]   ;;  %v710_v30 = vld [vmem:[%s917_s1 + $0x38] sm:$0xff]   ;;  %v719_v37 = vld [vmem:[%s917_s1 + $0x108] sm:$0xff]  }
   0xc   :  { %611 = vmatpush3.bf16.msra.mxu0 %v690_v10  ;;  %v707_v27 = vld [vmem:[%s917_s1 + $0xb0] sm:$0xff]   ;;  %v711_v31 = vld [vmem:[%s917_s1 + $0xb8] sm:$0xff]   ;;  %v720_v38 = vld [vmem:[%s918_s0 + $0x2c] ss:$20 sps:$4 sm:$0xff]  }
   0xd   :  { %639 = vmatpush3.bf16.msra.mxu1 %v691_v11  ;;  %612 = vmatprep.subr.bf16.mxu0 %v692_v12  ;;  %v712_v32 = vld [vmem:[%s918_s0] ss:$20 sps:$4 sm:$0xff]   ;;  %v714_v33 = vld [vmem:[%s918_s0 + $0x4] ss:$20 sps:$4 sm:$0xff]   ;;  %v715_v34 = vld [vmem:[%s918_s0 + $0x8] ss:$20 sps:$4 sm:$0xff]  }
   0xe   :  { %640 = vmatprep.subr.bf16.mxu1 %v693_v13  ;;  %407 = vmatprep.mubr.bf16.mxu0 %v714_v33  ;;  %v722_v39 = vld [vmem:[%s918_s0 + $0x34] ss:$20 sps:$4 sm:$0xff]   ;;  %v725_v42 = vld [vmem:[%s918_s0 + $0x30] ss:$20 sps:$4 sm:$0xff]   ;;  %v727_v44 = vld [vmem:[%s917_s1 + $0x118] sm:$0xff]  }
   0xf   :  { %v724_v40 = vld [vmem:[%s918_s0 + $0x28] ss:$20 sps:$4 sm:$0xff]   ;;  %v726_v41 = vld [vmem:[%s917_s1 + $0x110] sm:$0xff]   ;;  %v729_v45 = vld [vmem:[%s918_s0 + $0x38] ss:$20 sps:$4 sm:$0xff]  }
  0x10   :  { %613 = vmatpush3.bf16.msra.mxu0 %v694_v14  ;;  %v728_v43 = vld [vmem:[%s918_s0 + $0x10] ss:$20 sps:$4 sm:$0xff]   ;;  %v604_v11 = vld [vmem:[%s919_s2] ss:$0 sm:$0xff] }
  0x11   :  { %641 = vmatpush3.bf16.msra.mxu1 %v695_v15  ;;  %614 = vmatprep.subr.bf16.mxu0 %v696_v16  ;;  %v605_v14 = vld [vmem:[%s920_s3] ss:$0 sm:$0xff] }
  0x12   :  { %642 = vmatprep.subr.bf16.mxu1 %v697_v17 }
  0x14   :  { %615 = vmatpush3.bf16.msra.mxu0 %v698_v18 }
  0x15   :  { %643 = vmatpush3.bf16.msra.mxu1 %v699_v19  ;;  %616 = vmatprep.subr.bf16.mxu0 %v700_v20 }
  0x16   :  { %644 = vmatprep.subr.bf16.mxu1 %v701_v21 }
  0x18   :  { %617 = vmatpush3.bf16.msra.mxu0 %v702_v22 }
  0x19   :  { %645 = vmatpush3.bf16.msra.mxu1 %v703_v23  ;;  %618 = vmatprep.subr.bf16.mxu0 %v704_v24 }
  0x1a   :  { %646 = vmatprep.subr.bf16.mxu1 %v705_v25 }
  0x1c   :  { %619 = vmatpush3.bf16.msra.mxu0 %v706_v26 }
  0x1d   :  { %647 = vmatpush3.bf16.msra.mxu1 %v707_v27  ;;  %620 = vmatprep.subr.bf16.mxu0 %v708_v28 }
  0x1e   :  { %648 = vmatprep.subr.bf16.mxu1 %v709_v29 }
  0x20   :  { %621 = vmatpush3.bf16.msra.mxu0 %v710_v30 }
  0x21   :  { %649 = vmatpush3.bf16.msra.mxu1 %v711_v31  ;;  %668 = vmatprep.subr.bf16.mxu0 %v718_v36 }
  0x23   :  { %408 = vmatmul.mubr.bf16.vlgmr.msra.gmra.mrb[0].mxu0 %v712_v32 }
  0x24   :  { %457 = vmatmul.mubr.bf16.vlgmr.msra.gmra.mrb[0].mxu1 %v715_v34  ;;  %669 = vmatpush3.bf16.msra.mxu0 %v718_v36 }
  0x25   :  { %670 = vmatprep.subr.bf16.mxu0 %v719_v37  ;;  %415 = vmatprep.mubr.bf16.mxu0 %v720_v38 }
  0x26   :  { %464 = vmatprep.mubr.bf16.mxu1 %v722_v39 }
  0x28   :  { %671 = vmatpush3.bf16.msra.mxu0 %v719_v37 }
  0x29   :  { %672 = vmatprep.subr.bf16.mxu0 %v726_v41 }
  0x2b   :  { %416 = vmatmul.mubr.bf16.gmra.mrb[4].mxu0 %v724_v40 }
  0x2c   :  { %465 = vmatmul.mubr.bf16.gmra.mrb[4].mxu1 %v725_v42  ;;  %676 = vmatprep.mubr.msk.bf16.mxu0 %vm368_vm0, %v728_v43 }
  0x2d   :  { %673 = vmatpush3.bf16.msra.mxu0 %v726_v41 }
  0x2e   :  { %674 = vmatprep.subr.bf16.mxu0 %v727_v44 }
  0x31   :  { %675 = vmatpush3.bf16.msra.mxu0 %v727_v44 }
  0x34   :  { %677 = vmatmul.mubr.msk.bf16.vlgmr.msra.gmra.mrb[8].mxu0 %vm368_vm0, %v729_v45 }
  0xf6   :  { %v622_v46 = vpop.f32.mrb[0].mxu0 }
  0xf7   :  { %v650_v47 = vpop.f32.mrb[0].mxu1  ;;  %v623_v48 = vpop.f32.mrb[1].mxu0 }
  0xf8   :  { %v624_v49 = vadd.f32 %v623_v48, %v622_v46  ;;  %v651_v50 = vpop.f32.mrb[1].mxu1  ;;  %v625_v51 = vpop.f32.mrb[2].mxu0 }
  0xf9   :  { %v652_v52 = vadd.f32 %v651_v50, %v650_v47  ;;  %v653_v53 = vpop.f32.mrb[2].mxu1  ;;  %v626_v54 = vpop.f32.mrb[3].mxu0 }
  0xfa   :  { %v627_v55 = vadd.f32 %v626_v54, %v625_v51  ;;  %v654_v56 = vpop.f32.mrb[3].mxu1 }
  0xfb   :  { %v655_v57 = vadd.f32 %v654_v56, %v653_v53  ;;  %v459_v58 = vadd.f32 %v652_v52, %v624_v49 }
  0xfd   :  { %v462_v59 = vadd.f32 %v655_v57, %v627_v55 }
  0xfe   :  { %v628_v60 = vpop.f32.mrb[4].mxu0 }
  0xff   :  { %v656_v61 = vpop.f32.mrb[4].mxu1  ;;  %v629_v62 = vpop.f32.mrb[5].mxu0 }
 0x100   :  { %v630_v63 = vadd.f32 %v629_v62, %v628_v60  ;;  %v657_v0 = vpop.f32.mrb[5].mxu1  ;;  %v631_v1 = vpop.f32.mrb[6].mxu0 }
 0x101   :  { %v658_v2 = vadd.f32 %v657_v0, %v656_v61  ;;  %v659_v3 = vpop.f32.mrb[6].mxu1  ;;  %v632_v4 = vpop.f32.mrb[7].mxu0 }
 0x102   :  { %v633_v5 = vadd.f32 %v632_v4, %v631_v1  ;;  %v660_v6 = vpop.f32.mrb[7].mxu1 }
 0x103   :  { %v661_v7 = vadd.f32 %v660_v6, %v659_v3  ;;  %v467_v8 = vadd.f32 %v658_v2, %v630_v63 }
 0x105   :  { %v470_v9 = vadd.f32 %v661_v7, %v633_v5 }
 0x107   :  { %v678_v10 = vpop.f32.mrb[8].mxu0 }
 0x108   :  { %v516_v12 = vadd.f32 %v678_v10, %v467_v8  ;;  %v507_v13 = vpop.f32.mrb[9].mxu0 }
 0x109   :  { %v508_v15 = vadd.f32 %v507_v13, %v459_v58  ;;  %v679_v16 = vpop.f32.mrb[10].mxu0 }
 0x10a   :  { %v531_v17 = vmul.f32 %v604_v11, %v516_v12  ;;  %v519_v18 = vadd.f32 %v679_v16, %v470_v9  ;;  %v510_v19 = vpop.f32.mrb[11].mxu0 }
 0x10b   :  { %v529_v20 = vmul.f32 %v604_v11, %v508_v15  ;;  %v511_v21 = vadd.f32 %v510_v19, %v462_v59 }
 0x10c   :  { %v542_v22 = vadd.f32 %v605_v14, %v531_v17  ;;  %v532_v23 = vmul.f32 %v604_v11, %v519_v18 }
 0x10d   :  { %v540_v24 = vadd.f32 %v605_v14, %v529_v20  ;;  %v530_v25 = vmul.f32 %v604_v11, %v511_v21 }
 0x10e   :  { %v546_v26 = vmax.f32 %v542_v22, 0.0  ;;  %v543_v27 = vadd.f32 %v605_v14, %v532_v23 }
 0x10f   :  { %v544_v28 = vmax.f32 %v540_v24, 0.0  ;;  %v541_v29 = vadd.f32 %v605_v14, %v530_v25 }
 0x110   :  { %550 = vst.msk [vmem:[%s921_s4 + $0x10] sm:$0xff] %vm368_vm0, %v546_v26  ;;  %v547_v30 = vmax.f32 %v543_v27, 0.0 }
 0x111   :  { %548 = vst.msk [vmem:[%s921_s4] sm:$0xff] %vm368_vm0, %v544_v28  ;;  %v545_v31 = vmax.f32 %v541_v29, 0.0 }
 0x112   :  { %551 = vst.msk [vmem:[%s921_s4 + $0x18] sm:$0xff] %vm368_vm0, %v547_v30 }
 0x113   :  { %549 = vst.msk [vmem:[%s921_s4 + $0x8] sm:$0xff] %vm368_vm0, %v545_v31 }

// kernel: _forward_jit.200
= control target key start
LH: loop header
LB: loop body
LE: loop exit
PB: predicated region body
PF: predicated region fallthrough
CT: control target
= control target key end

     0   :  { %vm245_vm0 = vcmask 523264   ;;  %s445_s1 = inlined_call_operand.vmem [shape: bf16[256,64], index: 1, kind: input, shape index: {}]   ;;  %s446_s0 = inlined_call_operand.vmem [shape: bf16[32,256], index: 0, kind: input, shape index: {}]   ;;  %s447_s2 = inlined_call_operand.vmem [shape: f32[1,64], index: 2, kind: input, shape index: {}]   ;;  %s448_s3 = inlined_call_operand.vmem [shape: f32[1,64], index: 3, kind: input, shape index: {}]   ;;  %s449_s4 = inlined_call_operand.vmem [shape: f32[32,64], index: 4, kind: output, shape index: {}]  }
   0x1   :  { %v320_v0 = vld [vmem:[%s445_s1 + $0x40] sm:$0xff]   ;;  %v322_v2 = vld [vmem:[%s445_s1 + $0x48] sm:$0xff]   ;;  %v324_v4 = vld [vmem:[%s445_s1 + $0x50] sm:$0xff]  }
   0x2   :  { %v321_v1 = vld [vmem:[%s445_s1] sm:$0xff]   ;;  %276 = vmatprep.subr.bf16.mxu0 %v320_v0  ;;  %304 = vmatprep.subr.bf16.mxu1 %v320_v0  ;;  %v323_v3 = vld [vmem:[%s445_s1 + $0x8] sm:$0xff]   ;;  %v325_v5 = vld [vmem:[%s445_s1 + $0x10] sm:$0xff]  }
   0x3   :  { %277 = vmatpush3.bf16.msra.mxu0 %v321_v1  ;;  %312 = vmatpush3.bf16.msra.mxu1 %v321_v1  ;;  %v326_v6 = vld [vmem:[%s445_s1 + $0x58] sm:$0xff]   ;;  %v328_v8 = vld [vmem:[%s445_s1 + $0x60] sm:$0xff]   ;;  %v330_v10 = vld [vmem:[%s445_s1 + $0x68] sm:$0xff]  }
   0x4   :  { %278 = vmatprep.subr.bf16.mxu0 %v322_v2  ;;  %305 = vmatprep.subr.bf16.mxu1 %v322_v2  ;;  %v327_v7 = vld [vmem:[%s445_s1 + $0x18] sm:$0xff]   ;;  %v329_v9 = vld [vmem:[%s445_s1 + $0x20] sm:$0xff]   ;;  %v331_v13 = vld [vmem:[%s445_s1 + $0x28] sm:$0xff]  }
   0x5   :  { %v338_v11 = vld [vmem:[%s446_s0 + $0x4] ss:$8 sps:$4 sm:$0xff]   ;;  %v341_v12 = vld [vmem:[%s446_s0 + $0x14] ss:$8 sps:$4 sm:$0xff]   ;;  %v336_v18 = vld [vmem:[%s446_s0] ss:$8 sps:$4 sm:$0xff]  }
   0x6   :  { %v332_v14 = vld [vmem:[%s445_s1 + $0x70] sm:$0xff]   ;;  %202 = vmatprep.mubr.bf16.mxu0 %v338_v11  ;;  %210 = vmatprep.mubr.bf16.mxu1 %v341_v12  ;;  %v334_v16 = vld [vmem:[%s445_s1 + $0x78] sm:$0xff]   ;;  %v274_v23 = vld [vmem:[%s447_s2] ss:$0 sm:$0xff] }
   0x7   :  { %279 = vmatpush3.bf16.msra.mxu0 %v323_v3  ;;  %313 = vmatpush3.bf16.msra.mxu1 %v323_v3  ;;  %v333_v15 = vld [vmem:[%s445_s1 + $0x30] sm:$0xff]   ;;  %v335_v17 = vld [vmem:[%s445_s1 + $0x38] sm:$0xff]   ;;  %v275_v29 = vld [vmem:[%s448_s3] ss:$0 sm:$0xff] }
   0x8   :  { %280 = vmatprep.subr.bf16.mxu0 %v324_v4  ;;  %306 = vmatprep.subr.bf16.mxu1 %v324_v4  ;;  %v339_v19 = vld [vmem:[%s446_s0 + $0x10] ss:$8 sps:$4 sm:$0xff]  }
   0xb   :  { %281 = vmatpush3.bf16.msra.mxu0 %v325_v5  ;;  %314 = vmatpush3.bf16.msra.mxu1 %v325_v5 }
   0xc   :  { %282 = vmatprep.subr.bf16.mxu0 %v326_v6  ;;  %307 = vmatprep.subr.bf16.mxu1 %v326_v6 }
   0xf   :  { %283 = vmatpush3.bf16.msra.mxu0 %v327_v7  ;;  %315 = vmatpush3.bf16.msra.mxu1 %v327_v7 }
  0x10   :  { %284 = vmatprep.subr.bf16.mxu0 %v328_v8  ;;  %308 = vmatprep.subr.bf16.mxu1 %v328_v8 }
  0x13   :  { %285 = vmatpush3.bf16.msra.mxu0 %v329_v9  ;;  %316 = vmatpush3.bf16.msra.mxu1 %v329_v9 }
  0x14   :  { %286 = vmatprep.subr.bf16.mxu0 %v330_v10  ;;  %309 = vmatprep.subr.bf16.mxu1 %v330_v10 }
  0x17   :  { %287 = vmatpush3.bf16.msra.mxu0 %v331_v13  ;;  %317 = vmatpush3.bf16.msra.mxu1 %v331_v13 }
  0x18   :  { %288 = vmatprep.subr.bf16.mxu0 %v332_v14  ;;  %310 = vmatprep.subr.bf16.mxu1 %v332_v14 }
  0x1b   :  { %289 = vmatpush3.bf16.msra.mxu0 %v333_v15  ;;  %318 = vmatpush3.bf16.msra.mxu1 %v333_v15 }
  0x1c   :  { %290 = vmatprep.subr.bf16.mxu0 %v334_v16  ;;  %311 = vmatprep.subr.bf16.mxu1 %v334_v16 }
  0x1f   :  { %291 = vmatpush3.bf16.msra.mxu0 %v335_v17  ;;  %319 = vmatpush3.bf16.msra.mxu1 %v335_v17 }
  0x22   :  { %203 = vmatmul.mubr.bf16.vlgmr.msra.gmra.mrb[0].mxu0 %v336_v18  ;;  %211 = vmatmul.mubr.bf16.vlgmr.msra.gmra.mrb[0].mxu1 %v339_v19 }
  0xf5   :  { %v292_v20 = vpop.f32.mrb[0].mxu0  ;;  %v298_v21 = vpop.f32.mrb[0].mxu1 }
  0xf6   :  { %v293_v22 = vpop.f32.mrb[1].mxu0  ;;  %v299_v24 = vpop.f32.mrb[1].mxu1 }
  0xf7   :  { %v294_v25 = vadd.f32 %v293_v22, %v292_v20  ;;  %v300_v26 = vadd.f32 %v299_v24, %v298_v21  ;;  %v295_v27 = vpop.f32.mrb[2].mxu0  ;;  %v301_v28 = vpop.f32.mrb[2].mxu1 }
  0xf8   :  { %v296_v30 = vpop.f32.mrb[3].mxu0  ;;  %v302_v31 = vpop.f32.mrb[3].mxu1 }
  0xf9   :  { %v226_v32 = vmul.f32 %v294_v25, %v274_v23  ;;  %v228_v33 = vmul.f32 %v300_v26, %v274_v23  ;;  %v297_v34 = vadd.f32 %v296_v30, %v295_v27  ;;  %v303_v35 = vadd.f32 %v302_v31, %v301_v28 }
  0xfb   :  { %v237_v36 = vadd.f32 %v275_v29, %v226_v32  ;;  %v239_v37 = vadd.f32 %v275_v29, %v228_v33  ;;  %v227_v38 = vmul.f32 %v297_v34, %v274_v23  ;;  %v229_v39 = vmul.f32 %v303_v35, %v274_v23 }
  0xfd   :  { %v241_v40 = vmax.f32 %v237_v36, 0.0  ;;  %v243_v41 = vmax.f32 %v239_v37, 0.0  ;;  %v238_v42 = vadd.f32 %v275_v29, %v227_v38  ;;  %v240_v43 = vadd.f32 %v275_v29, %v229_v39 }
  0xff   :  { %246 = vst.msk [vmem:[%s449_s4] sm:$0xff] %vm245_vm0, %v241_v40  ;;  %248 = vst.msk [vmem:[%s449_s4 + $0x10] sm:$0xff] %vm245_vm0, %v243_v41  ;;  %v242_v44 = vmax.f32 %v238_v42, 0.0  ;;  %v244_v45 = vmax.f32 %v240_v43, 0.0 }
 0x101   :  { %247 = vst.msk [vmem:[%s449_s4 + $0x8] sm:$0xff] %vm245_vm0, %v242_v44  ;;  %249 = vst.msk [vmem:[%s449_s4 + $0x18] sm:$0xff] %vm245_vm0, %v244_v45 }

// kernel: _forward_jit.202
= control target key start
LH: loop header
LB: loop body
LE: loop exit
PB: predicated region body
PF: predicated region fallthrough
CT: control target
= control target key end

     0   :  { %vm446_vm0 = vcmask 523264   ;;  %s764_s1 = inlined_call_operand.vmem [shape: bf16[512,64], index: 1, kind: input, shape index: {}]   ;;  %s765_s0 = inlined_call_operand.vmem [shape: bf16[32,512], index: 0, kind: input, shape index: {}]   ;;  %s766_s2 = inlined_call_operand.vmem [shape: f32[1,64], index: 2, kind: input, shape index: {}]   ;;  %s767_s3 = inlined_call_operand.vmem [shape: f32[1,64], index: 3, kind: input, shape index: {}]   ;;  %s768_s4 = inlined_call_operand.vmem [shape: f32[32,64], index: 4, kind: output, shape index: {}]  }
   0x1   :  { %v553_v0 = vld [vmem:[%s764_s1 + $0x40] sm:$0xff]   ;;  %v557_v4 = vld [vmem:[%s764_s1 + $0x48] sm:$0xff]   ;;  %v561_v8 = vld [vmem:[%s764_s1 + $0x50] sm:$0xff]  }
   0x2   :  { %v554_v1 = vld [vmem:[%s764_s1 + $0xc0] sm:$0xff]   ;;  %497 = vmatprep.subr.bf16.mxu0 %v553_v0  ;;  %v558_v5 = vld [vmem:[%s764_s1 + $0xc8] sm:$0xff]   ;;  %v562_v9 = vld [vmem:[%s764_s1 + $0xd0] sm:$0xff]  }
   0x3   :  { %v555_v2 = vld [vmem:[%s764_s1] sm:$0xff]   ;;  %525 = vmatprep.subr.bf16.mxu1 %v554_v1  ;;  %v559_v6 = vld [vmem:[%s764_s1 + $0x8] sm:$0xff]   ;;  %v563_v10 = vld [vmem:[%s764_s1 + $0x10] sm:$0xff]  }
   0x4   :  { %v556_v3 = vld [vmem:[%s764_s1 + $0x80] sm:$0xff]   ;;  %498 = vmatpush3.bf16.msra.mxu0 %v555_v2  ;;  %v560_v7 = vld [vmem:[%s764_s1 + $0x88] sm:$0xff]   ;;  %v564_v11 = vld [vmem:[%s764_s1 + $0x90] sm:$0xff]  }
   0x5   :  { %526 = vmatpush3.bf16.msra.mxu1 %v556_v3  ;;  %499 = vmatprep.subr.bf16.mxu0 %v557_v4  ;;  %v565_v12 = vld [vmem:[%s764_s1 + $0x58] sm:$0xff]   ;;  %v569_v16 = vld [vmem:[%s764_s1 + $0x60] sm:$0xff]   ;;  %v573_v20 = vld [vmem:[%s764_s1 + $0x68] sm:$0xff]  }
   0x6   :  { %527 = vmatprep.subr.bf16.mxu1 %v558_v5  ;;  %v566_v13 = vld [vmem:[%s764_s1 + $0xd8] sm:$0xff]   ;;  %v570_v17 = vld [vmem:[%s764_s1 + $0xe0] sm:$0xff]   ;;  %v574_v21 = vld [vmem:[%s764_s1 + $0xe8] sm:$0xff]  }
   0x7   :  { %v567_v14 = vld [vmem:[%s764_s1 + $0x18] sm:$0xff]   ;;  %v571_v18 = vld [vmem:[%s764_s1 + $0x20] sm:$0xff]   ;;  %v575_v22 = vld [vmem:[%s764_s1 + $0x28] sm:$0xff]  }
   0x8   :  { %500 = vmatpush3.bf16.msra.mxu0 %v559_v6  ;;  %v568_v15 = vld [vmem:[%s764_s1 + $0x98] sm:$0xff]   ;;  %v572_v19 = vld [vmem:[%s764_s1 + $0xa0] sm:$0xff]   ;;  %v576_v23 = vld [vmem:[%s764_s1 + $0xa8] sm:$0xff]  }
   0x9   :  { %528 = vmatpush3.bf16.msra.mxu1 %v560_v7  ;;  %501 = vmatprep.subr.bf16.mxu0 %v561_v8  ;;  %v577_v24 = vld [vmem:[%s764_s1 + $0x70] sm:$0xff]   ;;  %v581_v28 = vld [vmem:[%s764_s1 + $0x78] sm:$0xff]   ;;  %v495_v49 = vld [vmem:[%s766_s2] ss:$0 sm:$0xff] }
   0xa   :  { %529 = vmatprep.subr.bf16.mxu1 %v562_v9  ;;  %v578_v25 = vld [vmem:[%s764_s1 + $0xf0] sm:$0xff]   ;;  %v582_v29 = vld [vmem:[%s764_s1 + $0xf8] sm:$0xff]   ;;  %v496_v54 = vld [vmem:[%s767_s3] ss:$0 sm:$0xff] }
   0xb   :  { %v579_v26 = vld [vmem:[%s764_s1 + $0x30] sm:$0xff]   ;;  %v583_v30 = vld [vmem:[%s764_s1 + $0x38] sm:$0xff]  }
   0xc   :  { %502 = vmatpush3.bf16.msra.mxu0 %v563_v10  ;;  %v580_v27 = vld [vmem:[%s764_s1 + $0xb0] sm:$0xff]   ;;  %v584_v31 = vld [vmem:[%s764_s1 + $0xb8] sm:$0xff]  }
   0xd   :  { %530 = vmatpush3.bf16.msra.mxu1 %v564_v11  ;;  %503 = vmatprep.subr.bf16.mxu0 %v565_v12  ;;  %v585_v32 = vld [vmem:[%s765_s0] ss:$16 sps:$4 sm:$0xff]   ;;  %v587_v33 = vld [vmem:[%s765_s0 + $0x4] ss:$16 sps:$4 sm:$0xff]   ;;  %v588_v34 = vld [vmem:[%s765_s0 + $0x8] ss:$16 sps:$4 sm:$0xff]  }
   0xe   :  { %531 = vmatprep.subr.bf16.mxu1 %v566_v13  ;;  %v590_v35 = vld [vmem:[%s765_s0 + $0xc] ss:$16 sps:$4 sm:$0xff]   ;;  %354 = vmatprep.mubr.bf16.mxu0 %v587_v33  ;;  %v591_v36 = vld [vmem:[%s765_s0 + $0x24] ss:$16 sps:$4 sm:$0xff]   ;;  %v595_v38 = vld [vmem:[%s765_s0 + $0x20] ss:$16 sps:$4 sm:$0xff]  }
   0xf   :  { %403 = vmatprep.mubr.bf16.mxu1 %v590_v35  ;;  %v593_v37 = vld [vmem:[%s765_s0 + $0x2c] ss:$16 sps:$4 sm:$0xff]   ;;  %v596_v39 = vld [vmem:[%s765_s0 + $0x28] ss:$16 sps:$4 sm:$0xff]  }
  0x10   :  { %504 = vmatpush3.bf16.msra.mxu0 %v567_v14 }
  0x11   :  { %532 = vmatpush3.bf16.msra.mxu1 %v568_v15  ;;  %505 = vmatprep.subr.bf16.mxu0 %v569_v16 }
  0x12   :  { %533 = vmatprep.subr.bf16.mxu1 %v570_v17 }
  0x14   :  { %506 = vmatpush3.bf16.msra.mxu0 %v571_v18 }
  0x15   :  { %534 = vmatpush3.bf16.msra.mxu1 %v572_v19  ;;  %507 = vmatprep.subr.bf16.mxu0 %v573_v20 }
  0x16   :  { %535 = vmatprep.subr.bf16.mxu1 %v574_v21 }
  0x18   :  { %508 = vmatpush3.bf16.msra.mxu0 %v575_v22 }
  0x19   :  { %536 = vmatpush3.bf16.msra.mxu1 %v576_v23  ;;  %509 = vmatprep.subr.bf16.mxu0 %v577_v24 }
  0x1a   :  { %537 = vmatprep.subr.bf16.mxu1 %v578_v25 }
  0x1c   :  { %510 = vmatpush3.bf16.msra.mxu0 %v579_v26 }
  0x1d   :  { %538 = vmatpush3.bf16.msra.mxu1 %v580_v27  ;;  %511 = vmatprep.subr.bf16.mxu0 %v581_v28 }
  0x1e   :  { %539 = vmatprep.subr.bf16.mxu1 %v582_v29 }
  0x20   :  { %512 = vmatpush3.bf16.msra.mxu0 %v583_v30 }
  0x21   :  { %540 = vmatpush3.bf16.msra.mxu1 %v584_v31 }
  0x23   :  { %355 = vmatmul.mubr.bf16.vlgmr.msra.gmra.mrb[0].mxu0 %v585_v32 }
  0x24   :  { %404 = vmatmul.mubr.bf16.vlgmr.msra.gmra.mrb[0].mxu1 %v588_v34  ;;  %362 = vmatprep.mubr.bf16.mxu0 %v591_v36 }
  0x25   :  { %411 = vmatprep.mubr.bf16.mxu1 %v593_v37 }
  0x2b   :  { %363 = vmatmul.mubr.bf16.gmra.mrb[4].mxu0 %v595_v38 }
  0x2c   :  { %412 = vmatmul.mubr.bf16.gmra.mrb[4].mxu1 %v596_v39 }
  0xf6   :  { %v513_v40 = vpop.f32.mrb[0].mxu0 }
  0xf7   :  { %v541_v41 = vpop.f32.mrb[0].mxu1  ;;  %v514_v42 = vpop.f32.mrb[1].mxu0 }
  0xf8   :  { %v515_v43 = vadd.f32 %v514_v42, %v513_v40  ;;  %v542_v44 = vpop.f32.mrb[1].mxu1  ;;  %v516_v45 = vpop.f32.mrb[2].mxu0 }
  0xf9   :  { %v543_v46 = vadd.f32 %v542_v44, %v541_v41  ;;  %v544_v47 = vpop.f32.mrb[2].mxu1  ;;  %v517_v48 = vpop.f32.mrb[3].mxu0 }
  0xfa   :  { %v518_v50 = vadd.f32 %v517_v48, %v516_v45  ;;  %v545_v51 = vpop.f32.mrb[3].mxu1 }
  0xfb   :  { %v406_v52 = vadd.f32 %v543_v46, %v515_v43  ;;  %v546_v53 = vadd.f32 %v545_v51, %v544_v47 }
  0xfd   :  { %v427_v55 = vmul.f32 %v495_v49, %v406_v52  ;;  %v409_v56 = vadd.f32 %v546_v53, %v518_v50 }
  0xfe   :  { %v519_v57 = vpop.f32.mrb[4].mxu0 }
  0xff   :  { %v438_v58 = vadd.f32 %v496_v54, %v427_v55  ;;  %v428_v59 = vmul.f32 %v495_v49, %v409_v56  ;;  %v547_v60 = vpop.f32.mrb[4].mxu1  ;;  %v520_v61 = vpop.f32.mrb[5].mxu0 }
 0x100   :  { %v521_v62 = vadd.f32 %v520_v61, %v519_v57  ;;  %v548_v63 = vpop.f32.mrb[5].mxu1  ;;  %v522_v0 = vpop.f32.mrb[6].mxu0 }
 0x101   :  { %v442_v1 = vmax.f32 %v438_v58, 0.0  ;;  %v439_v2 = vadd.f32 %v496_v54, %v428_v59  ;;  %v549_v3 = vadd.f32 %v548_v63, %v547_v60  ;;  %v550_v4 = vpop.f32.mrb[6].mxu1  ;;  %v523_v5 = vpop.f32.mrb[7].mxu0 }
 0x102   :  { %v524_v6 = vadd.f32 %v523_v5, %v522_v0  ;;  %v551_v7 = vpop.f32.mrb[7].mxu1 }
 0x103   :  { %447 = vst.msk [vmem:[%s768_s4] sm:$0xff] %vm446_vm0, %v442_v1  ;;  %v443_v8 = vmax.f32 %v439_v2, 0.0  ;;  %v414_v9 = vadd.f32 %v549_v3, %v521_v62  ;;  %v552_v10 = vadd.f32 %v551_v7, %v550_v4 }
 0x105   :  { %448 = vst.msk [vmem:[%s768_s4 + $0x8] sm:$0xff] %vm446_vm0, %v443_v8  ;;  %v429_v11 = vmul.f32 %v495_v49, %v414_v9  ;;  %v417_v12 = vadd.f32 %v552_v10, %v524_v6 }
 0x107   :  { %v440_v13 = vadd.f32 %v496_v54, %v429_v11  ;;  %v430_v14 = vmul.f32 %v495_v49, %v417_v12 }
 0x109   :  { %v444_v15 = vmax.f32 %v440_v13, 0.0  ;;  %v441_v16 = vadd.f32 %v496_v54, %v430_v14 }
 0x10b   :  { %449 = vst.msk [vmem:[%s768_s4 + $0x10] sm:$0xff] %vm446_vm0, %v444_v15  ;;  %v445_v17 = vmax.f32 %v441_v16, 0.0 }
 0x10d   :  { %450 = vst.msk [vmem:[%s768_s4 + $0x18] sm:$0xff] %vm446_vm0, %v445_v17 }

// kernel: _forward_jit.204
= control target key start
LH: loop header
LB: loop body
LE: loop exit
PB: predicated region body
PF: predicated region fallthrough
CT: control target
= control target key end

     0   :  { %vm289_vm0 = vcmask 261120   ;;  %s551_s1 = inlined_call_operand.vmem [shape: bf16[128,32], index: 1, kind: input, shape index: {}]   ;;  %s552_s0 = inlined_call_operand.vmem [shape: bf16[128,128], index: 0, kind: input, shape index: {}]   ;;  %s553_s2 = inlined_call_operand.vmem [shape: f32[1,32], index: 2, kind: input, shape index: {}]   ;;  %s554_s3 = inlined_call_operand.vmem [shape: f32[1,32], index: 3, kind: input, shape index: {}]   ;;  %s555_s4 = inlined_call_operand.vmem [shape: f32[128,32], index: 4, kind: output, shape index: {}]  }
   0x1   :  { %v392_v0 = vld [vmem:[%s551_s1] sm:$0xff]   ;;  %v393_v1 = vld [vmem:[%s551_s1 + $0x8] sm:$0xff]   ;;  %v394_v2 = vld [vmem:[%s551_s1 + $0x10] sm:$0xff]  }
   0x2   :  { %344 = vmatprep.subr.bf16.mxu0 %v392_v0  ;;  %376 = vmatprep.subr.bf16.mxu1 %v392_v0  ;;  %v395_v3 = vld [vmem:[%s551_s1 + $0x18] sm:$0xff]   ;;  %v400_v4 = vld [vmem:[%s552_s0] sm:$0xff]   ;;  %v397_v7 = vld [vmem:[%s551_s1 + $0x28] sm:$0xff]  }
   0x3   :  { %345 = vmatpush3.bf16.msra.mxu0 %v392_v0  ;;  %384 = vmatpush3.bf16.msra.mxu1 %v392_v0  ;;  %v401_v5 = vld [vmem:[%s552_s0 + $0x20] sm:$0xff]   ;;  %v398_v8 = vld [vmem:[%s551_s1 + $0x30] sm:$0xff]   ;;  %v399_v9 = vld [vmem:[%s551_s1 + $0x38] sm:$0xff]  }
   0x4   :  { %346 = vmatprep.subr.bf16.mxu0 %v393_v1  ;;  %377 = vmatprep.subr.bf16.mxu1 %v393_v1  ;;  %v396_v6 = vld [vmem:[%s551_s1 + $0x20] sm:$0xff]   ;;  %v402_v10 = vld [vmem:[%s552_s0 + $0x8] sm:$0xff]   ;;  %v404_v12 = vld [vmem:[%s552_s0 + $0x10] sm:$0xff]  }
   0x5   :  { %360 = vmatprep.mubr.bf16.mxu0 %v400_v4  ;;  %368 = vmatprep.mubr.bf16.mxu1 %v401_v5  ;;  %v403_v11 = vld [vmem:[%s552_s0 + $0x28] sm:$0xff]   ;;  %v405_v13 = vld [vmem:[%s552_s0 + $0x30] sm:$0xff]   ;;  %v406_v14 = vld [vmem:[%s552_s0 + $0x18] sm:$0xff]  }
   0x6   :  { %v407_v15 = vld [vmem:[%s552_s0 + $0x38] sm:$0xff]   ;;  %v326_v16 = vld [vmem:[%s553_s2] ss:$0 sm:$0xff] }
   0x7   :  { %347 = vmatpush3.bf16.msra.mxu0 %v393_v1  ;;  %385 = vmatpush3.bf16.msra.mxu1 %v393_v1  ;;  %v327_v18 = vld [vmem:[%s554_s3] ss:$0 sm:$0xff] }
   0x8   :  { %348 = vmatprep.subr.bf16.mxu0 %v394_v2  ;;  %378 = vmatprep.subr.bf16.mxu1 %v394_v2 }
   0xb   :  { %349 = vmatpush3.bf16.msra.mxu0 %v394_v2  ;;  %386 = vmatpush3.bf16.msra.mxu1 %v394_v2 }
   0xc   :  { %350 = vmatprep.subr.bf16.mxu0 %v395_v3  ;;  %379 = vmatprep.subr.bf16.mxu1 %v395_v3 }
   0xf   :  { %351 = vmatpush3.bf16.msra.mxu0 %v395_v3  ;;  %387 = vmatpush3.bf16.msra.mxu1 %v395_v3 }
  0x10   :  { %352 = vmatprep.subr.bf16.mxu0 %v396_v6  ;;  %380 = vmatprep.subr.bf16.mxu1 %v396_v6 }
  0x13   :  { %353 = vmatpush3.bf16.msra.mxu0 %v396_v6  ;;  %388 = vmatpush3.bf16.msra.mxu1 %v396_v6 }
  0x14   :  { %354 = vmatprep.subr.bf16.mxu0 %v397_v7  ;;  %381 = vmatprep.subr.bf16.mxu1 %v397_v7 }
  0x17   :  { %355 = vmatpush3.bf16.msra.mxu0 %v397_v7  ;;  %389 = vmatpush3.bf16.msra.mxu1 %v397_v7 }
  0x18   :  { %356 = vmatprep.subr.bf16.mxu0 %v398_v8  ;;  %382 = vmatprep.subr.bf16.mxu1 %v398_v8 }
  0x1b   :  { %357 = vmatpush3.bf16.msra.mxu0 %v398_v8  ;;  %390 = vmatpush3.bf16.msra.mxu1 %v398_v8 }
  0x1c   :  { %358 = vmatprep.subr.bf16.mxu0 %v399_v9  ;;  %383 = vmatprep.subr.bf16.mxu1 %v399_v9 }
  0x1f   :  { %359 = vmatpush3.bf16.msra.mxu0 %v399_v9  ;;  %391 = vmatpush3.bf16.msra.mxu1 %v399_v9 }
  0x22   :  { %361 = vmatmul.mubr.bf16.vlgmr.msra.gmra.mrb[0].mxu0 %v402_v10  ;;  %369 = vmatmul.mubr.bf16.vlgmr.msra.gmra.mrb[0].mxu1 %v403_v11 }
  0x23   :  { %364 = vmatprep.mubr.bf16.mxu0 %v404_v12  ;;  %372 = vmatprep.mubr.bf16.mxu1 %v405_v13 }
  0x2a   :  { %365 = vmatmul.mubr.bf16.gmra.mrb[4].mxu0 %v406_v14  ;;  %373 = vmatmul.mubr.bf16.gmra.mrb[4].mxu1 %v407_v15 }
  0xf5   :  { %v362_v17 = vpop.f32.mrb[0].mxu0  ;;  %v370_v19 = vpop.f32.mrb[0].mxu1 }
  0xf6   :  { %v252_v20 = vmul.f32 %v362_v17, %v326_v16  ;;  %v260_v21 = vmul.f32 %v370_v19, %v326_v16  ;;  %v180_v22 = vpop.f32.mrb[1].mxu0  ;;  %v212_v23 = vpop.f32.mrb[1].mxu1 }
  0xf7   :  { %v250_v24 = vmul.f32 %v326_v16, %v180_v22  ;;  %v258_v25 = vmul.f32 %v326_v16, %v212_v23  ;;  %v363_v26 = vpop.f32.mrb[2].mxu0  ;;  %v371_v27 = vpop.f32.mrb[2].mxu1 }
  0xf8   :  { %v275_v28 = vadd.f32 %v327_v18, %v252_v20  ;;  %v283_v29 = vadd.f32 %v327_v18, %v260_v21  ;;  %v253_v30 = vmul.f32 %v363_v26, %v326_v16  ;;  %v261_v31 = vmul.f32 %v371_v27, %v326_v16  ;;  %v183_v32 = vpop.f32.mrb[3].mxu0  ;;  %v215_v33 = vpop.f32.mrb[3].mxu1 }
  0xf9   :  { %v273_v34 = vadd.f32 %v327_v18, %v250_v24  ;;  %v281_v35 = vadd.f32 %v327_v18, %v258_v25  ;;  %v251_v36 = vmul.f32 %v326_v16, %v183_v32  ;;  %v259_v37 = vmul.f32 %v326_v16, %v215_v33 }
  0xfa   :  { %292 = vst.msk [vmem:[%s555_s4 + $0x10] sm:$0xff] %vm289_vm0, %v275_v28  ;;  %300 = vst.msk [vmem:[%s555_s4 + $0x50] sm:$0xff] %vm289_vm0, %v283_v29  ;;  %v276_v38 = vadd.f32 %v327_v18, %v253_v30  ;;  %v284_v39 = vadd.f32 %v327_v18, %v261_v31 }
  0xfb   :  { %290 = vst.msk [vmem:[%s555_s4] sm:$0xff] %vm289_vm0, %v273_v34  ;;  %298 = vst.msk [vmem:[%s555_s4 + $0x40] sm:$0xff] %vm289_vm0, %v281_v35  ;;  %v274_v40 = vadd.f32 %v327_v18, %v251_v36  ;;  %v282_v41 = vadd.f32 %v327_v18, %v259_v37 }
  0xfc   :  { %293 = vst.msk [vmem:[%s555_s4 + $0x18] sm:$0xff] %vm289_vm0, %v276_v38  ;;  %301 = vst.msk [vmem:[%s555_s4 + $0x58] sm:$0xff] %vm289_vm0, %v284_v39 }
  0xfd   :  { %291 = vst.msk [vmem:[%s555_s4 + $0x8] sm:$0xff] %vm289_vm0, %v274_v40  ;;  %299 = vst.msk [vmem:[%s555_s4 + $0x48] sm:$0xff] %vm289_vm0, %v282_v41  ;;  %v366_v42 = vpop.f32.mrb[4].mxu0  ;;  %v374_v43 = vpop.f32.mrb[4].mxu1 }
  0xfe   :  { %v256_v44 = vmul.f32 %v366_v42, %v326_v16  ;;  %v264_v45 = vmul.f32 %v374_v43, %v326_v16  ;;  %v196_v46 = vpop.f32.mrb[5].mxu0  ;;  %v228_v47 = vpop.f32.mrb[5].mxu1 }
  0xff   :  { %v254_v48 = vmul.f32 %v326_v16, %v196_v46  ;;  %v262_v49 = vmul.f32 %v326_v16, %v228_v47  ;;  %v367_v50 = vpop.f32.mrb[6].mxu0  ;;  %v375_v51 = vpop.f32.mrb[6].mxu1 }
 0x100   :  { %v279_v52 = vadd.f32 %v327_v18, %v256_v44  ;;  %v287_v53 = vadd.f32 %v327_v18, %v264_v45  ;;  %v257_v54 = vmul.f32 %v367_v50, %v326_v16  ;;  %v265_v55 = vmul.f32 %v375_v51, %v326_v16  ;;  %v199_v56 = vpop.f32.mrb[7].mxu0  ;;  %v231_v57 = vpop.f32.mrb[7].mxu1 }
 0x101   :  { %v277_v58 = vadd.f32 %v327_v18, %v254_v48  ;;  %v285_v59 = vadd.f32 %v327_v18, %v262_v49  ;;  %v255_v60 = vmul.f32 %v326_v16, %v199_v56  ;;  %v263_v61 = vmul.f32 %v326_v16, %v231_v57 }
 0x102   :  { %296 = vst.msk [vmem:[%s555_s4 + $0x30] sm:$0xff] %vm289_vm0, %v279_v52  ;;  %304 = vst.msk [vmem:[%s555_s4 + $0x70] sm:$0xff] %vm289_vm0, %v287_v53  ;;  %v280_v62 = vadd.f32 %v327_v18, %v257_v54  ;;  %v288_v63 = vadd.f32 %v327_v18, %v265_v55 }
 0x103   :  { %294 = vst.msk [vmem:[%s555_s4 + $0x20] sm:$0xff] %vm289_vm0, %v277_v58  ;;  %302 = vst.msk [vmem:[%s555_s4 + $0x60] sm:$0xff] %vm289_vm0, %v285_v59  ;;  %v278_v0 = vadd.f32 %v327_v18, %v255_v60  ;;  %v286_v1 = vadd.f32 %v327_v18, %v263_v61 }
 0x104   :  { %297 = vst.msk [vmem:[%s555_s4 + $0x38] sm:$0xff] %vm289_vm0, %v280_v62  ;;  %305 = vst.msk [vmem:[%s555_s4 + $0x78] sm:$0xff] %vm289_vm0, %v288_v63 }
 0x105   :  { %295 = vst.msk [vmem:[%s555_s4 + $0x28] sm:$0xff] %vm289_vm0, %v278_v0  ;;  %303 = vst.msk [vmem:[%s555_s4 + $0x68] sm:$0xff] %vm289_vm0, %v286_v1 }

// kernel: _forward_jit.203
= control target key start
LH: loop header
LB: loop body
LE: loop exit
PB: predicated region body
PF: predicated region fallthrough
CT: control target
= control target key end

     0   :  { %vm106_vm0 = vcmask 523264   ;;  %vm274_vm1 = vcmask 261120   ;;  %s512_s1 = inlined_call_operand.vmem [shape: bf16[64,32], index: 1, kind: input, shape index: {}]   ;;  %s513_s0 = inlined_call_operand.vmem [shape: bf16[128,64], index: 0, kind: input, shape index: {}]   ;;  %s514_s2 = inlined_call_operand.vmem [shape: f32[1,32], index: 2, kind: input, shape index: {}]   ;;  %s515_s3 = inlined_call_operand.vmem [shape: f32[1,32], index: 3, kind: input, shape index: {}]   ;;  %s516_s4 = inlined_call_operand.vmem [shape: f32[128,32], index: 4, kind: output, shape index: {}]  }
   0x1   :  { %v361_v0 = vld [vmem:[%s512_s1] sm:$0xff]   ;;  %v362_v1 = vld [vmem:[%s512_s1 + $0x8] sm:$0xff]   ;;  %v363_v2 = vld [vmem:[%s512_s1 + $0x10] sm:$0xff]  }
   0x2   :  { %329 = vmatprep.subr.bf16.mxu0 %v361_v0  ;;  %353 = vmatprep.subr.bf16.mxu1 %v361_v0  ;;  %v365_v3 = vld [vmem:[%s513_s0] sm:$0xff]   ;;  %v364_v5 = vld [vmem:[%s512_s1 + $0x18] sm:$0xff]   ;;  %v367_v6 = vld [vmem:[%s513_s0 + $0x8] sm:$0xff]  }
   0x3   :  { %330 = vmatpush3.bf16.msra.mxu0 %v361_v0  ;;  %357 = vmatpush3.bf16.msra.mxu1 %v361_v0  ;;  %v366_v4 = vld [vmem:[%s513_s0 + $0x20] sm:$0xff]   ;;  %v368_v7 = vld [vmem:[%s513_s0 + $0x28] sm:$0xff]   ;;  %v369_v8 = vld [vmem:[%s513_s0 + $0x10] sm:$0xff]  }
   0x4   :  { %331 = vmatprep.subr.bf16.mxu0 %v362_v1  ;;  %354 = vmatprep.subr.bf16.mxu1 %v362_v1  ;;  %v370_v9 = vld [vmem:[%s513_s0 + $0x30] sm:$0xff]   ;;  %v371_v10 = vld [vmem:[%s513_s0 + $0x18] sm:$0xff]   ;;  %v315_v12 = vld [vmem:[%s514_s2] ss:$0 sm:$0xff] }
   0x5   :  { %337 = vmatprep.mubr.msk.bf16.mxu0 %vm106_vm0, %v365_v3  ;;  %345 = vmatprep.mubr.msk.bf16.mxu1 %vm106_vm0, %v366_v4  ;;  %v372_v11 = vld [vmem:[%s513_s0 + $0x38] sm:$0xff]   ;;  %v316_v14 = vld [vmem:[%s515_s3] ss:$0 sm:$0xff] }
   0x7   :  { %332 = vmatpush3.bf16.msra.mxu0 %v362_v1  ;;  %358 = vmatpush3.bf16.msra.mxu1 %v362_v1 }
   0x8   :  { %333 = vmatprep.subr.bf16.mxu0 %v363_v2  ;;  %355 = vmatprep.subr.bf16.mxu1 %v363_v2 }
   0xb   :  { %334 = vmatpush3.bf16.msra.mxu0 %v363_v2  ;;  %359 = vmatpush3.bf16.msra.mxu1 %v363_v2 }
   0xc   :  { %335 = vmatprep.subr.bf16.mxu0 %v364_v5  ;;  %356 = vmatprep.subr.bf16.mxu1 %v364_v5 }
   0xf   :  { %336 = vmatpush3.bf16.msra.mxu0 %v364_v5  ;;  %360 = vmatpush3.bf16.msra.mxu1 %v364_v5 }
  0x12   :  { %338 = vmatmul.mubr.msk.bf16.vlgmr.msra.gmra.mrb[0].mxu0 %vm106_vm0, %v367_v6  ;;  %346 = vmatmul.mubr.msk.bf16.vlgmr.msra.gmra.mrb[0].mxu1 %vm106_vm0, %v368_v7 }
  0x13   :  { %341 = vmatprep.mubr.msk.bf16.mxu0 %vm106_vm0, %v369_v8  ;;  %349 = vmatprep.mubr.msk.bf16.mxu1 %vm106_vm0, %v370_v9 }
  0x1a   :  { %342 = vmatmul.mubr.msk.bf16.gmra.mrb[4].mxu0 %vm106_vm0, %v371_v10  ;;  %350 = vmatmul.mubr.msk.bf16.gmra.mrb[4].mxu1 %vm106_vm0, %v372_v11 }
  0xe5   :  { %v339_v13 = vpop.f32.mrb[0].mxu0  ;;  %v347_v15 = vpop.f32.mrb[0].mxu1 }
  0xe6   :  { %v237_v16 = vmul.f32 %v339_v13, %v315_v12  ;;  %v245_v17 = vmul.f32 %v347_v15, %v315_v12  ;;  %v165_v18 = vpop.f32.mrb[1].mxu0  ;;  %v197_v19 = vpop.f32.mrb[1].mxu1 }
  0xe7   :  { %v235_v20 = vmul.f32 %v315_v12, %v165_v18  ;;  %v243_v21 = vmul.f32 %v315_v12, %v197_v19  ;;  %v340_v22 = vpop.f32.mrb[2].mxu0  ;;  %v348_v23 = vpop.f32.mrb[2].mxu1 }
  0xe8   :  { %v260_v24 = vadd.f32 %v316_v14, %v237_v16  ;;  %v268_v25 = vadd.f32 %v316_v14, %v245_v17  ;;  %v238_v26 = vmul.f32 %v340_v22, %v315_v12  ;;  %v246_v27 = vmul.f32 %v348_v23, %v315_v12  ;;  %v168_v28 = vpop.f32.mrb[3].mxu0  ;;  %v200_v29 = vpop.f32.mrb[3].mxu1 }
  0xe9   :  { %v258_v30 = vadd.f32 %v316_v14, %v235_v20  ;;  %v266_v31 = vadd.f32 %v316_v14, %v243_v21  ;;  %v236_v32 = vmul.f32 %v315_v12, %v168_v28  ;;  %v244_v33 = vmul.f32 %v315_v12, %v200_v29 }
  0xea   :  { %277 = vst.msk [vmem:[%s516_s4 + $0x10] sm:$0xff] %vm274_vm1, %v260_v24  ;;  %285 = vst.msk [vmem:[%s516_s4 + $0x50] sm:$0xff] %vm274_vm1, %v268_v25  ;;  %v261_v34 = vadd.f32 %v316_v14, %v238_v26  ;;  %v269_v35 = vadd.f32 %v316_v14, %v246_v27 }
  0xeb   :  { %275 = vst.msk [vmem:[%s516_s4] sm:$0xff] %vm274_vm1, %v258_v30  ;;  %283 = vst.msk [vmem:[%s516_s4 + $0x40] sm:$0xff] %vm274_vm1, %v266_v31  ;;  %v259_v36 = vadd.f32 %v316_v14, %v236_v32  ;;  %v267_v37 = vadd.f32 %v316_v14, %v244_v33 }
  0xec   :  { %278 = vst.msk [vmem:[%s516_s4 + $0x18] sm:$0xff] %vm274_vm1, %v261_v34  ;;  %286 = vst.msk [vmem:[%s516_s4 + $0x58] sm:$0xff] %vm274_vm1, %v269_v35 }
  0xed   :  { %276 = vst.msk [vmem:[%s516_s4 + $0x8] sm:$0xff] %vm274_vm1, %v259_v36  ;;  %284 = vst.msk [vmem:[%s516_s4 + $0x48] sm:$0xff] %vm274_vm1, %v267_v37  ;;  %v343_v38 = vpop.f32.mrb[4].mxu0  ;;  %v351_v39 = vpop.f32.mrb[4].mxu1 }
  0xee   :  { %v241_v40 = vmul.f32 %v343_v38, %v315_v12  ;;  %v249_v41 = vmul.f32 %v351_v39, %v315_v12  ;;  %v181_v42 = vpop.f32.mrb[5].mxu0  ;;  %v213_v43 = vpop.f32.mrb[5].mxu1 }
  0xef   :  { %v239_v44 = vmul.f32 %v315_v12, %v181_v42  ;;  %v247_v45 = vmul.f32 %v315_v12, %v213_v43  ;;  %v344_v46 = vpop.f32.mrb[6].mxu0  ;;  %v352_v47 = vpop.f32.mrb[6].mxu1 }
  0xf0   :  { %v264_v48 = vadd.f32 %v316_v14, %v241_v40  ;;  %v272_v49 = vadd.f32 %v316_v14, %v249_v41  ;;  %v242_v50 = vmul.f32 %v344_v46, %v315_v12  ;;  %v250_v51 = vmul.f32 %v352_v47, %v315_v12  ;;  %v184_v52 = vpop.f32.mrb[7].mxu0  ;;  %v216_v53 = vpop.f32.mrb[7].mxu1 }
  0xf1   :  { %v262_v54 = vadd.f32 %v316_v14, %v239_v44  ;;  %v270_v55 = vadd.f32 %v316_v14, %v247_v45  ;;  %v240_v56 = vmul.f32 %v315_v12, %v184_v52  ;;  %v248_v57 = vmul.f32 %v315_v12, %v216_v53 }
  0xf2   :  { %281 = vst.msk [vmem:[%s516_s4 + $0x30] sm:$0xff] %vm274_vm1, %v264_v48  ;;  %289 = vst.msk [vmem:[%s516_s4 + $0x70] sm:$0xff] %vm274_vm1, %v272_v49  ;;  %v265_v58 = vadd.f32 %v316_v14, %v242_v50  ;;  %v273_v59 = vadd.f32 %v316_v14, %v250_v51 }
  0xf3   :  { %279 = vst.msk [vmem:[%s516_s4 + $0x20] sm:$0xff] %vm274_vm1, %v262_v54  ;;  %287 = vst.msk [vmem:[%s516_s4 + $0x60] sm:$0xff] %vm274_vm1, %v270_v55  ;;  %v263_v60 = vadd.f32 %v316_v14, %v240_v56  ;;  %v271_v61 = vadd.f32 %v316_v14, %v248_v57 }
  0xf4   :  { %282 = vst.msk [vmem:[%s516_s4 + $0x38] sm:$0xff] %vm274_vm1, %v265_v58  ;;  %290 = vst.msk [vmem:[%s516_s4 + $0x78] sm:$0xff] %vm274_vm1, %v273_v59 }
  0xf5   :  { %280 = vst.msk [vmem:[%s516_s4 + $0x28] sm:$0xff] %vm274_vm1, %v263_v60  ;;  %288 = vst.msk [vmem:[%s516_s4 + $0x68] sm:$0xff] %vm274_vm1, %v271_v61 }

// kernel: _forward_jit.206
= control target key start
LH: loop header
LB: loop body
LE: loop exit
PB: predicated region body
PF: predicated region fallthrough
CT: control target
= control target key end

     0   :  { %vm385_vm0 = vcmask 261120   ;;  %s787_s1 = inlined_call_operand.vmem [shape: bf16[256,32], index: 1, kind: input, shape index: {}]   ;;  %s788_s0 = inlined_call_operand.vmem [shape: bf16[128,256], index: 0, kind: input, shape index: {}]   ;;  %s789_s2 = inlined_call_operand.vmem [shape: f32[1,32], index: 2, kind: input, shape index: {}]   ;;  %s790_s3 = inlined_call_operand.vmem [shape: f32[1,32], index: 3, kind: input, shape index: {}]   ;;  %s791_s4 = inlined_call_operand.vmem [shape: f32[128,32], index: 4, kind: output, shape index: {}]  }
   0x1   :  { %v520_v0 = vld [vmem:[%s787_s1 + $0x40] sm:$0xff]   ;;  %v522_v2 = vld [vmem:[%s787_s1 + $0x48] sm:$0xff]   ;;  %v524_v4 = vld [vmem:[%s787_s1 + $0x50] sm:$0xff]  }
   0x2   :  { %v521_v1 = vld [vmem:[%s787_s1] sm:$0xff]   ;;  %440 = vmatprep.subr.bf16.mxu0 %v520_v0  ;;  %504 = vmatprep.subr.bf16.mxu1 %v520_v0  ;;  %v523_v3 = vld [vmem:[%s787_s1 + $0x8] sm:$0xff]   ;;  %v525_v5 = vld [vmem:[%s787_s1 + $0x10] sm:$0xff]  }
   0x3   :  { %441 = vmatpush3.bf16.msra.mxu0 %v521_v1  ;;  %512 = vmatpush3.bf16.msra.mxu1 %v521_v1  ;;  %v526_v6 = vld [vmem:[%s787_s1 + $0x58] sm:$0xff]   ;;  %v528_v8 = vld [vmem:[%s787_s1 + $0x60] sm:$0xff]   ;;  %v530_v10 = vld [vmem:[%s787_s1 + $0x68] sm:$0xff]  }
   0x4   :  { %442 = vmatprep.subr.bf16.mxu0 %v522_v2  ;;  %505 = vmatprep.subr.bf16.mxu1 %v522_v2  ;;  %v527_v7 = vld [vmem:[%s787_s1 + $0x18] sm:$0xff]   ;;  %v529_v9 = vld [vmem:[%s787_s1 + $0x20] sm:$0xff]   ;;  %v531_v13 = vld [vmem:[%s787_s1 + $0x28] sm:$0xff]  }
   0x5   :  { %v538_v11 = vld [vmem:[%s788_s0 + $0x4] ss:$8 sps:$4 sm:$0xff]   ;;  %v532_v14 = vld [vmem:[%s787_s1 + $0x70] sm:$0xff]   ;;  %v534_v16 = vld [vmem:[%s787_s1 + $0x78] sm:$0xff]  }
   0x6   :  { %v541_v12 = vld [vmem:[%s788_s0 + $0x44] ss:$8 sps:$4 sm:$0xff]   ;;  %274 = vmatprep.mubr.bf16.mxu0 %v538_v11  ;;  %v533_v15 = vld [vmem:[%s787_s1 + $0x30] sm:$0xff]   ;;  %v535_v17 = vld [vmem:[%s787_s1 + $0x38] sm:$0xff]  }
   0x7   :  { %443 = vmatpush3.bf16.msra.mxu0 %v523_v3  ;;  %513 = vmatpush3.bf16.msra.mxu1 %v523_v3  ;;  %v536_v18 = vld [vmem:[%s788_s0] ss:$8 sps:$4 sm:$0xff]   ;;  %v542_v20 = vld [vmem:[%s788_s0 + $0x14] ss:$8 sps:$4 sm:$0xff]   ;;  %v546_v22 = vld [vmem:[%s788_s0 + $0x10] ss:$8 sps:$4 sm:$0xff]  }
   0x8   :  { %444 = vmatprep.subr.bf16.mxu0 %v524_v4  ;;  %506 = vmatprep.subr.bf16.mxu1 %v524_v4  ;;  %v539_v19 = vld [vmem:[%s788_s0 + $0x40] ss:$8 sps:$4 sm:$0xff]   ;;  %v544_v21 = vld [vmem:[%s788_s0 + $0x54] ss:$8 sps:$4 sm:$0xff]   ;;  %v547_v23 = vld [vmem:[%s788_s0 + $0x50] ss:$8 sps:$4 sm:$0xff]  }
   0x9   :  { %306 = vmatprep.mubr.bf16.mxu1 %v541_v12  ;;  %v548_v24 = vld [vmem:[%s788_s0 + $0x24] ss:$8 sps:$4 sm:$0xff]   ;;  %v552_v26 = vld [vmem:[%s788_s0 + $0x20] ss:$8 sps:$4 sm:$0xff]   ;;  %v554_v28 = vld [vmem:[%s788_s0 + $0x34] ss:$8 sps:$4 sm:$0xff]  }
   0xa   :  { %v550_v25 = vld [vmem:[%s788_s0 + $0x64] ss:$8 sps:$4 sm:$0xff]   ;;  %v553_v27 = vld [vmem:[%s788_s0 + $0x60] ss:$8 sps:$4 sm:$0xff]   ;;  %v556_v29 = vld [vmem:[%s788_s0 + $0x74] ss:$8 sps:$4 sm:$0xff]  }
   0xb   :  { %445 = vmatpush3.bf16.msra.mxu0 %v525_v5  ;;  %514 = vmatpush3.bf16.msra.mxu1 %v525_v5  ;;  %v558_v30 = vld [vmem:[%s788_s0 + $0x30] ss:$8 sps:$4 sm:$0xff]   ;;  %v684_v35 = vld [vmem:[%s789_s2] ss:$0 sm:$0xff] }
   0xc   :  { %446 = vmatprep.subr.bf16.mxu0 %v526_v6  ;;  %507 = vmatprep.subr.bf16.mxu1 %v526_v6  ;;  %v559_v31 = vld [vmem:[%s788_s0 + $0x70] ss:$8 sps:$4 sm:$0xff]   ;;  %v689_v41 = vld [vmem:[%s790_s3] ss:$0 sm:$0xff] }
   0xf   :  { %447 = vmatpush3.bf16.msra.mxu0 %v527_v7  ;;  %515 = vmatpush3.bf16.msra.mxu1 %v527_v7 }
  0x10   :  { %448 = vmatprep.subr.bf16.mxu0 %v528_v8  ;;  %508 = vmatprep.subr.bf16.mxu1 %v528_v8 }
  0x13   :  { %449 = vmatpush3.bf16.msra.mxu0 %v529_v9  ;;  %516 = vmatpush3.bf16.msra.mxu1 %v529_v9 }
  0x14   :  { %450 = vmatprep.subr.bf16.mxu0 %v530_v10  ;;  %509 = vmatprep.subr.bf16.mxu1 %v530_v10 }
  0x17   :  { %451 = vmatpush3.bf16.msra.mxu0 %v531_v13  ;;  %517 = vmatpush3.bf16.msra.mxu1 %v531_v13 }
  0x18   :  { %452 = vmatprep.subr.bf16.mxu0 %v532_v14  ;;  %510 = vmatprep.subr.bf16.mxu1 %v532_v14 }
  0x1b   :  { %453 = vmatpush3.bf16.msra.mxu0 %v533_v15  ;;  %518 = vmatpush3.bf16.msra.mxu1 %v533_v15 }
  0x1c   :  { %454 = vmatprep.subr.bf16.mxu0 %v534_v16  ;;  %511 = vmatprep.subr.bf16.mxu1 %v534_v16 }
  0x1f   :  { %455 = vmatpush3.bf16.msra.mxu0 %v535_v17  ;;  %519 = vmatpush3.bf16.msra.mxu1 %v535_v17 }
  0x22   :  { %275 = vmatmul.mubr.bf16.vlgmr.msra.gmra.mrb[0].mxu0 %v536_v18  ;;  %307 = vmatmul.mubr.bf16.vlgmr.msra.gmra.mrb[0].mxu1 %v539_v19 }
  0x23   :  { %282 = vmatprep.mubr.bf16.mxu0 %v542_v20  ;;  %314 = vmatprep.mubr.bf16.mxu1 %v544_v21 }
  0x2a   :  { %283 = vmatmul.mubr.bf16.gmra.mrb[4].mxu0 %v546_v22  ;;  %315 = vmatmul.mubr.bf16.gmra.mrb[4].mxu1 %v547_v23 }
  0x2b   :  { %290 = vmatprep.mubr.bf16.mxu0 %v548_v24  ;;  %322 = vmatprep.mubr.bf16.mxu1 %v550_v25 }
  0x32   :  { %291 = vmatmul.mubr.bf16.gmra.mrb[8].mxu0 %v552_v26  ;;  %323 = vmatmul.mubr.bf16.gmra.mrb[8].mxu1 %v553_v27 }
  0x33   :  { %298 = vmatprep.mubr.bf16.mxu0 %v554_v28  ;;  %330 = vmatprep.mubr.bf16.mxu1 %v556_v29 }
  0x3a   :  { %299 = vmatmul.mubr.bf16.gmra.mrb[12].mxu0 %v558_v30  ;;  %331 = vmatmul.mubr.bf16.gmra.mrb[12].mxu1 %v559_v31 }
  0xf5   :  { %v456_v32 = vpop.f32.mrb[0].mxu0  ;;  %v480_v33 = vpop.f32.mrb[0].mxu1 }
  0xf6   :  { %v457_v34 = vpop.f32.mrb[1].mxu0  ;;  %v481_v36 = vpop.f32.mrb[1].mxu1 }
  0xf7   :  { %v458_v37 = vadd.f32 %v457_v34, %v456_v32  ;;  %v482_v38 = vadd.f32 %v481_v36, %v480_v33  ;;  %v459_v39 = vpop.f32.mrb[2].mxu0  ;;  %v483_v40 = vpop.f32.mrb[2].mxu1 }
  0xf8   :  { %v460_v42 = vpop.f32.mrb[3].mxu0  ;;  %v484_v43 = vpop.f32.mrb[3].mxu1 }
  0xf9   :  { %v346_v44 = vmul.f32 %v458_v37, %v684_v35  ;;  %v354_v45 = vmul.f32 %v482_v38, %v684_v35  ;;  %v461_v46 = vadd.f32 %v460_v42, %v459_v39  ;;  %v485_v47 = vadd.f32 %v484_v43, %v483_v40 }
  0xfb   :  { %v369_v48 = vadd.f32 %v689_v41, %v346_v44  ;;  %v377_v49 = vadd.f32 %v689_v41, %v354_v45  ;;  %v347_v50 = vmul.f32 %v461_v46, %v684_v35  ;;  %v355_v51 = vmul.f32 %v485_v47, %v684_v35 }
  0xfd   :  { %386 = vst.msk [vmem:[%s791_s4] sm:$0xff] %vm385_vm0, %v369_v48  ;;  %394 = vst.msk [vmem:[%s791_s4 + $0x40] sm:$0xff] %vm385_vm0, %v377_v49  ;;  %v370_v52 = vadd.f32 %v689_v41, %v347_v50  ;;  %v378_v53 = vadd.f32 %v689_v41, %v355_v51  ;;  %v462_v54 = vpop.f32.mrb[4].mxu0  ;;  %v486_v55 = vpop.f32.mrb[4].mxu1 }
  0xfe   :  { %v463_v56 = vpop.f32.mrb[5].mxu0  ;;  %v487_v57 = vpop.f32.mrb[5].mxu1 }
  0xff   :  { %387 = vst.msk [vmem:[%s791_s4 + $0x8] sm:$0xff] %vm385_vm0, %v370_v52  ;;  %395 = vst.msk [vmem:[%s791_s4 + $0x48] sm:$0xff] %vm385_vm0, %v378_v53  ;;  %v464_v58 = vadd.f32 %v463_v56, %v462_v54  ;;  %v488_v59 = vadd.f32 %v487_v57, %v486_v55  ;;  %v465_v60 = vpop.f32.mrb[6].mxu0  ;;  %v489_v61 = vpop.f32.mrb[6].mxu1 }
 0x100   :  { %v466_v62 = vpop.f32.mrb[7].mxu0  ;;  %v490_v63 = vpop.f32.mrb[7].mxu1 }
 0x101   :  { %v348_v0 = vmul.f32 %v464_v58, %v684_v35  ;;  %v356_v1 = vmul.f32 %v488_v59, %v684_v35  ;;  %v467_v2 = vadd.f32 %v466_v62, %v465_v60  ;;  %v491_v3 = vadd.f32 %v490_v63, %v489_v61 }
 0x103   :  { %v371_v4 = vadd.f32 %v689_v41, %v348_v0  ;;  %v379_v5 = vadd.f32 %v689_v41, %v356_v1  ;;  %v349_v6 = vmul.f32 %v467_v2, %v684_v35  ;;  %v357_v7 = vmul.f32 %v491_v3, %v684_v35 }
 0x105   :  { %388 = vst.msk [vmem:[%s791_s4 + $0x10] sm:$0xff] %vm385_vm0, %v371_v4  ;;  %396 = vst.msk [vmem:[%s791_s4 + $0x50] sm:$0xff] %vm385_vm0, %v379_v5  ;;  %v372_v8 = vadd.f32 %v689_v41, %v349_v6  ;;  %v380_v9 = vadd.f32 %v689_v41, %v357_v7  ;;  %v468_v10 = vpop.f32.mrb[8].mxu0  ;;  %v492_v11 = vpop.f32.mrb[8].mxu1 }
 0x106   :  { %v469_v12 = vpop.f32.mrb[9].mxu0  ;;  %v493_v13 = vpop.f32.mrb[9].mxu1 }
 0x107   :  { %389 = vst.msk [vmem:[%s791_s4 + $0x18] sm:$0xff] %vm385_vm0, %v372_v8  ;;  %397 = vst.msk [vmem:[%s791_s4 + $0x58] sm:$0xff] %vm385_vm0, %v380_v9  ;;  %v470_v14 = vadd.f32 %v469_v12, %v468_v10  ;;  %v494_v15 = vadd.f32 %v493_v13, %v492_v11  ;;  %v471_v16 = vpop.f32.mrb[10].mxu0  ;;  %v495_v17 = vpop.f32.mrb[10].mxu1 }
 0x108   :  { %v472_v18 = vpop.f32.mrb[11].mxu0  ;;  %v496_v19 = vpop.f32.mrb[11].mxu1 }
 0x109   :  { %v350_v20 = vmul.f32 %v470_v14, %v684_v35  ;;  %v358_v21 = vmul.f32 %v494_v15, %v684_v35  ;;  %v473_v22 = vadd.f32 %v472_v18, %v471_v16  ;;  %v497_v23 = vadd.f32 %v496_v19, %v495_v17 }
 0x10b   :  { %v373_v24 = vadd.f32 %v689_v41, %v350_v20  ;;  %v381_v25 = vadd.f32 %v689_v41, %v358_v21  ;;  %v351_v26 = vmul.f32 %v473_v22, %v684_v35  ;;  %v359_v27 = vmul.f32 %v497_v23, %v684_v35 }
 0x10d   :  { %390 = vst.msk [vmem:[%s791_s4 + $0x20] sm:$0xff] %vm385_vm0, %v373_v24  ;;  %398 = vst.msk [vmem:[%s791_s4 + $0x60] sm:$0xff] %vm385_vm0, %v381_v25  ;;  %v374_v28 = vadd.f32 %v689_v41, %v351_v26  ;;  %v382_v29 = vadd.f32 %v689_v41, %v359_v27  ;;  %v474_v30 = vpop.f32.mrb[12].mxu0  ;;  %v498_v31 = vpop.f32.mrb[12].mxu1 }
 0x10e   :  { %v475_v32 = vpop.f32.mrb[13].mxu0  ;;  %v499_v33 = vpop.f32.mrb[13].mxu1 }
 0x10f   :  { %391 = vst.msk [vmem:[%s791_s4 + $0x28] sm:$0xff] %vm385_vm0, %v374_v28  ;;  %399 = vst.msk [vmem:[%s791_s4 + $0x68] sm:$0xff] %vm385_vm0, %v382_v29  ;;  %v476_v34 = vadd.f32 %v475_v32, %v474_v30  ;;  %v500_v36 = vadd.f32 %v499_v33, %v498_v31  ;;  %v477_v37 = vpop.f32.mrb[14].mxu0  ;;  %v501_v38 = vpop.f32.mrb[14].mxu1 }
 0x110   :  { %v478_v39 = vpop.f32.mrb[15].mxu0  ;;  %v502_v40 = vpop.f32.mrb[15].mxu1 }
 0x111   :  { %v352_v42 = vmul.f32 %v476_v34, %v684_v35  ;;  %v360_v43 = vmul.f32 %v500_v36, %v684_v35  ;;  %v479_v44 = vadd.f32 %v478_v39, %v477_v37  ;;  %v503_v45 = vadd.f32 %v502_v40, %v501_v38 }
 0x113   :  { %v375_v46 = vadd.f32 %v689_v41, %v352_v42  ;;  %v383_v47 = vadd.f32 %v689_v41, %v360_v43  ;;  %v353_v48 = vmul.f32 %v479_v44, %v684_v35  ;;  %v361_v49 = vmul.f32 %v503_v45, %v684_v35 }
 0x115   :  { %392 = vst.msk [vmem:[%s791_s4 + $0x30] sm:$0xff] %vm385_vm0, %v375_v46  ;;  %400 = vst.msk [vmem:[%s791_s4 + $0x70] sm:$0xff] %vm385_vm0, %v383_v47  ;;  %v376_v50 = vadd.f32 %v689_v41, %v353_v48  ;;  %v384_v51 = vadd.f32 %v689_v41, %v361_v49 }
 0x117   :  { %393 = vst.msk [vmem:[%s791_s4 + $0x38] sm:$0xff] %vm385_vm0, %v376_v50  ;;  %401 = vst.msk [vmem:[%s791_s4 + $0x78] sm:$0xff] %vm385_vm0, %v384_v51 }

// kernel: _forward_jit.207
= control target key start
LH: loop header
LB: loop body
LE: loop exit
PB: predicated region body
PF: predicated region fallthrough
CT: control target
= control target key end

     0   :  { %vm314_vm0 = vcmask 261120   ;;  %vm595_vm1 = vcmask 523264   ;;  %s1105_s1 = inlined_call_operand.vmem [shape: bf16[288,64], index: 1, kind: input, shape index: {}]   ;;  %s1106_s0 = inlined_call_operand.vmem [shape: bf16[128,288], index: 0, kind: input, shape index: {}]   ;;  %s1107_s2 = inlined_call_operand.vmem [shape: f32[1,64], index: 2, kind: input, shape index: {}]   ;;  %s1108_s3 = inlined_call_operand.vmem [shape: f32[1,64], index: 3, kind: input, shape index: {}]   ;;  %s1109_s4 = inlined_call_operand.vmem [shape: f32[128,64], index: 4, kind: output, shape index: {}]  }
   0x1   :  { %v778_v0 = vld [vmem:[%s1105_s1 + $0x40] sm:$0xff]   ;;  %v780_v2 = vld [vmem:[%s1105_s1 + $0x48] sm:$0xff]   ;;  %v782_v4 = vld [vmem:[%s1105_s1 + $0x50] sm:$0xff]  }
   0x2   :  { %v779_v1 = vld [vmem:[%s1105_s1] sm:$0xff]   ;;  %668 = vmatprep.subr.bf16.mxu0 %v778_v0  ;;  %762 = vmatprep.subr.bf16.mxu1 %v778_v0  ;;  %v781_v3 = vld [vmem:[%s1105_s1 + $0x8] sm:$0xff]   ;;  %v783_v5 = vld [vmem:[%s1105_s1 + $0x10] sm:$0xff]  }
   0x3   :  { %669 = vmatpush3.bf16.msra.mxu0 %v779_v1  ;;  %770 = vmatpush3.bf16.msra.mxu1 %v779_v1  ;;  %v784_v6 = vld [vmem:[%s1105_s1 + $0x58] sm:$0xff]   ;;  %v786_v8 = vld [vmem:[%s1105_s1 + $0x60] sm:$0xff]   ;;  %v788_v10 = vld [vmem:[%s1105_s1 + $0x68] sm:$0xff]  }
   0x4   :  { %670 = vmatprep.subr.bf16.mxu0 %v780_v2  ;;  %763 = vmatprep.subr.bf16.mxu1 %v780_v2  ;;  %v785_v7 = vld [vmem:[%s1105_s1 + $0x18] sm:$0xff]   ;;  %v787_v9 = vld [vmem:[%s1105_s1 + $0x20] sm:$0xff]   ;;  %v789_v13 = vld [vmem:[%s1105_s1 + $0x28] sm:$0xff]  }
   0x5   :  { %v796_v11 = vld [vmem:[%s1106_s0 + $0x4] ss:$12 sps:$4 sm:$0xff]   ;;  %v799_v12 = vld [vmem:[%s1106_s0 + $0x94] ss:$12 sps:$4 sm:$0xff]   ;;  %v792_v16 = vld [vmem:[%s1105_s1 + $0x78] sm:$0xff]  }
   0x6   :  { %v790_v14 = vld [vmem:[%s1105_s1 + $0x70] sm:$0xff]   ;;  %371 = vmatprep.mubr.bf16.mxu0 %v796_v11  ;;  %419 = vmatprep.mubr.bf16.mxu1 %v799_v12  ;;  %v793_v17 = vld [vmem:[%s1105_s1 + $0x38] sm:$0xff]   ;;  %v794_v18 = vld [vmem:[%s1106_s0] ss:$12 sps:$4 sm:$0xff]  }
   0x7   :  { %671 = vmatpush3.bf16.msra.mxu0 %v781_v3  ;;  %771 = vmatpush3.bf16.msra.mxu1 %v781_v3  ;;  %v791_v15 = vld [vmem:[%s1105_s1 + $0x30] sm:$0xff]   ;;  %v800_v19 = vld [vmem:[%s1105_s1 + $0x80] sm:$0xff]   ;;  %v801_v21 = vld [vmem:[%s1106_s0 + $0x1c] ss:$12 sps:$4 sm:$0xff]  }
   0x8   :  { %672 = vmatprep.subr.bf16.mxu0 %v782_v4  ;;  %764 = vmatprep.subr.bf16.mxu1 %v782_v4  ;;  %v797_v20 = vld [vmem:[%s1106_s0 + $0x90] ss:$12 sps:$4 sm:$0xff]   ;;  %v803_v22 = vld [vmem:[%s1106_s0 + $0xac] ss:$12 sps:$4 sm:$0xff]   ;;  %v806_v25 = vld [vmem:[%s1106_s0 + $0xa8] ss:$12 sps:$4 sm:$0xff]  }
   0x9   :  { %v807_v23 = vld [vmem:[%s1105_s1 + $0x88] sm:$0xff]   ;;  %v805_v24 = vld [vmem:[%s1106_s0 + $0x18] ss:$12 sps:$4 sm:$0xff]   ;;  %v808_v26 = vld [vmem:[%s1106_s0 + $0x34] ss:$12 sps:$4 sm:$0xff]  }
   0xa   :  { %v810_v27 = vld [vmem:[%s1106_s0 + $0x8] ss:$12 sps:$4 sm:$0xff]   ;;  %v811_v28 = vld [vmem:[%s1106_s0 + $0x30] ss:$12 sps:$4 sm:$0xff]   ;;  %v812_v29 = vld [vmem:[%s1106_s0 + $0x20] ss:$12 sps:$4 sm:$0xff]  }
   0xb   :  { %673 = vmatpush3.bf16.msra.mxu0 %v783_v5  ;;  %772 = vmatpush3.bf16.msra.mxu1 %v783_v5  ;;  %v813_v30 = vld [vmem:[%s1106_s0 + $0x4c] ss:$12 sps:$4 sm:$0xff]   ;;  %v816_v32 = vld [vmem:[%s1106_s0 + $0x48] ss:$12 sps:$4 sm:$0xff]   ;;  %v817_v33 = vld [vmem:[%s1106_s0 + $0x50] ss:$12 sps:$4 sm:$0xff]  }
   0xc   :  { %674 = vmatprep.subr.bf16.mxu0 %v784_v6  ;;  %765 = vmatprep.subr.bf16.mxu1 %v784_v6  ;;  %v815_v31 = vld [vmem:[%s1106_s0 + $0x38] ss:$12 sps:$4 sm:$0xff]   ;;  %v820_v35 = vld [vmem:[%s1106_s0 + $0x68] ss:$12 sps:$4 sm:$0xff]   ;;  %v821_v36 = vld [vmem:[%s1106_s0 + $0x60] ss:$12 sps:$4 sm:$0xff]  }
   0xd   :  { %v818_v34 = vld [vmem:[%s1106_s0 + $0x64] ss:$12 sps:$4 sm:$0xff]   ;;  %v822_v37 = vld [vmem:[%s1106_s0 + $0x80] ss:$12 sps:$4 sm:$0xff]   ;;  %v823_v38 = vld [vmem:[%s1106_s0 + $0x7c] ss:$12 sps:$4 sm:$0xff]  }
   0xe   :  { %v825_v39 = vld [vmem:[%s1106_s0 + $0x98] ss:$12 sps:$4 sm:$0xff]   ;;  %v827_v41 = vld [vmem:[%s1106_s0 + $0xb0] ss:$12 sps:$4 sm:$0xff]   ;;  %v998_v4 = vld [vmem:[%s1107_s2] ss:$0 sm:$0xff] }
   0xf   :  { %675 = vmatpush3.bf16.msra.mxu0 %v785_v7  ;;  %773 = vmatpush3.bf16.msra.mxu1 %v785_v7  ;;  %v826_v40 = vld [vmem:[%s1106_s0 + $0x78] ss:$12 sps:$4 sm:$0xff]  }
  0x10   :  { %676 = vmatprep.subr.bf16.mxu0 %v786_v8  ;;  %766 = vmatprep.subr.bf16.mxu1 %v786_v8  ;;  %v1003_v8 = vld [vmem:[%s1108_s3] ss:$0 sm:$0xff] }
  0x13   :  { %677 = vmatpush3.bf16.msra.mxu0 %v787_v9  ;;  %774 = vmatpush3.bf16.msra.mxu1 %v787_v9 }
  0x14   :  { %678 = vmatprep.subr.bf16.mxu0 %v788_v10  ;;  %767 = vmatprep.subr.bf16.mxu1 %v788_v10 }
  0x17   :  { %679 = vmatpush3.bf16.msra.mxu0 %v789_v13  ;;  %775 = vmatpush3.bf16.msra.mxu1 %v789_v13 }
  0x18   :  { %680 = vmatprep.subr.bf16.mxu0 %v790_v14  ;;  %768 = vmatprep.subr.bf16.mxu1 %v790_v14 }
  0x1b   :  { %681 = vmatpush3.bf16.msra.mxu0 %v791_v15  ;;  %776 = vmatpush3.bf16.msra.mxu1 %v791_v15 }
  0x1c   :  { %682 = vmatprep.subr.bf16.mxu0 %v792_v16  ;;  %769 = vmatprep.subr.bf16.mxu1 %v792_v16 }
  0x1f   :  { %683 = vmatpush3.bf16.msra.mxu0 %v793_v17  ;;  %777 = vmatpush3.bf16.msra.mxu1 %v793_v17 }
  0x20   :  { %742 = vmatprep.subr.bf16.mxu1 %v800_v19 }
  0x22   :  { %372 = vmatmul.mubr.bf16.vlgmr.msra.gmra.mrb[0].mxu0 %v794_v18  ;;  %420 = vmatmul.mubr.bf16.vlgmr.msra.gmra.mrb[0].mxu1 %v797_v20 }
  0x23   :  { %743 = vmatpush3.bf16.msra.mxu1 %v800_v19  ;;  %379 = vmatprep.mubr.bf16.mxu0 %v801_v21 }
  0x24   :  { %427 = vmatprep.mubr.bf16.mxu1 %v803_v22  ;;  %744 = vmatprep.subr.bf16.mxu1 %v807_v23 }
  0x27   :  { %745 = vmatpush3.bf16.msra.mxu1 %v807_v23 }
  0x2a   :  { %380 = vmatmul.mubr.bf16.gmra.mrb[4].mxu0 %v805_v24  ;;  %428 = vmatmul.mubr.bf16.gmra.mrb[4].mxu1 %v806_v25 }
  0x2b   :  { %387 = vmatprep.mubr.bf16.mxu0 %v808_v26  ;;  %746 = vmatprep.mubr.msk.bf16.mxu1 %vm314_vm0, %v810_v27 }
  0x32   :  { %388 = vmatmul.mubr.bf16.gmra.mrb[8].mxu0 %v811_v28  ;;  %747 = vmatmul.mubr.msk.bf16.vlgmr.msra.gmra.mrb[8].mxu1 %vm314_vm0, %v812_v29 }
  0x33   :  { %395 = vmatprep.mubr.bf16.mxu0 %v813_v30  ;;  %750 = vmatprep.mubr.msk.bf16.mxu1 %vm314_vm0, %v815_v31 }
  0x3a   :  { %396 = vmatmul.mubr.bf16.gmra.mrb[12].mxu0 %v816_v32  ;;  %751 = vmatmul.mubr.msk.bf16.gmra.mrb[12].mxu1 %vm314_vm0, %v817_v33 }
  0x3b   :  { %403 = vmatprep.mubr.bf16.mxu0 %v818_v34  ;;  %754 = vmatprep.mubr.msk.bf16.mxu1 %vm314_vm0, %v820_v35 }
  0x42   :  { %404 = vmatmul.mubr.bf16.gmra.mrb[16].mxu0 %v821_v36  ;;  %755 = vmatmul.mubr.msk.bf16.gmra.mrb[16].mxu1 %vm314_vm0, %v822_v37 }
  0x43   :  { %411 = vmatprep.mubr.bf16.mxu0 %v823_v38  ;;  %758 = vmatprep.mubr.msk.bf16.mxu1 %vm314_vm0, %v825_v39 }
  0x4a   :  { %412 = vmatmul.mubr.bf16.gmra.mrb[20].mxu0 %v826_v40  ;;  %759 = vmatmul.mubr.msk.bf16.gmra.mrb[20].mxu1 %vm314_vm0, %v827_v41 }
  0xf5   :  { %v684_v42 = vpop.f32.mrb[0].mxu0  ;;  %v720_v43 = vpop.f32.mrb[0].mxu1 }
  0xf6   :  { %v685_v44 = vpop.f32.mrb[1].mxu0  ;;  %v721_v45 = vpop.f32.mrb[1].mxu1 }
  0xf7   :  { %v686_v46 = vadd.f32 %v685_v44, %v684_v42  ;;  %v987_v47 = vadd.f32 %v721_v45, %v720_v43  ;;  %v687_v48 = vpop.f32.mrb[2].mxu0  ;;  %v723_v49 = vpop.f32.mrb[2].mxu1 }
  0xf8   :  { %v688_v50 = vpop.f32.mrb[3].mxu0  ;;  %v724_v51 = vpop.f32.mrb[3].mxu1 }
  0xf9   :  { %v689_v52 = vadd.f32 %v688_v50, %v687_v48  ;;  %v989_v53 = vadd.f32 %v724_v51, %v723_v49 }
  0xfd   :  { %v690_v54 = vpop.f32.mrb[4].mxu0  ;;  %v726_v55 = vpop.f32.mrb[4].mxu1 }
  0xfe   :  { %v691_v56 = vpop.f32.mrb[5].mxu0  ;;  %v727_v57 = vpop.f32.mrb[5].mxu1 }
  0xff   :  { %v692_v58 = vadd.f32 %v691_v56, %v690_v54  ;;  %v991_v59 = vadd.f32 %v727_v57, %v726_v55  ;;  %v693_v60 = vpop.f32.mrb[6].mxu0  ;;  %v729_v61 = vpop.f32.mrb[6].mxu1 }
 0x100   :  { %v694_v62 = vpop.f32.mrb[7].mxu0  ;;  %v730_v63 = vpop.f32.mrb[7].mxu1 }
 0x101   :  { %v695_v0 = vadd.f32 %v694_v62, %v693_v60  ;;  %v993_v1 = vadd.f32 %v730_v63, %v729_v61 }
 0x105   :  { %v696_v2 = vpop.f32.mrb[8].mxu0  ;;  %v748_v3 = vpop.f32.mrb[8].mxu1 }
 0x106   :  { %v479_v5 = vadd.f32 %v748_v3, %v692_v58  ;;  %v697_v6 = vpop.f32.mrb[9].mxu0  ;;  %v470_v7 = vpop.f32.mrb[9].mxu1 }
 0x107   :  { %v698_v9 = vadd.f32 %v697_v6, %v696_v2  ;;  %v471_v10 = vadd.f32 %v686_v46, %v470_v7  ;;  %v699_v11 = vpop.f32.mrb[10].mxu0  ;;  %v749_v12 = vpop.f32.mrb[10].mxu1 }
 0x108   :  { %v542_v13 = vmul.f32 %v998_v4, %v479_v5  ;;  %v482_v14 = vadd.f32 %v749_v12, %v695_v0  ;;  %v700_v15 = vpop.f32.mrb[11].mxu0  ;;  %v473_v16 = vpop.f32.mrb[11].mxu1 }
 0x109   :  { %v540_v17 = vmul.f32 %v998_v4, %v471_v10  ;;  %v701_v18 = vadd.f32 %v700_v15, %v699_v11  ;;  %v474_v19 = vadd.f32 %v689_v52, %v473_v16 }
 0x10a   :  { %v565_v20 = vadd.f32 %v1003_v8, %v542_v13  ;;  %v543_v21 = vmul.f32 %v998_v4, %v482_v14 }
 0x10b   :  { %v563_v22 = vadd.f32 %v1003_v8, %v540_v17  ;;  %v541_v23 = vmul.f32 %v998_v4, %v474_v19 }
 0x10c   :  { %v581_v24 = vmax.f32 %v565_v20, 0.0  ;;  %v566_v25 = vadd.f32 %v1003_v8, %v543_v21 }
 0x10d   :  { %v579_v26 = vmax.f32 %v563_v22, 0.0  ;;  %v564_v27 = vadd.f32 %v1003_v8, %v541_v23  ;;  %v702_v28 = vpop.f32.mrb[12].mxu0  ;;  %v752_v29 = vpop.f32.mrb[12].mxu1 }
 0x10e   :  { %598 = vst.msk [vmem:[%s1109_s4 + $0x10] sm:$0xff] %vm595_vm1, %v581_v24  ;;  %v582_v30 = vmax.f32 %v566_v25, 0.0  ;;  %v703_v31 = vpop.f32.mrb[13].mxu0  ;;  %v486_v32 = vpop.f32.mrb[13].mxu1 }
 0x10f   :  { %596 = vst.msk [vmem:[%s1109_s4] sm:$0xff] %vm595_vm1, %v579_v26  ;;  %v580_v33 = vmax.f32 %v564_v27, 0.0  ;;  %v704_v34 = vadd.f32 %v703_v31, %v702_v28  ;;  %v487_v35 = vadd.f32 %v698_v9, %v486_v32  ;;  %v705_v36 = vpop.f32.mrb[14].mxu0  ;;  %v753_v37 = vpop.f32.mrb[14].mxu1 }
 0x110   :  { %599 = vst.msk [vmem:[%s1109_s4 + $0x18] sm:$0xff] %vm595_vm1, %v582_v30  ;;  %v706_v38 = vpop.f32.mrb[15].mxu0  ;;  %v489_v39 = vpop.f32.mrb[15].mxu1 }
 0x111   :  { %597 = vst.msk [vmem:[%s1109_s4 + $0x8] sm:$0xff] %vm595_vm1, %v580_v33  ;;  %v495_v40 = vadd.f32 %v752_v29, %v704_v34  ;;  %v544_v41 = vmul.f32 %v998_v4, %v487_v35  ;;  %v707_v42 = vadd.f32 %v706_v38, %v705_v36  ;;  %v490_v43 = vadd.f32 %v701_v18, %v489_v39 }
 0x113   :  { %v546_v44 = vmul.f32 %v998_v4, %v495_v40  ;;  %v567_v45 = vadd.f32 %v1003_v8, %v544_v41  ;;  %v498_v46 = vadd.f32 %v753_v37, %v707_v42  ;;  %v545_v48 = vmul.f32 %v998_v4, %v490_v43 }
 0x115   :  { %v569_v49 = vadd.f32 %v1003_v8, %v546_v44  ;;  %v583_v50 = vmax.f32 %v567_v45, 0.0  ;;  %v547_v51 = vmul.f32 %v998_v4, %v498_v46  ;;  %v568_v52 = vadd.f32 %v1003_v8, %v545_v48  ;;  %v708_v54 = vpop.f32.mrb[16].mxu0  ;;  %v756_v55 = vpop.f32.mrb[16].mxu1 }
 0x116   :  { %v709_v56 = vpop.f32.mrb[17].mxu0  ;;  %v502_v57 = vpop.f32.mrb[17].mxu1 }
 0x117   :  { %v585_v58 = vmax.f32 %v569_v49, 0.0  ;;  %600 = vst.msk [vmem:[%s1109_s4 + $0x20] sm:$0xff] %vm595_vm1, %v583_v50  ;;  %v570_v60 = vadd.f32 %v1003_v8, %v547_v51  ;;  %v584_v61 = vmax.f32 %v568_v52, 0.0  ;;  %v710_v62 = vadd.f32 %v709_v56, %v708_v54  ;;  %v711_v63 = vpop.f32.mrb[18].mxu0  ;;  %v757_v0 = vpop.f32.mrb[18].mxu1 }
 0x118   :  { %v712_v2 = vpop.f32.mrb[19].mxu0  ;;  %v505_v3 = vpop.f32.mrb[19].mxu1 }
 0x119   :  { %602 = vst.msk [vmem:[%s1109_s4 + $0x30] sm:$0xff] %vm595_vm1, %v585_v58  ;;  %v586_v5 = vmax.f32 %v570_v60, 0.0  ;;  %601 = vst.msk [vmem:[%s1109_s4 + $0x28] sm:$0xff] %vm595_vm1, %v584_v61  ;;  %v503_v6 = vadd.f32 %v710_v62, %v502_v57  ;;  %v713_v7 = vadd.f32 %v712_v2, %v711_v63 }
 0x11b   :  { %603 = vst.msk [vmem:[%s1109_s4 + $0x38] sm:$0xff] %vm595_vm1, %v586_v5  ;;  %v548_v9 = vmul.f32 %v998_v4, %v503_v6  ;;  %v506_v10 = vadd.f32 %v713_v7, %v505_v3 }
 0x11d   :  { %v571_v11 = vadd.f32 %v1003_v8, %v548_v9  ;;  %v549_v12 = vmul.f32 %v998_v4, %v506_v10  ;;  %v714_v13 = vpop.f32.mrb[20].mxu0  ;;  %v760_v14 = vpop.f32.mrb[20].mxu1 }
 0x11e   :  { %v527_v15 = vadd.f32 %v760_v14, %v991_v59  ;;  %v715_v16 = vpop.f32.mrb[21].mxu0  ;;  %v518_v17 = vpop.f32.mrb[21].mxu1 }
 0x11f   :  { %v587_v18 = vmax.f32 %v571_v11, 0.0  ;;  %v572_v19 = vadd.f32 %v1003_v8, %v549_v12  ;;  %v716_v20 = vadd.f32 %v715_v16, %v714_v13  ;;  %v519_v21 = vadd.f32 %v987_v47, %v518_v17  ;;  %v717_v22 = vpop.f32.mrb[22].mxu0  ;;  %v761_v23 = vpop.f32.mrb[22].mxu1 }
 0x120   :  { %v554_v24 = vmul.f32 %v998_v4, %v527_v15  ;;  %v530_v25 = vadd.f32 %v761_v23, %v993_v1  ;;  %v718_v26 = vpop.f32.mrb[23].mxu0  ;;  %v521_v27 = vpop.f32.mrb[23].mxu1 }
 0x121   :  { %604 = vst.msk [vmem:[%s1109_s4 + $0x40] sm:$0xff] %vm595_vm1, %v587_v18  ;;  %v588_v59 = vmax.f32 %v572_v19, 0.0  ;;  %v511_v28 = vadd.f32 %v756_v55, %v716_v20  ;;  %v552_v29 = vmul.f32 %v998_v4, %v519_v21  ;;  %v719_v30 = vadd.f32 %v718_v26, %v717_v22 }
 0x122   :  { %v577_v47 = vadd.f32 %v1003_v8, %v554_v24  ;;  %v555_v31 = vmul.f32 %v998_v4, %v530_v25  ;;  %v522_v32 = vadd.f32 %v989_v53, %v521_v27 }
 0x123   :  { %605 = vst.msk [vmem:[%s1109_s4 + $0x48] sm:$0xff] %vm595_vm1, %v588_v59  ;;  %v550_v1 = vmul.f32 %v998_v4, %v511_v28  ;;  %v575_v33 = vadd.f32 %v1003_v8, %v552_v29  ;;  %v514_v34 = vadd.f32 %v757_v0, %v719_v30 }
 0x124   :  { %v593_v35 = vmax.f32 %v577_v47, 0.0  ;;  %v578_v36 = vadd.f32 %v1003_v8, %v555_v31  ;;  %v553_v37 = vmul.f32 %v998_v4, %v522_v32 }
 0x125   :  { %v573_v38 = vadd.f32 %v1003_v8, %v550_v1  ;;  %v591_v39 = vmax.f32 %v575_v33, 0.0  ;;  %v551_v53 = vmul.f32 %v998_v4, %v514_v34 }
 0x126   :  { %610 = vst.msk [vmem:[%s1109_s4 + $0x70] sm:$0xff] %vm595_vm1, %v593_v35  ;;  %v594_v40 = vmax.f32 %v578_v36, 0.0  ;;  %v576_v41 = vadd.f32 %v1003_v8, %v553_v37 }
 0x127   :  { %v589_v42 = vmax.f32 %v573_v38, 0.0  ;;  %608 = vst.msk [vmem:[%s1109_s4 + $0x60] sm:$0xff] %vm595_vm1, %v591_v39  ;;  %v574_v43 = vadd.f32 %v1003_v8, %v551_v53 }
 0x128   :  { %611 = vst.msk [vmem:[%s1109_s4 + $0x78] sm:$0xff] %vm595_vm1, %v594_v40  ;;  %v592_v4 = vmax.f32 %v576_v41, 0.0 }
 0x129   :  { %606 = vst.msk [vmem:[%s1109_s4 + $0x50] sm:$0xff] %vm595_vm1, %v589_v42  ;;  %v590_v44 = vmax.f32 %v574_v43, 0.0 }
 0x12a   :  { %609 = vst.msk [vmem:[%s1109_s4 + $0x68] sm:$0xff] %vm595_vm1, %v592_v4 }
 0x12b   :  { %607 = vst.msk [vmem:[%s1109_s4 + $0x58] sm:$0xff] %vm595_vm1, %v590_v44 }

// kernel: _forward_jit.208
= control target key start
LH: loop header
LB: loop body
LE: loop exit
PB: predicated region body
PF: predicated region fallthrough
CT: control target
= control target key end

     0   :  { %vm554_vm0 = vcmask 523264   ;;  %s1686_s1 = inlined_call_operand.vmem [shape: bf16[576,64], index: 1, kind: input, shape index: {}]   ;;  %s1687_s0 = inlined_call_operand.vmem [shape: bf16[128,576], index: 0, kind: input, shape index: {}]   ;;  %s1688_s2 = inlined_call_operand.vmem [shape: f32[1,64], index: 2, kind: input, shape index: {}]   ;;  %s1689_s3 = inlined_call_operand.vmem [shape: f32[1,64], index: 3, kind: input, shape index: {}]   ;;  %s1690_s4 = inlined_call_operand.vmem [shape: f32[128,64], index: 4, kind: output, shape index: {}]  }
   0x1   :  { %v1194_v0 = vld [vmem:[%s1686_s1 + $0x40] sm:$0xff]   ;;  %v1198_v4 = vld [vmem:[%s1686_s1 + $0x48] sm:$0xff]   ;;  %v1202_v8 = vld [vmem:[%s1686_s1 + $0x50] sm:$0xff]  }
   0x2   :  { %v1195_v1 = vld [vmem:[%s1686_s1 + $0xc0] sm:$0xff]   ;;  %1022 = vmatprep.subr.bf16.mxu0 %v1194_v0  ;;  %v1199_v5 = vld [vmem:[%s1686_s1 + $0xc8] sm:$0xff]   ;;  %v1203_v9 = vld [vmem:[%s1686_s1 + $0xd0] sm:$0xff]  }
   0x3   :  { %v1196_v2 = vld [vmem:[%s1686_s1] sm:$0xff]   ;;  %1086 = vmatprep.subr.bf16.mxu1 %v1195_v1  ;;  %v1200_v6 = vld [vmem:[%s1686_s1 + $0x8] sm:$0xff]   ;;  %v1204_v10 = vld [vmem:[%s1686_s1 + $0x10] sm:$0xff]  }
   0x4   :  { %v1197_v3 = vld [vmem:[%s1686_s1 + $0x80] sm:$0xff]   ;;  %1023 = vmatpush3.bf16.msra.mxu0 %v1196_v2  ;;  %v1201_v7 = vld [vmem:[%s1686_s1 + $0x88] sm:$0xff]   ;;  %v1205_v11 = vld [vmem:[%s1686_s1 + $0x90] sm:$0xff]  }
   0x5   :  { %1087 = vmatpush3.bf16.msra.mxu1 %v1197_v3  ;;  %1024 = vmatprep.subr.bf16.mxu0 %v1198_v4  ;;  %v1206_v12 = vld [vmem:[%s1686_s1 + $0x58] sm:$0xff]   ;;  %v1210_v16 = vld [vmem:[%s1686_s1 + $0x60] sm:$0xff]   ;;  %v1214_v20 = vld [vmem:[%s1686_s1 + $0x68] sm:$0xff]  }
   0x6   :  { %1088 = vmatprep.subr.bf16.mxu1 %v1199_v5  ;;  %v1207_v13 = vld [vmem:[%s1686_s1 + $0xd8] sm:$0xff]   ;;  %v1211_v17 = vld [vmem:[%s1686_s1 + $0xe0] sm:$0xff]   ;;  %v1215_v21 = vld [vmem:[%s1686_s1 + $0xe8] sm:$0xff]  }
   0x7   :  { %v1208_v14 = vld [vmem:[%s1686_s1 + $0x18] sm:$0xff]   ;;  %v1212_v18 = vld [vmem:[%s1686_s1 + $0x20] sm:$0xff]   ;;  %v1216_v22 = vld [vmem:[%s1686_s1 + $0x28] sm:$0xff]  }
   0x8   :  { %1025 = vmatpush3.bf16.msra.mxu0 %v1200_v6  ;;  %v1209_v15 = vld [vmem:[%s1686_s1 + $0x98] sm:$0xff]   ;;  %v1213_v19 = vld [vmem:[%s1686_s1 + $0xa0] sm:$0xff]   ;;  %v1217_v23 = vld [vmem:[%s1686_s1 + $0xa8] sm:$0xff]  }
   0x9   :  { %1089 = vmatpush3.bf16.msra.mxu1 %v1201_v7  ;;  %1026 = vmatprep.subr.bf16.mxu0 %v1202_v8  ;;  %v1218_v24 = vld [vmem:[%s1686_s1 + $0x70] sm:$0xff]   ;;  %v1222_v28 = vld [vmem:[%s1686_s1 + $0x78] sm:$0xff]   ;;  %v1231_v35 = vld [vmem:[%s1687_s0 + $0xc] ss:$20 sps:$4 sm:$0xff]  }
   0xa   :  { %1090 = vmatprep.subr.bf16.mxu1 %v1203_v9  ;;  %v1219_v25 = vld [vmem:[%s1686_s1 + $0xf0] sm:$0xff]   ;;  %v1223_v29 = vld [vmem:[%s1686_s1 + $0xf8] sm:$0xff]   ;;  %v1232_v36 = vld [vmem:[%s1686_s1 + $0x100] sm:$0xff]   ;;  %708 = vmatprep.mubr.bf16.mxu1 %v1231_v35 }
   0xb   :  { %v1220_v26 = vld [vmem:[%s1686_s1 + $0x30] sm:$0xff]   ;;  %v1224_v30 = vld [vmem:[%s1686_s1 + $0x38] sm:$0xff]   ;;  %v1233_v37 = vld [vmem:[%s1687_s0 + $0x2c] ss:$20 sps:$4 sm:$0xff]  }
   0xc   :  { %1027 = vmatpush3.bf16.msra.mxu0 %v1204_v10  ;;  %v1221_v27 = vld [vmem:[%s1686_s1 + $0xb0] sm:$0xff]   ;;  %v1225_v31 = vld [vmem:[%s1686_s1 + $0xb8] sm:$0xff]   ;;  %v1245_v42 = vld [vmem:[%s1686_s1 + $0x108] sm:$0xff]  }
   0xd   :  { %1091 = vmatpush3.bf16.msra.mxu1 %v1205_v11  ;;  %1028 = vmatprep.subr.bf16.mxu0 %v1206_v12  ;;  %v1226_v32 = vld [vmem:[%s1687_s0] ss:$20 sps:$4 sm:$0xff]   ;;  %v1228_v33 = vld [vmem:[%s1687_s0 + $0x4] ss:$20 sps:$4 sm:$0xff]   ;;  %v1229_v34 = vld [vmem:[%s1687_s0 + $0x8] ss:$20 sps:$4 sm:$0xff]  }
   0xe   :  { %1092 = vmatprep.subr.bf16.mxu1 %v1207_v13  ;;  %611 = vmatprep.mubr.bf16.mxu0 %v1228_v33  ;;  %v1235_v38 = vld [vmem:[%s1687_s0 + $0x34] ss:$20 sps:$4 sm:$0xff]   ;;  %v1238_v40 = vld [vmem:[%s1687_s0 + $0x30] ss:$20 sps:$4 sm:$0xff]   ;;  %v1244_v45 = vld [vmem:[%s1687_s0 + $0x58] ss:$20 sps:$4 sm:$0xff]  }
   0xf   :  { %v1237_v39 = vld [vmem:[%s1687_s0 + $0x28] ss:$20 sps:$4 sm:$0xff]   ;;  %v1243_v44 = vld [vmem:[%s1687_s0 + $0x50] ss:$20 sps:$4 sm:$0xff]   ;;  %v1250_v50 = vld [vmem:[%s1687_s0 + $0x78] ss:$20 sps:$4 sm:$0xff]  }
  0x10   :  { %1029 = vmatpush3.bf16.msra.mxu0 %v1208_v14  ;;  %v1239_v41 = vld [vmem:[%s1687_s0 + $0x54] ss:$20 sps:$4 sm:$0xff]   ;;  %v1241_v43 = vld [vmem:[%s1687_s0 + $0x5c] ss:$20 sps:$4 sm:$0xff]   ;;  %v1248_v48 = vld [vmem:[%s1687_s0 + $0x84] ss:$20 sps:$4 sm:$0xff]  }
  0x11   :  { %1093 = vmatpush3.bf16.msra.mxu1 %v1209_v15  ;;  %1030 = vmatprep.subr.bf16.mxu0 %v1210_v16  ;;  %v1258_v46 = vld [vmem:[%s1686_s1 + $0x110] sm:$0xff]   ;;  %v1271_v49 = vld [vmem:[%s1686_s1 + $0x118] sm:$0xff]   ;;  %v1254_v53 = vld [vmem:[%s1687_s0 + $0xac] ss:$20 sps:$4 sm:$0xff]  }
  0x12   :  { %1094 = vmatprep.subr.bf16.mxu1 %v1211_v17  ;;  %v1246_v47 = vld [vmem:[%s1687_s0 + $0x7c] ss:$20 sps:$4 sm:$0xff]   ;;  %v1251_v51 = vld [vmem:[%s1687_s0 + $0x80] ss:$20 sps:$4 sm:$0xff]   ;;  %v1252_v52 = vld [vmem:[%s1687_s0 + $0xa4] ss:$20 sps:$4 sm:$0xff]  }
  0x13   :  { %v1256_v54 = vld [vmem:[%s1687_s0 + $0xa0] ss:$20 sps:$4 sm:$0xff]   ;;  %v1257_v55 = vld [vmem:[%s1687_s0 + $0xa8] ss:$20 sps:$4 sm:$0xff]   ;;  %v1264_v59 = vld [vmem:[%s1687_s0 + $0xd0] ss:$20 sps:$4 sm:$0xff]  }
  0x14   :  { %1031 = vmatpush3.bf16.msra.mxu0 %v1212_v18  ;;  %v1259_v56 = vld [vmem:[%s1687_s0 + $0xcc] ss:$20 sps:$4 sm:$0xff]   ;;  %v1261_v57 = vld [vmem:[%s1687_s0 + $0xd4] ss:$20 sps:$4 sm:$0xff]   ;;  %v1267_v61 = vld [vmem:[%s1687_s0 + $0xfc] ss:$20 sps:$4 sm:$0xff]  }
  0x15   :  { %1095 = vmatpush3.bf16.msra.mxu1 %v1213_v19  ;;  %1032 = vmatprep.subr.bf16.mxu0 %v1214_v20  ;;  %v1263_v58 = vld [vmem:[%s1687_s0 + $0xc8] ss:$20 sps:$4 sm:$0xff]   ;;  %v1269_v62 = vld [vmem:[%s1687_s0 + $0xf0] ss:$20 sps:$4 sm:$0xff]   ;;  %v1270_v63 = vld [vmem:[%s1687_s0 + $0xf8] ss:$20 sps:$4 sm:$0xff]  }
  0x16   :  { %1096 = vmatprep.subr.bf16.mxu1 %v1215_v21  ;;  %v1265_v60 = vld [vmem:[%s1687_s0 + $0xf4] ss:$20 sps:$4 sm:$0xff]   ;;  %v1272_v0 = vld [vmem:[%s1687_s0 + $0x11c] ss:$20 sps:$4 sm:$0xff]   ;;  %v1274_v1 = vld [vmem:[%s1687_s0 + $0x124] ss:$20 sps:$4 sm:$0xff]  }
  0x17   :  { %v1276_v2 = vld [vmem:[%s1687_s0 + $0x118] ss:$20 sps:$4 sm:$0xff]   ;;  %v1277_v3 = vld [vmem:[%s1687_s0 + $0x120] ss:$20 sps:$4 sm:$0xff]   ;;  %v1278_v4 = vld [vmem:[%s1687_s0 + $0x10] ss:$20 sps:$4 sm:$0xff]  }
  0x18   :  { %1033 = vmatpush3.bf16.msra.mxu0 %v1216_v22  ;;  %v1279_v5 = vld [vmem:[%s1687_s0 + $0xb0] ss:$20 sps:$4 sm:$0xff]   ;;  %v1280_v6 = vld [vmem:[%s1687_s0 + $0x38] ss:$20 sps:$4 sm:$0xff]   ;;  %v1282_v8 = vld [vmem:[%s1687_s0 + $0x60] ss:$20 sps:$4 sm:$0xff]  }
  0x19   :  { %1097 = vmatpush3.bf16.msra.mxu1 %v1217_v23  ;;  %1034 = vmatprep.subr.bf16.mxu0 %v1218_v24  ;;  %v1281_v7 = vld [vmem:[%s1687_s0 + $0xd8] ss:$20 sps:$4 sm:$0xff]   ;;  %v1283_v9 = vld [vmem:[%s1687_s0 + $0x100] ss:$20 sps:$4 sm:$0xff]   ;;  %v1284_v10 = vld [vmem:[%s1687_s0 + $0x88] ss:$20 sps:$4 sm:$0xff]  }
  0x1a   :  { %1098 = vmatprep.subr.bf16.mxu1 %v1219_v25  ;;  %v1285_v11 = vld [vmem:[%s1687_s0 + $0x128] ss:$20 sps:$4 sm:$0xff]  }
  0x1c   :  { %1035 = vmatpush3.bf16.msra.mxu0 %v1220_v26 }
  0x1d   :  { %1099 = vmatpush3.bf16.msra.mxu1 %v1221_v27  ;;  %1036 = vmatprep.subr.bf16.mxu0 %v1222_v28 }
  0x1e   :  { %1100 = vmatprep.subr.bf16.mxu1 %v1223_v29 }
  0x20   :  { %1037 = vmatpush3.bf16.msra.mxu0 %v1224_v30 }
  0x21   :  { %1101 = vmatpush3.bf16.msra.mxu1 %v1225_v31  ;;  %1162 = vmatprep.subr.bf16.mxu0 %v1232_v36 }
  0x22   :  { %1186 = vmatprep.subr.bf16.mxu1 %v1232_v36 }
  0x23   :  { %612 = vmatmul.mubr.bf16.vlgmr.msra.gmra.mrb[0].mxu0 %v1226_v32 }
  0x24   :  { %709 = vmatmul.mubr.bf16.vlgmr.msra.gmra.mrb[0].mxu1 %v1229_v34  ;;  %1163 = vmatpush3.bf16.msra.mxu0 %v1232_v36 }
  0x25   :  { %1190 = vmatpush3.bf16.msra.mxu1 %v1232_v36  ;;  %619 = vmatprep.mubr.bf16.mxu0 %v1233_v37 }
  0x26   :  { %716 = vmatprep.mubr.bf16.mxu1 %v1235_v38  ;;  %1164 = vmatprep.subr.bf16.mxu0 %v1245_v42 }
  0x27   :  { %1187 = vmatprep.subr.bf16.mxu1 %v1245_v42 }
  0x28   :  { %1165 = vmatpush3.bf16.msra.mxu0 %v1245_v42 }
  0x29   :  { %1191 = vmatpush3.bf16.msra.mxu1 %v1245_v42  ;;  %1166 = vmatprep.subr.bf16.mxu0 %v1258_v46 }
  0x2a   :  { %1188 = vmatprep.subr.bf16.mxu1 %v1258_v46 }
  0x2b   :  { %620 = vmatmul.mubr.bf16.gmra.mrb[4].mxu0 %v1237_v39 }
  0x2c   :  { %717 = vmatmul.mubr.bf16.gmra.mrb[4].mxu1 %v1238_v40  ;;  %627 = vmatprep.mubr.bf16.mxu0 %v1239_v41 }
  0x2d   :  { %724 = vmatprep.mubr.bf16.mxu1 %v1241_v43  ;;  %1167 = vmatpush3.bf16.msra.mxu0 %v1258_v46 }
  0x2e   :  { %1192 = vmatpush3.bf16.msra.mxu1 %v1258_v46  ;;  %1168 = vmatprep.subr.bf16.mxu0 %v1271_v49 }
  0x2f   :  { %1189 = vmatprep.subr.bf16.mxu1 %v1271_v49 }
  0x31   :  { %1169 = vmatpush3.bf16.msra.mxu0 %v1271_v49 }
  0x32   :  { %1193 = vmatpush3.bf16.msra.mxu1 %v1271_v49 }
  0x33   :  { %628 = vmatmul.mubr.bf16.gmra.mrb[8].mxu0 %v1243_v44 }
  0x34   :  { %725 = vmatmul.mubr.bf16.gmra.mrb[8].mxu1 %v1244_v45  ;;  %635 = vmatprep.mubr.bf16.mxu0 %v1246_v47 }
  0x35   :  { %732 = vmatprep.mubr.bf16.mxu1 %v1248_v48 }
  0x3b   :  { %636 = vmatmul.mubr.bf16.gmra.mrb[12].mxu0 %v1250_v50 }
  0x3c   :  { %733 = vmatmul.mubr.bf16.gmra.mrb[12].mxu1 %v1251_v51  ;;  %643 = vmatprep.mubr.bf16.mxu0 %v1252_v52 }
  0x3d   :  { %740 = vmatprep.mubr.bf16.mxu1 %v1254_v53 }
  0x43   :  { %644 = vmatmul.mubr.bf16.gmra.mrb[16].mxu0 %v1256_v54 }
  0x44   :  { %741 = vmatmul.mubr.bf16.gmra.mrb[16].mxu1 %v1257_v55  ;;  %651 = vmatprep.mubr.bf16.mxu0 %v1259_v56 }
  0x45   :  { %748 = vmatprep.mubr.bf16.mxu1 %v1261_v57 }
  0x4b   :  { %652 = vmatmul.mubr.bf16.gmra.mrb[20].mxu0 %v1263_v58 }
  0x4c   :  { %749 = vmatmul.mubr.bf16.gmra.mrb[20].mxu1 %v1264_v59  ;;  %659 = vmatprep.mubr.bf16.mxu0 %v1265_v60 }
  0x4d   :  { %756 = vmatprep.mubr.bf16.mxu1 %v1267_v61 }
  0x53   :  { %660 = vmatmul.mubr.bf16.gmra.mrb[24].mxu0 %v1269_v62 }
  0x54   :  { %757 = vmatmul.mubr.bf16.gmra.mrb[24].mxu1 %v1270_v63  ;;  %667 = vmatprep.mubr.bf16.mxu0 %v1272_v0 }
  0x55   :  { %764 = vmatprep.mubr.bf16.mxu1 %v1274_v1 }
  0x5b   :  { %668 = vmatmul.mubr.bf16.gmra.mrb[28].mxu0 %v1276_v2 }
  0x5c   :  { %765 = vmatmul.mubr.bf16.gmra.mrb[28].mxu1 %v1277_v3  ;;  %1170 = vmatprep.mubr.msk.bf16.mxu0 %vm554_vm0, %v1278_v4 }
  0x5d   :  { %1178 = vmatprep.mubr.msk.bf16.mxu1 %vm554_vm0, %v1279_v5 }
  0x63   :  { %1171 = vmatmul.mubr.msk.bf16.vlgmr.msra.gmra.mrb[32].mxu0 %vm554_vm0, %v1280_v6 }
  0x64   :  { %1179 = vmatmul.mubr.msk.bf16.vlgmr.msra.gmra.mrb[32].mxu1 %vm554_vm0, %v1281_v7  ;;  %1174 = vmatprep.mubr.msk.bf16.mxu0 %vm554_vm0, %v1282_v8 }
  0x65   :  { %1182 = vmatprep.mubr.msk.bf16.mxu1 %vm554_vm0, %v1283_v9 }
  0x6b   :  { %1175 = vmatmul.mubr.msk.bf16.gmra.mrb[36].mxu0 %vm554_vm0, %v1284_v10 }
  0x6c   :  { %1183 = vmatmul.mubr.msk.bf16.gmra.mrb[36].mxu1 %vm554_vm0, %v1285_v11 }
  0xf6   :  { %v1038_v12 = vpop.f32.mrb[0].mxu0 }
  0xf7   :  { %v1102_v13 = vpop.f32.mrb[0].mxu1  ;;  %v1039_v14 = vpop.f32.mrb[1].mxu0 }
  0xf8   :  { %v1040_v15 = vadd.f32 %v1039_v14, %v1038_v12  ;;  %v1103_v16 = vpop.f32.mrb[1].mxu1  ;;  %v1041_v17 = vpop.f32.mrb[2].mxu0 }
  0xf9   :  { %v1104_v18 = vadd.f32 %v1103_v16, %v1102_v13  ;;  %v1105_v19 = vpop.f32.mrb[2].mxu1  ;;  %v1042_v20 = vpop.f32.mrb[3].mxu0 }
  0xfa   :  { %v1043_v21 = vadd.f32 %v1042_v20, %v1041_v17  ;;  %v1106_v22 = vpop.f32.mrb[3].mxu1 }
  0xfb   :  { %v1107_v23 = vadd.f32 %v1106_v22, %v1105_v19  ;;  %v1547_v24 = vadd.f32 %v1104_v18, %v1040_v15 }
  0xfd   :  { %v1549_v25 = vadd.f32 %v1107_v23, %v1043_v21 }
  0xfe   :  { %v1044_v26 = vpop.f32.mrb[4].mxu0 }
  0xff   :  { %v1108_v27 = vpop.f32.mrb[4].mxu1  ;;  %v1045_v28 = vpop.f32.mrb[5].mxu0 }
 0x100   :  { %v1046_v29 = vadd.f32 %v1045_v28, %v1044_v26  ;;  %v1109_v30 = vpop.f32.mrb[5].mxu1  ;;  %v1047_v31 = vpop.f32.mrb[6].mxu0 }
 0x101   :  { %v1110_v32 = vadd.f32 %v1109_v30, %v1108_v27  ;;  %v1111_v33 = vpop.f32.mrb[6].mxu1  ;;  %v1048_v34 = vpop.f32.mrb[7].mxu0 }
 0x102   :  { %v1049_v35 = vadd.f32 %v1048_v34, %v1047_v31  ;;  %v1112_v36 = vpop.f32.mrb[7].mxu1 }
 0x103   :  { %v1113_v37 = vadd.f32 %v1112_v36, %v1111_v33  ;;  %v1551_v38 = vadd.f32 %v1110_v32, %v1046_v29 }
 0x105   :  { %v1553_v39 = vadd.f32 %v1113_v37, %v1049_v35 }
 0x106   :  { %v1050_v40 = vpop.f32.mrb[8].mxu0 }
 0x107   :  { %v1114_v41 = vpop.f32.mrb[8].mxu1  ;;  %v1051_v42 = vpop.f32.mrb[9].mxu0 }
 0x108   :  { %v1052_v43 = vadd.f32 %v1051_v42, %v1050_v40  ;;  %v1115_v44 = vpop.f32.mrb[9].mxu1  ;;  %v1053_v45 = vpop.f32.mrb[10].mxu0 }
 0x109   :  { %v1116_v46 = vadd.f32 %v1115_v44, %v1114_v41  ;;  %v1117_v47 = vpop.f32.mrb[10].mxu1  ;;  %v1054_v48 = vpop.f32.mrb[11].mxu0 }
 0x10a   :  { %v1055_v49 = vadd.f32 %v1054_v48, %v1053_v45  ;;  %v1118_v50 = vpop.f32.mrb[11].mxu1 }
 0x10b   :  { %v1119_v51 = vadd.f32 %v1118_v50, %v1117_v47  ;;  %v1555_v52 = vadd.f32 %v1116_v46, %v1052_v43 }
 0x10d   :  { %v1557_v53 = vadd.f32 %v1119_v51, %v1055_v49 }
 0x10e   :  { %v1056_v54 = vpop.f32.mrb[12].mxu0 }
 0x10f   :  { %v1120_v55 = vpop.f32.mrb[12].mxu1  ;;  %v1057_v56 = vpop.f32.mrb[13].mxu0 }
 0x110   :  { %v1058_v57 = vadd.f32 %v1057_v56, %v1056_v54  ;;  %v1121_v58 = vpop.f32.mrb[13].mxu1  ;;  %v1059_v59 = vpop.f32.mrb[14].mxu0 }
 0x111   :  { %v1122_v60 = vadd.f32 %v1121_v58, %v1120_v55  ;;  %v1123_v61 = vpop.f32.mrb[14].mxu1  ;;  %v1060_v62 = vpop.f32.mrb[15].mxu0 }
 0x112   :  { %v1061_v63 = vadd.f32 %v1060_v62, %v1059_v59  ;;  %v1124_v0 = vpop.f32.mrb[15].mxu1 }
 0x113   :  { %v1125_v1 = vadd.f32 %v1124_v0, %v1123_v61  ;;  %v1559_v2 = vadd.f32 %v1122_v60, %v1058_v57 }
 0x115   :  { %v1561_v3 = vadd.f32 %v1125_v1, %v1061_v63 }
 0x116   :  { %v1062_v4 = vpop.f32.mrb[16].mxu0 }
 0x117   :  { %v1126_v5 = vpop.f32.mrb[16].mxu1  ;;  %v1063_v6 = vpop.f32.mrb[17].mxu0 }
 0x118   :  { %v1064_v7 = vadd.f32 %v1063_v6, %v1062_v4  ;;  %v1127_v8 = vpop.f32.mrb[17].mxu1  ;;  %v1065_v9 = vpop.f32.mrb[18].mxu0 }
 0x119   :  { %v1128_v10 = vadd.f32 %v1127_v8, %v1126_v5  ;;  %v1129_v11 = vpop.f32.mrb[18].mxu1  ;;  %v1066_v12 = vpop.f32.mrb[19].mxu0  ;;  %v1572_v5 = vld [vmem:[%s1688_s2] ss:$0 sm:$0xff] }
 0x11a   :  { %v1067_v13 = vadd.f32 %v1066_v12, %v1065_v9  ;;  %v1130_v14 = vpop.f32.mrb[19].mxu1  ;;  %v1578_v9 = vld [vmem:[%s1689_s3] ss:$0 sm:$0xff] }
 0x11b   :  { %v1131_v15 = vadd.f32 %v1130_v14, %v1129_v11  ;;  %v743_v16 = vadd.f32 %v1128_v10, %v1064_v7 }
 0x11d   :  { %v1563_v17 = vadd.f32 %v1131_v15, %v1067_v13 }
 0x11e   :  { %v1068_v18 = vpop.f32.mrb[20].mxu0 }
 0x11f   :  { %v1132_v19 = vpop.f32.mrb[20].mxu1  ;;  %v1069_v20 = vpop.f32.mrb[21].mxu0 }
 0x120   :  { %v1070_v21 = vadd.f32 %v1069_v20, %v1068_v18  ;;  %v1133_v22 = vpop.f32.mrb[21].mxu1  ;;  %v1071_v23 = vpop.f32.mrb[22].mxu0 }
 0x121   :  { %v1134_v26 = vadd.f32 %v1133_v22, %v1132_v19  ;;  %v1135_v27 = vpop.f32.mrb[22].mxu1  ;;  %v1072_v28 = vpop.f32.mrb[23].mxu0 }
 0x122   :  { %v1073_v29 = vadd.f32 %v1072_v28, %v1071_v23  ;;  %v1136_v30 = vpop.f32.mrb[23].mxu1 }
 0x123   :  { %v1137_v31 = vadd.f32 %v1136_v30, %v1135_v27  ;;  %v751_v32 = vadd.f32 %v1134_v26, %v1070_v21 }
 0x125   :  { %v754_v33 = vadd.f32 %v1137_v31, %v1073_v29 }
 0x126   :  { %v1074_v34 = vpop.f32.mrb[24].mxu0 }
 0x127   :  { %v1138_v35 = vpop.f32.mrb[24].mxu1  ;;  %v1075_v36 = vpop.f32.mrb[25].mxu0 }
 0x128   :  { %v1076_v37 = vadd.f32 %v1075_v36, %v1074_v34  ;;  %v1139_v40 = vpop.f32.mrb[25].mxu1  ;;  %v1077_v41 = vpop.f32.mrb[26].mxu0 }
 0x129   :  { %v1140_v42 = vadd.f32 %v1139_v40, %v1138_v35  ;;  %v1141_v43 = vpop.f32.mrb[26].mxu1  ;;  %v1078_v44 = vpop.f32.mrb[27].mxu0 }
 0x12a   :  { %v1079_v45 = vadd.f32 %v1078_v44, %v1077_v41  ;;  %v1142_v46 = vpop.f32.mrb[27].mxu1 }
 0x12b   :  { %v1143_v47 = vadd.f32 %v1142_v46, %v1141_v43  ;;  %v1565_v48 = vadd.f32 %v1140_v42, %v1076_v37 }
 0x12d   :  { %v1567_v49 = vadd.f32 %v1143_v47, %v1079_v45 }
 0x12e   :  { %v1080_v50 = vpop.f32.mrb[28].mxu0 }
 0x12f   :  { %v1144_v51 = vpop.f32.mrb[28].mxu1  ;;  %v1081_v54 = vpop.f32.mrb[29].mxu0 }
 0x130   :  { %v1082_v55 = vadd.f32 %v1081_v54, %v1080_v50  ;;  %v1145_v56 = vpop.f32.mrb[29].mxu1  ;;  %v1083_v57 = vpop.f32.mrb[30].mxu0 }
 0x131   :  { %v1146_v58 = vadd.f32 %v1145_v56, %v1144_v51  ;;  %v1147_v59 = vpop.f32.mrb[30].mxu1  ;;  %v1084_v60 = vpop.f32.mrb[31].mxu0 }
 0x132   :  { %v1085_v61 = vadd.f32 %v1084_v60, %v1083_v57  ;;  %v1148_v62 = vpop.f32.mrb[31].mxu1 }
 0x133   :  { %v1149_v63 = vadd.f32 %v1148_v62, %v1147_v59  ;;  %v767_v0 = vadd.f32 %v1146_v58, %v1082_v55 }
 0x135   :  { %v770_v1 = vadd.f32 %v1149_v63, %v1085_v61 }
 0x136   :  { %v1172_v4 = vpop.f32.mrb[32].mxu0 }
 0x137   :  { %v816_v6 = vadd.f32 %v1172_v4, %v1551_v38  ;;  %v1180_v7 = vpop.f32.mrb[32].mxu1  ;;  %v807_v8 = vpop.f32.mrb[33].mxu0 }
 0x138   :  { %v848_v10 = vadd.f32 %v1180_v7, %v751_v32  ;;  %v808_v11 = vadd.f32 %v807_v8, %v1547_v24  ;;  %v839_v12 = vpop.f32.mrb[33].mxu1  ;;  %v1173_v13 = vpop.f32.mrb[34].mxu0 }
 0x139   :  { %v879_v14 = vmul.f32 %v1572_v5, %v816_v6  ;;  %v840_v15 = vadd.f32 %v839_v12, %v743_v16  ;;  %v819_v18 = vadd.f32 %v1173_v13, %v1553_v39  ;;  %v1181_v19 = vpop.f32.mrb[34].mxu1  ;;  %v810_v20 = vpop.f32.mrb[35].mxu0 }
 0x13a   :  { %v887_v38 = vmul.f32 %v1572_v5, %v848_v10  ;;  %v877_v21 = vmul.f32 %v1572_v5, %v808_v11  ;;  %v851_v22 = vadd.f32 %v1181_v19, %v754_v33  ;;  %v811_v23 = vadd.f32 %v810_v20, %v1549_v25  ;;  %v842_v26 = vpop.f32.mrb[35].mxu1 }
 0x13b   :  { %v902_v27 = vadd.f32 %v1578_v9, %v879_v14  ;;  %v885_v24 = vmul.f32 %v1572_v5, %v840_v15  ;;  %v880_v28 = vmul.f32 %v1572_v5, %v819_v18  ;;  %v843_v16 = vadd.f32 %v842_v26, %v1563_v17 }
 0x13c   :  { %v910_v39 = vadd.f32 %v1578_v9, %v887_v38  ;;  %v900_v29 = vadd.f32 %v1578_v9, %v877_v21  ;;  %v888_v30 = vmul.f32 %v1572_v5, %v851_v22  ;;  %v878_v31 = vmul.f32 %v1572_v5, %v811_v23 }
 0x13d   :  { %918 = vst.msk [vmem:[%s1690_s4 + $0x10] sm:$0xff] %vm554_vm0, %v902_v27  ;;  %v908_v25 = vadd.f32 %v1578_v9, %v885_v24  ;;  %v903_v32 = vadd.f32 %v1578_v9, %v880_v28  ;;  %v886_v33 = vmul.f32 %v1572_v5, %v843_v16 }
 0x13e   :  { %926 = vst.msk [vmem:[%s1690_s4 + $0x50] sm:$0xff] %vm554_vm0, %v910_v39  ;;  %916 = vst.msk [vmem:[%s1690_s4] sm:$0xff] %vm554_vm0, %v900_v29  ;;  %v911_v17 = vadd.f32 %v1578_v9, %v888_v30  ;;  %v901_v34 = vadd.f32 %v1578_v9, %v878_v31  ;;  %v1176_v35 = vpop.f32.mrb[36].mxu0 }
 0x13f   :  { %924 = vst.msk [vmem:[%s1690_s4 + $0x40] sm:$0xff] %vm554_vm0, %v908_v25  ;;  %919 = vst.msk [vmem:[%s1690_s4 + $0x18] sm:$0xff] %vm554_vm0, %v903_v32  ;;  %v909_v36 = vadd.f32 %v1578_v9, %v886_v33  ;;  %v832_v37 = vadd.f32 %v1176_v35, %v1559_v2  ;;  %v1184_v40 = vpop.f32.mrb[36].mxu1  ;;  %v823_v41 = vpop.f32.mrb[37].mxu0 }
 0x140   :  { %927 = vst.msk [vmem:[%s1690_s4 + $0x58] sm:$0xff] %vm554_vm0, %v911_v17  ;;  %917 = vst.msk [vmem:[%s1690_s4 + $0x8] sm:$0xff] %vm554_vm0, %v901_v34  ;;  %v864_v42 = vadd.f32 %v1184_v40, %v767_v0  ;;  %v824_v43 = vadd.f32 %v823_v41, %v1555_v52  ;;  %v855_v44 = vpop.f32.mrb[37].mxu1  ;;  %v1177_v45 = vpop.f32.mrb[38].mxu0 }
 0x141   :  { %925 = vst.msk [vmem:[%s1690_s4 + $0x48] sm:$0xff] %vm554_vm0, %v909_v36  ;;  %v883_v2 = vmul.f32 %v1572_v5, %v832_v37  ;;  %v856_v46 = vadd.f32 %v855_v44, %v1565_v48  ;;  %v835_v47 = vadd.f32 %v1177_v45, %v1561_v3  ;;  %v1185_v50 = vpop.f32.mrb[38].mxu1  ;;  %v826_v51 = vpop.f32.mrb[39].mxu0 }
 0x142   :  { %v891_v54 = vmul.f32 %v1572_v5, %v864_v42  ;;  %v881_v55 = vmul.f32 %v1572_v5, %v824_v43  ;;  %v867_v52 = vadd.f32 %v1185_v50, %v770_v1  ;;  %v827_v56 = vadd.f32 %v826_v51, %v1557_v53  ;;  %v858_v57 = vpop.f32.mrb[39].mxu1 }
 0x143   :  { %v906_v58 = vadd.f32 %v1578_v9, %v883_v2  ;;  %v889_v59 = vmul.f32 %v1572_v5, %v856_v46  ;;  %v884_v60 = vmul.f32 %v1572_v5, %v835_v47  ;;  %v859_v48 = vadd.f32 %v858_v57, %v1567_v49 }
 0x144   :  { %v914_v3 = vadd.f32 %v1578_v9, %v891_v54  ;;  %v904_v61 = vadd.f32 %v1578_v9, %v881_v55  ;;  %v892_v62 = vmul.f32 %v1572_v5, %v867_v52  ;;  %v882_v63 = vmul.f32 %v1572_v5, %v827_v56 }
 0x145   :  { %922 = vst.msk [vmem:[%s1690_s4 + $0x30] sm:$0xff] %vm554_vm0, %v906_v58  ;;  %v912_v53 = vadd.f32 %v1578_v9, %v889_v59  ;;  %v907_v0 = vadd.f32 %v1578_v9, %v884_v60  ;;  %v890_v1 = vmul.f32 %v1572_v5, %v859_v48 }
 0x146   :  { %930 = vst.msk [vmem:[%s1690_s4 + $0x70] sm:$0xff] %vm554_vm0, %v914_v3  ;;  %920 = vst.msk [vmem:[%s1690_s4 + $0x20] sm:$0xff] %vm554_vm0, %v904_v61  ;;  %v915_v49 = vadd.f32 %v1578_v9, %v892_v62  ;;  %v905_v4 = vadd.f32 %v1578_v9, %v882_v63 }
 0x147   :  { %928 = vst.msk [vmem:[%s1690_s4 + $0x60] sm:$0xff] %vm554_vm0, %v912_v53  ;;  %923 = vst.msk [vmem:[%s1690_s4 + $0x38] sm:$0xff] %vm554_vm0, %v907_v0  ;;  %v913_v5 = vadd.f32 %v1578_v9, %v890_v1 }
 0x148   :  { %931 = vst.msk [vmem:[%s1690_s4 + $0x78] sm:$0xff] %vm554_vm0, %v915_v49  ;;  %921 = vst.msk [vmem:[%s1690_s4 + $0x28] sm:$0xff] %vm554_vm0, %v905_v4 }
 0x149   :  { %929 = vst.msk [vmem:[%s1690_s4 + $0x68] sm:$0xff] %vm554_vm0, %v913_v5 }

// kernel: _forward_jit.210
= control target key start
LH: loop header
LB: loop body
LE: loop exit
PB: predicated region body
PF: predicated region fallthrough
CT: control target
= control target key end

     0   :  { %vm368_vm0 = vcmask 523264   ;;  %s907_s1 = inlined_call_operand.vmem [shape: bf16[576,128], index: 1, kind: input, shape index: {}]   ;;  %s908_s0 = inlined_call_operand.vmem [shape: bf16[32,576], index: 0, kind: input, shape index: {}]   ;;  %s909_s2 = inlined_call_operand.vmem [shape: f32[1,128], index: 2, kind: input, shape index: {}]   ;;  %s910_s3 = inlined_call_operand.vmem [shape: f32[1,128], index: 3, kind: input, shape index: {}]   ;;  %s911_s4 = inlined_call_operand.vmem [shape: f32[32,128], index: 4, kind: output, shape index: {}]  }
   0x1   :  { %v676_v0 = vld [vmem:[%s907_s1 + $0x40] sm:$0xff]   ;;  %v680_v4 = vld [vmem:[%s907_s1 + $0x48] sm:$0xff]   ;;  %v684_v8 = vld [vmem:[%s907_s1 + $0x50] sm:$0xff]  }
   0x2   :  { %v677_v1 = vld [vmem:[%s907_s1 + $0xc0] sm:$0xff]   ;;  %602 = vmatprep.subr.bf16.mxu0 %v676_v0  ;;  %v681_v5 = vld [vmem:[%s907_s1 + $0xc8] sm:$0xff]   ;;  %v685_v9 = vld [vmem:[%s907_s1 + $0xd0] sm:$0xff]  }
   0x3   :  { %v678_v2 = vld [vmem:[%s907_s1] sm:$0xff]   ;;  %630 = vmatprep.subr.bf16.mxu1 %v677_v1  ;;  %v682_v6 = vld [vmem:[%s907_s1 + $0x8] sm:$0xff]   ;;  %v686_v10 = vld [vmem:[%s907_s1 + $0x10] sm:$0xff]  }
   0x4   :  { %v679_v3 = vld [vmem:[%s907_s1 + $0x80] sm:$0xff]   ;;  %603 = vmatpush3.bf16.msra.mxu0 %v678_v2  ;;  %v683_v7 = vld [vmem:[%s907_s1 + $0x88] sm:$0xff]   ;;  %v687_v11 = vld [vmem:[%s907_s1 + $0x90] sm:$0xff]  }
   0x5   :  { %631 = vmatpush3.bf16.msra.mxu1 %v679_v3  ;;  %604 = vmatprep.subr.bf16.mxu0 %v680_v4  ;;  %v688_v12 = vld [vmem:[%s907_s1 + $0x58] sm:$0xff]   ;;  %v692_v16 = vld [vmem:[%s907_s1 + $0x60] sm:$0xff]   ;;  %v696_v20 = vld [vmem:[%s907_s1 + $0x68] sm:$0xff]  }
   0x6   :  { %632 = vmatprep.subr.bf16.mxu1 %v681_v5  ;;  %v689_v13 = vld [vmem:[%s907_s1 + $0xd8] sm:$0xff]   ;;  %v693_v17 = vld [vmem:[%s907_s1 + $0xe0] sm:$0xff]   ;;  %v697_v21 = vld [vmem:[%s907_s1 + $0xe8] sm:$0xff]  }
   0x7   :  { %v690_v14 = vld [vmem:[%s907_s1 + $0x18] sm:$0xff]   ;;  %v694_v18 = vld [vmem:[%s907_s1 + $0x20] sm:$0xff]   ;;  %v698_v22 = vld [vmem:[%s907_s1 + $0x28] sm:$0xff]  }
   0x8   :  { %605 = vmatpush3.bf16.msra.mxu0 %v682_v6  ;;  %v691_v15 = vld [vmem:[%s907_s1 + $0x98] sm:$0xff]   ;;  %v695_v19 = vld [vmem:[%s907_s1 + $0xa0] sm:$0xff]   ;;  %v699_v23 = vld [vmem:[%s907_s1 + $0xa8] sm:$0xff]  }
   0x9   :  { %633 = vmatpush3.bf16.msra.mxu1 %v683_v7  ;;  %606 = vmatprep.subr.bf16.mxu0 %v684_v8  ;;  %v700_v24 = vld [vmem:[%s907_s1 + $0x70] sm:$0xff]   ;;  %v704_v28 = vld [vmem:[%s907_s1 + $0x78] sm:$0xff]   ;;  %v713_v35 = vld [vmem:[%s908_s0 + $0xc] ss:$20 sps:$4 sm:$0xff]  }
   0xa   :  { %634 = vmatprep.subr.bf16.mxu1 %v685_v9  ;;  %v701_v25 = vld [vmem:[%s907_s1 + $0xf0] sm:$0xff]   ;;  %v705_v29 = vld [vmem:[%s907_s1 + $0xf8] sm:$0xff]   ;;  %v714_v36 = vld [vmem:[%s907_s1 + $0x100] sm:$0xff]   ;;  %456 = vmatprep.mubr.bf16.mxu1 %v713_v35 }
   0xb   :  { %v702_v26 = vld [vmem:[%s907_s1 + $0x30] sm:$0xff]   ;;  %v706_v30 = vld [vmem:[%s907_s1 + $0x38] sm:$0xff]   ;;  %v715_v37 = vld [vmem:[%s907_s1 + $0x108] sm:$0xff]  }
   0xc   :  { %607 = vmatpush3.bf16.msra.mxu0 %v686_v10  ;;  %v703_v27 = vld [vmem:[%s907_s1 + $0xb0] sm:$0xff]   ;;  %v707_v31 = vld [vmem:[%s907_s1 + $0xb8] sm:$0xff]   ;;  %v716_v38 = vld [vmem:[%s908_s0 + $0x2c] ss:$20 sps:$4 sm:$0xff]  }
   0xd   :  { %635 = vmatpush3.bf16.msra.mxu1 %v687_v11  ;;  %608 = vmatprep.subr.bf16.mxu0 %v688_v12  ;;  %v708_v32 = vld [vmem:[%s908_s0] ss:$20 sps:$4 sm:$0xff]   ;;  %v710_v33 = vld [vmem:[%s908_s0 + $0x4] ss:$20 sps:$4 sm:$0xff]   ;;  %v711_v34 = vld [vmem:[%s908_s0 + $0x8] ss:$20 sps:$4 sm:$0xff]  }
   0xe   :  { %636 = vmatprep.subr.bf16.mxu1 %v689_v13  ;;  %407 = vmatprep.mubr.bf16.mxu0 %v710_v33  ;;  %v718_v39 = vld [vmem:[%s908_s0 + $0x34] ss:$20 sps:$4 sm:$0xff]   ;;  %v721_v42 = vld [vmem:[%s908_s0 + $0x30] ss:$20 sps:$4 sm:$0xff]   ;;  %v723_v44 = vld [vmem:[%s907_s1 + $0x118] sm:$0xff]  }
   0xf   :  { %v720_v40 = vld [vmem:[%s908_s0 + $0x28] ss:$20 sps:$4 sm:$0xff]   ;;  %v722_v41 = vld [vmem:[%s907_s1 + $0x110] sm:$0xff]   ;;  %v725_v45 = vld [vmem:[%s908_s0 + $0x38] ss:$20 sps:$4 sm:$0xff]  }
  0x10   :  { %609 = vmatpush3.bf16.msra.mxu0 %v690_v14  ;;  %v724_v43 = vld [vmem:[%s908_s0 + $0x10] ss:$20 sps:$4 sm:$0xff]   ;;  %v600_v11 = vld [vmem:[%s909_s2] ss:$0 sm:$0xff] }
  0x11   :  { %637 = vmatpush3.bf16.msra.mxu1 %v691_v15  ;;  %610 = vmatprep.subr.bf16.mxu0 %v692_v16  ;;  %v601_v14 = vld [vmem:[%s910_s3] ss:$0 sm:$0xff] }
  0x12   :  { %638 = vmatprep.subr.bf16.mxu1 %v693_v17 }
  0x14   :  { %611 = vmatpush3.bf16.msra.mxu0 %v694_v18 }
  0x15   :  { %639 = vmatpush3.bf16.msra.mxu1 %v695_v19  ;;  %612 = vmatprep.subr.bf16.mxu0 %v696_v20 }
  0x16   :  { %640 = vmatprep.subr.bf16.mxu1 %v697_v21 }
  0x18   :  { %613 = vmatpush3.bf16.msra.mxu0 %v698_v22 }
  0x19   :  { %641 = vmatpush3.bf16.msra.mxu1 %v699_v23  ;;  %614 = vmatprep.subr.bf16.mxu0 %v700_v24 }
  0x1a   :  { %642 = vmatprep.subr.bf16.mxu1 %v701_v25 }
  0x1c   :  { %615 = vmatpush3.bf16.msra.mxu0 %v702_v26 }
  0x1d   :  { %643 = vmatpush3.bf16.msra.mxu1 %v703_v27  ;;  %616 = vmatprep.subr.bf16.mxu0 %v704_v28 }
  0x1e   :  { %644 = vmatprep.subr.bf16.mxu1 %v705_v29 }
  0x20   :  { %617 = vmatpush3.bf16.msra.mxu0 %v706_v30 }
  0x21   :  { %645 = vmatpush3.bf16.msra.mxu1 %v707_v31  ;;  %664 = vmatprep.subr.bf16.mxu0 %v714_v36 }
  0x23   :  { %408 = vmatmul.mubr.bf16.vlgmr.msra.gmra.mrb[0].mxu0 %v708_v32 }
  0x24   :  { %457 = vmatmul.mubr.bf16.vlgmr.msra.gmra.mrb[0].mxu1 %v711_v34  ;;  %665 = vmatpush3.bf16.msra.mxu0 %v714_v36 }
  0x25   :  { %666 = vmatprep.subr.bf16.mxu0 %v715_v37  ;;  %415 = vmatprep.mubr.bf16.mxu0 %v716_v38 }
  0x26   :  { %464 = vmatprep.mubr.bf16.mxu1 %v718_v39 }
  0x28   :  { %667 = vmatpush3.bf16.msra.mxu0 %v715_v37 }
  0x29   :  { %668 = vmatprep.subr.bf16.mxu0 %v722_v41 }
  0x2b   :  { %416 = vmatmul.mubr.bf16.gmra.mrb[4].mxu0 %v720_v40 }
  0x2c   :  { %465 = vmatmul.mubr.bf16.gmra.mrb[4].mxu1 %v721_v42  ;;  %672 = vmatprep.mubr.msk.bf16.mxu0 %vm368_vm0, %v724_v43 }
  0x2d   :  { %669 = vmatpush3.bf16.msra.mxu0 %v722_v41 }
  0x2e   :  { %670 = vmatprep.subr.bf16.mxu0 %v723_v44 }
  0x31   :  { %671 = vmatpush3.bf16.msra.mxu0 %v723_v44 }
  0x34   :  { %673 = vmatmul.mubr.msk.bf16.vlgmr.msra.gmra.mrb[8].mxu0 %vm368_vm0, %v725_v45 }
  0xf6   :  { %v618_v46 = vpop.f32.mrb[0].mxu0 }
  0xf7   :  { %v646_v47 = vpop.f32.mrb[0].mxu1  ;;  %v619_v48 = vpop.f32.mrb[1].mxu0 }
  0xf8   :  { %v620_v49 = vadd.f32 %v619_v48, %v618_v46  ;;  %v647_v50 = vpop.f32.mrb[1].mxu1  ;;  %v621_v51 = vpop.f32.mrb[2].mxu0 }
  0xf9   :  { %v648_v52 = vadd.f32 %v647_v50, %v646_v47  ;;  %v649_v53 = vpop.f32.mrb[2].mxu1  ;;  %v622_v54 = vpop.f32.mrb[3].mxu0 }
  0xfa   :  { %v623_v55 = vadd.f32 %v622_v54, %v621_v51  ;;  %v650_v56 = vpop.f32.mrb[3].mxu1 }
  0xfb   :  { %v651_v57 = vadd.f32 %v650_v56, %v649_v53  ;;  %v459_v58 = vadd.f32 %v648_v52, %v620_v49 }
  0xfd   :  { %v462_v59 = vadd.f32 %v651_v57, %v623_v55 }
  0xfe   :  { %v624_v60 = vpop.f32.mrb[4].mxu0 }
  0xff   :  { %v652_v61 = vpop.f32.mrb[4].mxu1  ;;  %v625_v62 = vpop.f32.mrb[5].mxu0 }
 0x100   :  { %v626_v63 = vadd.f32 %v625_v62, %v624_v60  ;;  %v653_v0 = vpop.f32.mrb[5].mxu1  ;;  %v627_v1 = vpop.f32.mrb[6].mxu0 }
 0x101   :  { %v654_v2 = vadd.f32 %v653_v0, %v652_v61  ;;  %v655_v3 = vpop.f32.mrb[6].mxu1  ;;  %v628_v4 = vpop.f32.mrb[7].mxu0 }
 0x102   :  { %v629_v5 = vadd.f32 %v628_v4, %v627_v1  ;;  %v656_v6 = vpop.f32.mrb[7].mxu1 }
 0x103   :  { %v657_v7 = vadd.f32 %v656_v6, %v655_v3  ;;  %v467_v8 = vadd.f32 %v654_v2, %v626_v63 }
 0x105   :  { %v470_v9 = vadd.f32 %v657_v7, %v629_v5 }
 0x107   :  { %v674_v10 = vpop.f32.mrb[8].mxu0 }
 0x108   :  { %v516_v12 = vadd.f32 %v674_v10, %v467_v8  ;;  %v507_v13 = vpop.f32.mrb[9].mxu0 }
 0x109   :  { %v508_v15 = vadd.f32 %v507_v13, %v459_v58  ;;  %v675_v16 = vpop.f32.mrb[10].mxu0 }
 0x10a   :  { %v531_v17 = vmul.f32 %v600_v11, %v516_v12  ;;  %v519_v18 = vadd.f32 %v675_v16, %v470_v9  ;;  %v510_v19 = vpop.f32.mrb[11].mxu0 }
 0x10b   :  { %v529_v20 = vmul.f32 %v600_v11, %v508_v15  ;;  %v511_v21 = vadd.f32 %v510_v19, %v462_v59 }
 0x10c   :  { %v542_v22 = vadd.f32 %v601_v14, %v531_v17  ;;  %v532_v23 = vmul.f32 %v600_v11, %v519_v18 }
 0x10d   :  { %v540_v24 = vadd.f32 %v601_v14, %v529_v20  ;;  %v530_v25 = vmul.f32 %v600_v11, %v511_v21 }
 0x10e   :  { %546 = vst [vmem:[%s911_s4 + $0x10] sm:$0xff] %v542_v22  ;;  %v543_v26 = vadd.f32 %v601_v14, %v532_v23 }
 0x10f   :  { %544 = vst [vmem:[%s911_s4] sm:$0xff] %v540_v24  ;;  %v541_v27 = vadd.f32 %v601_v14, %v530_v25 }
 0x110   :  { %547 = vst [vmem:[%s911_s4 + $0x18] sm:$0xff] %v543_v26 }
 0x111   :  { %545 = vst [vmem:[%s911_s4 + $0x8] sm:$0xff] %v541_v27 }

// kernel: _forward_jit.219
= control target key start
LH: loop header
LB: loop body
LE: loop exit
PB: predicated region body
PF: predicated region fallthrough
CT: control target
= control target key end

     0   :  { %v2148_v0 = vmov 0   ;;  %vm770_vm0 = vcmask 261120   ;;  %s3109_s1 = inlined_call_operand.vmem [shape: bf16[288,32], index: 1, kind: input, shape index: {}]   ;;  %s3110_s0 = inlined_call_operand.vmem [shape: bf16[512,288], index: 0, kind: input, shape index: {}]   ;;  %s3111_s2 = inlined_call_operand.vmem [shape: f32[1,32], index: 2, kind: input, shape index: {}]   ;;  %s3112_s3 = inlined_call_operand.vmem [shape: f32[1,32], index: 3, kind: input, shape index: {}]   ;;  %s3113_s4 = inlined_call_operand.vmem [shape: f32[512,32], index: 4, kind: output, shape index: {}]  }
   0x1   :  { %867 = vmatprep.subr.bf16.mxu0 %v2148_v0  ;;  %1969 = vmatprep.subr.bf16.mxu1 %v2148_v0  ;;  %v2002_v1 = vld [vmem:[%s3109_s1] sm:$0xff]   ;;  %v2003_v2 = vld [vmem:[%s3109_s1 + $0x8] sm:$0xff]   ;;  %v2004_v3 = vld [vmem:[%s3109_s1 + $0x10] sm:$0xff]  }
   0x2   :  { %868 = vmatpush1.bf16.msra.mxu0 %v2002_v1  ;;  %1985 = vmatpush1.bf16.msra.mxu1 %v2002_v1  ;;  %v2005_v4 = vld [vmem:[%s3109_s1 + $0x18] sm:$0xff]   ;;  %v2006_v5 = vld [vmem:[%s3109_s1 + $0x20] sm:$0xff]   ;;  %v2007_v7 = vld [vmem:[%s3109_s1 + $0x28] sm:$0xff]  }
   0x3   :  { %869 = vmatprep.subr.bf16.mxu0 %v2148_v0  ;;  %1970 = vmatprep.subr.bf16.mxu1 %v2148_v0  ;;  %v2020_v6 = vld [vmem:[%s3110_s0 + $0x4] ss:$12 sps:$4 sm:$0xff]   ;;  %v2009_v10 = vld [vmem:[%s3109_s1 + $0x38] sm:$0xff]   ;;  %v2011_v12 = vld [vmem:[%s3109_s1 + $0x48] sm:$0xff]  }
   0x4   :  { %v2023_v8 = vld [vmem:[%s3110_s0 + $0x244] ss:$12 sps:$4 sm:$0xff]   ;;  %899 = vmatprep.mubr.bf16.mxu0 %v2020_v6  ;;  %v2013_v14 = vld [vmem:[%s3109_s1 + $0x58] sm:$0xff]   ;;  %v2015_v16 = vld [vmem:[%s3109_s1 + $0x68] sm:$0xff]  }
   0x5   :  { %1091 = vmatprep.mubr.bf16.mxu1 %v2023_v8  ;;  %v2008_v9 = vld [vmem:[%s3109_s1 + $0x30] sm:$0xff]   ;;  %v2010_v11 = vld [vmem:[%s3109_s1 + $0x40] sm:$0xff]   ;;  %v2017_v18 = vld [vmem:[%s3109_s1 + $0x78] sm:$0xff]  }
   0x6   :  { %870 = vmatpush1.bf16.msra.mxu0 %v2003_v2  ;;  %1986 = vmatpush1.bf16.msra.mxu1 %v2003_v2  ;;  %v2012_v13 = vld [vmem:[%s3109_s1 + $0x50] sm:$0xff]   ;;  %v2014_v15 = vld [vmem:[%s3109_s1 + $0x60] sm:$0xff]   ;;  %v2025_v22 = vld [vmem:[%s3110_s0 + $0x1c] ss:$12 sps:$4 sm:$0xff]  }
   0x7   :  { %871 = vmatprep.subr.bf16.mxu0 %v2148_v0  ;;  %1971 = vmatprep.subr.bf16.mxu1 %v2148_v0  ;;  %v2016_v17 = vld [vmem:[%s3109_s1 + $0x70] sm:$0xff]   ;;  %v2024_v19 = vld [vmem:[%s3109_s1 + $0x80] sm:$0xff]   ;;  %v2027_v23 = vld [vmem:[%s3110_s0 + $0x25c] ss:$12 sps:$4 sm:$0xff]  }
   0x8   :  { %v2018_v20 = vld [vmem:[%s3110_s0] ss:$12 sps:$4 sm:$0xff]   ;;  %v2029_v25 = vld [vmem:[%s3110_s0 + $0x18] ss:$12 sps:$4 sm:$0xff]   ;;  %v2035_v29 = vld [vmem:[%s3110_s0 + $0x30] ss:$12 sps:$4 sm:$0xff]  }
   0x9   :  { %v2021_v21 = vld [vmem:[%s3110_s0 + $0x240] ss:$12 sps:$4 sm:$0xff]   ;;  %v2030_v26 = vld [vmem:[%s3110_s0 + $0x258] ss:$12 sps:$4 sm:$0xff]   ;;  %v2036_v30 = vld [vmem:[%s3110_s0 + $0x270] ss:$12 sps:$4 sm:$0xff]  }
   0xa   :  { %872 = vmatpush1.bf16.msra.mxu0 %v2004_v3  ;;  %1987 = vmatpush1.bf16.msra.mxu1 %v2004_v3  ;;  %v2049_v24 = vld [vmem:[%s3109_s1 + $0x88] sm:$0xff]   ;;  %v2031_v27 = vld [vmem:[%s3110_s0 + $0x34] ss:$12 sps:$4 sm:$0xff]   ;;  %v2043_v35 = vld [vmem:[%s3110_s0 + $0x64] ss:$12 sps:$4 sm:$0xff]  }
   0xb   :  { %873 = vmatprep.subr.bf16.mxu0 %v2148_v0  ;;  %1972 = vmatprep.subr.bf16.mxu1 %v2148_v0  ;;  %v2033_v28 = vld [vmem:[%s3110_s0 + $0x274] ss:$12 sps:$4 sm:$0xff]   ;;  %v2037_v31 = vld [vmem:[%s3110_s0 + $0x4c] ss:$12 sps:$4 sm:$0xff]   ;;  %v2045_v36 = vld [vmem:[%s3110_s0 + $0x2a4] ss:$12 sps:$4 sm:$0xff]  }
   0xc   :  { %v2039_v32 = vld [vmem:[%s3110_s0 + $0x28c] ss:$12 sps:$4 sm:$0xff]   ;;  %v2041_v33 = vld [vmem:[%s3110_s0 + $0x48] ss:$12 sps:$4 sm:$0xff]   ;;  %v2060_v45 = vld [vmem:[%s3110_s0 + $0x90] ss:$12 sps:$4 sm:$0xff]  }
   0xd   :  { %v2042_v34 = vld [vmem:[%s3110_s0 + $0x288] ss:$12 sps:$4 sm:$0xff]   ;;  %v2047_v37 = vld [vmem:[%s3110_s0 + $0x60] ss:$12 sps:$4 sm:$0xff]   ;;  %v2054_v41 = vld [vmem:[%s3110_s0 + $0x78] ss:$12 sps:$4 sm:$0xff]  }
   0xe   :  { %874 = vmatpush1.bf16.msra.mxu0 %v2005_v4  ;;  %1988 = vmatpush1.bf16.msra.mxu1 %v2005_v4  ;;  %v2048_v38 = vld [vmem:[%s3110_s0 + $0x2a0] ss:$12 sps:$4 sm:$0xff]   ;;  %v2050_v39 = vld [vmem:[%s3110_s0 + $0x7c] ss:$12 sps:$4 sm:$0xff]   ;;  %v2055_v42 = vld [vmem:[%s3110_s0 + $0x2b8] ss:$12 sps:$4 sm:$0xff]  }
   0xf   :  { %875 = vmatprep.subr.bf16.mxu0 %v2148_v0  ;;  %1973 = vmatprep.subr.bf16.mxu1 %v2148_v0  ;;  %v2052_v40 = vld [vmem:[%s3110_s0 + $0x2bc] ss:$12 sps:$4 sm:$0xff]   ;;  %v2056_v43 = vld [vmem:[%s3110_s0 + $0x94] ss:$12 sps:$4 sm:$0xff]   ;;  %v2062_v47 = vld [vmem:[%s3110_s0 + $0xac] ss:$12 sps:$4 sm:$0xff]  }
  0x10   :  { %v2058_v44 = vld [vmem:[%s3110_s0 + $0x2d4] ss:$12 sps:$4 sm:$0xff]   ;;  %v2061_v46 = vld [vmem:[%s3110_s0 + $0x2d0] ss:$12 sps:$4 sm:$0xff]   ;;  %v2064_v48 = vld [vmem:[%s3110_s0 + $0x2ec] ss:$12 sps:$4 sm:$0xff]  }
  0x11   :  { %v2066_v49 = vld [vmem:[%s3110_s0 + $0xa8] ss:$12 sps:$4 sm:$0xff]   ;;  %v2068_v51 = vld [vmem:[%s3110_s0 + $0xc4] ss:$12 sps:$4 sm:$0xff]   ;;  %v2071_v53 = vld [vmem:[%s3110_s0 + $0xc0] ss:$12 sps:$4 sm:$0xff]  }
  0x12   :  { %876 = vmatpush1.bf16.msra.mxu0 %v2006_v5  ;;  %1989 = vmatpush1.bf16.msra.mxu1 %v2006_v5  ;;  %v2067_v50 = vld [vmem:[%s3110_s0 + $0x2e8] ss:$12 sps:$4 sm:$0xff]   ;;  %v2072_v54 = vld [vmem:[%s3110_s0 + $0x20] ss:$12 sps:$4 sm:$0xff]   ;;  %v2075_v56 = vld [vmem:[%s3110_s0 + $0x38] ss:$12 sps:$4 sm:$0xff]  }
  0x13   :  { %877 = vmatprep.subr.bf16.mxu0 %v2148_v0  ;;  %1974 = vmatprep.subr.bf16.mxu1 %v2148_v0  ;;  %v2070_v52 = vld [vmem:[%s3110_s0 + $0x8] ss:$12 sps:$4 sm:$0xff]   ;;  %v2076_v57 = vld [vmem:[%s3110_s0 + $0xd8] ss:$12 sps:$4 sm:$0xff]   ;;  %v2077_v58 = vld [vmem:[%s3110_s0 + $0x50] ss:$12 sps:$4 sm:$0xff]  }
  0x14   :  { %v2073_v55 = vld [vmem:[%s3110_s0 + $0xdc] ss:$12 sps:$4 sm:$0xff]   ;;  %v2078_v59 = vld [vmem:[%s3110_s0 + $0xf4] ss:$12 sps:$4 sm:$0xff]   ;;  %v2083_v63 = vld [vmem:[%s3110_s0 + $0x10c] ss:$12 sps:$4 sm:$0xff]  }
  0x15   :  { %v2080_v60 = vld [vmem:[%s3110_s0 + $0x68] ss:$12 sps:$4 sm:$0xff]   ;;  %v2081_v61 = vld [vmem:[%s3110_s0 + $0xf0] ss:$12 sps:$4 sm:$0xff]   ;;  %v2082_v62 = vld [vmem:[%s3110_s0 + $0x80] ss:$12 sps:$4 sm:$0xff]  }
  0x16   :  { %878 = vmatpush1.bf16.msra.mxu0 %v2007_v7  ;;  %1990 = vmatpush1.bf16.msra.mxu1 %v2007_v7  ;;  %v2086_v1 = vld [vmem:[%s3110_s0 + $0x108] ss:$12 sps:$4 sm:$0xff]   ;;  %v2087_v2 = vld [vmem:[%s3110_s0 + $0xb0] ss:$12 sps:$4 sm:$0xff]   ;;  %v2091_v5 = vld [vmem:[%s3110_s0 + $0x120] ss:$12 sps:$4 sm:$0xff]  }
  0x17   :  { %879 = vmatprep.subr.bf16.mxu0 %v2148_v0  ;;  %1975 = vmatprep.subr.bf16.mxu1 %v2148_v0  ;;  %v2088_v3 = vld [vmem:[%s3110_s0 + $0x124] ss:$12 sps:$4 sm:$0xff]   ;;  %v2090_v4 = vld [vmem:[%s3110_s0 + $0xc8] ss:$12 sps:$4 sm:$0xff]   ;;  %v2092_v6 = vld [vmem:[%s3110_s0 + $0xe0] ss:$12 sps:$4 sm:$0xff]  }
  0x18   :  { %v2093_v7 = vld [vmem:[%s3110_s0 + $0x13c] ss:$12 sps:$4 sm:$0xff]   ;;  %v2095_v8 = vld [vmem:[%s3110_s0 + $0xf8] ss:$12 sps:$4 sm:$0xff]  }
  0x1a   :  { %880 = vmatpush1.bf16.msra.mxu0 %v2008_v9  ;;  %1991 = vmatpush1.bf16.msra.mxu1 %v2008_v9  ;;  %v2096_v9 = vld [vmem:[%s3110_s0 + $0x138] ss:$12 sps:$4 sm:$0xff]  }
  0x1b   :  { %881 = vmatprep.subr.bf16.mxu0 %v2148_v0  ;;  %1976 = vmatprep.subr.bf16.mxu1 %v2148_v0 }
  0x1e   :  { %882 = vmatpush1.bf16.msra.mxu0 %v2009_v10  ;;  %1992 = vmatpush1.bf16.msra.mxu1 %v2009_v10  ;;  %v2097_v10 = vld [vmem:[%s3110_s0 + $0x110] ss:$12 sps:$4 sm:$0xff]  }
  0x1f   :  { %883 = vmatprep.subr.bf16.mxu0 %v2148_v0  ;;  %1977 = vmatprep.subr.bf16.mxu1 %v2148_v0 }
  0x22   :  { %884 = vmatpush1.bf16.msra.mxu0 %v2010_v11  ;;  %1993 = vmatpush1.bf16.msra.mxu1 %v2010_v11  ;;  %v2098_v11 = vld [vmem:[%s3110_s0 + $0x154] ss:$12 sps:$4 sm:$0xff]  }
  0x23   :  { %885 = vmatprep.subr.bf16.mxu0 %v2148_v0  ;;  %1978 = vmatprep.subr.bf16.mxu1 %v2148_v0 }
  0x26   :  { %886 = vmatpush1.bf16.msra.mxu0 %v2011_v12  ;;  %1994 = vmatpush1.bf16.msra.mxu1 %v2011_v12  ;;  %v2100_v12 = vld [vmem:[%s3110_s0 + $0x128] ss:$12 sps:$4 sm:$0xff]  }
  0x27   :  { %887 = vmatprep.subr.bf16.mxu0 %v2148_v0  ;;  %1979 = vmatprep.subr.bf16.mxu1 %v2148_v0 }
  0x2a   :  { %888 = vmatpush1.bf16.msra.mxu0 %v2012_v13  ;;  %1995 = vmatpush1.bf16.msra.mxu1 %v2012_v13  ;;  %v2101_v13 = vld [vmem:[%s3110_s0 + $0x150] ss:$12 sps:$4 sm:$0xff]  }
  0x2b   :  { %889 = vmatprep.subr.bf16.mxu0 %v2148_v0  ;;  %1980 = vmatprep.subr.bf16.mxu1 %v2148_v0 }
  0x2e   :  { %890 = vmatpush1.bf16.msra.mxu0 %v2013_v14  ;;  %1996 = vmatpush1.bf16.msra.mxu1 %v2013_v14  ;;  %v2102_v14 = vld [vmem:[%s3110_s0 + $0x140] ss:$12 sps:$4 sm:$0xff]  }
  0x2f   :  { %891 = vmatprep.subr.bf16.mxu0 %v2148_v0  ;;  %1981 = vmatprep.subr.bf16.mxu1 %v2148_v0 }
  0x32   :  { %892 = vmatpush1.bf16.msra.mxu0 %v2014_v15  ;;  %1997 = vmatpush1.bf16.msra.mxu1 %v2014_v15  ;;  %v2103_v15 = vld [vmem:[%s3110_s0 + $0x16c] ss:$12 sps:$4 sm:$0xff]  }
  0x33   :  { %893 = vmatprep.subr.bf16.mxu0 %v2148_v0  ;;  %1982 = vmatprep.subr.bf16.mxu1 %v2148_v0 }
  0x36   :  { %894 = vmatpush1.bf16.msra.mxu0 %v2015_v16  ;;  %1998 = vmatpush1.bf16.msra.mxu1 %v2015_v16  ;;  %v2105_v16 = vld [vmem:[%s3110_s0 + $0x158] ss:$12 sps:$4 sm:$0xff]  }
  0x37   :  { %895 = vmatprep.subr.bf16.mxu0 %v2148_v0  ;;  %1983 = vmatprep.subr.bf16.mxu1 %v2148_v0 }
  0x3a   :  { %896 = vmatpush1.bf16.msra.mxu0 %v2016_v17  ;;  %1999 = vmatpush1.bf16.msra.mxu1 %v2016_v17  ;;  %v2106_v17 = vld [vmem:[%s3110_s0 + $0x168] ss:$12 sps:$4 sm:$0xff]  }
  0x3b   :  { %897 = vmatprep.subr.bf16.mxu0 %v2148_v0  ;;  %1984 = vmatprep.subr.bf16.mxu1 %v2148_v0  ;;  %v2085_v0 = vld [vmem:[%s3110_s0 + $0x98] ss:$12 sps:$4 sm:$0xff]  }
  0x3e   :  { %898 = vmatpush1.bf16.msra.mxu0 %v2017_v18  ;;  %2000 = vmatpush1.bf16.msra.mxu1 %v2017_v18  ;;  %v2107_v18 = vld [vmem:[%s3110_s0 + $0x170] ss:$12 sps:$4 sm:$0xff]  }
  0x3f   :  { %1901 = vmatprep.subr.bf16.mxu1 %v2024_v19 }
  0x41   :  { %900 = vmatmul.mubr.bf16.vlgmr.msra.gmra.mrb[0].mxu0 %v2018_v20  ;;  %1092 = vmatmul.mubr.bf16.vlgmr.msra.gmra.mrb[0].mxu1 %v2021_v21  ;;  %v2110_v20 = vld [vmem:[%s3110_s0 + $0x188] ss:$12 sps:$4 sm:$0xff]   ;;  %v2111_v21 = vld [vmem:[%s3110_s0 + $0x180] ss:$12 sps:$4 sm:$0xff]  }
  0x42   :  { %1902 = vmatpush3.bf16.msra.mxu1 %v2024_v19  ;;  %907 = vmatprep.mubr.bf16.mxu0 %v2025_v22  ;;  %v2108_v19 = vld [vmem:[%s3110_s0 + $0x184] ss:$12 sps:$4 sm:$0xff]   ;;  %v2112_v22 = vld [vmem:[%s3110_s0 + $0x1a0] ss:$12 sps:$4 sm:$0xff]  }
  0x43   :  { %1099 = vmatprep.mubr.bf16.mxu1 %v2027_v23  ;;  %1903 = vmatprep.subr.bf16.mxu1 %v2049_v24  ;;  %v2113_v23 = vld [vmem:[%s3110_s0 + $0x19c] ss:$12 sps:$4 sm:$0xff]  }
  0x46   :  { %1904 = vmatpush3.bf16.msra.mxu1 %v2049_v24  ;;  %v2115_v24 = vld [vmem:[%s3110_s0 + $0x1b8] ss:$12 sps:$4 sm:$0xff]  }
  0x49   :  { %908 = vmatmul.mubr.bf16.gmra.mrb[4].mxu0 %v2029_v25  ;;  %1100 = vmatmul.mubr.bf16.gmra.mrb[4].mxu1 %v2030_v26  ;;  %v2116_v25 = vld [vmem:[%s3110_s0 + $0x198] ss:$12 sps:$4 sm:$0xff]   ;;  %v2117_v26 = vld [vmem:[%s3110_s0 + $0x1d0] ss:$12 sps:$4 sm:$0xff]  }
  0x4a   :  { %915 = vmatprep.mubr.bf16.mxu0 %v2031_v27  ;;  %1107 = vmatprep.mubr.bf16.mxu1 %v2033_v28  ;;  %v2118_v27 = vld [vmem:[%s3110_s0 + $0x1b4] ss:$12 sps:$4 sm:$0xff]  }
  0x4b   :  { %v2120_v28 = vld [vmem:[%s3110_s0 + $0x1e8] ss:$12 sps:$4 sm:$0xff]  }
  0x51   :  { %916 = vmatmul.mubr.bf16.gmra.mrb[8].mxu0 %v2035_v29  ;;  %1108 = vmatmul.mubr.bf16.gmra.mrb[8].mxu1 %v2036_v30  ;;  %v2121_v29 = vld [vmem:[%s3110_s0 + $0x1b0] ss:$12 sps:$4 sm:$0xff]   ;;  %v2122_v30 = vld [vmem:[%s3110_s0 + $0x200] ss:$12 sps:$4 sm:$0xff]  }
  0x52   :  { %923 = vmatprep.mubr.bf16.mxu0 %v2037_v31  ;;  %1115 = vmatprep.mubr.bf16.mxu1 %v2039_v32  ;;  %v2123_v31 = vld [vmem:[%s3110_s0 + $0x1cc] ss:$12 sps:$4 sm:$0xff]  }
  0x53   :  { %v2125_v32 = vld [vmem:[%s3110_s0 + $0x218] ss:$12 sps:$4 sm:$0xff]  }
  0x59   :  { %924 = vmatmul.mubr.bf16.gmra.mrb[12].mxu0 %v2041_v33  ;;  %1116 = vmatmul.mubr.bf16.gmra.mrb[12].mxu1 %v2042_v34  ;;  %v2126_v33 = vld [vmem:[%s3110_s0 + $0x1c8] ss:$12 sps:$4 sm:$0xff]   ;;  %v2127_v34 = vld [vmem:[%s3110_s0 + $0x230] ss:$12 sps:$4 sm:$0xff]  }
  0x5a   :  { %931 = vmatprep.mubr.bf16.mxu0 %v2043_v35  ;;  %1123 = vmatprep.mubr.bf16.mxu1 %v2045_v36  ;;  %v2128_v35 = vld [vmem:[%s3110_s0 + $0x1e4] ss:$12 sps:$4 sm:$0xff]   ;;  %v2130_v36 = vld [vmem:[%s3110_s0 + $0x248] ss:$12 sps:$4 sm:$0xff]  }
  0x61   :  { %932 = vmatmul.mubr.bf16.gmra.mrb[16].mxu0 %v2047_v37  ;;  %1124 = vmatmul.mubr.bf16.gmra.mrb[16].mxu1 %v2048_v38  ;;  %v2131_v37 = vld [vmem:[%s3110_s0 + $0x1e0] ss:$12 sps:$4 sm:$0xff]  }
  0x62   :  { %939 = vmatprep.mubr.bf16.mxu0 %v2050_v39  ;;  %1131 = vmatprep.mubr.bf16.mxu1 %v2052_v40  ;;  %v2132_v38 = vld [vmem:[%s3110_s0 + $0x260] ss:$12 sps:$4 sm:$0xff]   ;;  %v2133_v39 = vld [vmem:[%s3110_s0 + $0x1fc] ss:$12 sps:$4 sm:$0xff]   ;;  %v2135_v40 = vld [vmem:[%s3110_s0 + $0x278] ss:$12 sps:$4 sm:$0xff]  }
  0x69   :  { %940 = vmatmul.mubr.bf16.gmra.mrb[20].mxu0 %v2054_v41  ;;  %1132 = vmatmul.mubr.bf16.gmra.mrb[20].mxu1 %v2055_v42  ;;  %v2136_v41 = vld [vmem:[%s3110_s0 + $0x1f8] ss:$12 sps:$4 sm:$0xff]   ;;  %v2137_v42 = vld [vmem:[%s3110_s0 + $0x290] ss:$12 sps:$4 sm:$0xff]  }
  0x6a   :  { %947 = vmatprep.mubr.bf16.mxu0 %v2056_v43  ;;  %1139 = vmatprep.mubr.bf16.mxu1 %v2058_v44  ;;  %v2138_v43 = vld [vmem:[%s3110_s0 + $0x214] ss:$12 sps:$4 sm:$0xff]  }
  0x6b   :  { %v2140_v44 = vld [vmem:[%s3110_s0 + $0x2a8] ss:$12 sps:$4 sm:$0xff]  }
  0x71   :  { %948 = vmatmul.mubr.bf16.gmra.mrb[24].mxu0 %v2060_v45  ;;  %1140 = vmatmul.mubr.bf16.gmra.mrb[24].mxu1 %v2061_v46  ;;  %v2141_v45 = vld [vmem:[%s3110_s0 + $0x210] ss:$12 sps:$4 sm:$0xff]   ;;  %v2142_v46 = vld [vmem:[%s3110_s0 + $0x2c0] ss:$12 sps:$4 sm:$0xff]  }
  0x72   :  { %955 = vmatprep.mubr.bf16.mxu0 %v2062_v47  ;;  %1147 = vmatprep.mubr.bf16.mxu1 %v2064_v48  ;;  %v2143_v47 = vld [vmem:[%s3110_s0 + $0x22c] ss:$12 sps:$4 sm:$0xff]  }
  0x73   :  { %v2145_v48 = vld [vmem:[%s3110_s0 + $0x2d8] ss:$12 sps:$4 sm:$0xff]  }
  0x79   :  { %956 = vmatmul.mubr.bf16.gmra.mrb[28].mxu0 %v2066_v49  ;;  %1148 = vmatmul.mubr.bf16.gmra.mrb[28].mxu1 %v2067_v50  ;;  %v2146_v49 = vld [vmem:[%s3110_s0 + $0x228] ss:$12 sps:$4 sm:$0xff]   ;;  %v2147_v50 = vld [vmem:[%s3110_s0 + $0x2f0] ss:$12 sps:$4 sm:$0xff]  }
  0x7a   :  { %963 = vmatprep.mubr.bf16.mxu0 %v2068_v51  ;;  %1905 = vmatprep.mubr.msk.bf16.mxu1 %vm770_vm0, %v2070_v52 }
  0x81   :  { %964 = vmatmul.mubr.bf16.gmra.mrb[32].mxu0 %v2071_v53  ;;  %1906 = vmatmul.mubr.msk.bf16.vlgmr.msra.gmra.mrb[32].mxu1 %vm770_vm0, %v2072_v54 }
  0x82   :  { %971 = vmatprep.mubr.bf16.mxu0 %v2073_v55  ;;  %1909 = vmatprep.mubr.msk.bf16.mxu1 %vm770_vm0, %v2075_v56 }
  0x89   :  { %972 = vmatmul.mubr.bf16.gmra.mrb[36].mxu0 %v2076_v57  ;;  %1910 = vmatmul.mubr.msk.bf16.gmra.mrb[36].mxu1 %vm770_vm0, %v2077_v58 }
  0x8a   :  { %979 = vmatprep.mubr.bf16.mxu0 %v2078_v59  ;;  %1913 = vmatprep.mubr.msk.bf16.mxu1 %vm770_vm0, %v2080_v60 }
  0x91   :  { %980 = vmatmul.mubr.bf16.gmra.mrb[40].mxu0 %v2081_v61  ;;  %1914 = vmatmul.mubr.msk.bf16.gmra.mrb[40].mxu1 %vm770_vm0, %v2082_v62 }
  0x92   :  { %987 = vmatprep.mubr.bf16.mxu0 %v2083_v63  ;;  %1917 = vmatprep.mubr.msk.bf16.mxu1 %vm770_vm0, %v2085_v0 }
  0x99   :  { %988 = vmatmul.mubr.bf16.gmra.mrb[44].mxu0 %v2086_v1  ;;  %1918 = vmatmul.mubr.msk.bf16.gmra.mrb[44].mxu1 %vm770_vm0, %v2087_v2 }
  0x9a   :  { %995 = vmatprep.mubr.bf16.mxu0 %v2088_v3  ;;  %1921 = vmatprep.mubr.msk.bf16.mxu1 %vm770_vm0, %v2090_v4 }
  0xa1   :  { %996 = vmatmul.mubr.bf16.gmra.mrb[48].mxu0 %v2091_v5  ;;  %1922 = vmatmul.mubr.msk.bf16.gmra.mrb[48].mxu1 %vm770_vm0, %v2092_v6 }
  0xa2   :  { %1003 = vmatprep.mubr.bf16.mxu0 %v2093_v7  ;;  %1925 = vmatprep.mubr.msk.bf16.mxu1 %vm770_vm0, %v2095_v8 }
  0xa9   :  { %1004 = vmatmul.mubr.bf16.gmra.mrb[52].mxu0 %v2096_v9  ;;  %1926 = vmatmul.mubr.msk.bf16.gmra.mrb[52].mxu1 %vm770_vm0, %v2097_v10 }
  0xaa   :  { %1011 = vmatprep.mubr.bf16.mxu0 %v2098_v11  ;;  %1929 = vmatprep.mubr.msk.bf16.mxu1 %vm770_vm0, %v2100_v12 }
  0xb1   :  { %1012 = vmatmul.mubr.bf16.gmra.mrb[56].mxu0 %v2101_v13  ;;  %1930 = vmatmul.mubr.msk.bf16.gmra.mrb[56].mxu1 %vm770_vm0, %v2102_v14 }
  0xb2   :  { %1019 = vmatprep.mubr.bf16.mxu0 %v2103_v15  ;;  %1933 = vmatprep.mubr.msk.bf16.mxu1 %vm770_vm0, %v2105_v16 }
  0xb9   :  { %1020 = vmatmul.mubr.bf16.gmra.mrb[60].mxu0 %v2106_v17  ;;  %1934 = vmatmul.mubr.msk.bf16.gmra.mrb[60].mxu1 %vm770_vm0, %v2107_v18 }
  0xba   :  { %1027 = vmatprep.mubr.bf16.mxu0 %v2108_v19  ;;  %1937 = vmatprep.mubr.msk.bf16.mxu1 %vm770_vm0, %v2110_v20 }
  0xc1   :  { %1028 = vmatmul.mubr.bf16.gmra.mrb[64].mxu0 %v2111_v21  ;;  %1938 = vmatmul.mubr.msk.bf16.gmra.mrb[64].mxu1 %vm770_vm0, %v2112_v22 }
  0xc2   :  { %1035 = vmatprep.mubr.bf16.mxu0 %v2113_v23  ;;  %1941 = vmatprep.mubr.msk.bf16.mxu1 %vm770_vm0, %v2115_v24 }
  0xc9   :  { %1036 = vmatmul.mubr.bf16.gmra.mrb[68].mxu0 %v2116_v25  ;;  %1942 = vmatmul.mubr.msk.bf16.gmra.mrb[68].mxu1 %vm770_vm0, %v2117_v26 }
  0xca   :  { %1043 = vmatprep.mubr.bf16.mxu0 %v2118_v27  ;;  %1945 = vmatprep.mubr.msk.bf16.mxu1 %vm770_vm0, %v2120_v28 }
  0xd1   :  { %1044 = vmatmul.mubr.bf16.gmra.mrb[72].mxu0 %v2121_v29  ;;  %1946 = vmatmul.mubr.msk.bf16.gmra.mrb[72].mxu1 %vm770_vm0, %v2122_v30 }
  0xd2   :  { %1051 = vmatprep.mubr.bf16.mxu0 %v2123_v31  ;;  %1949 = vmatprep.mubr.msk.bf16.mxu1 %vm770_vm0, %v2125_v32 }
  0xd9   :  { %1052 = vmatmul.mubr.bf16.gmra.mrb[76].mxu0 %v2126_v33  ;;  %1950 = vmatmul.mubr.msk.bf16.gmra.mrb[76].mxu1 %vm770_vm0, %v2127_v34 }
  0xda   :  { %1059 = vmatprep.mubr.bf16.mxu0 %v2128_v35  ;;  %1953 = vmatprep.mubr.msk.bf16.mxu1 %vm770_vm0, %v2130_v36 }
  0xe1   :  { %1060 = vmatmul.mubr.bf16.gmra.mrb[80].mxu0 %v2131_v37  ;;  %1954 = vmatmul.mubr.msk.bf16.gmra.mrb[80].mxu1 %vm770_vm0, %v2132_v38 }
  0xe2   :  { %1067 = vmatprep.mubr.bf16.mxu0 %v2133_v39  ;;  %1957 = vmatprep.mubr.msk.bf16.mxu1 %vm770_vm0, %v2135_v40 }
  0xe9   :  { %1068 = vmatmul.mubr.bf16.gmra.mrb[84].mxu0 %v2136_v41  ;;  %1958 = vmatmul.mubr.msk.bf16.gmra.mrb[84].mxu1 %vm770_vm0, %v2137_v42 }
  0xea   :  { %1075 = vmatprep.mubr.bf16.mxu0 %v2138_v43  ;;  %1961 = vmatprep.mubr.msk.bf16.mxu1 %vm770_vm0, %v2140_v44 }
  0xf1   :  { %1076 = vmatmul.mubr.bf16.gmra.mrb[88].mxu0 %v2141_v45  ;;  %1962 = vmatmul.mubr.msk.bf16.gmra.mrb[88].mxu1 %vm770_vm0, %v2142_v46 }
  0xf2   :  { %1083 = vmatprep.mubr.bf16.mxu0 %v2143_v47  ;;  %1965 = vmatprep.mubr.msk.bf16.mxu1 %vm770_vm0, %v2145_v48 }
  0xf9   :  { %1084 = vmatmul.mubr.bf16.gmra.mrb[92].mxu0 %v2146_v49  ;;  %1966 = vmatmul.mubr.msk.bf16.gmra.mrb[92].mxu1 %vm770_vm0, %v2147_v50 }
 0x114   :  { %v2580_v51 = vpop.f32.mrb[0].mxu0  ;;  %v2582_v52 = vpop.f32.mrb[0].mxu1 }
 0x115   :  { %v903_v53 = vpop.f32.mrb[1].mxu0  ;;  %v1095_v54 = vpop.f32.mrb[1].mxu1 }
 0x116   :  { %v2584_v55 = vpop.f32.mrb[2].mxu0  ;;  %v2586_v56 = vpop.f32.mrb[2].mxu1 }
 0x117   :  { %v906_v57 = vpop.f32.mrb[3].mxu0  ;;  %v1098_v58 = vpop.f32.mrb[3].mxu1 }
 0x118   :  { %v2647_v57 = vld [vmem:[%s3111_s2] ss:$0 sm:$0xff] }
 0x11c   :  { %v909_v59 = vpop.f32.mrb[4].mxu0  ;;  %v2588_v60 = vpop.f32.mrb[4].mxu1 }
 0x11d   :  { %v911_v61 = vpop.f32.mrb[5].mxu0  ;;  %v1103_v62 = vpop.f32.mrb[5].mxu1 }
 0x11e   :  { %v2590_v63 = vpop.f32.mrb[6].mxu0  ;;  %v2592_v0 = vpop.f32.mrb[6].mxu1 }
 0x11f   :  { %v914_v1 = vpop.f32.mrb[7].mxu0  ;;  %v1106_v2 = vpop.f32.mrb[7].mxu1 }
 0x120   :  { %v2652_v1 = vld [vmem:[%s3112_s3] ss:$0 sm:$0xff] }
 0x124   :  { %v2594_v3 = vpop.f32.mrb[8].mxu0  ;;  %v2596_v4 = vpop.f32.mrb[8].mxu1 }
 0x125   :  { %v919_v5 = vpop.f32.mrb[9].mxu0  ;;  %v1111_v6 = vpop.f32.mrb[9].mxu1 }
 0x126   :  { %v2598_v7 = vpop.f32.mrb[10].mxu0  ;;  %v2600_v8 = vpop.f32.mrb[10].mxu1 }
 0x127   :  { %v922_v9 = vpop.f32.mrb[11].mxu0  ;;  %v1114_v10 = vpop.f32.mrb[11].mxu1 }
 0x12c   :  { %v2602_v11 = vpop.f32.mrb[12].mxu0  ;;  %v2604_v12 = vpop.f32.mrb[12].mxu1 }
 0x12d   :  { %v927_v13 = vpop.f32.mrb[13].mxu0  ;;  %v1119_v14 = vpop.f32.mrb[13].mxu1 }
 0x12e   :  { %v2606_v15 = vpop.f32.mrb[14].mxu0  ;;  %v2608_v16 = vpop.f32.mrb[14].mxu1 }
 0x12f   :  { %v930_v17 = vpop.f32.mrb[15].mxu0  ;;  %v1122_v18 = vpop.f32.mrb[15].mxu1 }
 0x134   :  { %v2610_v19 = vpop.f32.mrb[16].mxu0  ;;  %v2612_v20 = vpop.f32.mrb[16].mxu1 }
 0x135   :  { %v935_v21 = vpop.f32.mrb[17].mxu0  ;;  %v1127_v22 = vpop.f32.mrb[17].mxu1 }
 0x136   :  { %v2614_v23 = vpop.f32.mrb[18].mxu0  ;;  %v2616_v24 = vpop.f32.mrb[18].mxu1 }
 0x137   :  { %v938_v25 = vpop.f32.mrb[19].mxu0  ;;  %v1130_v26 = vpop.f32.mrb[19].mxu1 }
 0x13c   :  { %v2618_v27 = vpop.f32.mrb[20].mxu0  ;;  %v2620_v28 = vpop.f32.mrb[20].mxu1 }
 0x13d   :  { %v943_v29 = vpop.f32.mrb[21].mxu0  ;;  %v1135_v30 = vpop.f32.mrb[21].mxu1 }
 0x13e   :  { %v2622_v31 = vpop.f32.mrb[22].mxu0  ;;  %v2624_v32 = vpop.f32.mrb[22].mxu1 }
 0x13f   :  { %v946_v33 = vpop.f32.mrb[23].mxu0  ;;  %v1138_v34 = vpop.f32.mrb[23].mxu1 }
 0x144   :  { %v2626_v35 = vpop.f32.mrb[24].mxu0  ;;  %v2628_v36 = vpop.f32.mrb[24].mxu1 }
 0x145   :  { %v951_v37 = vpop.f32.mrb[25].mxu0  ;;  %v1143_v38 = vpop.f32.mrb[25].mxu1 }
 0x146   :  { %v2630_v39 = vpop.f32.mrb[26].mxu0  ;;  %v2632_v40 = vpop.f32.mrb[26].mxu1 }
 0x147   :  { %v954_v41 = vpop.f32.mrb[27].mxu0  ;;  %v1146_v42 = vpop.f32.mrb[27].mxu1 }
 0x14c   :  { %v2634_v43 = vpop.f32.mrb[28].mxu0  ;;  %v2636_v44 = vpop.f32.mrb[28].mxu1 }
 0x14d   :  { %v959_v45 = vpop.f32.mrb[29].mxu0  ;;  %v1151_v46 = vpop.f32.mrb[29].mxu1 }
 0x14e   :  { %v2638_v47 = vpop.f32.mrb[30].mxu0  ;;  %v2640_v48 = vpop.f32.mrb[30].mxu1 }
 0x14f   :  { %v962_v49 = vpop.f32.mrb[31].mxu0  ;;  %v1154_v50 = vpop.f32.mrb[31].mxu1 }
 0x154   :  { %v2642_v53 = vpop.f32.mrb[32].mxu0  ;;  %v1907_v54 = vpop.f32.mrb[32].mxu1 }
 0x155   :  { %v1199_v58 = vadd.f32 %v1907_v54, %v909_v59  ;;  %v967_v61 = vpop.f32.mrb[33].mxu0  ;;  %v1190_v62 = vpop.f32.mrb[33].mxu1 }
 0x156   :  { %v1191_v2 = vadd.f32 %v1190_v62, %v2580_v51  ;;  %v2655_v5 = vpop.f32.mrb[34].mxu0  ;;  %v1908_v6 = vpop.f32.mrb[34].mxu1 }
 0x157   :  { %v1454_v9 = vmul.f32 %v2647_v57, %v1199_v58  ;;  %v1202_v10 = vadd.f32 %v1908_v6, %v2590_v63  ;;  %v970_v13 = vpop.f32.mrb[35].mxu0  ;;  %v1193_v14 = vpop.f32.mrb[35].mxu1 }
 0x158   :  { %v1452_v59 = vmul.f32 %v2647_v57, %v1191_v2  ;;  %v1194_v17 = vadd.f32 %v1193_v14, %v2584_v55 }
 0x159   :  { %v1525_v18 = vadd.f32 %v2652_v1, %v1454_v9  ;;  %v1455_v21 = vmul.f32 %v2647_v57, %v1202_v10 }
 0x15a   :  { %v1523_v22 = vadd.f32 %v2652_v1, %v1452_v59  ;;  %v1453_v51 = vmul.f32 %v2647_v57, %v1194_v17 }
 0x15b   :  { %v1589_v25 = vmax.f32 %v1525_v18, 0.0  ;;  %v1526_v26 = vadd.f32 %v2652_v1, %v1455_v21 }
 0x15c   :  { %v1587_v29 = vmax.f32 %v1523_v22, 0.0  ;;  %v1524_v63 = vadd.f32 %v2652_v1, %v1453_v51  ;;  %v2667_v30 = vpop.f32.mrb[36].mxu0  ;;  %v1911_v33 = vpop.f32.mrb[36].mxu1 }
 0x15d   :  { %1653 = vst.msk [vmem:[%s3113_s4 + $0x10] sm:$0xff] %vm770_vm0, %v1589_v25  ;;  %v1590_v55 = vmax.f32 %v1526_v26, 0.0  ;;  %v1215_v34 = vadd.f32 %v1911_v33, %v2602_v11  ;;  %v975_v37 = vpop.f32.mrb[37].mxu0  ;;  %v1206_v38 = vpop.f32.mrb[37].mxu1 }
 0x15e   :  { %1651 = vst.msk [vmem:[%s3113_s4] sm:$0xff] %vm770_vm0, %v1587_v29  ;;  %v1588_v41 = vmax.f32 %v1524_v63, 0.0  ;;  %v1207_v42 = vadd.f32 %v1206_v38, %v2594_v3  ;;  %v2679_v45 = vpop.f32.mrb[38].mxu0  ;;  %v1912_v46 = vpop.f32.mrb[38].mxu1 }
 0x15f   :  { %1654 = vst.msk [vmem:[%s3113_s4 + $0x18] sm:$0xff] %vm770_vm0, %v1590_v55  ;;  %v1458_v11 = vmul.f32 %v2647_v57, %v1215_v34  ;;  %v1218_v49 = vadd.f32 %v1912_v46, %v2606_v15  ;;  %v978_v50 = vpop.f32.mrb[39].mxu0  ;;  %v1209_v54 = vpop.f32.mrb[39].mxu1 }
 0x160   :  { %1652 = vst.msk [vmem:[%s3113_s4 + $0x8] sm:$0xff] %vm770_vm0, %v1588_v41  ;;  %v1456_v3 = vmul.f32 %v2647_v57, %v1207_v42  ;;  %v1210_v58 = vadd.f32 %v1209_v54, %v2598_v7 }
 0x161   :  { %v1529_v61 = vadd.f32 %v2652_v1, %v1458_v11  ;;  %v1459_v62 = vmul.f32 %v2647_v57, %v1218_v49 }
 0x162   :  { %v1527_v2 = vadd.f32 %v2652_v1, %v1456_v3  ;;  %v1457_v6 = vmul.f32 %v2647_v57, %v1210_v58 }
 0x163   :  { %v1593_v15 = vmax.f32 %v1529_v61, 0.0  ;;  %v1530_v9 = vadd.f32 %v2652_v1, %v1459_v62 }
 0x164   :  { %v1591_v10 = vmax.f32 %v1527_v2, 0.0  ;;  %v1528_v13 = vadd.f32 %v2652_v1, %v1457_v6  ;;  %v2699_v14 = vpop.f32.mrb[40].mxu0  ;;  %v1915_v59 = vpop.f32.mrb[40].mxu1 }
 0x165   :  { %1657 = vst.msk [vmem:[%s3113_s4 + $0x30] sm:$0xff] %vm770_vm0, %v1593_v15  ;;  %v1594_v7 = vmax.f32 %v1530_v9, 0.0  ;;  %v1231_v17 = vadd.f32 %v1915_v59, %v2618_v27  ;;  %v983_v18 = vpop.f32.mrb[41].mxu0  ;;  %v1222_v21 = vpop.f32.mrb[41].mxu1 }
 0x166   :  { %1655 = vst.msk [vmem:[%s3113_s4 + $0x20] sm:$0xff] %vm770_vm0, %v1591_v10  ;;  %v1592_v22 = vmax.f32 %v1528_v13, 0.0  ;;  %v1223_v51 = vadd.f32 %v1222_v21, %v2610_v19  ;;  %v2711_v25 = vpop.f32.mrb[42].mxu0  ;;  %v1916_v26 = vpop.f32.mrb[42].mxu1 }
 0x167   :  { %1658 = vst.msk [vmem:[%s3113_s4 + $0x38] sm:$0xff] %vm770_vm0, %v1594_v7  ;;  %v1462_v27 = vmul.f32 %v2647_v57, %v1231_v17  ;;  %v1234_v29 = vadd.f32 %v1916_v26, %v2622_v31  ;;  %v986_v63 = vpop.f32.mrb[43].mxu0  ;;  %v1225_v33 = vpop.f32.mrb[43].mxu1 }
 0x168   :  { %1656 = vst.msk [vmem:[%s3113_s4 + $0x28] sm:$0xff] %vm770_vm0, %v1592_v22  ;;  %v1460_v19 = vmul.f32 %v2647_v57, %v1223_v51  ;;  %v1226_v55 = vadd.f32 %v1225_v33, %v2614_v23 }
 0x169   :  { %v1533_v34 = vadd.f32 %v2652_v1, %v1462_v27  ;;  %v1463_v37 = vmul.f32 %v2647_v57, %v1234_v29 }
 0x16a   :  { %v1531_v38 = vadd.f32 %v2652_v1, %v1460_v19  ;;  %v1461_v41 = vmul.f32 %v2647_v57, %v1226_v55 }
 0x16b   :  { %v1597_v31 = vmax.f32 %v1533_v34, 0.0  ;;  %v1534_v42 = vadd.f32 %v2652_v1, %v1463_v37 }
 0x16c   :  { %v1595_v46 = vmax.f32 %v1531_v38, 0.0  ;;  %v1532_v11 = vadd.f32 %v2652_v1, %v1461_v41  ;;  %v989_v49 = vpop.f32.mrb[44].mxu0  ;;  %v1919_v50 = vpop.f32.mrb[44].mxu1 }
 0x16d   :  { %1661 = vst.msk [vmem:[%s3113_s4 + $0x50] sm:$0xff] %vm770_vm0, %v1597_v31  ;;  %v1598_v23 = vmax.f32 %v1534_v42, 0.0  ;;  %v1247_v54 = vadd.f32 %v1919_v50, %v2634_v43  ;;  %v991_v3 = vpop.f32.mrb[45].mxu0  ;;  %v1238_v58 = vpop.f32.mrb[45].mxu1 }
 0x16e   :  { %1659 = vst.msk [vmem:[%s3113_s4 + $0x40] sm:$0xff] %vm770_vm0, %v1595_v46  ;;  %v1596_v61 = vmax.f32 %v1532_v11, 0.0  ;;  %v1239_v62 = vadd.f32 %v1238_v58, %v2626_v35  ;;  %v992_v2 = vpop.f32.mrb[46].mxu0  ;;  %v1920_v6 = vpop.f32.mrb[46].mxu1 }
 0x16f   :  { %1662 = vst.msk [vmem:[%s3113_s4 + $0x58] sm:$0xff] %vm770_vm0, %v1598_v23  ;;  %v1466_v15 = vmul.f32 %v2647_v57, %v1247_v54  ;;  %v1250_v43 = vadd.f32 %v1920_v6, %v2638_v47  ;;  %v994_v9 = vpop.f32.mrb[47].mxu0  ;;  %v1241_v10 = vpop.f32.mrb[47].mxu1 }
 0x170   :  { %1660 = vst.msk [vmem:[%s3113_s4 + $0x48] sm:$0xff] %vm770_vm0, %v1596_v61  ;;  %v1464_v35 = vmul.f32 %v2647_v57, %v1239_v62  ;;  %v1242_v13 = vadd.f32 %v1241_v10, %v2630_v39 }
 0x171   :  { %v1537_v59 = vadd.f32 %v2652_v1, %v1466_v15  ;;  %v1467_v7 = vmul.f32 %v2647_v57, %v1250_v43 }
 0x172   :  { %v1535_v17 = vadd.f32 %v2652_v1, %v1464_v35  ;;  %v1465_v18 = vmul.f32 %v2647_v57, %v1242_v13 }
 0x173   :  { %v1601_v47 = vmax.f32 %v1537_v59, 0.0  ;;  %v1538_v21 = vadd.f32 %v2652_v1, %v1467_v7 }
 0x174   :  { %v1599_v22 = vmax.f32 %v1535_v17, 0.0  ;;  %v1536_v51 = vadd.f32 %v2652_v1, %v1465_v18  ;;  %v2759_v26 = vpop.f32.mrb[48].mxu0  ;;  %v1923_v27 = vpop.f32.mrb[48].mxu1 }
 0x175   :  { %1665 = vst.msk [vmem:[%s3113_s4 + $0x70] sm:$0xff] %vm770_vm0, %v1601_v47  ;;  %v1602_v39 = vmax.f32 %v1538_v21, 0.0  ;;  %v1263_v29 = vadd.f32 %v1923_v27, %v2667_v30  ;;  %v999_v63 = vpop.f32.mrb[49].mxu0  ;;  %v1254_v33 = vpop.f32.mrb[49].mxu1 }
 0x176   :  { %1663 = vst.msk [vmem:[%s3113_s4 + $0x60] sm:$0xff] %vm770_vm0, %v1599_v22  ;;  %v1600_v19 = vmax.f32 %v1536_v51, 0.0  ;;  %v1255_v55 = vadd.f32 %v1254_v33, %v2642_v53  ;;  %v2771_v34 = vpop.f32.mrb[50].mxu0  ;;  %v1924_v37 = vpop.f32.mrb[50].mxu1 }
 0x177   :  { %1666 = vst.msk [vmem:[%s3113_s4 + $0x78] sm:$0xff] %vm770_vm0, %v1602_v39  ;;  %v1470_v30 = vmul.f32 %v2647_v57, %v1263_v29  ;;  %v1266_v38 = vadd.f32 %v1924_v37, %v2679_v45  ;;  %v1002_v41 = vpop.f32.mrb[51].mxu0  ;;  %v1257_v31 = vpop.f32.mrb[51].mxu1 }
 0x178   :  { %1664 = vst.msk [vmem:[%s3113_s4 + $0x68] sm:$0xff] %vm770_vm0, %v1600_v19  ;;  %v1468_v53 = vmul.f32 %v2647_v57, %v1255_v55  ;;  %v1258_v42 = vadd.f32 %v1257_v31, %v2655_v5 }
 0x179   :  { %v1541_v46 = vadd.f32 %v2652_v1, %v1470_v30  ;;  %v1471_v11 = vmul.f32 %v2647_v57, %v1266_v38 }
 0x17a   :  { %v1539_v50 = vadd.f32 %v2652_v1, %v1468_v53  ;;  %v1469_v23 = vmul.f32 %v2647_v57, %v1258_v42 }
 0x17b   :  { %v1605_v45 = vmax.f32 %v1541_v46, 0.0  ;;  %v1542_v54 = vadd.f32 %v2652_v1, %v1471_v11 }
 0x17c   :  { %v1603_v3 = vmax.f32 %v1539_v50, 0.0  ;;  %v1540_v58 = vadd.f32 %v2652_v1, %v1469_v23  ;;  %v1005_v61 = vpop.f32.mrb[52].mxu0  ;;  %v1927_v62 = vpop.f32.mrb[52].mxu1 }
 0x17d   :  { %1669 = vst.msk [vmem:[%s3113_s4 + $0x90] sm:$0xff] %vm770_vm0, %v1605_v45  ;;  %v1606_v5 = vmax.f32 %v1542_v54, 0.0  ;;  %v1279_v6 = vadd.f32 %v1927_v62, %v989_v49  ;;  %v1007_v15 = vpop.f32.mrb[53].mxu0  ;;  %v1270_v43 = vpop.f32.mrb[53].mxu1 }
 0x17e   :  { %1667 = vst.msk [vmem:[%s3113_s4 + $0x80] sm:$0xff] %vm770_vm0, %v1603_v3  ;;  %v1604_v9 = vmax.f32 %v1540_v58, 0.0  ;;  %v1271_v10 = vadd.f32 %v1270_v43, %v2699_v14  ;;  %v1008_v35 = vpop.f32.mrb[54].mxu0  ;;  %v1928_v13 = vpop.f32.mrb[54].mxu1 }
 0x17f   :  { %1670 = vst.msk [vmem:[%s3113_s4 + $0x98] sm:$0xff] %vm770_vm0, %v1606_v5  ;;  %v1474_v59 = vmul.f32 %v2647_v57, %v1279_v6  ;;  %v1282_v49 = vadd.f32 %v1928_v13, %v992_v2  ;;  %v1010_v7 = vpop.f32.mrb[55].mxu0  ;;  %v1273_v17 = vpop.f32.mrb[55].mxu1 }
 0x180   :  { %1668 = vst.msk [vmem:[%s3113_s4 + $0x88] sm:$0xff] %vm770_vm0, %v1604_v9  ;;  %v1472_v18 = vmul.f32 %v2647_v57, %v1271_v10  ;;  %v1274_v14 = vadd.f32 %v1273_v17, %v2711_v25 }
 0x181   :  { %v1545_v47 = vadd.f32 %v2652_v1, %v1474_v59  ;;  %v1475_v21 = vmul.f32 %v2647_v57, %v1282_v49 }
 0x182   :  { %v1543_v22 = vadd.f32 %v2652_v1, %v1472_v18  ;;  %v1473_v51 = vmul.f32 %v2647_v57, %v1274_v14 }
 0x183   :  { %v1609_v2 = vmax.f32 %v1545_v47, 0.0  ;;  %v1546_v27 = vadd.f32 %v2652_v1, %v1475_v21 }
 0x184   :  { %v1607_v39 = vmax.f32 %v1543_v22, 0.0  ;;  %v1544_v29 = vadd.f32 %v2652_v1, %v1473_v51  ;;  %v1013_v63 = vpop.f32.mrb[56].mxu0  ;;  %v1931_v33 = vpop.f32.mrb[56].mxu1 }
 0x185   :  { %1673 = vst.msk [vmem:[%s3113_s4 + $0xb0] sm:$0xff] %vm770_vm0, %v1609_v2  ;;  %v1610_v25 = vmax.f32 %v1546_v27, 0.0  ;;  %v1295_v19 = vadd.f32 %v1931_v33, %v1005_v61  ;;  %v1015_v55 = vpop.f32.mrb[57].mxu0  ;;  %v1286_v37 = vpop.f32.mrb[57].mxu1 }
 0x186   :  { %1671 = vst.msk [vmem:[%s3113_s4 + $0xa0] sm:$0xff] %vm770_vm0, %v1607_v39  ;;  %v1608_v30 = vmax.f32 %v1544_v29, 0.0  ;;  %v1287_v38 = vadd.f32 %v1286_v37, %v2759_v26  ;;  %v1016_v41 = vpop.f32.mrb[58].mxu0  ;;  %v1932_v31 = vpop.f32.mrb[58].mxu1 }
 0x187   :  { %1674 = vst.msk [vmem:[%s3113_s4 + $0xb8] sm:$0xff] %vm770_vm0, %v1610_v25  ;;  %v1478_v53 = vmul.f32 %v2647_v57, %v1295_v19  ;;  %v1298_v42 = vadd.f32 %v1932_v31, %v1008_v35  ;;  %v1018_v46 = vpop.f32.mrb[59].mxu0  ;;  %v1289_v11 = vpop.f32.mrb[59].mxu1 }
 0x188   :  { %1672 = vst.msk [vmem:[%s3113_s4 + $0xa8] sm:$0xff] %vm770_vm0, %v1608_v30  ;;  %v1476_v50 = vmul.f32 %v2647_v57, %v1287_v38  ;;  %v1290_v26 = vadd.f32 %v1289_v11, %v2771_v34 }
 0x189   :  { %v1549_v23 = vadd.f32 %v2652_v1, %v1478_v53  ;;  %v1479_v45 = vmul.f32 %v2647_v57, %v1298_v42 }
 0x18a   :  { %v1547_v54 = vadd.f32 %v2652_v1, %v1476_v50  ;;  %v1477_v3 = vmul.f32 %v2647_v57, %v1290_v26 }
 0x18b   :  { %v1613_v58 = vmax.f32 %v1549_v23, 0.0  ;;  %v1550_v61 = vadd.f32 %v2652_v1, %v1479_v45 }
 0x18c   :  { %v1611_v62 = vmax.f32 %v1547_v54, 0.0  ;;  %v1548_v5 = vadd.f32 %v2652_v1, %v1477_v3  ;;  %v1021_v6 = vpop.f32.mrb[60].mxu0  ;;  %v1935_v15 = vpop.f32.mrb[60].mxu1 }
 0x18d   :  { %1677 = vst.msk [vmem:[%s3113_s4 + $0xd0] sm:$0xff] %vm770_vm0, %v1613_v58  ;;  %v1614_v34 = vmax.f32 %v1550_v61, 0.0  ;;  %v1311_v43 = vadd.f32 %v1935_v15, %v1021_v6  ;;  %v1023_v9 = vpop.f32.mrb[61].mxu0  ;;  %v1302_v10 = vpop.f32.mrb[61].mxu1 }
 0x18e   :  { %1675 = vst.msk [vmem:[%s3113_s4 + $0xc0] sm:$0xff] %vm770_vm0, %v1611_v62  ;;  %v1612_v35 = vmax.f32 %v1548_v5, 0.0  ;;  %v1303_v13 = vadd.f32 %v1302_v10, %v1013_v63  ;;  %v1024_v59 = vpop.f32.mrb[62].mxu0  ;;  %v1936_v49 = vpop.f32.mrb[62].mxu1 }
 0x18f   :  { %1678 = vst.msk [vmem:[%s3113_s4 + $0xd8] sm:$0xff] %vm770_vm0, %v1614_v34  ;;  %v1482_v7 = vmul.f32 %v2647_v57, %v1311_v43  ;;  %v1314_v17 = vadd.f32 %v1936_v49, %v1024_v59  ;;  %v1026_v18 = vpop.f32.mrb[63].mxu0  ;;  %v1305_v14 = vpop.f32.mrb[63].mxu1 }
 0x190   :  { %1676 = vst.msk [vmem:[%s3113_s4 + $0xc8] sm:$0xff] %vm770_vm0, %v1612_v35  ;;  %v1480_v47 = vmul.f32 %v2647_v57, %v1303_v13  ;;  %v1306_v21 = vadd.f32 %v1305_v14, %v1016_v41 }
 0x191   :  { %v1553_v22 = vadd.f32 %v2652_v1, %v1482_v7  ;;  %v1483_v51 = vmul.f32 %v2647_v57, %v1314_v17 }
 0x192   :  { %v1551_v2 = vadd.f32 %v2652_v1, %v1480_v47  ;;  %v1481_v27 = vmul.f32 %v2647_v57, %v1306_v21 }
 0x193   :  { %v1617_v39 = vmax.f32 %v1553_v22, 0.0  ;;  %v1554_v29 = vadd.f32 %v2652_v1, %v1483_v51 }
 0x194   :  { %v1615_v63 = vmax.f32 %v1551_v2, 0.0  ;;  %v1552_v33 = vadd.f32 %v2652_v1, %v1481_v27  ;;  %v1029_v25 = vpop.f32.mrb[64].mxu0  ;;  %v1939_v19 = vpop.f32.mrb[64].mxu1 }
 0x195   :  { %1681 = vst.msk [vmem:[%s3113_s4 + $0xf0] sm:$0xff] %vm770_vm0, %v1617_v39  ;;  %v1618_v55 = vmax.f32 %v1554_v29, 0.0  ;;  %v1031_v37 = vpop.f32.mrb[65].mxu0  ;;  %v1318_v30 = vpop.f32.mrb[65].mxu1 }
 0x196   :  { %1679 = vst.msk [vmem:[%s3113_s4 + $0xe0] sm:$0xff] %vm770_vm0, %v1615_v63  ;;  %v1616_v38 = vmax.f32 %v1552_v33, 0.0  ;;  %v1319_v41 = vadd.f32 %v1318_v30, %v1029_v25  ;;  %v1032_v31 = vpop.f32.mrb[66].mxu0  ;;  %v1940_v53 = vpop.f32.mrb[66].mxu1 }
 0x197   :  { %1682 = vst.msk [vmem:[%s3113_s4 + $0xf8] sm:$0xff] %vm770_vm0, %v1618_v55  ;;  %v1034_v42 = vpop.f32.mrb[67].mxu0  ;;  %v1321_v46 = vpop.f32.mrb[67].mxu1 }
 0x198   :  { %1680 = vst.msk [vmem:[%s3113_s4 + $0xe8] sm:$0xff] %vm770_vm0, %v1616_v38  ;;  %v1484_v11 = vmul.f32 %v2647_v57, %v1319_v41  ;;  %v1322_v50 = vadd.f32 %v1321_v46, %v1032_v31 }
 0x19a   :  { %v1555_v26 = vadd.f32 %v2652_v1, %v1484_v11  ;;  %v1485_v23 = vmul.f32 %v2647_v57, %v1322_v50 }
 0x19c   :  { %v1619_v45 = vmax.f32 %v1555_v26, 0.0  ;;  %v1556_v54 = vadd.f32 %v2652_v1, %v1485_v23  ;;  %v1037_v3 = vpop.f32.mrb[68].mxu0  ;;  %v1943_v58 = vpop.f32.mrb[68].mxu1 }
 0x19d   :  { %v1327_v61 = vadd.f32 %v1939_v19, %v1037_v3  ;;  %v1039_v62 = vpop.f32.mrb[69].mxu0  ;;  %v1334_v5 = vpop.f32.mrb[69].mxu1 }
 0x19e   :  { %1683 = vst.msk [vmem:[%s3113_s4 + $0x100] sm:$0xff] %vm770_vm0, %v1619_v45  ;;  %v1620_v6 = vmax.f32 %v1556_v54, 0.0  ;;  %v1040_v15 = vpop.f32.mrb[70].mxu0  ;;  %v1944_v34 = vpop.f32.mrb[70].mxu1 }
 0x19f   :  { %v1486_v43 = vmul.f32 %v2647_v57, %v1327_v61  ;;  %v1330_v9 = vadd.f32 %v1940_v53, %v1040_v15  ;;  %v1042_v10 = vpop.f32.mrb[71].mxu0  ;;  %v1337_v35 = vpop.f32.mrb[71].mxu1 }
 0x1a0   :  { %1684 = vst.msk [vmem:[%s3113_s4 + $0x108] sm:$0xff] %vm770_vm0, %v1620_v6 }
 0x1a1   :  { %v1557_v13 = vadd.f32 %v2652_v1, %v1486_v43  ;;  %v1487_v59 = vmul.f32 %v2647_v57, %v1330_v9 }
 0x1a3   :  { %v1621_v49 = vmax.f32 %v1557_v13, 0.0  ;;  %v1558_v7 = vadd.f32 %v2652_v1, %v1487_v59 }
 0x1a4   :  { %v1045_v17 = vpop.f32.mrb[72].mxu0  ;;  %v2899_v18 = vpop.f32.mrb[72].mxu1 }
 0x1a5   :  { %1685 = vst.msk [vmem:[%s3113_s4 + $0x110] sm:$0xff] %vm770_vm0, %v1621_v49  ;;  %v1622_v14 = vmax.f32 %v1558_v7, 0.0  ;;  %v1335_v47 = vadd.f32 %v1334_v5, %v1045_v17  ;;  %v1047_v21 = vpop.f32.mrb[73].mxu0  ;;  %v1350_v22 = vpop.f32.mrb[73].mxu1 }
 0x1a6   :  { %v1048_v51 = vpop.f32.mrb[74].mxu0  ;;  %v2905_v2 = vpop.f32.mrb[74].mxu1 }
 0x1a7   :  { %1686 = vst.msk [vmem:[%s3113_s4 + $0x118] sm:$0xff] %vm770_vm0, %v1622_v14  ;;  %v1488_v27 = vmul.f32 %v2647_v57, %v1335_v47  ;;  %v1338_v39 = vadd.f32 %v1337_v35, %v1048_v51  ;;  %v1050_v29 = vpop.f32.mrb[75].mxu0  ;;  %v1353_v63 = vpop.f32.mrb[75].mxu1 }
 0x1a9   :  { %v1559_v33 = vadd.f32 %v2652_v1, %v1488_v27  ;;  %v1489_v25 = vmul.f32 %v2647_v57, %v1338_v39 }
 0x1ab   :  { %v1623_v19 = vmax.f32 %v1559_v33, 0.0  ;;  %v1560_v55 = vadd.f32 %v2652_v1, %v1489_v25 }
 0x1ac   :  { %v1053_v37 = vpop.f32.mrb[76].mxu0  ;;  %v2915_v30 = vpop.f32.mrb[76].mxu1 }
 0x1ad   :  { %1687 = vst.msk [vmem:[%s3113_s4 + $0x120] sm:$0xff] %vm770_vm0, %v1623_v19  ;;  %v1624_v38 = vmax.f32 %v1560_v55, 0.0  ;;  %v1343_v41 = vadd.f32 %v1943_v58, %v1053_v37  ;;  %v1055_v31 = vpop.f32.mrb[77].mxu0  ;;  %v2921_v53 = vpop.f32.mrb[77].mxu1 }
 0x1ae   :  { %v1056_v42 = vpop.f32.mrb[78].mxu0  ;;  %v2923_v46 = vpop.f32.mrb[78].mxu1 }
 0x1af   :  { %1688 = vst.msk [vmem:[%s3113_s4 + $0x128] sm:$0xff] %vm770_vm0, %v1624_v38  ;;  %v1490_v11 = vmul.f32 %v2647_v57, %v1343_v41  ;;  %v1346_v50 = vadd.f32 %v1944_v34, %v1056_v42  ;;  %v1058_v26 = vpop.f32.mrb[79].mxu0  ;;  %v2930_v23 = vpop.f32.mrb[79].mxu1 }
 0x1b1   :  { %v1561_v45 = vadd.f32 %v2652_v1, %v1490_v11  ;;  %v1491_v54 = vmul.f32 %v2647_v57, %v1346_v50 }
 0x1b3   :  { %v1625_v3 = vmax.f32 %v1561_v45, 0.0  ;;  %v1562_v58 = vadd.f32 %v2652_v1, %v1491_v54 }
 0x1b4   :  { %v1061_v61 = vpop.f32.mrb[80].mxu0  ;;  %v1955_v62 = vpop.f32.mrb[80].mxu1 }
 0x1b5   :  { %1689 = vst.msk [vmem:[%s3113_s4 + $0x130] sm:$0xff] %vm770_vm0, %v1625_v3  ;;  %v1626_v5 = vmax.f32 %v1562_v58, 0.0  ;;  %v1351_v6 = vadd.f32 %v1350_v22, %v1061_v61  ;;  %v1391_v15 = vadd.f32 %v1955_v62, %v2588_v60  ;;  %v1063_v34 = vpop.f32.mrb[81].mxu0  ;;  %v1382_v43 = vpop.f32.mrb[81].mxu1 }
 0x1b6   :  { %v1383_v9 = vadd.f32 %v1382_v43, %v2582_v52  ;;  %v1064_v10 = vpop.f32.mrb[82].mxu0  ;;  %v1956_v35 = vpop.f32.mrb[82].mxu1 }
 0x1b7   :  { %1690 = vst.msk [vmem:[%s3113_s4 + $0x138] sm:$0xff] %vm770_vm0, %v1626_v5  ;;  %v1492_v13 = vmul.f32 %v2647_v57, %v1351_v6  ;;  %v1502_v59 = vmul.f32 %v2647_v57, %v1391_v15  ;;  %v1354_v49 = vadd.f32 %v1353_v63, %v1064_v10  ;;  %v1394_v7 = vadd.f32 %v1956_v35, %v2592_v0  ;;  %v1066_v17 = vpop.f32.mrb[83].mxu0  ;;  %v1385_v60 = vpop.f32.mrb[83].mxu1 }
 0x1b8   :  { %v1500_v14 = vmul.f32 %v2647_v57, %v1383_v9  ;;  %v1386_v52 = vadd.f32 %v1385_v60, %v2586_v56 }
 0x1b9   :  { %v1563_v47 = vadd.f32 %v2652_v1, %v1492_v13  ;;  %v1573_v21 = vadd.f32 %v2652_v1, %v1502_v59  ;;  %v1493_v22 = vmul.f32 %v2647_v57, %v1354_v49  ;;  %v1503_v51 = vmul.f32 %v2647_v57, %v1394_v7 }
 0x1ba   :  { %v1571_v27 = vadd.f32 %v2652_v1, %v1500_v14  ;;  %v1501_v39 = vmul.f32 %v2647_v57, %v1386_v52 }
 0x1bb   :  { %v1627_v29 = vmax.f32 %v1563_v47, 0.0  ;;  %v1637_v0 = vmax.f32 %v1573_v21, 0.0  ;;  %v1564_v63 = vadd.f32 %v2652_v1, %v1493_v22  ;;  %v1574_v33 = vadd.f32 %v2652_v1, %v1503_v51 }
 0x1bc   :  { %v1635_v25 = vmax.f32 %v1571_v27, 0.0  ;;  %v1572_v56 = vadd.f32 %v2652_v1, %v1501_v39  ;;  %v1069_v19 = vpop.f32.mrb[84].mxu0  ;;  %v1959_v55 = vpop.f32.mrb[84].mxu1 }
 0x1bd   :  { %1691 = vst.msk [vmem:[%s3113_s4 + $0x140] sm:$0xff] %vm770_vm0, %v1627_v29  ;;  %1701 = vst.msk [vmem:[%s3113_s4 + $0x190] sm:$0xff] %vm770_vm0, %v1637_v0  ;;  %v1628_v37 = vmax.f32 %v1564_v63, 0.0  ;;  %v1638_v38 = vmax.f32 %v1574_v33, 0.0  ;;  %v1359_v41 = vadd.f32 %v2899_v18, %v1069_v19  ;;  %v1407_v31 = vadd.f32 %v1959_v55, %v2604_v12  ;;  %v1071_v42 = vpop.f32.mrb[85].mxu0  ;;  %v1398_v11 = vpop.f32.mrb[85].mxu1 }
 0x1be   :  { %1699 = vst.msk [vmem:[%s3113_s4 + $0x180] sm:$0xff] %vm770_vm0, %v1635_v25  ;;  %v1636_v50 = vmax.f32 %v1572_v56, 0.0  ;;  %v1399_v26 = vadd.f32 %v1398_v11, %v2596_v4  ;;  %v1072_v45 = vpop.f32.mrb[86].mxu0  ;;  %v1960_v54 = vpop.f32.mrb[86].mxu1 }
 0x1bf   :  { %1692 = vst.msk [vmem:[%s3113_s4 + $0x148] sm:$0xff] %vm770_vm0, %v1628_v37  ;;  %1702 = vst.msk [vmem:[%s3113_s4 + $0x198] sm:$0xff] %vm770_vm0, %v1638_v38  ;;  %v1494_v12 = vmul.f32 %v2647_v57, %v1359_v41  ;;  %v1506_v18 = vmul.f32 %v2647_v57, %v1407_v31  ;;  %v1362_v3 = vadd.f32 %v2905_v2, %v1072_v45  ;;  %v1074_v58 = vpop.f32.mrb[87].mxu0  ;;  %v1401_v61 = vpop.f32.mrb[87].mxu1 }
 0x1c0   :  { %v1410_v4 = vadd.f32 %v1960_v54, %v2608_v16  ;;  %1700 = vst.msk [vmem:[%s3113_s4 + $0x188] sm:$0xff] %vm770_vm0, %v1636_v50  ;;  %v1504_v62 = vmul.f32 %v2647_v57, %v1399_v26  ;;  %v1402_v5 = vadd.f32 %v1401_v61, %v2600_v8 }
 0x1c1   :  { %v1565_v6 = vadd.f32 %v2652_v1, %v1494_v12  ;;  %v1577_v15 = vadd.f32 %v2652_v1, %v1506_v18  ;;  %v1495_v34 = vmul.f32 %v2647_v57, %v1362_v3 }
 0x1c2   :  { %v1507_v2 = vmul.f32 %v2647_v57, %v1410_v4  ;;  %v1575_v16 = vadd.f32 %v2652_v1, %v1504_v62  ;;  %v1505_v43 = vmul.f32 %v2647_v57, %v1402_v5 }
 0x1c3   :  { %v1629_v9 = vmax.f32 %v1565_v6, 0.0  ;;  %v1641_v10 = vmax.f32 %v1577_v15, 0.0  ;;  %v1566_v35 = vadd.f32 %v2652_v1, %v1495_v34 }
 0x1c4   :  { %v1578_v13 = vadd.f32 %v2652_v1, %v1507_v2  ;;  %v1639_v59 = vmax.f32 %v1575_v16, 0.0  ;;  %v1576_v8 = vadd.f32 %v2652_v1, %v1505_v43  ;;  %v1077_v49 = vpop.f32.mrb[88].mxu0  ;;  %v1963_v7 = vpop.f32.mrb[88].mxu1 }
 0x1c5   :  { %1693 = vst.msk [vmem:[%s3113_s4 + $0x150] sm:$0xff] %vm770_vm0, %v1629_v9  ;;  %1705 = vst.msk [vmem:[%s3113_s4 + $0x1b0] sm:$0xff] %vm770_vm0, %v1641_v10  ;;  %v1630_v17 = vmax.f32 %v1566_v35, 0.0  ;;  %v1367_v14 = vadd.f32 %v2921_v53, %v1077_v49  ;;  %v1423_v52 = vadd.f32 %v1963_v7, %v2620_v28  ;;  %v1079_v47 = vpop.f32.mrb[89].mxu0  ;;  %v1414_v21 = vpop.f32.mrb[89].mxu1 }
 0x1c6   :  { %v1642_v60 = vmax.f32 %v1578_v13, 0.0  ;;  %1703 = vst.msk [vmem:[%s3113_s4 + $0x1a0] sm:$0xff] %vm770_vm0, %v1639_v59  ;;  %v1640_v22 = vmax.f32 %v1576_v8, 0.0  ;;  %v1415_v51 = vadd.f32 %v1414_v21, %v2612_v20  ;;  %v1080_v27 = vpop.f32.mrb[90].mxu0  ;;  %v1964_v39 = vpop.f32.mrb[90].mxu1 }
 0x1c7   :  { %1694 = vst.msk [vmem:[%s3113_s4 + $0x158] sm:$0xff] %vm770_vm0, %v1630_v17  ;;  %v1496_v28 = vmul.f32 %v2647_v57, %v1367_v14  ;;  %v1510_v53 = vmul.f32 %v2647_v57, %v1423_v52  ;;  %v1370_v29 = vadd.f32 %v2930_v23, %v1080_v27  ;;  %v1426_v20 = vadd.f32 %v1964_v39, %v2624_v32  ;;  %v1082_v0 = vpop.f32.mrb[91].mxu0  ;;  %v1417_v63 = vpop.f32.mrb[91].mxu1 }
 0x1c8   :  { %1706 = vst.msk [vmem:[%s3113_s4 + $0x1b8] sm:$0xff] %vm770_vm0, %v1642_v60  ;;  %1704 = vst.msk [vmem:[%s3113_s4 + $0x1a8] sm:$0xff] %vm770_vm0, %v1640_v22  ;;  %v1508_v33 = vmul.f32 %v2647_v57, %v1415_v51  ;;  %v1418_v25 = vadd.f32 %v1417_v63, %v2616_v24 }
 0x1c9   :  { %v1567_v56 = vadd.f32 %v2652_v1, %v1496_v28  ;;  %v1581_v19 = vadd.f32 %v2652_v1, %v1510_v53  ;;  %v1497_v55 = vmul.f32 %v2647_v57, %v1370_v29  ;;  %v1511_v23 = vmul.f32 %v2647_v57, %v1426_v20 }
 0x1ca   :  { %v1579_v32 = vadd.f32 %v2652_v1, %v1508_v33  ;;  %v1509_v37 = vmul.f32 %v2647_v57, %v1418_v25 }
 0x1cb   :  { %v1631_v38 = vmax.f32 %v1567_v56, 0.0  ;;  %v1645_v41 = vmax.f32 %v1581_v19, 0.0  ;;  %v1568_v31 = vadd.f32 %v2652_v1, %v1497_v55  ;;  %v1582_v42 = vadd.f32 %v2652_v1, %v1511_v23 }
 0x1cc   :  { %v1643_v11 = vmax.f32 %v1579_v32, 0.0  ;;  %v1580_v24 = vadd.f32 %v2652_v1, %v1509_v37  ;;  %v1085_v50 = vpop.f32.mrb[92].mxu0  ;;  %v1967_v26 = vpop.f32.mrb[92].mxu1 }
 0x1cd   :  { %1695 = vst.msk [vmem:[%s3113_s4 + $0x160] sm:$0xff] %vm770_vm0, %v1631_v38  ;;  %1709 = vst.msk [vmem:[%s3113_s4 + $0x1d0] sm:$0xff] %vm770_vm0, %v1645_v41  ;;  %v1632_v45 = vmax.f32 %v1568_v31, 0.0  ;;  %v1646_v54 = vmax.f32 %v1582_v42, 0.0  ;;  %v1375_v12 = vadd.f32 %v2915_v30, %v1085_v50  ;;  %v1439_v18 = vadd.f32 %v1967_v26, %v2636_v44  ;;  %v1087_v3 = vpop.f32.mrb[93].mxu0  ;;  %v1430_v4 = vpop.f32.mrb[93].mxu1 }
 0x1ce   :  { %1707 = vst.msk [vmem:[%s3113_s4 + $0x1c0] sm:$0xff] %vm770_vm0, %v1643_v11  ;;  %v1644_v58 = vmax.f32 %v1580_v24, 0.0  ;;  %v1431_v61 = vadd.f32 %v1430_v4, %v2628_v36  ;;  %v1088_v62 = vpop.f32.mrb[94].mxu0  ;;  %v1968_v5 = vpop.f32.mrb[94].mxu1 }
 0x1cf   :  { %1696 = vst.msk [vmem:[%s3113_s4 + $0x168] sm:$0xff] %vm770_vm0, %v1632_v45  ;;  %1710 = vst.msk [vmem:[%s3113_s4 + $0x1d8] sm:$0xff] %vm770_vm0, %v1646_v54  ;;  %v1498_v44 = vmul.f32 %v2647_v57, %v1375_v12  ;;  %v1514_v30 = vmul.f32 %v2647_v57, %v1439_v18  ;;  %v1378_v6 = vadd.f32 %v2923_v46, %v1088_v62  ;;  %v1090_v15 = vpop.f32.mrb[95].mxu0  ;;  %v1433_v34 = vpop.f32.mrb[95].mxu1 }
 0x1d0   :  { %v1442_v36 = vadd.f32 %v1968_v5, %v2640_v48  ;;  %1708 = vst.msk [vmem:[%s3113_s4 + $0x1c8] sm:$0xff] %vm770_vm0, %v1644_v58  ;;  %v1512_v2 = vmul.f32 %v2647_v57, %v1431_v61  ;;  %v1434_v16 = vadd.f32 %v1433_v34, %v2632_v40 }
 0x1d1   :  { %v1569_v43 = vadd.f32 %v2652_v1, %v1498_v44  ;;  %v1585_v9 = vadd.f32 %v2652_v1, %v1514_v30  ;;  %v1499_v10 = vmul.f32 %v2647_v57, %v1378_v6 }
 0x1d2   :  { %v1515_v46 = vmul.f32 %v2647_v57, %v1442_v36  ;;  %v1583_v48 = vadd.f32 %v2652_v1, %v1512_v2  ;;  %v1513_v35 = vmul.f32 %v2647_v57, %v1434_v16 }
 0x1d3   :  { %v1633_v13 = vmax.f32 %v1569_v43, 0.0  ;;  %v1649_v59 = vmax.f32 %v1585_v9, 0.0  ;;  %v1570_v8 = vadd.f32 %v2652_v1, %v1499_v10 }
 0x1d4   :  { %v1586_v49 = vadd.f32 %v2652_v1, %v1515_v46  ;;  %v1647_v7 = vmax.f32 %v1583_v48, 0.0  ;;  %v1584_v40 = vadd.f32 %v2652_v1, %v1513_v35 }
 0x1d5   :  { %1697 = vst.msk [vmem:[%s3113_s4 + $0x170] sm:$0xff] %vm770_vm0, %v1633_v13  ;;  %1713 = vst.msk [vmem:[%s3113_s4 + $0x1f0] sm:$0xff] %vm770_vm0, %v1649_v59  ;;  %v1634_v57 = vmax.f32 %v1570_v8, 0.0 }
 0x1d6   :  { %v1650_v17 = vmax.f32 %v1586_v49, 0.0  ;;  %1711 = vst.msk [vmem:[%s3113_s4 + $0x1e0] sm:$0xff] %vm770_vm0, %v1647_v7  ;;  %v1648_v60 = vmax.f32 %v1584_v40, 0.0 }
 0x1d7   :  { %1698 = vst.msk [vmem:[%s3113_s4 + $0x178] sm:$0xff] %vm770_vm0, %v1634_v57 }
 0x1d8   :  { %1714 = vst.msk [vmem:[%s3113_s4 + $0x1f8] sm:$0xff] %vm770_vm0, %v1650_v17  ;;  %1712 = vst.msk [vmem:[%s3113_s4 + $0x1e8] sm:$0xff] %vm770_vm0, %v1648_v60 }

// kernel: _forward_jit.220
= control target key start
LH: loop header
LB: loop body
LE: loop exit
PB: predicated region body
PF: predicated region fallthrough
CT: control target
= control target key end

     0   :  { %v2085_v0 = vmov 0   ;;  %vm770_vm0 = vcmask 261120   ;;  %vm1587_vm1 = vcmask 15360   ;;  %s3040_s1 = inlined_call_operand.vmem [shape: bf16[288,2], index: 1, kind: input, shape index: {}]   ;;  %s3041_s0 = inlined_call_operand.vmem [shape: bf16[512,288], index: 0, kind: input, shape index: {}]   ;;  %s3042_s2 = inlined_call_operand.vmem [shape: f32[1,2], index: 2, kind: input, shape index: {}]   ;;  %s3043_s3 = inlined_call_operand.vmem [shape: f32[1,2], index: 3, kind: input, shape index: {}]   ;;  %s3044_s4 = inlined_call_operand.vmem [shape: f32[512,2], index: 4, kind: output, shape index: {}]  }
   0x1   :  { %867 = vmatprep.subr.bf16.mxu0 %v2085_v0  ;;  %1906 = vmatprep.subr.bf16.mxu1 %v2085_v0  ;;  %v1939_v1 = vld [vmem:[%s3040_s1] sm:$0xff]   ;;  %v1940_v2 = vld [vmem:[%s3040_s1 + $0x8] sm:$0xff]   ;;  %v1941_v3 = vld [vmem:[%s3040_s1 + $0x10] sm:$0xff]  }
   0x2   :  { %868 = vmatpush1.bf16.msra.mxu0 %v1939_v1  ;;  %1922 = vmatpush1.bf16.msra.mxu1 %v1939_v1  ;;  %v1942_v4 = vld [vmem:[%s3040_s1 + $0x18] sm:$0xff]   ;;  %v1943_v5 = vld [vmem:[%s3040_s1 + $0x20] sm:$0xff]   ;;  %v1944_v7 = vld [vmem:[%s3040_s1 + $0x28] sm:$0xff]  }
   0x3   :  { %869 = vmatprep.subr.bf16.mxu0 %v2085_v0  ;;  %1907 = vmatprep.subr.bf16.mxu1 %v2085_v0  ;;  %v1957_v6 = vld [vmem:[%s3041_s0 + $0x4] ss:$12 sps:$4 sm:$0xff]   ;;  %v1946_v10 = vld [vmem:[%s3040_s1 + $0x38] sm:$0xff]   ;;  %v1948_v12 = vld [vmem:[%s3040_s1 + $0x48] sm:$0xff]  }
   0x4   :  { %v1960_v8 = vld [vmem:[%s3041_s0 + $0x244] ss:$12 sps:$4 sm:$0xff]   ;;  %899 = vmatprep.mubr.bf16.mxu0 %v1957_v6  ;;  %v1950_v14 = vld [vmem:[%s3040_s1 + $0x58] sm:$0xff]   ;;  %v1952_v16 = vld [vmem:[%s3040_s1 + $0x68] sm:$0xff]  }
   0x5   :  { %1091 = vmatprep.mubr.bf16.mxu1 %v1960_v8  ;;  %v1945_v9 = vld [vmem:[%s3040_s1 + $0x30] sm:$0xff]   ;;  %v1947_v11 = vld [vmem:[%s3040_s1 + $0x40] sm:$0xff]   ;;  %v1954_v18 = vld [vmem:[%s3040_s1 + $0x78] sm:$0xff]  }
   0x6   :  { %870 = vmatpush1.bf16.msra.mxu0 %v1940_v2  ;;  %1923 = vmatpush1.bf16.msra.mxu1 %v1940_v2  ;;  %v1949_v13 = vld [vmem:[%s3040_s1 + $0x50] sm:$0xff]   ;;  %v1951_v15 = vld [vmem:[%s3040_s1 + $0x60] sm:$0xff]   ;;  %v1962_v22 = vld [vmem:[%s3041_s0 + $0x1c] ss:$12 sps:$4 sm:$0xff]  }
   0x7   :  { %871 = vmatprep.subr.bf16.mxu0 %v2085_v0  ;;  %1908 = vmatprep.subr.bf16.mxu1 %v2085_v0  ;;  %v1953_v17 = vld [vmem:[%s3040_s1 + $0x70] sm:$0xff]   ;;  %v1961_v19 = vld [vmem:[%s3040_s1 + $0x80] sm:$0xff]   ;;  %v1964_v23 = vld [vmem:[%s3041_s0 + $0x25c] ss:$12 sps:$4 sm:$0xff]  }
   0x8   :  { %v1955_v20 = vld [vmem:[%s3041_s0] ss:$12 sps:$4 sm:$0xff]   ;;  %v1966_v25 = vld [vmem:[%s3041_s0 + $0x18] ss:$12 sps:$4 sm:$0xff]   ;;  %v1972_v29 = vld [vmem:[%s3041_s0 + $0x30] ss:$12 sps:$4 sm:$0xff]  }
   0x9   :  { %v1958_v21 = vld [vmem:[%s3041_s0 + $0x240] ss:$12 sps:$4 sm:$0xff]   ;;  %v1967_v26 = vld [vmem:[%s3041_s0 + $0x258] ss:$12 sps:$4 sm:$0xff]   ;;  %v1973_v30 = vld [vmem:[%s3041_s0 + $0x270] ss:$12 sps:$4 sm:$0xff]  }
   0xa   :  { %872 = vmatpush1.bf16.msra.mxu0 %v1941_v3  ;;  %1924 = vmatpush1.bf16.msra.mxu1 %v1941_v3  ;;  %v1986_v24 = vld [vmem:[%s3040_s1 + $0x88] sm:$0xff]   ;;  %v1968_v27 = vld [vmem:[%s3041_s0 + $0x34] ss:$12 sps:$4 sm:$0xff]   ;;  %v1980_v35 = vld [vmem:[%s3041_s0 + $0x64] ss:$12 sps:$4 sm:$0xff]  }
   0xb   :  { %873 = vmatprep.subr.bf16.mxu0 %v2085_v0  ;;  %1909 = vmatprep.subr.bf16.mxu1 %v2085_v0  ;;  %v1970_v28 = vld [vmem:[%s3041_s0 + $0x274] ss:$12 sps:$4 sm:$0xff]   ;;  %v1974_v31 = vld [vmem:[%s3041_s0 + $0x4c] ss:$12 sps:$4 sm:$0xff]   ;;  %v1982_v36 = vld [vmem:[%s3041_s0 + $0x2a4] ss:$12 sps:$4 sm:$0xff]  }
   0xc   :  { %v1976_v32 = vld [vmem:[%s3041_s0 + $0x28c] ss:$12 sps:$4 sm:$0xff]   ;;  %v1978_v33 = vld [vmem:[%s3041_s0 + $0x48] ss:$12 sps:$4 sm:$0xff]   ;;  %v1997_v45 = vld [vmem:[%s3041_s0 + $0x90] ss:$12 sps:$4 sm:$0xff]  }
   0xd   :  { %v1979_v34 = vld [vmem:[%s3041_s0 + $0x288] ss:$12 sps:$4 sm:$0xff]   ;;  %v1984_v37 = vld [vmem:[%s3041_s0 + $0x60] ss:$12 sps:$4 sm:$0xff]   ;;  %v1991_v41 = vld [vmem:[%s3041_s0 + $0x78] ss:$12 sps:$4 sm:$0xff]  }
   0xe   :  { %874 = vmatpush1.bf16.msra.mxu0 %v1942_v4  ;;  %1925 = vmatpush1.bf16.msra.mxu1 %v1942_v4  ;;  %v1985_v38 = vld [vmem:[%s3041_s0 + $0x2a0] ss:$12 sps:$4 sm:$0xff]   ;;  %v1987_v39 = vld [vmem:[%s3041_s0 + $0x7c] ss:$12 sps:$4 sm:$0xff]   ;;  %v1992_v42 = vld [vmem:[%s3041_s0 + $0x2b8] ss:$12 sps:$4 sm:$0xff]  }
   0xf   :  { %875 = vmatprep.subr.bf16.mxu0 %v2085_v0  ;;  %1910 = vmatprep.subr.bf16.mxu1 %v2085_v0  ;;  %v1989_v40 = vld [vmem:[%s3041_s0 + $0x2bc] ss:$12 sps:$4 sm:$0xff]   ;;  %v1993_v43 = vld [vmem:[%s3041_s0 + $0x94] ss:$12 sps:$4 sm:$0xff]   ;;  %v1999_v47 = vld [vmem:[%s3041_s0 + $0xac] ss:$12 sps:$4 sm:$0xff]  }
  0x10   :  { %v1995_v44 = vld [vmem:[%s3041_s0 + $0x2d4] ss:$12 sps:$4 sm:$0xff]   ;;  %v1998_v46 = vld [vmem:[%s3041_s0 + $0x2d0] ss:$12 sps:$4 sm:$0xff]   ;;  %v2001_v48 = vld [vmem:[%s3041_s0 + $0x2ec] ss:$12 sps:$4 sm:$0xff]  }
  0x11   :  { %v2003_v49 = vld [vmem:[%s3041_s0 + $0xa8] ss:$12 sps:$4 sm:$0xff]   ;;  %v2005_v51 = vld [vmem:[%s3041_s0 + $0xc4] ss:$12 sps:$4 sm:$0xff]   ;;  %v2008_v53 = vld [vmem:[%s3041_s0 + $0xc0] ss:$12 sps:$4 sm:$0xff]  }
  0x12   :  { %876 = vmatpush1.bf16.msra.mxu0 %v1943_v5  ;;  %1926 = vmatpush1.bf16.msra.mxu1 %v1943_v5  ;;  %v2004_v50 = vld [vmem:[%s3041_s0 + $0x2e8] ss:$12 sps:$4 sm:$0xff]   ;;  %v2009_v54 = vld [vmem:[%s3041_s0 + $0x20] ss:$12 sps:$4 sm:$0xff]   ;;  %v2012_v56 = vld [vmem:[%s3041_s0 + $0x38] ss:$12 sps:$4 sm:$0xff]  }
  0x13   :  { %877 = vmatprep.subr.bf16.mxu0 %v2085_v0  ;;  %1911 = vmatprep.subr.bf16.mxu1 %v2085_v0  ;;  %v2007_v52 = vld [vmem:[%s3041_s0 + $0x8] ss:$12 sps:$4 sm:$0xff]   ;;  %v2013_v57 = vld [vmem:[%s3041_s0 + $0xd8] ss:$12 sps:$4 sm:$0xff]   ;;  %v2014_v58 = vld [vmem:[%s3041_s0 + $0x50] ss:$12 sps:$4 sm:$0xff]  }
  0x14   :  { %v2010_v55 = vld [vmem:[%s3041_s0 + $0xdc] ss:$12 sps:$4 sm:$0xff]   ;;  %v2015_v59 = vld [vmem:[%s3041_s0 + $0xf4] ss:$12 sps:$4 sm:$0xff]   ;;  %v2020_v63 = vld [vmem:[%s3041_s0 + $0x10c] ss:$12 sps:$4 sm:$0xff]  }
  0x15   :  { %v2017_v60 = vld [vmem:[%s3041_s0 + $0x68] ss:$12 sps:$4 sm:$0xff]   ;;  %v2018_v61 = vld [vmem:[%s3041_s0 + $0xf0] ss:$12 sps:$4 sm:$0xff]   ;;  %v2019_v62 = vld [vmem:[%s3041_s0 + $0x80] ss:$12 sps:$4 sm:$0xff]  }
  0x16   :  { %878 = vmatpush1.bf16.msra.mxu0 %v1944_v7  ;;  %1927 = vmatpush1.bf16.msra.mxu1 %v1944_v7  ;;  %v2023_v1 = vld [vmem:[%s3041_s0 + $0x108] ss:$12 sps:$4 sm:$0xff]   ;;  %v2024_v2 = vld [vmem:[%s3041_s0 + $0xb0] ss:$12 sps:$4 sm:$0xff]   ;;  %v2028_v5 = vld [vmem:[%s3041_s0 + $0x120] ss:$12 sps:$4 sm:$0xff]  }
  0x17   :  { %879 = vmatprep.subr.bf16.mxu0 %v2085_v0  ;;  %1912 = vmatprep.subr.bf16.mxu1 %v2085_v0  ;;  %v2025_v3 = vld [vmem:[%s3041_s0 + $0x124] ss:$12 sps:$4 sm:$0xff]   ;;  %v2027_v4 = vld [vmem:[%s3041_s0 + $0xc8] ss:$12 sps:$4 sm:$0xff]   ;;  %v2029_v6 = vld [vmem:[%s3041_s0 + $0xe0] ss:$12 sps:$4 sm:$0xff]  }
  0x18   :  { %v2030_v7 = vld [vmem:[%s3041_s0 + $0x13c] ss:$12 sps:$4 sm:$0xff]   ;;  %v2032_v8 = vld [vmem:[%s3041_s0 + $0xf8] ss:$12 sps:$4 sm:$0xff]  }
  0x1a   :  { %880 = vmatpush1.bf16.msra.mxu0 %v1945_v9  ;;  %1928 = vmatpush1.bf16.msra.mxu1 %v1945_v9  ;;  %v2033_v9 = vld [vmem:[%s3041_s0 + $0x138] ss:$12 sps:$4 sm:$0xff]  }
  0x1b   :  { %881 = vmatprep.subr.bf16.mxu0 %v2085_v0  ;;  %1913 = vmatprep.subr.bf16.mxu1 %v2085_v0 }
  0x1e   :  { %882 = vmatpush1.bf16.msra.mxu0 %v1946_v10  ;;  %1929 = vmatpush1.bf16.msra.mxu1 %v1946_v10  ;;  %v2034_v10 = vld [vmem:[%s3041_s0 + $0x110] ss:$12 sps:$4 sm:$0xff]  }
  0x1f   :  { %883 = vmatprep.subr.bf16.mxu0 %v2085_v0  ;;  %1914 = vmatprep.subr.bf16.mxu1 %v2085_v0 }
  0x22   :  { %884 = vmatpush1.bf16.msra.mxu0 %v1947_v11  ;;  %1930 = vmatpush1.bf16.msra.mxu1 %v1947_v11  ;;  %v2035_v11 = vld [vmem:[%s3041_s0 + $0x154] ss:$12 sps:$4 sm:$0xff]  }
  0x23   :  { %885 = vmatprep.subr.bf16.mxu0 %v2085_v0  ;;  %1915 = vmatprep.subr.bf16.mxu1 %v2085_v0 }
  0x26   :  { %886 = vmatpush1.bf16.msra.mxu0 %v1948_v12  ;;  %1931 = vmatpush1.bf16.msra.mxu1 %v1948_v12  ;;  %v2037_v12 = vld [vmem:[%s3041_s0 + $0x128] ss:$12 sps:$4 sm:$0xff]  }
  0x27   :  { %887 = vmatprep.subr.bf16.mxu0 %v2085_v0  ;;  %1916 = vmatprep.subr.bf16.mxu1 %v2085_v0 }
  0x2a   :  { %888 = vmatpush1.bf16.msra.mxu0 %v1949_v13  ;;  %1932 = vmatpush1.bf16.msra.mxu1 %v1949_v13  ;;  %v2038_v13 = vld [vmem:[%s3041_s0 + $0x150] ss:$12 sps:$4 sm:$0xff]  }
  0x2b   :  { %889 = vmatprep.subr.bf16.mxu0 %v2085_v0  ;;  %1917 = vmatprep.subr.bf16.mxu1 %v2085_v0 }
  0x2e   :  { %890 = vmatpush1.bf16.msra.mxu0 %v1950_v14  ;;  %1933 = vmatpush1.bf16.msra.mxu1 %v1950_v14  ;;  %v2039_v14 = vld [vmem:[%s3041_s0 + $0x140] ss:$12 sps:$4 sm:$0xff]  }
  0x2f   :  { %891 = vmatprep.subr.bf16.mxu0 %v2085_v0  ;;  %1918 = vmatprep.subr.bf16.mxu1 %v2085_v0 }
  0x32   :  { %892 = vmatpush1.bf16.msra.mxu0 %v1951_v15  ;;  %1934 = vmatpush1.bf16.msra.mxu1 %v1951_v15  ;;  %v2040_v15 = vld [vmem:[%s3041_s0 + $0x16c] ss:$12 sps:$4 sm:$0xff]  }
  0x33   :  { %893 = vmatprep.subr.bf16.mxu0 %v2085_v0  ;;  %1919 = vmatprep.subr.bf16.mxu1 %v2085_v0 }
  0x36   :  { %894 = vmatpush1.bf16.msra.mxu0 %v1952_v16  ;;  %1935 = vmatpush1.bf16.msra.mxu1 %v1952_v16  ;;  %v2042_v16 = vld [vmem:[%s3041_s0 + $0x158] ss:$12 sps:$4 sm:$0xff]  }
  0x37   :  { %895 = vmatprep.subr.bf16.mxu0 %v2085_v0  ;;  %1920 = vmatprep.subr.bf16.mxu1 %v2085_v0 }
  0x3a   :  { %896 = vmatpush1.bf16.msra.mxu0 %v1953_v17  ;;  %1936 = vmatpush1.bf16.msra.mxu1 %v1953_v17  ;;  %v2043_v17 = vld [vmem:[%s3041_s0 + $0x168] ss:$12 sps:$4 sm:$0xff]  }
  0x3b   :  { %897 = vmatprep.subr.bf16.mxu0 %v2085_v0  ;;  %1921 = vmatprep.subr.bf16.mxu1 %v2085_v0  ;;  %v2022_v0 = vld [vmem:[%s3041_s0 + $0x98] ss:$12 sps:$4 sm:$0xff]  }
  0x3e   :  { %898 = vmatpush1.bf16.msra.mxu0 %v1954_v18  ;;  %1937 = vmatpush1.bf16.msra.mxu1 %v1954_v18  ;;  %v2044_v18 = vld [vmem:[%s3041_s0 + $0x170] ss:$12 sps:$4 sm:$0xff]  }
  0x3f   :  { %1838 = vmatprep.subr.bf16.mxu1 %v1961_v19 }
  0x41   :  { %900 = vmatmul.mubr.bf16.vlgmr.msra.gmra.mrb[0].mxu0 %v1955_v20  ;;  %1092 = vmatmul.mubr.bf16.vlgmr.msra.gmra.mrb[0].mxu1 %v1958_v21  ;;  %v2047_v20 = vld [vmem:[%s3041_s0 + $0x188] ss:$12 sps:$4 sm:$0xff]   ;;  %v2048_v21 = vld [vmem:[%s3041_s0 + $0x180] ss:$12 sps:$4 sm:$0xff]  }
  0x42   :  { %1839 = vmatpush3.bf16.msra.mxu1 %v1961_v19  ;;  %907 = vmatprep.mubr.bf16.mxu0 %v1962_v22  ;;  %v2045_v19 = vld [vmem:[%s3041_s0 + $0x184] ss:$12 sps:$4 sm:$0xff]   ;;  %v2049_v22 = vld [vmem:[%s3041_s0 + $0x1a0] ss:$12 sps:$4 sm:$0xff]  }
  0x43   :  { %1099 = vmatprep.mubr.bf16.mxu1 %v1964_v23  ;;  %1840 = vmatprep.subr.bf16.mxu1 %v1986_v24  ;;  %v2050_v23 = vld [vmem:[%s3041_s0 + $0x19c] ss:$12 sps:$4 sm:$0xff]  }
  0x46   :  { %1841 = vmatpush3.bf16.msra.mxu1 %v1986_v24  ;;  %v2052_v24 = vld [vmem:[%s3041_s0 + $0x1b8] ss:$12 sps:$4 sm:$0xff]  }
  0x49   :  { %908 = vmatmul.mubr.bf16.gmra.mrb[4].mxu0 %v1966_v25  ;;  %1100 = vmatmul.mubr.bf16.gmra.mrb[4].mxu1 %v1967_v26  ;;  %v2053_v25 = vld [vmem:[%s3041_s0 + $0x198] ss:$12 sps:$4 sm:$0xff]   ;;  %v2054_v26 = vld [vmem:[%s3041_s0 + $0x1d0] ss:$12 sps:$4 sm:$0xff]  }
  0x4a   :  { %915 = vmatprep.mubr.bf16.mxu0 %v1968_v27  ;;  %1107 = vmatprep.mubr.bf16.mxu1 %v1970_v28  ;;  %v2055_v27 = vld [vmem:[%s3041_s0 + $0x1b4] ss:$12 sps:$4 sm:$0xff]  }
  0x4b   :  { %v2057_v28 = vld [vmem:[%s3041_s0 + $0x1e8] ss:$12 sps:$4 sm:$0xff]  }
  0x51   :  { %916 = vmatmul.mubr.bf16.gmra.mrb[8].mxu0 %v1972_v29  ;;  %1108 = vmatmul.mubr.bf16.gmra.mrb[8].mxu1 %v1973_v30  ;;  %v2058_v29 = vld [vmem:[%s3041_s0 + $0x1b0] ss:$12 sps:$4 sm:$0xff]   ;;  %v2059_v30 = vld [vmem:[%s3041_s0 + $0x200] ss:$12 sps:$4 sm:$0xff]  }
  0x52   :  { %923 = vmatprep.mubr.bf16.mxu0 %v1974_v31  ;;  %1115 = vmatprep.mubr.bf16.mxu1 %v1976_v32  ;;  %v2060_v31 = vld [vmem:[%s3041_s0 + $0x1cc] ss:$12 sps:$4 sm:$0xff]  }
  0x53   :  { %v2062_v32 = vld [vmem:[%s3041_s0 + $0x218] ss:$12 sps:$4 sm:$0xff]  }
  0x59   :  { %924 = vmatmul.mubr.bf16.gmra.mrb[12].mxu0 %v1978_v33  ;;  %1116 = vmatmul.mubr.bf16.gmra.mrb[12].mxu1 %v1979_v34  ;;  %v2063_v33 = vld [vmem:[%s3041_s0 + $0x1c8] ss:$12 sps:$4 sm:$0xff]   ;;  %v2064_v34 = vld [vmem:[%s3041_s0 + $0x230] ss:$12 sps:$4 sm:$0xff]  }
  0x5a   :  { %931 = vmatprep.mubr.bf16.mxu0 %v1980_v35  ;;  %1123 = vmatprep.mubr.bf16.mxu1 %v1982_v36  ;;  %v2065_v35 = vld [vmem:[%s3041_s0 + $0x1e4] ss:$12 sps:$4 sm:$0xff]   ;;  %v2067_v36 = vld [vmem:[%s3041_s0 + $0x248] ss:$12 sps:$4 sm:$0xff]  }
  0x61   :  { %932 = vmatmul.mubr.bf16.gmra.mrb[16].mxu0 %v1984_v37  ;;  %1124 = vmatmul.mubr.bf16.gmra.mrb[16].mxu1 %v1985_v38  ;;  %v2068_v37 = vld [vmem:[%s3041_s0 + $0x1e0] ss:$12 sps:$4 sm:$0xff]  }
  0x62   :  { %939 = vmatprep.mubr.bf16.mxu0 %v1987_v39  ;;  %1131 = vmatprep.mubr.bf16.mxu1 %v1989_v40  ;;  %v2069_v38 = vld [vmem:[%s3041_s0 + $0x260] ss:$12 sps:$4 sm:$0xff]   ;;  %v2070_v39 = vld [vmem:[%s3041_s0 + $0x1fc] ss:$12 sps:$4 sm:$0xff]   ;;  %v2072_v40 = vld [vmem:[%s3041_s0 + $0x278] ss:$12 sps:$4 sm:$0xff]  }
  0x69   :  { %940 = vmatmul.mubr.bf16.gmra.mrb[20].mxu0 %v1991_v41  ;;  %1132 = vmatmul.mubr.bf16.gmra.mrb[20].mxu1 %v1992_v42  ;;  %v2073_v41 = vld [vmem:[%s3041_s0 + $0x1f8] ss:$12 sps:$4 sm:$0xff]   ;;  %v2074_v42 = vld [vmem:[%s3041_s0 + $0x290] ss:$12 sps:$4 sm:$0xff]  }
  0x6a   :  { %947 = vmatprep.mubr.bf16.mxu0 %v1993_v43  ;;  %1139 = vmatprep.mubr.bf16.mxu1 %v1995_v44  ;;  %v2075_v43 = vld [vmem:[%s3041_s0 + $0x214] ss:$12 sps:$4 sm:$0xff]  }
  0x6b   :  { %v2077_v44 = vld [vmem:[%s3041_s0 + $0x2a8] ss:$12 sps:$4 sm:$0xff]  }
  0x71   :  { %948 = vmatmul.mubr.bf16.gmra.mrb[24].mxu0 %v1997_v45  ;;  %1140 = vmatmul.mubr.bf16.gmra.mrb[24].mxu1 %v1998_v46  ;;  %v2078_v45 = vld [vmem:[%s3041_s0 + $0x210] ss:$12 sps:$4 sm:$0xff]   ;;  %v2079_v46 = vld [vmem:[%s3041_s0 + $0x2c0] ss:$12 sps:$4 sm:$0xff]  }
  0x72   :  { %955 = vmatprep.mubr.bf16.mxu0 %v1999_v47  ;;  %1147 = vmatprep.mubr.bf16.mxu1 %v2001_v48  ;;  %v2080_v47 = vld [vmem:[%s3041_s0 + $0x22c] ss:$12 sps:$4 sm:$0xff]  }
  0x73   :  { %v2082_v48 = vld [vmem:[%s3041_s0 + $0x2d8] ss:$12 sps:$4 sm:$0xff]  }
  0x79   :  { %956 = vmatmul.mubr.bf16.gmra.mrb[28].mxu0 %v2003_v49  ;;  %1148 = vmatmul.mubr.bf16.gmra.mrb[28].mxu1 %v2004_v50  ;;  %v2083_v49 = vld [vmem:[%s3041_s0 + $0x228] ss:$12 sps:$4 sm:$0xff]   ;;  %v2084_v50 = vld [vmem:[%s3041_s0 + $0x2f0] ss:$12 sps:$4 sm:$0xff]  }
  0x7a   :  { %963 = vmatprep.mubr.bf16.mxu0 %v2005_v51  ;;  %1842 = vmatprep.mubr.msk.bf16.mxu1 %vm770_vm0, %v2007_v52 }
  0x81   :  { %964 = vmatmul.mubr.bf16.gmra.mrb[32].mxu0 %v2008_v53  ;;  %1843 = vmatmul.mubr.msk.bf16.vlgmr.msra.gmra.mrb[32].mxu1 %vm770_vm0, %v2009_v54 }
  0x82   :  { %971 = vmatprep.mubr.bf16.mxu0 %v2010_v55  ;;  %1846 = vmatprep.mubr.msk.bf16.mxu1 %vm770_vm0, %v2012_v56 }
  0x89   :  { %972 = vmatmul.mubr.bf16.gmra.mrb[36].mxu0 %v2013_v57  ;;  %1847 = vmatmul.mubr.msk.bf16.gmra.mrb[36].mxu1 %vm770_vm0, %v2014_v58 }
  0x8a   :  { %979 = vmatprep.mubr.bf16.mxu0 %v2015_v59  ;;  %1850 = vmatprep.mubr.msk.bf16.mxu1 %vm770_vm0, %v2017_v60 }
  0x91   :  { %980 = vmatmul.mubr.bf16.gmra.mrb[40].mxu0 %v2018_v61  ;;  %1851 = vmatmul.mubr.msk.bf16.gmra.mrb[40].mxu1 %vm770_vm0, %v2019_v62 }
  0x92   :  { %987 = vmatprep.mubr.bf16.mxu0 %v2020_v63  ;;  %1854 = vmatprep.mubr.msk.bf16.mxu1 %vm770_vm0, %v2022_v0 }
  0x99   :  { %988 = vmatmul.mubr.bf16.gmra.mrb[44].mxu0 %v2023_v1  ;;  %1855 = vmatmul.mubr.msk.bf16.gmra.mrb[44].mxu1 %vm770_vm0, %v2024_v2 }
  0x9a   :  { %995 = vmatprep.mubr.bf16.mxu0 %v2025_v3  ;;  %1858 = vmatprep.mubr.msk.bf16.mxu1 %vm770_vm0, %v2027_v4 }
  0xa1   :  { %996 = vmatmul.mubr.bf16.gmra.mrb[48].mxu0 %v2028_v5  ;;  %1859 = vmatmul.mubr.msk.bf16.gmra.mrb[48].mxu1 %vm770_vm0, %v2029_v6 }
  0xa2   :  { %1003 = vmatprep.mubr.bf16.mxu0 %v2030_v7  ;;  %1862 = vmatprep.mubr.msk.bf16.mxu1 %vm770_vm0, %v2032_v8 }
  0xa9   :  { %1004 = vmatmul.mubr.bf16.gmra.mrb[52].mxu0 %v2033_v9  ;;  %1863 = vmatmul.mubr.msk.bf16.gmra.mrb[52].mxu1 %vm770_vm0, %v2034_v10 }
  0xaa   :  { %1011 = vmatprep.mubr.bf16.mxu0 %v2035_v11  ;;  %1866 = vmatprep.mubr.msk.bf16.mxu1 %vm770_vm0, %v2037_v12 }
  0xb1   :  { %1012 = vmatmul.mubr.bf16.gmra.mrb[56].mxu0 %v2038_v13  ;;  %1867 = vmatmul.mubr.msk.bf16.gmra.mrb[56].mxu1 %vm770_vm0, %v2039_v14 }
  0xb2   :  { %1019 = vmatprep.mubr.bf16.mxu0 %v2040_v15  ;;  %1870 = vmatprep.mubr.msk.bf16.mxu1 %vm770_vm0, %v2042_v16 }
  0xb9   :  { %1020 = vmatmul.mubr.bf16.gmra.mrb[60].mxu0 %v2043_v17  ;;  %1871 = vmatmul.mubr.msk.bf16.gmra.mrb[60].mxu1 %vm770_vm0, %v2044_v18 }
  0xba   :  { %1027 = vmatprep.mubr.bf16.mxu0 %v2045_v19  ;;  %1874 = vmatprep.mubr.msk.bf16.mxu1 %vm770_vm0, %v2047_v20 }
  0xc1   :  { %1028 = vmatmul.mubr.bf16.gmra.mrb[64].mxu0 %v2048_v21  ;;  %1875 = vmatmul.mubr.msk.bf16.gmra.mrb[64].mxu1 %vm770_vm0, %v2049_v22 }
  0xc2   :  { %1035 = vmatprep.mubr.bf16.mxu0 %v2050_v23  ;;  %1878 = vmatprep.mubr.msk.bf16.mxu1 %vm770_vm0, %v2052_v24 }
  0xc9   :  { %1036 = vmatmul.mubr.bf16.gmra.mrb[68].mxu0 %v2053_v25  ;;  %1879 = vmatmul.mubr.msk.bf16.gmra.mrb[68].mxu1 %vm770_vm0, %v2054_v26 }
  0xca   :  { %1043 = vmatprep.mubr.bf16.mxu0 %v2055_v27  ;;  %1882 = vmatprep.mubr.msk.bf16.mxu1 %vm770_vm0, %v2057_v28 }
  0xd1   :  { %1044 = vmatmul.mubr.bf16.gmra.mrb[72].mxu0 %v2058_v29  ;;  %1883 = vmatmul.mubr.msk.bf16.gmra.mrb[72].mxu1 %vm770_vm0, %v2059_v30 }
  0xd2   :  { %1051 = vmatprep.mubr.bf16.mxu0 %v2060_v31  ;;  %1886 = vmatprep.mubr.msk.bf16.mxu1 %vm770_vm0, %v2062_v32 }
  0xd9   :  { %1052 = vmatmul.mubr.bf16.gmra.mrb[76].mxu0 %v2063_v33  ;;  %1887 = vmatmul.mubr.msk.bf16.gmra.mrb[76].mxu1 %vm770_vm0, %v2064_v34 }
  0xda   :  { %1059 = vmatprep.mubr.bf16.mxu0 %v2065_v35  ;;  %1890 = vmatprep.mubr.msk.bf16.mxu1 %vm770_vm0, %v2067_v36 }
  0xe1   :  { %1060 = vmatmul.mubr.bf16.gmra.mrb[80].mxu0 %v2068_v37  ;;  %1891 = vmatmul.mubr.msk.bf16.gmra.mrb[80].mxu1 %vm770_vm0, %v2069_v38 }
  0xe2   :  { %1067 = vmatprep.mubr.bf16.mxu0 %v2070_v39  ;;  %1894 = vmatprep.mubr.msk.bf16.mxu1 %vm770_vm0, %v2072_v40 }
  0xe9   :  { %1068 = vmatmul.mubr.bf16.gmra.mrb[84].mxu0 %v2073_v41  ;;  %1895 = vmatmul.mubr.msk.bf16.gmra.mrb[84].mxu1 %vm770_vm0, %v2074_v42 }
  0xea   :  { %1075 = vmatprep.mubr.bf16.mxu0 %v2075_v43  ;;  %1898 = vmatprep.mubr.msk.bf16.mxu1 %vm770_vm0, %v2077_v44 }
  0xf1   :  { %1076 = vmatmul.mubr.bf16.gmra.mrb[88].mxu0 %v2078_v45  ;;  %1899 = vmatmul.mubr.msk.bf16.gmra.mrb[88].mxu1 %vm770_vm0, %v2079_v46 }
  0xf2   :  { %1083 = vmatprep.mubr.bf16.mxu0 %v2080_v47  ;;  %1902 = vmatprep.mubr.msk.bf16.mxu1 %vm770_vm0, %v2082_v48 }
  0xf9   :  { %1084 = vmatmul.mubr.bf16.gmra.mrb[92].mxu0 %v2083_v49  ;;  %1903 = vmatmul.mubr.msk.bf16.gmra.mrb[92].mxu1 %vm770_vm0, %v2084_v50 }
 0x114   :  { %v2517_v51 = vpop.f32.mrb[0].mxu0  ;;  %v2519_v52 = vpop.f32.mrb[0].mxu1 }
 0x115   :  { %v903_v53 = vpop.f32.mrb[1].mxu0  ;;  %v1095_v54 = vpop.f32.mrb[1].mxu1 }
 0x116   :  { %v2521_v55 = vpop.f32.mrb[2].mxu0  ;;  %v2523_v56 = vpop.f32.mrb[2].mxu1 }
 0x117   :  { %v906_v57 = vpop.f32.mrb[3].mxu0  ;;  %v1098_v58 = vpop.f32.mrb[3].mxu1 }
 0x118   :  { %v2584_v57 = vld [vmem:[%s3042_s2] ss:$0 sm:$0xff] }
 0x11c   :  { %v909_v59 = vpop.f32.mrb[4].mxu0  ;;  %v2525_v60 = vpop.f32.mrb[4].mxu1 }
 0x11d   :  { %v911_v61 = vpop.f32.mrb[5].mxu0  ;;  %v1103_v62 = vpop.f32.mrb[5].mxu1 }
 0x11e   :  { %v2527_v63 = vpop.f32.mrb[6].mxu0  ;;  %v2529_v0 = vpop.f32.mrb[6].mxu1 }
 0x11f   :  { %v914_v1 = vpop.f32.mrb[7].mxu0  ;;  %v1106_v2 = vpop.f32.mrb[7].mxu1 }
 0x120   :  { %v2589_v1 = vld [vmem:[%s3043_s3] ss:$0 sm:$0xff] }
 0x124   :  { %v2531_v3 = vpop.f32.mrb[8].mxu0  ;;  %v2533_v4 = vpop.f32.mrb[8].mxu1 }
 0x125   :  { %v919_v5 = vpop.f32.mrb[9].mxu0  ;;  %v1111_v6 = vpop.f32.mrb[9].mxu1 }
 0x126   :  { %v2535_v7 = vpop.f32.mrb[10].mxu0  ;;  %v2537_v8 = vpop.f32.mrb[10].mxu1 }
 0x127   :  { %v922_v9 = vpop.f32.mrb[11].mxu0  ;;  %v1114_v10 = vpop.f32.mrb[11].mxu1 }
 0x12c   :  { %v2539_v11 = vpop.f32.mrb[12].mxu0  ;;  %v2541_v12 = vpop.f32.mrb[12].mxu1 }
 0x12d   :  { %v927_v13 = vpop.f32.mrb[13].mxu0  ;;  %v1119_v14 = vpop.f32.mrb[13].mxu1 }
 0x12e   :  { %v2543_v15 = vpop.f32.mrb[14].mxu0  ;;  %v2545_v16 = vpop.f32.mrb[14].mxu1 }
 0x12f   :  { %v930_v17 = vpop.f32.mrb[15].mxu0  ;;  %v1122_v18 = vpop.f32.mrb[15].mxu1 }
 0x134   :  { %v2547_v19 = vpop.f32.mrb[16].mxu0  ;;  %v2549_v20 = vpop.f32.mrb[16].mxu1 }
 0x135   :  { %v935_v21 = vpop.f32.mrb[17].mxu0  ;;  %v1127_v22 = vpop.f32.mrb[17].mxu1 }
 0x136   :  { %v2551_v23 = vpop.f32.mrb[18].mxu0  ;;  %v2553_v24 = vpop.f32.mrb[18].mxu1 }
 0x137   :  { %v938_v25 = vpop.f32.mrb[19].mxu0  ;;  %v1130_v26 = vpop.f32.mrb[19].mxu1 }
 0x13c   :  { %v2555_v27 = vpop.f32.mrb[20].mxu0  ;;  %v2557_v28 = vpop.f32.mrb[20].mxu1 }
 0x13d   :  { %v943_v29 = vpop.f32.mrb[21].mxu0  ;;  %v1135_v30 = vpop.f32.mrb[21].mxu1 }
 0x13e   :  { %v2559_v31 = vpop.f32.mrb[22].mxu0  ;;  %v2561_v32 = vpop.f32.mrb[22].mxu1 }
 0x13f   :  { %v946_v33 = vpop.f32.mrb[23].mxu0  ;;  %v1138_v34 = vpop.f32.mrb[23].mxu1 }
 0x144   :  { %v2563_v35 = vpop.f32.mrb[24].mxu0  ;;  %v2565_v36 = vpop.f32.mrb[24].mxu1 }
 0x145   :  { %v951_v37 = vpop.f32.mrb[25].mxu0  ;;  %v1143_v38 = vpop.f32.mrb[25].mxu1 }
 0x146   :  { %v2567_v39 = vpop.f32.mrb[26].mxu0  ;;  %v2569_v40 = vpop.f32.mrb[26].mxu1 }
 0x147   :  { %v954_v41 = vpop.f32.mrb[27].mxu0  ;;  %v1146_v42 = vpop.f32.mrb[27].mxu1 }
 0x14c   :  { %v2571_v43 = vpop.f32.mrb[28].mxu0  ;;  %v2573_v44 = vpop.f32.mrb[28].mxu1 }
 0x14d   :  { %v959_v45 = vpop.f32.mrb[29].mxu0  ;;  %v1151_v46 = vpop.f32.mrb[29].mxu1 }
 0x14e   :  { %v2575_v47 = vpop.f32.mrb[30].mxu0  ;;  %v2577_v48 = vpop.f32.mrb[30].mxu1 }
 0x14f   :  { %v962_v49 = vpop.f32.mrb[31].mxu0  ;;  %v1154_v50 = vpop.f32.mrb[31].mxu1 }
 0x154   :  { %v2579_v53 = vpop.f32.mrb[32].mxu0  ;;  %v1844_v54 = vpop.f32.mrb[32].mxu1 }
 0x155   :  { %v1199_v58 = vadd.f32 %v1844_v54, %v909_v59  ;;  %v967_v61 = vpop.f32.mrb[33].mxu0  ;;  %v1190_v62 = vpop.f32.mrb[33].mxu1 }
 0x156   :  { %v1191_v2 = vadd.f32 %v1190_v62, %v2517_v51  ;;  %v2592_v5 = vpop.f32.mrb[34].mxu0  ;;  %v1845_v6 = vpop.f32.mrb[34].mxu1 }
 0x157   :  { %v1454_v9 = vmul.f32 %v2584_v57, %v1199_v58  ;;  %v1202_v10 = vadd.f32 %v1845_v6, %v2527_v63  ;;  %v970_v13 = vpop.f32.mrb[35].mxu0  ;;  %v1193_v14 = vpop.f32.mrb[35].mxu1 }
 0x158   :  { %v1452_v59 = vmul.f32 %v2584_v57, %v1191_v2  ;;  %v1194_v17 = vadd.f32 %v1193_v14, %v2521_v55 }
 0x159   :  { %v1525_v18 = vadd.f32 %v2589_v1, %v1454_v9  ;;  %v1455_v21 = vmul.f32 %v2584_v57, %v1202_v10 }
 0x15a   :  { %v1523_v51 = vadd.f32 %v2589_v1, %v1452_v59  ;;  %v1453_v22 = vmul.f32 %v2584_v57, %v1194_v17 }
 0x15b   :  { %1590 = vst.msk [vmem:[%s3044_s4 + $0x10] sm:$0xff] %vm1587_vm1, %v1525_v18  ;;  %v1526_v63 = vadd.f32 %v2589_v1, %v1455_v21 }
 0x15c   :  { %1588 = vst.msk [vmem:[%s3044_s4] sm:$0xff] %vm1587_vm1, %v1523_v51  ;;  %v1524_v55 = vadd.f32 %v2589_v1, %v1453_v22  ;;  %v2612_v25 = vpop.f32.mrb[36].mxu0  ;;  %v1848_v26 = vpop.f32.mrb[36].mxu1 }
 0x15d   :  { %1591 = vst.msk [vmem:[%s3044_s4 + $0x18] sm:$0xff] %vm1587_vm1, %v1526_v63  ;;  %v1215_v29 = vadd.f32 %v1848_v26, %v2539_v11  ;;  %v975_v30 = vpop.f32.mrb[37].mxu0  ;;  %v1206_v33 = vpop.f32.mrb[37].mxu1 }
 0x15e   :  { %1589 = vst.msk [vmem:[%s3044_s4 + $0x8] sm:$0xff] %vm1587_vm1, %v1524_v55  ;;  %v1207_v34 = vadd.f32 %v1206_v33, %v2531_v3  ;;  %v2624_v37 = vpop.f32.mrb[38].mxu0  ;;  %v1849_v38 = vpop.f32.mrb[38].mxu1 }
 0x15f   :  { %v1458_v41 = vmul.f32 %v2584_v57, %v1215_v29  ;;  %v1218_v42 = vadd.f32 %v1849_v38, %v2543_v15  ;;  %v978_v45 = vpop.f32.mrb[39].mxu0  ;;  %v1209_v46 = vpop.f32.mrb[39].mxu1 }
 0x160   :  { %v1456_v11 = vmul.f32 %v2584_v57, %v1207_v34  ;;  %v1210_v49 = vadd.f32 %v1209_v46, %v2535_v7 }
 0x161   :  { %v1529_v50 = vadd.f32 %v2589_v1, %v1458_v41  ;;  %v1459_v54 = vmul.f32 %v2584_v57, %v1218_v42 }
 0x162   :  { %v1527_v58 = vadd.f32 %v2589_v1, %v1456_v11  ;;  %v1457_v3 = vmul.f32 %v2584_v57, %v1210_v49 }
 0x163   :  { %1594 = vst.msk [vmem:[%s3044_s4 + $0x30] sm:$0xff] %vm1587_vm1, %v1529_v50  ;;  %v1530_v15 = vadd.f32 %v2589_v1, %v1459_v54 }
 0x164   :  { %1592 = vst.msk [vmem:[%s3044_s4 + $0x20] sm:$0xff] %vm1587_vm1, %v1527_v58  ;;  %v1528_v7 = vadd.f32 %v2589_v1, %v1457_v3  ;;  %v2644_v61 = vpop.f32.mrb[40].mxu0  ;;  %v1852_v62 = vpop.f32.mrb[40].mxu1 }
 0x165   :  { %1595 = vst.msk [vmem:[%s3044_s4 + $0x38] sm:$0xff] %vm1587_vm1, %v1530_v15  ;;  %v1231_v2 = vadd.f32 %v1852_v62, %v2555_v27  ;;  %v983_v6 = vpop.f32.mrb[41].mxu0  ;;  %v1222_v9 = vpop.f32.mrb[41].mxu1 }
 0x166   :  { %1593 = vst.msk [vmem:[%s3044_s4 + $0x28] sm:$0xff] %vm1587_vm1, %v1528_v7  ;;  %v1223_v10 = vadd.f32 %v1222_v9, %v2547_v19  ;;  %v2656_v13 = vpop.f32.mrb[42].mxu0  ;;  %v1853_v14 = vpop.f32.mrb[42].mxu1 }
 0x167   :  { %v1462_v59 = vmul.f32 %v2584_v57, %v1231_v2  ;;  %v1234_v17 = vadd.f32 %v1853_v14, %v2559_v31  ;;  %v986_v18 = vpop.f32.mrb[43].mxu0  ;;  %v1225_v21 = vpop.f32.mrb[43].mxu1 }
 0x168   :  { %v1460_v27 = vmul.f32 %v2584_v57, %v1223_v10  ;;  %v1226_v51 = vadd.f32 %v1225_v21, %v2551_v23 }
 0x169   :  { %v1533_v22 = vadd.f32 %v2589_v1, %v1462_v59  ;;  %v1463_v63 = vmul.f32 %v2584_v57, %v1234_v17 }
 0x16a   :  { %v1531_v55 = vadd.f32 %v2589_v1, %v1460_v27  ;;  %v1461_v19 = vmul.f32 %v2584_v57, %v1226_v51 }
 0x16b   :  { %1598 = vst.msk [vmem:[%s3044_s4 + $0x50] sm:$0xff] %vm1587_vm1, %v1533_v22  ;;  %v1534_v31 = vadd.f32 %v2589_v1, %v1463_v63 }
 0x16c   :  { %1596 = vst.msk [vmem:[%s3044_s4 + $0x40] sm:$0xff] %vm1587_vm1, %v1531_v55  ;;  %v1532_v23 = vadd.f32 %v2589_v1, %v1461_v19  ;;  %v989_v26 = vpop.f32.mrb[44].mxu0  ;;  %v1856_v29 = vpop.f32.mrb[44].mxu1 }
 0x16d   :  { %1599 = vst.msk [vmem:[%s3044_s4 + $0x58] sm:$0xff] %vm1587_vm1, %v1534_v31  ;;  %v1247_v30 = vadd.f32 %v1856_v29, %v2571_v43  ;;  %v991_v33 = vpop.f32.mrb[45].mxu0  ;;  %v1238_v34 = vpop.f32.mrb[45].mxu1 }
 0x16e   :  { %1597 = vst.msk [vmem:[%s3044_s4 + $0x48] sm:$0xff] %vm1587_vm1, %v1532_v23  ;;  %v1239_v38 = vadd.f32 %v1238_v34, %v2563_v35  ;;  %v992_v41 = vpop.f32.mrb[46].mxu0  ;;  %v1857_v42 = vpop.f32.mrb[46].mxu1 }
 0x16f   :  { %v1466_v45 = vmul.f32 %v2584_v57, %v1247_v30  ;;  %v1250_v46 = vadd.f32 %v1857_v42, %v2575_v47  ;;  %v994_v11 = vpop.f32.mrb[47].mxu0  ;;  %v1241_v49 = vpop.f32.mrb[47].mxu1 }
 0x170   :  { %v1464_v50 = vmul.f32 %v2584_v57, %v1239_v38  ;;  %v1242_v43 = vadd.f32 %v1241_v49, %v2567_v39 }
 0x171   :  { %v1537_v54 = vadd.f32 %v2589_v1, %v1466_v45  ;;  %v1467_v58 = vmul.f32 %v2584_v57, %v1250_v46 }
 0x172   :  { %v1535_v3 = vadd.f32 %v2589_v1, %v1464_v50  ;;  %v1465_v35 = vmul.f32 %v2584_v57, %v1242_v43 }
 0x173   :  { %1602 = vst.msk [vmem:[%s3044_s4 + $0x70] sm:$0xff] %vm1587_vm1, %v1537_v54  ;;  %v1538_v47 = vadd.f32 %v2589_v1, %v1467_v58 }
 0x174   :  { %1600 = vst.msk [vmem:[%s3044_s4 + $0x60] sm:$0xff] %vm1587_vm1, %v1535_v3  ;;  %v1536_v39 = vadd.f32 %v2589_v1, %v1465_v35  ;;  %v997_v15 = vpop.f32.mrb[48].mxu0  ;;  %v1860_v7 = vpop.f32.mrb[48].mxu1 }
 0x175   :  { %1603 = vst.msk [vmem:[%s3044_s4 + $0x78] sm:$0xff] %vm1587_vm1, %v1538_v47  ;;  %v1263_v62 = vadd.f32 %v1860_v7, %v2612_v25  ;;  %v999_v2 = vpop.f32.mrb[49].mxu0  ;;  %v1254_v6 = vpop.f32.mrb[49].mxu1 }
 0x176   :  { %1601 = vst.msk [vmem:[%s3044_s4 + $0x68] sm:$0xff] %vm1587_vm1, %v1536_v39  ;;  %v1255_v9 = vadd.f32 %v1254_v6, %v2579_v53  ;;  %v1000_v10 = vpop.f32.mrb[50].mxu0  ;;  %v1861_v14 = vpop.f32.mrb[50].mxu1 }
 0x177   :  { %v1470_v59 = vmul.f32 %v2584_v57, %v1263_v62  ;;  %v1266_v17 = vadd.f32 %v1861_v14, %v2624_v37  ;;  %v1002_v18 = vpop.f32.mrb[51].mxu0  ;;  %v1257_v21 = vpop.f32.mrb[51].mxu1 }
 0x178   :  { %v1468_v27 = vmul.f32 %v2584_v57, %v1255_v9  ;;  %v1258_v25 = vadd.f32 %v1257_v21, %v2592_v5 }
 0x179   :  { %v1541_v51 = vadd.f32 %v2589_v1, %v1470_v59  ;;  %v1471_v22 = vmul.f32 %v2584_v57, %v1266_v17 }
 0x17a   :  { %v1539_v63 = vadd.f32 %v2589_v1, %v1468_v27  ;;  %v1469_v53 = vmul.f32 %v2584_v57, %v1258_v25 }
 0x17b   :  { %1606 = vst.msk [vmem:[%s3044_s4 + $0x90] sm:$0xff] %vm1587_vm1, %v1541_v51  ;;  %v1542_v37 = vadd.f32 %v2589_v1, %v1471_v22 }
 0x17c   :  { %1604 = vst.msk [vmem:[%s3044_s4 + $0x80] sm:$0xff] %vm1587_vm1, %v1539_v63  ;;  %v1540_v5 = vadd.f32 %v2589_v1, %v1469_v53  ;;  %v1005_v55 = vpop.f32.mrb[52].mxu0  ;;  %v1864_v19 = vpop.f32.mrb[52].mxu1 }
 0x17d   :  { %1607 = vst.msk [vmem:[%s3044_s4 + $0x98] sm:$0xff] %vm1587_vm1, %v1542_v37  ;;  %v1279_v31 = vadd.f32 %v1864_v19, %v989_v26  ;;  %v1007_v23 = vpop.f32.mrb[53].mxu0  ;;  %v1270_v29 = vpop.f32.mrb[53].mxu1 }
 0x17e   :  { %1605 = vst.msk [vmem:[%s3044_s4 + $0x88] sm:$0xff] %vm1587_vm1, %v1540_v5  ;;  %v1271_v30 = vadd.f32 %v1270_v29, %v2644_v61  ;;  %v1008_v33 = vpop.f32.mrb[54].mxu0  ;;  %v1865_v34 = vpop.f32.mrb[54].mxu1 }
 0x17f   :  { %v1474_v38 = vmul.f32 %v2584_v57, %v1279_v31  ;;  %v1282_v42 = vadd.f32 %v1865_v34, %v992_v41  ;;  %v1010_v45 = vpop.f32.mrb[55].mxu0  ;;  %v1273_v46 = vpop.f32.mrb[55].mxu1 }
 0x180   :  { %v1472_v11 = vmul.f32 %v2584_v57, %v1271_v30  ;;  %v1274_v26 = vadd.f32 %v1273_v46, %v2656_v13 }
 0x181   :  { %v1545_v49 = vadd.f32 %v2589_v1, %v1474_v38  ;;  %v1475_v50 = vmul.f32 %v2584_v57, %v1282_v42 }
 0x182   :  { %v1543_v43 = vadd.f32 %v2589_v1, %v1472_v11  ;;  %v1473_v54 = vmul.f32 %v2584_v57, %v1274_v26 }
 0x183   :  { %1610 = vst.msk [vmem:[%s3044_s4 + $0xb0] sm:$0xff] %vm1587_vm1, %v1545_v49  ;;  %v1546_v61 = vadd.f32 %v2589_v1, %v1475_v50 }
 0x184   :  { %1608 = vst.msk [vmem:[%s3044_s4 + $0xa0] sm:$0xff] %vm1587_vm1, %v1543_v43  ;;  %v1544_v13 = vadd.f32 %v2589_v1, %v1473_v54  ;;  %v1013_v41 = vpop.f32.mrb[56].mxu0  ;;  %v1868_v58 = vpop.f32.mrb[56].mxu1 }
 0x185   :  { %1611 = vst.msk [vmem:[%s3044_s4 + $0xb8] sm:$0xff] %vm1587_vm1, %v1546_v61  ;;  %v1295_v3 = vadd.f32 %v1868_v58, %v1005_v55  ;;  %v1015_v35 = vpop.f32.mrb[57].mxu0  ;;  %v1286_v47 = vpop.f32.mrb[57].mxu1 }
 0x186   :  { %1609 = vst.msk [vmem:[%s3044_s4 + $0xa8] sm:$0xff] %vm1587_vm1, %v1544_v13  ;;  %v1287_v39 = vadd.f32 %v1286_v47, %v997_v15  ;;  %v1016_v7 = vpop.f32.mrb[58].mxu0  ;;  %v1869_v62 = vpop.f32.mrb[58].mxu1 }
 0x187   :  { %v1478_v2 = vmul.f32 %v2584_v57, %v1295_v3  ;;  %v1298_v6 = vadd.f32 %v1869_v62, %v1008_v33  ;;  %v1018_v9 = vpop.f32.mrb[59].mxu0  ;;  %v1289_v14 = vpop.f32.mrb[59].mxu1 }
 0x188   :  { %v1476_v59 = vmul.f32 %v2584_v57, %v1287_v39  ;;  %v1290_v17 = vadd.f32 %v1289_v14, %v1000_v10 }
 0x189   :  { %v1549_v18 = vadd.f32 %v2589_v1, %v1478_v2  ;;  %v1479_v21 = vmul.f32 %v2584_v57, %v1298_v6 }
 0x18a   :  { %v1547_v27 = vadd.f32 %v2589_v1, %v1476_v59  ;;  %v1477_v25 = vmul.f32 %v2584_v57, %v1290_v17 }
 0x18b   :  { %1614 = vst.msk [vmem:[%s3044_s4 + $0xd0] sm:$0xff] %vm1587_vm1, %v1549_v18  ;;  %v1550_v15 = vadd.f32 %v2589_v1, %v1479_v21 }
 0x18c   :  { %1612 = vst.msk [vmem:[%s3044_s4 + $0xc0] sm:$0xff] %vm1587_vm1, %v1547_v27  ;;  %v1548_v10 = vadd.f32 %v2589_v1, %v1477_v25  ;;  %v1021_v51 = vpop.f32.mrb[60].mxu0  ;;  %v1872_v22 = vpop.f32.mrb[60].mxu1 }
 0x18d   :  { %1615 = vst.msk [vmem:[%s3044_s4 + $0xd8] sm:$0xff] %vm1587_vm1, %v1550_v15  ;;  %v1311_v63 = vadd.f32 %v1872_v22, %v1021_v51  ;;  %v1023_v53 = vpop.f32.mrb[61].mxu0  ;;  %v1302_v37 = vpop.f32.mrb[61].mxu1 }
 0x18e   :  { %1613 = vst.msk [vmem:[%s3044_s4 + $0xc8] sm:$0xff] %vm1587_vm1, %v1548_v10  ;;  %v1303_v5 = vadd.f32 %v1302_v37, %v1013_v41  ;;  %v1024_v55 = vpop.f32.mrb[62].mxu0  ;;  %v1873_v19 = vpop.f32.mrb[62].mxu1 }
 0x18f   :  { %v1482_v31 = vmul.f32 %v2584_v57, %v1311_v63  ;;  %v1314_v23 = vadd.f32 %v1873_v19, %v1024_v55  ;;  %v1026_v29 = vpop.f32.mrb[63].mxu0  ;;  %v1305_v30 = vpop.f32.mrb[63].mxu1 }
 0x190   :  { %v1480_v33 = vmul.f32 %v2584_v57, %v1303_v5  ;;  %v1306_v34 = vadd.f32 %v1305_v30, %v1016_v7 }
 0x191   :  { %v1553_v38 = vadd.f32 %v2589_v1, %v1482_v31  ;;  %v1483_v42 = vmul.f32 %v2584_v57, %v1314_v23 }
 0x192   :  { %v1551_v45 = vadd.f32 %v2589_v1, %v1480_v33  ;;  %v1481_v46 = vmul.f32 %v2584_v57, %v1306_v34 }
 0x193   :  { %1618 = vst.msk [vmem:[%s3044_s4 + $0xf0] sm:$0xff] %vm1587_vm1, %v1553_v38  ;;  %v1554_v11 = vadd.f32 %v2589_v1, %v1483_v42 }
 0x194   :  { %1616 = vst.msk [vmem:[%s3044_s4 + $0xe0] sm:$0xff] %vm1587_vm1, %v1551_v45  ;;  %v1552_v26 = vadd.f32 %v2589_v1, %v1481_v46  ;;  %v1029_v49 = vpop.f32.mrb[64].mxu0  ;;  %v1876_v50 = vpop.f32.mrb[64].mxu1 }
 0x195   :  { %1619 = vst.msk [vmem:[%s3044_s4 + $0xf8] sm:$0xff] %vm1587_vm1, %v1554_v11  ;;  %v1031_v43 = vpop.f32.mrb[65].mxu0  ;;  %v1318_v54 = vpop.f32.mrb[65].mxu1 }
 0x196   :  { %1617 = vst.msk [vmem:[%s3044_s4 + $0xe8] sm:$0xff] %vm1587_vm1, %v1552_v26  ;;  %v1319_v61 = vadd.f32 %v1318_v54, %v1029_v49  ;;  %v1032_v13 = vpop.f32.mrb[66].mxu0  ;;  %v1877_v41 = vpop.f32.mrb[66].mxu1 }
 0x197   :  { %v1034_v58 = vpop.f32.mrb[67].mxu0  ;;  %v1321_v3 = vpop.f32.mrb[67].mxu1 }
 0x198   :  { %v1484_v35 = vmul.f32 %v2584_v57, %v1319_v61  ;;  %v1322_v47 = vadd.f32 %v1321_v3, %v1032_v13 }
 0x19a   :  { %v1555_v39 = vadd.f32 %v2589_v1, %v1484_v35  ;;  %v1485_v7 = vmul.f32 %v2584_v57, %v1322_v47 }
 0x19c   :  { %1620 = vst.msk [vmem:[%s3044_s4 + $0x100] sm:$0xff] %vm1587_vm1, %v1555_v39  ;;  %v1556_v62 = vadd.f32 %v2589_v1, %v1485_v7  ;;  %v1037_v2 = vpop.f32.mrb[68].mxu0  ;;  %v1880_v6 = vpop.f32.mrb[68].mxu1 }
 0x19d   :  { %v1327_v9 = vadd.f32 %v1876_v50, %v1037_v2  ;;  %v1039_v14 = vpop.f32.mrb[69].mxu0  ;;  %v1334_v59 = vpop.f32.mrb[69].mxu1 }
 0x19e   :  { %1621 = vst.msk [vmem:[%s3044_s4 + $0x108] sm:$0xff] %vm1587_vm1, %v1556_v62  ;;  %v1040_v17 = vpop.f32.mrb[70].mxu0  ;;  %v1881_v18 = vpop.f32.mrb[70].mxu1 }
 0x19f   :  { %v1486_v21 = vmul.f32 %v2584_v57, %v1327_v9  ;;  %v1330_v27 = vadd.f32 %v1877_v41, %v1040_v17  ;;  %v1042_v25 = vpop.f32.mrb[71].mxu0  ;;  %v1337_v15 = vpop.f32.mrb[71].mxu1 }
 0x1a1   :  { %v1557_v10 = vadd.f32 %v2589_v1, %v1486_v21  ;;  %v1487_v51 = vmul.f32 %v2584_v57, %v1330_v27 }
 0x1a3   :  { %1622 = vst.msk [vmem:[%s3044_s4 + $0x110] sm:$0xff] %vm1587_vm1, %v1557_v10  ;;  %v1558_v22 = vadd.f32 %v2589_v1, %v1487_v51 }
 0x1a4   :  { %v1045_v63 = vpop.f32.mrb[72].mxu0  ;;  %v2834_v53 = vpop.f32.mrb[72].mxu1 }
 0x1a5   :  { %1623 = vst.msk [vmem:[%s3044_s4 + $0x118] sm:$0xff] %vm1587_vm1, %v1558_v22  ;;  %v1335_v37 = vadd.f32 %v1334_v59, %v1045_v63  ;;  %v1047_v5 = vpop.f32.mrb[73].mxu0  ;;  %v1350_v55 = vpop.f32.mrb[73].mxu1 }
 0x1a6   :  { %v1048_v19 = vpop.f32.mrb[74].mxu0  ;;  %v2840_v31 = vpop.f32.mrb[74].mxu1 }
 0x1a7   :  { %v1488_v23 = vmul.f32 %v2584_v57, %v1335_v37  ;;  %v1338_v29 = vadd.f32 %v1337_v15, %v1048_v19  ;;  %v1050_v30 = vpop.f32.mrb[75].mxu0  ;;  %v1353_v33 = vpop.f32.mrb[75].mxu1 }
 0x1a9   :  { %v1559_v34 = vadd.f32 %v2589_v1, %v1488_v23  ;;  %v1489_v38 = vmul.f32 %v2584_v57, %v1338_v29 }
 0x1ab   :  { %1624 = vst.msk [vmem:[%s3044_s4 + $0x120] sm:$0xff] %vm1587_vm1, %v1559_v34  ;;  %v1560_v42 = vadd.f32 %v2589_v1, %v1489_v38 }
 0x1ac   :  { %v1053_v45 = vpop.f32.mrb[76].mxu0  ;;  %v2850_v46 = vpop.f32.mrb[76].mxu1 }
 0x1ad   :  { %1625 = vst.msk [vmem:[%s3044_s4 + $0x128] sm:$0xff] %vm1587_vm1, %v1560_v42  ;;  %v1343_v11 = vadd.f32 %v1880_v6, %v1053_v45  ;;  %v1055_v26 = vpop.f32.mrb[77].mxu0  ;;  %v2856_v49 = vpop.f32.mrb[77].mxu1 }
 0x1ae   :  { %v1056_v50 = vpop.f32.mrb[78].mxu0  ;;  %v2858_v43 = vpop.f32.mrb[78].mxu1 }
 0x1af   :  { %v1490_v54 = vmul.f32 %v2584_v57, %v1343_v11  ;;  %v1346_v61 = vadd.f32 %v1881_v18, %v1056_v50  ;;  %v1058_v13 = vpop.f32.mrb[79].mxu0  ;;  %v2861_v41 = vpop.f32.mrb[79].mxu1 }
 0x1b1   :  { %v1561_v58 = vadd.f32 %v2589_v1, %v1490_v54  ;;  %v1491_v3 = vmul.f32 %v2584_v57, %v1346_v61 }
 0x1b3   :  { %1626 = vst.msk [vmem:[%s3044_s4 + $0x130] sm:$0xff] %vm1587_vm1, %v1561_v58  ;;  %v1562_v35 = vadd.f32 %v2589_v1, %v1491_v3 }
 0x1b4   :  { %v1061_v47 = vpop.f32.mrb[80].mxu0  ;;  %v1892_v39 = vpop.f32.mrb[80].mxu1 }
 0x1b5   :  { %1627 = vst.msk [vmem:[%s3044_s4 + $0x138] sm:$0xff] %vm1587_vm1, %v1562_v35  ;;  %v1351_v7 = vadd.f32 %v1350_v55, %v1061_v47  ;;  %v1391_v62 = vadd.f32 %v1892_v39, %v2525_v60  ;;  %v1063_v2 = vpop.f32.mrb[81].mxu0  ;;  %v1382_v6 = vpop.f32.mrb[81].mxu1 }
 0x1b6   :  { %v1383_v9 = vadd.f32 %v1382_v6, %v2519_v52  ;;  %v1064_v14 = vpop.f32.mrb[82].mxu0  ;;  %v1893_v59 = vpop.f32.mrb[82].mxu1 }
 0x1b7   :  { %v1492_v17 = vmul.f32 %v2584_v57, %v1351_v7  ;;  %v1502_v18 = vmul.f32 %v2584_v57, %v1391_v62  ;;  %v1354_v21 = vadd.f32 %v1353_v33, %v1064_v14  ;;  %v1394_v27 = vadd.f32 %v1893_v59, %v2529_v0  ;;  %v1066_v25 = vpop.f32.mrb[83].mxu0  ;;  %v1385_v15 = vpop.f32.mrb[83].mxu1 }
 0x1b8   :  { %v1500_v10 = vmul.f32 %v2584_v57, %v1383_v9  ;;  %v1386_v51 = vadd.f32 %v1385_v15, %v2523_v56 }
 0x1b9   :  { %v1563_v60 = vadd.f32 %v2589_v1, %v1492_v17  ;;  %v1573_v22 = vadd.f32 %v2589_v1, %v1502_v18  ;;  %v1493_v52 = vmul.f32 %v2584_v57, %v1354_v21  ;;  %v1503_v63 = vmul.f32 %v2584_v57, %v1394_v27 }
 0x1ba   :  { %v1571_v37 = vadd.f32 %v2589_v1, %v1500_v10  ;;  %v1501_v5 = vmul.f32 %v2584_v57, %v1386_v51 }
 0x1bb   :  { %1628 = vst.msk [vmem:[%s3044_s4 + $0x140] sm:$0xff] %vm1587_vm1, %v1563_v60  ;;  %1638 = vst.msk [vmem:[%s3044_s4 + $0x190] sm:$0xff] %vm1587_vm1, %v1573_v22  ;;  %v1564_v56 = vadd.f32 %v2589_v1, %v1493_v52  ;;  %v1574_v0 = vadd.f32 %v2589_v1, %v1503_v63 }
 0x1bc   :  { %1636 = vst.msk [vmem:[%s3044_s4 + $0x180] sm:$0xff] %vm1587_vm1, %v1571_v37  ;;  %v1572_v55 = vadd.f32 %v2589_v1, %v1501_v5  ;;  %v1069_v19 = vpop.f32.mrb[84].mxu0  ;;  %v1896_v23 = vpop.f32.mrb[84].mxu1 }
 0x1bd   :  { %1629 = vst.msk [vmem:[%s3044_s4 + $0x148] sm:$0xff] %vm1587_vm1, %v1564_v56  ;;  %1639 = vst.msk [vmem:[%s3044_s4 + $0x198] sm:$0xff] %vm1587_vm1, %v1574_v0  ;;  %v1359_v29 = vadd.f32 %v2834_v53, %v1069_v19  ;;  %v1407_v30 = vadd.f32 %v1896_v23, %v2541_v12  ;;  %v1071_v33 = vpop.f32.mrb[85].mxu0  ;;  %v1398_v34 = vpop.f32.mrb[85].mxu1 }
 0x1be   :  { %1637 = vst.msk [vmem:[%s3044_s4 + $0x188] sm:$0xff] %vm1587_vm1, %v1572_v55  ;;  %v1399_v38 = vadd.f32 %v1398_v34, %v2533_v4  ;;  %v1072_v42 = vpop.f32.mrb[86].mxu0  ;;  %v1897_v45 = vpop.f32.mrb[86].mxu1 }
 0x1bf   :  { %v1494_v11 = vmul.f32 %v2584_v57, %v1359_v29  ;;  %v1506_v26 = vmul.f32 %v2584_v57, %v1407_v30  ;;  %v1362_v50 = vadd.f32 %v2840_v31, %v1072_v42  ;;  %v1410_v53 = vadd.f32 %v1897_v45, %v2545_v16  ;;  %v1074_v12 = vpop.f32.mrb[87].mxu0  ;;  %v1401_v54 = vpop.f32.mrb[87].mxu1 }
 0x1c0   :  { %v1504_v61 = vmul.f32 %v2584_v57, %v1399_v38  ;;  %v1402_v13 = vadd.f32 %v1401_v54, %v2537_v8 }
 0x1c1   :  { %v1565_v58 = vadd.f32 %v2589_v1, %v1494_v11  ;;  %v1577_v4 = vadd.f32 %v2589_v1, %v1506_v26  ;;  %v1495_v3 = vmul.f32 %v2584_v57, %v1362_v50  ;;  %v1507_v35 = vmul.f32 %v2584_v57, %v1410_v53 }
 0x1c2   :  { %v1575_v47 = vadd.f32 %v2589_v1, %v1504_v61  ;;  %v1505_v31 = vmul.f32 %v2584_v57, %v1402_v13 }
 0x1c3   :  { %1630 = vst.msk [vmem:[%s3044_s4 + $0x150] sm:$0xff] %vm1587_vm1, %v1565_v58  ;;  %1642 = vst.msk [vmem:[%s3044_s4 + $0x1b0] sm:$0xff] %vm1587_vm1, %v1577_v4  ;;  %v1566_v8 = vadd.f32 %v2589_v1, %v1495_v3  ;;  %v1578_v16 = vadd.f32 %v2589_v1, %v1507_v35 }
 0x1c4   :  { %1640 = vst.msk [vmem:[%s3044_s4 + $0x1a0] sm:$0xff] %vm1587_vm1, %v1575_v47  ;;  %v1576_v39 = vadd.f32 %v2589_v1, %v1505_v31  ;;  %v1077_v7 = vpop.f32.mrb[88].mxu0  ;;  %v1900_v62 = vpop.f32.mrb[88].mxu1 }
 0x1c5   :  { %1631 = vst.msk [vmem:[%s3044_s4 + $0x158] sm:$0xff] %vm1587_vm1, %v1566_v8  ;;  %1643 = vst.msk [vmem:[%s3044_s4 + $0x1b8] sm:$0xff] %vm1587_vm1, %v1578_v16  ;;  %v1367_v2 = vadd.f32 %v2856_v49, %v1077_v7  ;;  %v1423_v6 = vadd.f32 %v1900_v62, %v2557_v28  ;;  %v1079_v9 = vpop.f32.mrb[89].mxu0  ;;  %v1414_v14 = vpop.f32.mrb[89].mxu1 }
 0x1c6   :  { %1641 = vst.msk [vmem:[%s3044_s4 + $0x1a8] sm:$0xff] %vm1587_vm1, %v1576_v39  ;;  %v1415_v59 = vadd.f32 %v1414_v14, %v2549_v20  ;;  %v1080_v17 = vpop.f32.mrb[90].mxu0  ;;  %v1901_v18 = vpop.f32.mrb[90].mxu1 }
 0x1c7   :  { %v1496_v21 = vmul.f32 %v2584_v57, %v1367_v2  ;;  %v1510_v27 = vmul.f32 %v2584_v57, %v1423_v6  ;;  %v1370_v25 = vadd.f32 %v2861_v41, %v1080_v17  ;;  %v1426_v49 = vadd.f32 %v1901_v18, %v2561_v32  ;;  %v1082_v28 = vpop.f32.mrb[91].mxu0  ;;  %v1417_v15 = vpop.f32.mrb[91].mxu1 }
 0x1c8   :  { %v1508_v10 = vmul.f32 %v2584_v57, %v1415_v59  ;;  %v1418_v51 = vadd.f32 %v1417_v15, %v2553_v24 }
 0x1c9   :  { %v1567_v60 = vadd.f32 %v2589_v1, %v1496_v21  ;;  %v1581_v20 = vadd.f32 %v2589_v1, %v1510_v27  ;;  %v1497_v22 = vmul.f32 %v2584_v57, %v1370_v25  ;;  %v1511_v52 = vmul.f32 %v2584_v57, %v1426_v49 }
 0x1ca   :  { %v1579_v63 = vadd.f32 %v2589_v1, %v1508_v10  ;;  %v1509_v41 = vmul.f32 %v2584_v57, %v1418_v51 }
 0x1cb   :  { %1632 = vst.msk [vmem:[%s3044_s4 + $0x160] sm:$0xff] %vm1587_vm1, %v1567_v60  ;;  %1646 = vst.msk [vmem:[%s3044_s4 + $0x1d0] sm:$0xff] %vm1587_vm1, %v1581_v20  ;;  %v1568_v24 = vadd.f32 %v2589_v1, %v1497_v22  ;;  %v1582_v32 = vadd.f32 %v2589_v1, %v1511_v52 }
 0x1cc   :  { %1644 = vst.msk [vmem:[%s3044_s4 + $0x1c0] sm:$0xff] %vm1587_vm1, %v1579_v63  ;;  %v1580_v37 = vadd.f32 %v2589_v1, %v1509_v41  ;;  %v1085_v5 = vpop.f32.mrb[92].mxu0  ;;  %v1904_v56 = vpop.f32.mrb[92].mxu1 }
 0x1cd   :  { %1633 = vst.msk [vmem:[%s3044_s4 + $0x168] sm:$0xff] %vm1587_vm1, %v1568_v24  ;;  %1647 = vst.msk [vmem:[%s3044_s4 + $0x1d8] sm:$0xff] %vm1587_vm1, %v1582_v32  ;;  %v1375_v0 = vadd.f32 %v2850_v46, %v1085_v5  ;;  %v1439_v55 = vadd.f32 %v1904_v56, %v2573_v44  ;;  %v1087_v19 = vpop.f32.mrb[93].mxu0  ;;  %v1430_v23 = vpop.f32.mrb[93].mxu1 }
 0x1ce   :  { %1645 = vst.msk [vmem:[%s3044_s4 + $0x1c8] sm:$0xff] %vm1587_vm1, %v1580_v37  ;;  %v1431_v29 = vadd.f32 %v1430_v23, %v2565_v36  ;;  %v1088_v30 = vpop.f32.mrb[94].mxu0  ;;  %v1905_v33 = vpop.f32.mrb[94].mxu1 }
 0x1cf   :  { %v1498_v34 = vmul.f32 %v2584_v57, %v1375_v0  ;;  %v1514_v38 = vmul.f32 %v2584_v57, %v1439_v55  ;;  %v1378_v42 = vadd.f32 %v2858_v43, %v1088_v30  ;;  %v1442_v46 = vadd.f32 %v1905_v33, %v2577_v48  ;;  %v1090_v44 = vpop.f32.mrb[95].mxu0  ;;  %v1433_v45 = vpop.f32.mrb[95].mxu1 }
 0x1d0   :  { %v1512_v11 = vmul.f32 %v2584_v57, %v1431_v29  ;;  %v1434_v26 = vadd.f32 %v1433_v45, %v2569_v40 }
 0x1d1   :  { %v1569_v50 = vadd.f32 %v2589_v1, %v1498_v34  ;;  %v1585_v36 = vadd.f32 %v2589_v1, %v1514_v38  ;;  %v1499_v53 = vmul.f32 %v2584_v57, %v1378_v42  ;;  %v1515_v12 = vmul.f32 %v2584_v57, %v1442_v46 }
 0x1d2   :  { %v1583_v54 = vadd.f32 %v2589_v1, %v1512_v11  ;;  %v1513_v43 = vmul.f32 %v2584_v57, %v1434_v26 }
 0x1d3   :  { %1634 = vst.msk [vmem:[%s3044_s4 + $0x170] sm:$0xff] %vm1587_vm1, %v1569_v50  ;;  %1650 = vst.msk [vmem:[%s3044_s4 + $0x1f0] sm:$0xff] %vm1587_vm1, %v1585_v36  ;;  %v1570_v40 = vadd.f32 %v2589_v1, %v1499_v53  ;;  %v1586_v48 = vadd.f32 %v2589_v1, %v1515_v12 }
 0x1d4   :  { %1648 = vst.msk [vmem:[%s3044_s4 + $0x1e0] sm:$0xff] %vm1587_vm1, %v1583_v54  ;;  %v1584_v57 = vadd.f32 %v2589_v1, %v1513_v43 }
 0x1d5   :  { %1635 = vst.msk [vmem:[%s3044_s4 + $0x178] sm:$0xff] %vm1587_vm1, %v1570_v40  ;;  %1651 = vst.msk [vmem:[%s3044_s4 + $0x1f8] sm:$0xff] %vm1587_vm1, %v1586_v48 }
 0x1d6   :  { %1649 = vst.msk [vmem:[%s3044_s4 + $0x1e8] sm:$0xff] %vm1587_vm1, %v1584_v57 }

// kernel: _forward_jit.221
= control target key start
LH: loop header
LB: loop body
LE: loop exit
PB: predicated region body
PF: predicated region fallthrough
CT: control target
= control target key end

     0   :  { %s86_s2 = inlined_call_operand.vmem [shape: f32[8,128], index: 2, kind: input, shape index: {}]   ;;  %s87_s3 = inlined_call_operand.vmem [shape: f32[8,128], index: 3, kind: input, shape index: {}]   ;;  %s88_s0 = inlined_call_operand.vmem [shape: f32[8,128], index: 0, kind: input, shape index: {}]   ;;  %s89_s1 = inlined_call_operand.vmem [shape: f32[8,128], index: 1, kind: input, shape index: {}]   ;;  %s90_s4 = inlined_call_operand.vmem [shape: f32[8,128], index: 4, kind: output, shape index: {}]  }
   0x1   :  { %v17_v0 = vld [vmem:[%s86_s2] sm:$0xff] }
   0x2   :  { %v18_v1 = vld [vmem:[%s87_s3] sm:$0xff] }
   0x3   :  { %v19_v2 = vmax.f32 %v17_v0, %v18_v1  ;;  %v29_v11 = vld [vmem:[%s88_s0] sm:$0xff] }
   0x4   :  { %v32_v12 = vld [vmem:[%s89_s1] sm:$0xff] }
   0x5   :  { %v20_v3 = vsub.f32 %v17_v0, %v19_v2  ;;  %v23_v4 = vsub.f32 %v18_v1, %v19_v2 }
   0x7   :  { %v21_v5 = vmul.f32 1.442695, %v20_v3  ;;  %v24_v6 = vmul.f32 1.442695, %v23_v4 }
   0x9   :  { %40 = vpow2.f32 %v21_v5 }
   0xa   :  { %42 = vpow2.f32 %v24_v6 }
  0x13   :  { %v41_v7 = vpop.eup %40 }
  0x14   :  { %v43_v8 = vpop.eup %42 }
  0x15   :  { %v26_v9 = vadd.f32 %v43_v8, %v41_v7 }
  0x17   :  { %44 = vrcp.f32 %v26_v9 }
  0x21   :  { %v45_v10 = vpop.eup %44 }
  0x22   :  { %v28_v13 = vmul.f32 %v45_v10, %v43_v8  ;;  %v31_v14 = vmul.f32 %v45_v10, %v41_v7 }
  0x24   :  { %v30_v15 = vmul.f32 %v29_v11, %v28_v13  ;;  %v33_v16 = vmul.f32 %v32_v12, %v31_v14 }
  0x26   :  { %v34_v17 = vadd.f32 %v33_v16, %v30_v15 }
  0x28   :  { %35 = vst [vmem:[%s90_s4] sm:$0xff] %v34_v17 }

</bundles_post_ra>
